<compile_context>
chip_gen: v7x
topology: tpu7x:2x2x1
jax: 0.10.0
libtpu: 0.0.40
codegen_flags: <defaults>
</compile_context>

<pallas_src>
import functools

import jax
import jax.numpy as jnp
from jax.experimental import pallas as pl
from jax.experimental.pallas import tpu as pltpu

# ----------------------------- model config ---------------------------------
HID_DIM = 32
N_HEADS = 4
HEAD_DIM = HID_DIM // N_HEADS
PF_DIM = 64
N_LAYERS = 2
SRC_VOCAB = 16
TRG_VOCAB = 16
VOCAB_PAD = 128          # lane-dense padding of the output projection
MAX_LEN = 16
SRC_PAD_IDX = 0
TRG_PAD_IDX = 0
LN_EPS = 1e-5
NEG_INF = -1e10


# ----------------------------- fused Pallas kernel ---------------------------
def _forward_kernel(*refs, B, Ls, Lt):
    (src_x_ref, trg_x_ref, enc_bias_ref, self_bias_ref, cross_bias_ref,
     e_qkv_w, e_qkv_b, e_o_w, e_o_b, e_ln1_g, e_ln1_b,
     e_f1_w, e_f1_b, e_f2_w, e_f2_b, e_ln2_g, e_ln2_b,
     d_sa_qkv_w, d_sa_qkv_b, d_sa_o_w, d_sa_o_b, d_ln1_g, d_ln1_b,
     d_ca_q_w, d_ca_q_b, d_ca_kv_w, d_ca_kv_b, d_ca_o_w, d_ca_o_b,
     d_ln2_g, d_ln2_b, d_f1_w, d_f1_b, d_f2_w, d_f2_b, d_ln3_g, d_ln3_b,
     out_w, out_b,
     logits_ref, attn_ref) = refs

    H = HID_DIM

    def ln(x, g, b):
        mu = jnp.mean(x, axis=-1, keepdims=True)
        d = x - mu
        var = jnp.mean(d * d, axis=-1, keepdims=True)
        return d * jax.lax.rsqrt(var + jnp.float32(LN_EPS)) * g + b

    def matmul(x, w, b):
        return jnp.dot(x, w, preferred_element_type=jnp.float32) + b

    inv_scale = jnp.float32(1.0 / (HEAD_DIM ** 0.5))

    def attend(q2d, k2d, v2d, bias, Lq, Lk, attn_sink=None):
        """q2d: [B*Lq, H], k2d/v2d: [B*Lk, H], bias: [B, Lq, Lk] additive.
        Returns context [B*Lq, H]; optionally writes per-head attention weights."""
        ctx_heads = []
        for h in range(N_HEADS):
            sl = slice(h * HEAD_DIM, (h + 1) * HEAD_DIM)
            qh = q2d[:, sl].reshape(B, Lq, HEAD_DIM)
            kh = k2d[:, sl].reshape(B, Lk, HEAD_DIM)
            vh = v2d[:, sl].reshape(B, Lk, HEAD_DIM)
            en = jnp.einsum("bqd,bkd->bqk", qh, kh,
                            preferred_element_type=jnp.float32) * inv_scale + bias
            en = en - jnp.max(en, axis=-1, keepdims=True)
            p = jnp.exp(en)
            a = p * pl.reciprocal(jnp.sum(p, axis=-1, keepdims=True), approx=True)
            if attn_sink is not None:
                attn_sink[h] = a                      # [B, Lq, Lk]
            ctx = jnp.einsum("bqk,bkd->bqd", a, vh,
                             preferred_element_type=jnp.float32)
            ctx_heads.append(ctx.reshape(B * Lq, HEAD_DIM))
        return jnp.concatenate(ctx_heads, axis=-1)    # [B*Lq, H]

    # ------------------------------- encoder ---------------------------------
    x = src_x_ref[...]                                # [B*Ls, H]
    enc_bias = enc_bias_ref[...]                      # [B, Ls, Ls]
    for l in range(N_LAYERS):
        qkv = matmul(x, e_qkv_w[l], e_qkv_b[l])       # fused QKV: [B*Ls, 3H]
        ctx = attend(qkv[:, 0:H], qkv[:, H:2 * H], qkv[:, 2 * H:3 * H],
                     enc_bias, Ls, Ls)
        x = ln(x + matmul(ctx, e_o_w[l], e_o_b[l]), e_ln1_g[l], e_ln1_b[l])
        hmid = jnp.maximum(matmul(x, e_f1_w[l], e_f1_b[l]), jnp.float32(0.0))
        x = ln(x + matmul(hmid, e_f2_w[l], e_f2_b[l]), e_ln2_g[l], e_ln2_b[l])
    enc_src = x                                       # [B*Ls, H]

    # ------------------------------- decoder ---------------------------------
    y = trg_x_ref[...]                                # [B*Lt, H]
    self_bias = self_bias_ref[...]                    # [B, Lt, Lt]
    cross_bias = cross_bias_ref[...]                  # [B, Lt, Ls]
    for l in range(N_LAYERS):
        # masked self-attention
        qkv = matmul(y, d_sa_qkv_w[l], d_sa_qkv_b[l])
        ctx = attend(qkv[:, 0:H], qkv[:, H:2 * H], qkv[:, 2 * H:3 * H],
                     self_bias, Lt, Lt)
        y = ln(y + matmul(ctx, d_sa_o_w[l], d_sa_o_b[l]), d_ln1_g[l], d_ln1_b[l])

        # cross-attention (K/V fused); only the last layer's weights are emitted
        q = matmul(y, d_ca_q_w[l], d_ca_q_b[l])
        kv = matmul(enc_src, d_ca_kv_w[l], d_ca_kv_b[l])
        sink = attn_ref if l == N_LAYERS - 1 else None
        ctx = attend(q, kv[:, 0:H], kv[:, H:2 * H], cross_bias, Lt, Ls,
                     attn_sink=sink)
        y = ln(y + matmul(ctx, d_ca_o_w[l], d_ca_o_b[l]), d_ln2_g[l], d_ln2_b[l])

        # position-wise feed-forward (fc1 + ReLU + fc2, VMEM resident)
        hmid = jnp.maximum(matmul(y, d_f1_w[l], d_f1_b[l]), jnp.float32(0.0))
        y = ln(y + matmul(hmid, d_f2_w[l], d_f2_b[l]), d_ln3_g[l], d_ln3_b[l])

    # lane-dense (128-wide) logits; real vocab occupies the first TRG_VOCAB lanes
    logits_ref[...] = matmul(y, out_w[...], out_b[...])


# --------------------------------- wrapper ------------------------------------
def seq2seq_forward(src, trg, params):
    """src: [B, src_len] int32, trg: [B, trg_len] int32 ->
    (logits [B, trg_len, TRG_VOCAB], attention [B, N_HEADS, trg_len, src_len])."""
    B, Ls = src.shape
    Lt = trg.shape[1]
    scale = jnp.sqrt(jnp.float32(HID_DIM))

    # embeddings (gather + positional) stay in JAX glue
    src_x = (params["enc_tok"][src] * scale
             + params["enc_pos"][:Ls][None, :, :]).reshape(B * Ls, HID_DIM)
    trg_x = (params["dec_tok"][trg] * scale
             + params["dec_pos"][:Lt][None, :, :]).reshape(B * Lt, HID_DIM)

    # masks as additive biases (0 = attend, -1e10 = masked)
    neg = jnp.float32(NEG_INF)
    zero = jnp.float32(0.0)
    src_keep = src != SRC_PAD_IDX                     # [B, Ls]
    trg_keep = trg != TRG_PAD_IDX                     # [B, Lt]
    causal = jnp.tril(jnp.ones((Lt, Lt), dtype=bool))
    enc_bias = jnp.broadcast_to(jnp.where(src_keep[:, None, :], zero, neg),
                                (B, Ls, Ls)).astype(jnp.float32)
    cross_bias = jnp.broadcast_to(jnp.where(src_keep[:, None, :], zero, neg),
                                  (B, Lt, Ls)).astype(jnp.float32)
    self_bias = jnp.where(trg_keep[:, None, :] & causal[None, :, :],
                          zero, neg).astype(jnp.float32)

    e = params["enc"]
    d = params["dec"]
    flat_inputs = [
        src_x, trg_x, enc_bias, self_bias, cross_bias,
        e["qkv_w"], e["qkv_b"], e["o_w"], e["o_b"], e["ln1_g"], e["ln1_b"],
        e["fc1_w"], e["fc1_b"], e["fc2_w"], e["fc2_b"], e["ln2_g"], e["ln2_b"],
        d["sa_qkv_w"], d["sa_qkv_b"], d["sa_o_w"], d["sa_o_b"], d["ln1_g"], d["ln1_b"],
        d["ca_q_w"], d["ca_q_b"], d["ca_kv_w"], d["ca_kv_b"], d["ca_o_w"], d["ca_o_b"],
        d["ln2_g"], d["ln2_b"], d["fc1_w"], d["fc1_b"], d["fc2_w"], d["fc2_b"],
        d["ln3_g"], d["ln3_b"], params["fc_out_w"], params["fc_out_b"],
    ]

    vmem = pl.BlockSpec(memory_space=pltpu.MemorySpace.VMEM)
    logits_pad, attn_hb = pl.pallas_call(
        functools.partial(_forward_kernel, B=B, Ls=Ls, Lt=Lt),
        out_shape=(
            jax.ShapeDtypeStruct((B * Lt, VOCAB_PAD), jnp.float32),
            jax.ShapeDtypeStruct((N_HEADS, B, Lt, Ls), jnp.float32),
        ),
        in_specs=[vmem] * len(flat_inputs),
        out_specs=(vmem, vmem),
    )(*flat_inputs)

    output = logits_pad[:, :TRG_VOCAB].reshape(B, Lt, TRG_VOCAB)
    attention = jnp.transpose(attn_hb, (1, 0, 2, 3))  # [B, N_HEADS, Lt, Ls]
    return output, attention


# ------------------------------ parameter init -------------------------------
def init_params(key):
    keys = iter(jax.random.split(key, 64))
    H, PF, NL = HID_DIM, PF_DIM, N_LAYERS

    def w(shape):
        return jax.random.normal(next(keys), shape, jnp.float32) * 0.02

    def zeros(shape):
        return jnp.zeros(shape, jnp.float32)

    def ones(shape):
        return jnp.ones(shape, jnp.float32)

    enc = {
        "qkv_w": w((NL, H, 3 * H)), "qkv_b": zeros((NL, 1, 3 * H)),
        "o_w": w((NL, H, H)), "o_b": zeros((NL, 1, H)),
        "ln1_g": ones((NL, 1, H)), "ln1_b": zeros((NL, 1, H)),
        "fc1_w": w((NL, H, PF)), "fc1_b": zeros((NL, 1, PF)),
        "fc2_w": w((NL, PF, H)), "fc2_b": zeros((NL, 1, H)),
        "ln2_g": ones((NL, 1, H)), "ln2_b": zeros((NL, 1, H)),
    }
    dec = {
        "sa_qkv_w": w((NL, H, 3 * H)), "sa_qkv_b": zeros((NL, 1, 3 * H)),
        "sa_o_w": w((NL, H, H)), "sa_o_b": zeros((NL, 1, H)),
        "ln1_g": ones((NL, 1, H)), "ln1_b": zeros((NL, 1, H)),
        "ca_q_w": w((NL, H, H)), "ca_q_b": zeros((NL, 1, H)),
        "ca_kv_w": w((NL, H, 2 * H)), "ca_kv_b": zeros((NL, 1, 2 * H)),
        "ca_o_w": w((NL, H, H)), "ca_o_b": zeros((NL, 1, H)),
        "ln2_g": ones((NL, 1, H)), "ln2_b": zeros((NL, 1, H)),
        "fc1_w": w((NL, H, PF)), "fc1_b": zeros((NL, 1, PF)),
        "fc2_w": w((NL, PF, H)), "fc2_b": zeros((NL, 1, H)),
        "ln3_g": ones((NL, 1, H)), "ln3_b": zeros((NL, 1, H)),
    }
    # output projection padded to 128 lanes (real vocab in the first TRG_VOCAB cols)
    fc_out_w = jnp.zeros((H, VOCAB_PAD), jnp.float32).at[:, :TRG_VOCAB].set(
        w((H, TRG_VOCAB)))
    fc_out_b = jnp.zeros((1, VOCAB_PAD), jnp.float32)

    return {
        "enc_tok": w((SRC_VOCAB, H)), "enc_pos": w((MAX_LEN, H)),
        "dec_tok": w((TRG_VOCAB, H)), "dec_pos": w((MAX_LEN, H)),
        "enc": enc, "dec": dec,
        "fc_out_w": fc_out_w, "fc_out_b": fc_out_b,
    }


# ----------------------------------- main ------------------------------------
if __name__ == "__main__":
    key = jax.random.PRNGKey(0)
    pkey, skey, tkey = jax.random.split(key, 3)
    params = init_params(pkey)

    B, SRC_LEN, TRG_LEN = 2, 8, 8
    src = jax.random.randint(skey, (B, SRC_LEN), 1, SRC_VOCAB, dtype=jnp.int32)
    trg = jax.random.randint(tkey, (B, TRG_LEN), 1, TRG_VOCAB, dtype=jnp.int32)
    # introduce some pad tokens so the masks are non-trivial
    src = src.at[:, -2:].set(SRC_PAD_IDX)
    trg = trg.at[:, -1:].set(TRG_PAD_IDX)

    fwd = jax.jit(seq2seq_forward)
    output, attention = fwd(src, trg, params)
    jax.block_until_ready((output, attention))

    assert output.shape == (B, TRG_LEN, TRG_VOCAB), output.shape
    assert attention.shape == (B, N_HEADS, TRG_LEN, SRC_LEN), attention.shape
    assert bool(jnp.all(jnp.isfinite(output)))
    assert bool(jnp.all(attention >= 0.0))
    # rows softmax-normalized (approx reciprocal on EUP -> slightly loose tol)
    assert bool(jnp.allclose(jnp.sum(attention, axis=-1), 1.0, atol=1e-2))
    print("KERNEL_OK")
</pallas_src>

<mosaic_0001>
module attributes {stable_mosaic.version = 11 : i64} {
  func.func @_forward_kernel(%arg0: memref<16x32xf32, #tpu.memory_space<vmem>>, %arg1: memref<16x32xf32, #tpu.memory_space<vmem>>, %arg2: memref<2x8x8xf32, #tpu.memory_space<vmem>>, %arg3: memref<2x8x8xf32, #tpu.memory_space<vmem>>, %arg4: memref<2x8x8xf32, #tpu.memory_space<vmem>>, %arg5: memref<2x32x96xf32, #tpu.memory_space<vmem>>, %arg6: memref<2x1x96xf32, #tpu.memory_space<vmem>>, %arg7: memref<2x32x32xf32, #tpu.memory_space<vmem>>, %arg8: memref<2x1x32xf32, #tpu.memory_space<vmem>>, %arg9: memref<2x1x32xf32, #tpu.memory_space<vmem>>, %arg10: memref<2x1x32xf32, #tpu.memory_space<vmem>>, %arg11: memref<2x32x64xf32, #tpu.memory_space<vmem>>, %arg12: memref<2x1x64xf32, #tpu.memory_space<vmem>>, %arg13: memref<2x64x32xf32, #tpu.memory_space<vmem>>, %arg14: memref<2x1x32xf32, #tpu.memory_space<vmem>>, %arg15: memref<2x1x32xf32, #tpu.memory_space<vmem>>, %arg16: memref<2x1x32xf32, #tpu.memory_space<vmem>>, %arg17: memref<2x32x96xf32, #tpu.memory_space<vmem>>, %arg18: memref<2x1x96xf32, #tpu.memory_space<vmem>>, %arg19: memref<2x32x32xf32, #tpu.memory_space<vmem>>, %arg20: memref<2x1x32xf32, #tpu.memory_space<vmem>>, %arg21: memref<2x1x32xf32, #tpu.memory_space<vmem>>, %arg22: memref<2x1x32xf32, #tpu.memory_space<vmem>>, %arg23: memref<2x32x32xf32, #tpu.memory_space<vmem>>, %arg24: memref<2x1x32xf32, #tpu.memory_space<vmem>>, %arg25: memref<2x32x64xf32, #tpu.memory_space<vmem>>, %arg26: memref<2x1x64xf32, #tpu.memory_space<vmem>>, %arg27: memref<2x32x32xf32, #tpu.memory_space<vmem>>, %arg28: memref<2x1x32xf32, #tpu.memory_space<vmem>>, %arg29: memref<2x1x32xf32, #tpu.memory_space<vmem>>, %arg30: memref<2x1x32xf32, #tpu.memory_space<vmem>>, %arg31: memref<2x32x64xf32, #tpu.memory_space<vmem>>, %arg32: memref<2x1x64xf32, #tpu.memory_space<vmem>>, %arg33: memref<2x64x32xf32, #tpu.memory_space<vmem>>, %arg34: memref<2x1x32xf32, #tpu.memory_space<vmem>>, %arg35: memref<2x1x32xf32, #tpu.memory_space<vmem>>, %arg36: memref<2x1x32xf32, #tpu.memory_space<vmem>>, %arg37: memref<32x128xf32, #tpu.memory_space<vmem>>, %arg38: memref<1x128xf32, #tpu.memory_space<vmem>>, %arg39: memref<16x128xf32, #tpu.memory_space<vmem>>, %arg40: memref<4x2x8x8xf32, #tpu.memory_space<vmem>>) attributes {dimension_semantics = [], scalar_prefetch = 0 : i64, scratch_operands = 0 : i64, tpu.core_type = #tpu.core_type<tc>} {
    %c0 = arith.constant 0 : index
    %c0_0 = arith.constant 0 : index
    %0 = vector.load %arg0[%c0, %c0_0] : memref<16x32xf32, #tpu.memory_space<vmem>>, vector<16x32xf32>
    %c0_1 = arith.constant 0 : index
    %c0_2 = arith.constant 0 : index
    %c0_3 = arith.constant 0 : index
    %1 = vector.load %arg2[%c0_1, %c0_2, %c0_3] : memref<2x8x8xf32, #tpu.memory_space<vmem>>, vector<2x8x8xf32>
    %c0_4 = arith.constant 0 : index
    %c0_5 = arith.constant 0 : index
    %c0_6 = arith.constant 0 : index
    %2 = vector.load %arg5[%c0_4, %c0_5, %c0_6] : memref<2x32x96xf32, #tpu.memory_space<vmem>>, vector<1x32x96xf32>
    %3 = vector.shape_cast %2 : vector<1x32x96xf32> to vector<32x96xf32>
    %c0_7 = arith.constant 0 : index
    %c0_8 = arith.constant 0 : index
    %c0_9 = arith.constant 0 : index
    %4 = vector.load %arg6[%c0_7, %c0_8, %c0_9] : memref<2x1x96xf32, #tpu.memory_space<vmem>>, vector<1x1x96xf32>
    %5 = vector.shape_cast %4 : vector<1x1x96xf32> to vector<1x96xf32>
    %cst = arith.constant dense<0.000000e+00> : vector<16x96xf32>
    %6 = tpu.matmul %0, %3, %cst {dimension_numbers = #tpu.dot_dimension_numbers<[1], [0], [0], [1], [0, 0, 1, 1], [], []>} : vector<16x32xf32>, vector<32x96xf32>, vector<16x96xf32> -> vector<16x96xf32>
    %7 = vector.broadcast %5 : vector<1x96xf32> to vector<16x96xf32>
    %8 = arith.addf %6, %7 : vector<16x96xf32>
    %9 = vector.extract_strided_slice %8 {offsets = [0, 0], sizes = [16, 32], strides = [1, 1]} : vector<16x96xf32> to vector<16x32xf32>
    %10 = vector.extract_strided_slice %8 {offsets = [0, 32], sizes = [16, 32], strides = [1, 1]} : vector<16x96xf32> to vector<16x32xf32>
    %11 = vector.extract_strided_slice %8 {offsets = [0, 64], sizes = [16, 32], strides = [1, 1]} : vector<16x96xf32> to vector<16x32xf32>
    %12 = vector.extract_strided_slice %9 {offsets = [0, 0], sizes = [16, 8], strides = [1, 1]} : vector<16x32xf32> to vector<16x8xf32>
    %13 = vector.shape_cast %12 : vector<16x8xf32> to vector<2x8x8xf32>
    %14 = vector.extract_strided_slice %10 {offsets = [0, 0], sizes = [16, 8], strides = [1, 1]} : vector<16x32xf32> to vector<16x8xf32>
    %15 = vector.shape_cast %14 : vector<16x8xf32> to vector<2x8x8xf32>
    %16 = vector.extract_strided_slice %11 {offsets = [0, 0], sizes = [16, 8], strides = [1, 1]} : vector<16x32xf32> to vector<16x8xf32>
    %17 = vector.shape_cast %16 : vector<16x8xf32> to vector<2x8x8xf32>
    "tpu.trace_start"() <{level = 10 : i32, message = "bqd,bkd->bqk"}> : () -> ()
    %cst_10 = arith.constant dense<0.000000e+00> : vector<2x8x8xf32>
    %18 = tpu.matmul %13, %15, %cst_10 {dimension_numbers = #tpu.dot_dimension_numbers<[2], [2], [1], [1], [0, 0, 0, 1, 1, 1], [0], [0]>} : vector<2x8x8xf32>, vector<2x8x8xf32>, vector<2x8x8xf32> -> vector<2x8x8xf32>
    "tpu.trace_stop"() : () -> ()
    %cst_11 = arith.constant 0.353553385 : f32
    %19 = vector.broadcast %cst_11 : f32 to vector<2x8x8xf32>
    %20 = arith.mulf %18, %19 : vector<2x8x8xf32>
    %21 = arith.addf %20, %1 : vector<2x8x8xf32>
    %cst_12 = arith.constant dense<0xFF800000> : vector<2x8xf32>
    %22 = vector.multi_reduction <maximumf>, %21, %cst_12 [2] : vector<2x8x8xf32> to vector<2x8xf32>
    %23 = vector.shape_cast %22 : vector<2x8xf32> to vector<2x8x1xf32>
    %24 = vector.broadcast %23 : vector<2x8x1xf32> to vector<2x8x8xf32>
    %25 = arith.subf %21, %24 : vector<2x8x8xf32>
    %26 = math.exp %25 : vector<2x8x8xf32>
    %cst_13 = arith.constant dense<0.000000e+00> : vector<2x8xf32>
    %27 = vector.multi_reduction <add>, %26, %cst_13 [2] : vector<2x8x8xf32> to vector<2x8xf32>
    %28 = vector.shape_cast %27 : vector<2x8xf32> to vector<2x8x1xf32>
    %29 = tpu.reciprocal %28 {approx = true} : vector<2x8x1xf32> -> vector<2x8x1xf32>
    %30 = vector.broadcast %29 : vector<2x8x1xf32> to vector<2x8x8xf32>
    %31 = arith.mulf %26, %30 : vector<2x8x8xf32>
    "tpu.trace_start"() <{level = 10 : i32, message = "bqk,bkd->bqd"}> : () -> ()
    %cst_14 = arith.constant dense<0.000000e+00> : vector<2x8x8xf32>
    %32 = tpu.matmul %31, %17, %cst_14 {dimension_numbers = #tpu.dot_dimension_numbers<[2], [1], [1], [2], [0, 0, 0, 1, 1, 2], [0], [0]>} : vector<2x8x8xf32>, vector<2x8x8xf32>, vector<2x8x8xf32> -> vector<2x8x8xf32>
    "tpu.trace_stop"() : () -> ()
    %33 = vector.shape_cast %32 : vector<2x8x8xf32> to vector<16x8xf32>
    %34 = vector.extract_strided_slice %9 {offsets = [0, 8], sizes = [16, 8], strides = [1, 1]} : vector<16x32xf32> to vector<16x8xf32>
    %35 = vector.shape_cast %34 : vector<16x8xf32> to vector<2x8x8xf32>
    %36 = vector.extract_strided_slice %10 {offsets = [0, 8], sizes = [16, 8], strides = [1, 1]} : vector<16x32xf32> to vector<16x8xf32>
    %37 = vector.shape_cast %36 : vector<16x8xf32> to vector<2x8x8xf32>
    %38 = vector.extract_strided_slice %11 {offsets = [0, 8], sizes = [16, 8], strides = [1, 1]} : vector<16x32xf32> to vector<16x8xf32>
    %39 = vector.shape_cast %38 : vector<16x8xf32> to vector<2x8x8xf32>
    "tpu.trace_start"() <{level = 10 : i32, message = "bqd,bkd->bqk"}> : () -> ()
    %cst_15 = arith.constant dense<0.000000e+00> : vector<2x8x8xf32>
    %40 = tpu.matmul %35, %37, %cst_15 {dimension_numbers = #tpu.dot_dimension_numbers<[2], [2], [1], [1], [0, 0, 0, 1, 1, 1], [0], [0]>} : vector<2x8x8xf32>, vector<2x8x8xf32>, vector<2x8x8xf32> -> vector<2x8x8xf32>
    "tpu.trace_stop"() : () -> ()
    %cst_16 = arith.constant 0.353553385 : f32
    %41 = vector.broadcast %cst_16 : f32 to vector<2x8x8xf32>
    %42 = arith.mulf %40, %41 : vector<2x8x8xf32>
    %43 = arith.addf %42, %1 : vector<2x8x8xf32>
    %cst_17 = arith.constant dense<0xFF800000> : vector<2x8xf32>
    %44 = vector.multi_reduction <maximumf>, %43, %cst_17 [2] : vector<2x8x8xf32> to vector<2x8xf32>
    %45 = vector.shape_cast %44 : vector<2x8xf32> to vector<2x8x1xf32>
    %46 = vector.broadcast %45 : vector<2x8x1xf32> to vector<2x8x8xf32>
    %47 = arith.subf %43, %46 : vector<2x8x8xf32>
    %48 = math.exp %47 : vector<2x8x8xf32>
    %cst_18 = arith.constant dense<0.000000e+00> : vector<2x8xf32>
    %49 = vector.multi_reduction <add>, %48, %cst_18 [2] : vector<2x8x8xf32> to vector<2x8xf32>
    %50 = vector.shape_cast %49 : vector<2x8xf32> to vector<2x8x1xf32>
    %51 = tpu.reciprocal %50 {approx = true} : vector<2x8x1xf32> -> vector<2x8x1xf32>
    %52 = vector.broadcast %51 : vector<2x8x1xf32> to vector<2x8x8xf32>
    %53 = arith.mulf %48, %52 : vector<2x8x8xf32>
    "tpu.trace_start"() <{level = 10 : i32, message = "bqk,bkd->bqd"}> : () -> ()
    %cst_19 = arith.constant dense<0.000000e+00> : vector<2x8x8xf32>
    %54 = tpu.matmul %53, %39, %cst_19 {dimension_numbers = #tpu.dot_dimension_numbers<[2], [1], [1], [2], [0, 0, 0, 1, 1, 2], [0], [0]>} : vector<2x8x8xf32>, vector<2x8x8xf32>, vector<2x8x8xf32> -> vector<2x8x8xf32>
    "tpu.trace_stop"() : () -> ()
    %55 = vector.shape_cast %54 : vector<2x8x8xf32> to vector<16x8xf32>
    %56 = vector.extract_strided_slice %9 {offsets = [0, 16], sizes = [16, 8], strides = [1, 1]} : vector<16x32xf32> to vector<16x8xf32>
    %57 = vector.shape_cast %56 : vector<16x8xf32> to vector<2x8x8xf32>
    %58 = vector.extract_strided_slice %10 {offsets = [0, 16], sizes = [16, 8], strides = [1, 1]} : vector<16x32xf32> to vector<16x8xf32>
    %59 = vector.shape_cast %58 : vector<16x8xf32> to vector<2x8x8xf32>
    %60 = vector.extract_strided_slice %11 {offsets = [0, 16], sizes = [16, 8], strides = [1, 1]} : vector<16x32xf32> to vector<16x8xf32>
    %61 = vector.shape_cast %60 : vector<16x8xf32> to vector<2x8x8xf32>
    "tpu.trace_start"() <{level = 10 : i32, message = "bqd,bkd->bqk"}> : () -> ()
    %cst_20 = arith.constant dense<0.000000e+00> : vector<2x8x8xf32>
    %62 = tpu.matmul %57, %59, %cst_20 {dimension_numbers = #tpu.dot_dimension_numbers<[2], [2], [1], [1], [0, 0, 0, 1, 1, 1], [0], [0]>} : vector<2x8x8xf32>, vector<2x8x8xf32>, vector<2x8x8xf32> -> vector<2x8x8xf32>
    "tpu.trace_stop"() : () -> ()
    %cst_21 = arith.constant 0.353553385 : f32
    %63 = vector.broadcast %cst_21 : f32 to vector<2x8x8xf32>
    %64 = arith.mulf %62, %63 : vector<2x8x8xf32>
    %65 = arith.addf %64, %1 : vector<2x8x8xf32>
    %cst_22 = arith.constant dense<0xFF800000> : vector<2x8xf32>
    %66 = vector.multi_reduction <maximumf>, %65, %cst_22 [2] : vector<2x8x8xf32> to vector<2x8xf32>
    %67 = vector.shape_cast %66 : vector<2x8xf32> to vector<2x8x1xf32>
    %68 = vector.broadcast %67 : vector<2x8x1xf32> to vector<2x8x8xf32>
    %69 = arith.subf %65, %68 : vector<2x8x8xf32>
    %70 = math.exp %69 : vector<2x8x8xf32>
    %cst_23 = arith.constant dense<0.000000e+00> : vector<2x8xf32>
    %71 = vector.multi_reduction <add>, %70, %cst_23 [2] : vector<2x8x8xf32> to vector<2x8xf32>
    %72 = vector.shape_cast %71 : vector<2x8xf32> to vector<2x8x1xf32>
    %73 = tpu.reciprocal %72 {approx = true} : vector<2x8x1xf32> -> vector<2x8x1xf32>
    %74 = vector.broadcast %73 : vector<2x8x1xf32> to vector<2x8x8xf32>
    %75 = arith.mulf %70, %74 : vector<2x8x8xf32>
    "tpu.trace_start"() <{level = 10 : i32, message = "bqk,bkd->bqd"}> : () -> ()
    %cst_24 = arith.constant dense<0.000000e+00> : vector<2x8x8xf32>
    %76 = tpu.matmul %75, %61, %cst_24 {dimension_numbers = #tpu.dot_dimension_numbers<[2], [1], [1], [2], [0, 0, 0, 1, 1, 2], [0], [0]>} : vector<2x8x8xf32>, vector<2x8x8xf32>, vector<2x8x8xf32> -> vector<2x8x8xf32>
    "tpu.trace_stop"() : () -> ()
    %77 = vector.shape_cast %76 : vector<2x8x8xf32> to vector<16x8xf32>
    %78 = vector.extract_strided_slice %9 {offsets = [0, 24], sizes = [16, 8], strides = [1, 1]} : vector<16x32xf32> to vector<16x8xf32>
    %79 = vector.shape_cast %78 : vector<16x8xf32> to vector<2x8x8xf32>
    %80 = vector.extract_strided_slice %10 {offsets = [0, 24], sizes = [16, 8], strides = [1, 1]} : vector<16x32xf32> to vector<16x8xf32>
    %81 = vector.shape_cast %80 : vector<16x8xf32> to vector<2x8x8xf32>
    %82 = vector.extract_strided_slice %11 {offsets = [0, 24], sizes = [16, 8], strides = [1, 1]} : vector<16x32xf32> to vector<16x8xf32>
    %83 = vector.shape_cast %82 : vector<16x8xf32> to vector<2x8x8xf32>
    "tpu.trace_start"() <{level = 10 : i32, message = "bqd,bkd->bqk"}> : () -> ()
    %cst_25 = arith.constant dense<0.000000e+00> : vector<2x8x8xf32>
    %84 = tpu.matmul %79, %81, %cst_25 {dimension_numbers = #tpu.dot_dimension_numbers<[2], [2], [1], [1], [0, 0, 0, 1, 1, 1], [0], [0]>} : vector<2x8x8xf32>, vector<2x8x8xf32>, vector<2x8x8xf32> -> vector<2x8x8xf32>
    "tpu.trace_stop"() : () -> ()
    %cst_26 = arith.constant 0.353553385 : f32
    %85 = vector.broadcast %cst_26 : f32 to vector<2x8x8xf32>
    %86 = arith.mulf %84, %85 : vector<2x8x8xf32>
    %87 = arith.addf %86, %1 : vector<2x8x8xf32>
    %cst_27 = arith.constant dense<0xFF800000> : vector<2x8xf32>
    %88 = vector.multi_reduction <maximumf>, %87, %cst_27 [2] : vector<2x8x8xf32> to vector<2x8xf32>
    %89 = vector.shape_cast %88 : vector<2x8xf32> to vector<2x8x1xf32>
    %90 = vector.broadcast %89 : vector<2x8x1xf32> to vector<2x8x8xf32>
    %91 = arith.subf %87, %90 : vector<2x8x8xf32>
    %92 = math.exp %91 : vector<2x8x8xf32>
    %cst_28 = arith.constant dense<0.000000e+00> : vector<2x8xf32>
    %93 = vector.multi_reduction <add>, %92, %cst_28 [2] : vector<2x8x8xf32> to vector<2x8xf32>
    %94 = vector.shape_cast %93 : vector<2x8xf32> to vector<2x8x1xf32>
    %95 = tpu.reciprocal %94 {approx = true} : vector<2x8x1xf32> -> vector<2x8x1xf32>
    %96 = vector.broadcast %95 : vector<2x8x1xf32> to vector<2x8x8xf32>
    %97 = arith.mulf %92, %96 : vector<2x8x8xf32>
    "tpu.trace_start"() <{level = 10 : i32, message = "bqk,bkd->bqd"}> : () -> ()
    %cst_29 = arith.constant dense<0.000000e+00> : vector<2x8x8xf32>
    %98 = tpu.matmul %97, %83, %cst_29 {dimension_numbers = #tpu.dot_dimension_numbers<[2], [1], [1], [2], [0, 0, 0, 1, 1, 2], [0], [0]>} : vector<2x8x8xf32>, vector<2x8x8xf32>, vector<2x8x8xf32> -> vector<2x8x8xf32>
    "tpu.trace_stop"() : () -> ()
    %99 = vector.shape_cast %98 : vector<2x8x8xf32> to vector<16x8xf32>
    %100 = tpu.concatenate %33, %55, %77, %99 in 1 : vector<16x8xf32>, vector<16x8xf32>, vector<16x8xf32>, vector<16x8xf32> -> vector<16x32xf32>
    %c0_30 = arith.constant 0 : index
    %c0_31 = arith.constant 0 : index
    %c0_32 = arith.constant 0 : index
    %101 = vector.load %arg7[%c0_30, %c0_31, %c0_32] : memref<2x32x32xf32, #tpu.memory_space<vmem>>, vector<1x32x32xf32>
    %102 = vector.shape_cast %101 : vector<1x32x32xf32> to vector<32x32xf32>
    %c0_33 = arith.constant 0 : index
    %c0_34 = arith.constant 0 : index
    %c0_35 = arith.constant 0 : index
    %103 = vector.load %arg8[%c0_33, %c0_34, %c0_35] : memref<2x1x32xf32, #tpu.memory_space<vmem>>, vector<1x1x32xf32>
    %104 = vector.shape_cast %103 : vector<1x1x32xf32> to vector<1x32xf32>
    %cst_36 = arith.constant dense<0.000000e+00> : vector<16x32xf32>
    %105 = tpu.matmul %100, %102, %cst_36 {dimension_numbers = #tpu.dot_dimension_numbers<[1], [0], [0], [1], [0, 0, 1, 1], [], []>} : vector<16x32xf32>, vector<32x32xf32>, vector<16x32xf32> -> vector<16x32xf32>
    %106 = vector.broadcast %104 : vector<1x32xf32> to vector<16x32xf32>
    %107 = arith.addf %105, %106 : vector<16x32xf32>
    %108 = arith.addf %0, %107 : vector<16x32xf32>
    %c0_37 = arith.constant 0 : index
    %c0_38 = arith.constant 0 : index
    %c0_39 = arith.constant 0 : index
    %109 = vector.load %arg9[%c0_37, %c0_38, %c0_39] : memref<2x1x32xf32, #tpu.memory_space<vmem>>, vector<1x1x32xf32>
    %110 = vector.shape_cast %109 : vector<1x1x32xf32> to vector<1x32xf32>
    %c0_40 = arith.constant 0 : index
    %c0_41 = arith.constant 0 : index
    %c0_42 = arith.constant 0 : index
    %111 = vector.load %arg10[%c0_40, %c0_41, %c0_42] : memref<2x1x32xf32, #tpu.memory_space<vmem>>, vector<1x1x32xf32>
    %112 = vector.shape_cast %111 : vector<1x1x32xf32> to vector<1x32xf32>
    %cst_43 = arith.constant dense<0.000000e+00> : vector<16xf32>
    %113 = vector.multi_reduction <add>, %108, %cst_43 [1] : vector<16x32xf32> to vector<16xf32>
    %114 = vector.shape_cast %113 : vector<16xf32> to vector<16x1xf32>
    %cst_44 = arith.constant 3.200000e+01 : f32
    %115 = vector.broadcast %cst_44 : f32 to vector<16x1xf32>
    %116 = arith.divf %114, %115 : vector<16x1xf32>
    %117 = vector.broadcast %116 : vector<16x1xf32> to vector<16x32xf32>
    %118 = arith.subf %108, %117 : vector<16x32xf32>
    %119 = arith.mulf %118, %118 : vector<16x32xf32>
    %cst_45 = arith.constant dense<0.000000e+00> : vector<16xf32>
    %120 = vector.multi_reduction <add>, %119, %cst_45 [1] : vector<16x32xf32> to vector<16xf32>
    %121 = vector.shape_cast %120 : vector<16xf32> to vector<16x1xf32>
    %cst_46 = arith.constant 3.200000e+01 : f32
    %122 = vector.broadcast %cst_46 : f32 to vector<16x1xf32>
    %123 = arith.divf %121, %122 : vector<16x1xf32>
    %cst_47 = arith.constant 9.99999974E-6 : f32
    %124 = vector.broadcast %cst_47 : f32 to vector<16x1xf32>
    %125 = arith.addf %123, %124 : vector<16x1xf32>
    %126 = math.rsqrt %125 : vector<16x1xf32>
    %127 = vector.broadcast %126 : vector<16x1xf32> to vector<16x32xf32>
    %128 = arith.mulf %118, %127 : vector<16x32xf32>
    %129 = vector.broadcast %110 : vector<1x32xf32> to vector<16x32xf32>
    %130 = arith.mulf %128, %129 : vector<16x32xf32>
    %131 = vector.broadcast %112 : vector<1x32xf32> to vector<16x32xf32>
    %132 = arith.addf %130, %131 : vector<16x32xf32>
    %c0_48 = arith.constant 0 : index
    %c0_49 = arith.constant 0 : index
    %c0_50 = arith.constant 0 : index
    %133 = vector.load %arg11[%c0_48, %c0_49, %c0_50] : memref<2x32x64xf32, #tpu.memory_space<vmem>>, vector<1x32x64xf32>
    %134 = vector.shape_cast %133 : vector<1x32x64xf32> to vector<32x64xf32>
    %c0_51 = arith.constant 0 : index
    %c0_52 = arith.constant 0 : index
    %c0_53 = arith.constant 0 : index
    %135 = vector.load %arg12[%c0_51, %c0_52, %c0_53] : memref<2x1x64xf32, #tpu.memory_space<vmem>>, vector<1x1x64xf32>
    %136 = vector.shape_cast %135 : vector<1x1x64xf32> to vector<1x64xf32>
    %cst_54 = arith.constant dense<0.000000e+00> : vector<16x64xf32>
    %137 = tpu.matmul %132, %134, %cst_54 {dimension_numbers = #tpu.dot_dimension_numbers<[1], [0], [0], [1], [0, 0, 1, 1], [], []>} : vector<16x32xf32>, vector<32x64xf32>, vector<16x64xf32> -> vector<16x64xf32>
    %138 = vector.broadcast %136 : vector<1x64xf32> to vector<16x64xf32>
    %139 = arith.addf %137, %138 : vector<16x64xf32>
    %cst_55 = arith.constant 0.000000e+00 : f32
    %140 = vector.broadcast %cst_55 : f32 to vector<16x64xf32>
    %141 = arith.maximumf %139, %140 : vector<16x64xf32>
    %c0_56 = arith.constant 0 : index
    %c0_57 = arith.constant 0 : index
    %c0_58 = arith.constant 0 : index
    %142 = vector.load %arg13[%c0_56, %c0_57, %c0_58] : memref<2x64x32xf32, #tpu.memory_space<vmem>>, vector<1x64x32xf32>
    %143 = vector.shape_cast %142 : vector<1x64x32xf32> to vector<64x32xf32>
    %c0_59 = arith.constant 0 : index
    %c0_60 = arith.constant 0 : index
    %c0_61 = arith.constant 0 : index
    %144 = vector.load %arg14[%c0_59, %c0_60, %c0_61] : memref<2x1x32xf32, #tpu.memory_space<vmem>>, vector<1x1x32xf32>
    %145 = vector.shape_cast %144 : vector<1x1x32xf32> to vector<1x32xf32>
    %cst_62 = arith.constant dense<0.000000e+00> : vector<16x32xf32>
    %146 = tpu.matmul %141, %143, %cst_62 {dimension_numbers = #tpu.dot_dimension_numbers<[1], [0], [0], [1], [0, 0, 1, 1], [], []>} : vector<16x64xf32>, vector<64x32xf32>, vector<16x32xf32> -> vector<16x32xf32>
    %147 = vector.broadcast %145 : vector<1x32xf32> to vector<16x32xf32>
    %148 = arith.addf %146, %147 : vector<16x32xf32>
    %149 = arith.addf %132, %148 : vector<16x32xf32>
    %c0_63 = arith.constant 0 : index
    %c0_64 = arith.constant 0 : index
    %c0_65 = arith.constant 0 : index
    %150 = vector.load %arg15[%c0_63, %c0_64, %c0_65] : memref<2x1x32xf32, #tpu.memory_space<vmem>>, vector<1x1x32xf32>
    %151 = vector.shape_cast %150 : vector<1x1x32xf32> to vector<1x32xf32>
    %c0_66 = arith.constant 0 : index
    %c0_67 = arith.constant 0 : index
    %c0_68 = arith.constant 0 : index
    %152 = vector.load %arg16[%c0_66, %c0_67, %c0_68] : memref<2x1x32xf32, #tpu.memory_space<vmem>>, vector<1x1x32xf32>
    %153 = vector.shape_cast %152 : vector<1x1x32xf32> to vector<1x32xf32>
    %cst_69 = arith.constant dense<0.000000e+00> : vector<16xf32>
    %154 = vector.multi_reduction <add>, %149, %cst_69 [1] : vector<16x32xf32> to vector<16xf32>
    %155 = vector.shape_cast %154 : vector<16xf32> to vector<16x1xf32>
    %cst_70 = arith.constant 3.200000e+01 : f32
    %156 = vector.broadcast %cst_70 : f32 to vector<16x1xf32>
    %157 = arith.divf %155, %156 : vector<16x1xf32>
    %158 = vector.broadcast %157 : vector<16x1xf32> to vector<16x32xf32>
    %159 = arith.subf %149, %158 : vector<16x32xf32>
    %160 = arith.mulf %159, %159 : vector<16x32xf32>
    %cst_71 = arith.constant dense<0.000000e+00> : vector<16xf32>
    %161 = vector.multi_reduction <add>, %160, %cst_71 [1] : vector<16x32xf32> to vector<16xf32>
    %162 = vector.shape_cast %161 : vector<16xf32> to vector<16x1xf32>
    %cst_72 = arith.constant 3.200000e+01 : f32
    %163 = vector.broadcast %cst_72 : f32 to vector<16x1xf32>
    %164 = arith.divf %162, %163 : vector<16x1xf32>
    %cst_73 = arith.constant 9.99999974E-6 : f32
    %165 = vector.broadcast %cst_73 : f32 to vector<16x1xf32>
    %166 = arith.addf %164, %165 : vector<16x1xf32>
    %167 = math.rsqrt %166 : vector<16x1xf32>
    %168 = vector.broadcast %167 : vector<16x1xf32> to vector<16x32xf32>
    %169 = arith.mulf %159, %168 : vector<16x32xf32>
    %170 = vector.broadcast %151 : vector<1x32xf32> to vector<16x32xf32>
    %171 = arith.mulf %169, %170 : vector<16x32xf32>
    %172 = vector.broadcast %153 : vector<1x32xf32> to vector<16x32xf32>
    %173 = arith.addf %171, %172 : vector<16x32xf32>
    %c1 = arith.constant 1 : index
    %c0_74 = arith.constant 0 : index
    %c0_75 = arith.constant 0 : index
    %174 = vector.load %arg5[%c1, %c0_74, %c0_75] : memref<2x32x96xf32, #tpu.memory_space<vmem>>, vector<1x32x96xf32>
    %175 = vector.shape_cast %174 : vector<1x32x96xf32> to vector<32x96xf32>
    %c1_76 = arith.constant 1 : index
    %c0_77 = arith.constant 0 : index
    %c0_78 = arith.constant 0 : index
    %176 = vector.load %arg6[%c1_76, %c0_77, %c0_78] : memref<2x1x96xf32, #tpu.memory_space<vmem>>, vector<1x1x96xf32>
    %177 = vector.shape_cast %176 : vector<1x1x96xf32> to vector<1x96xf32>
    %cst_79 = arith.constant dense<0.000000e+00> : vector<16x96xf32>
    %178 = tpu.matmul %173, %175, %cst_79 {dimension_numbers = #tpu.dot_dimension_numbers<[1], [0], [0], [1], [0, 0, 1, 1], [], []>} : vector<16x32xf32>, vector<32x96xf32>, vector<16x96xf32> -> vector<16x96xf32>
    %179 = vector.broadcast %177 : vector<1x96xf32> to vector<16x96xf32>
    %180 = arith.addf %178, %179 : vector<16x96xf32>
    %181 = vector.extract_strided_slice %180 {offsets = [0, 0], sizes = [16, 32], strides = [1, 1]} : vector<16x96xf32> to vector<16x32xf32>
    %182 = vector.extract_strided_slice %180 {offsets = [0, 32], sizes = [16, 32], strides = [1, 1]} : vector<16x96xf32> to vector<16x32xf32>
    %183 = vector.extract_strided_slice %180 {offsets = [0, 64], sizes = [16, 32], strides = [1, 1]} : vector<16x96xf32> to vector<16x32xf32>
    %184 = vector.extract_strided_slice %181 {offsets = [0, 0], sizes = [16, 8], strides = [1, 1]} : vector<16x32xf32> to vector<16x8xf32>
    %185 = vector.shape_cast %184 : vector<16x8xf32> to vector<2x8x8xf32>
    %186 = vector.extract_strided_slice %182 {offsets = [0, 0], sizes = [16, 8], strides = [1, 1]} : vector<16x32xf32> to vector<16x8xf32>
    %187 = vector.shape_cast %186 : vector<16x8xf32> to vector<2x8x8xf32>
    %188 = vector.extract_strided_slice %183 {offsets = [0, 0], sizes = [16, 8], strides = [1, 1]} : vector<16x32xf32> to vector<16x8xf32>
    %189 = vector.shape_cast %188 : vector<16x8xf32> to vector<2x8x8xf32>
    "tpu.trace_start"() <{level = 10 : i32, message = "bqd,bkd->bqk"}> : () -> ()
    %cst_80 = arith.constant dense<0.000000e+00> : vector<2x8x8xf32>
    %190 = tpu.matmul %185, %187, %cst_80 {dimension_numbers = #tpu.dot_dimension_numbers<[2], [2], [1], [1], [0, 0, 0, 1, 1, 1], [0], [0]>} : vector<2x8x8xf32>, vector<2x8x8xf32>, vector<2x8x8xf32> -> vector<2x8x8xf32>
    "tpu.trace_stop"() : () -> ()
    %cst_81 = arith.constant 0.353553385 : f32
    %191 = vector.broadcast %cst_81 : f32 to vector<2x8x8xf32>
    %192 = arith.mulf %190, %191 : vector<2x8x8xf32>
    %193 = arith.addf %192, %1 : vector<2x8x8xf32>
    %cst_82 = arith.constant dense<0xFF800000> : vector<2x8xf32>
    %194 = vector.multi_reduction <maximumf>, %193, %cst_82 [2] : vector<2x8x8xf32> to vector<2x8xf32>
    %195 = vector.shape_cast %194 : vector<2x8xf32> to vector<2x8x1xf32>
    %196 = vector.broadcast %195 : vector<2x8x1xf32> to vector<2x8x8xf32>
    %197 = arith.subf %193, %196 : vector<2x8x8xf32>
    %198 = math.exp %197 : vector<2x8x8xf32>
    %cst_83 = arith.constant dense<0.000000e+00> : vector<2x8xf32>
    %199 = vector.multi_reduction <add>, %198, %cst_83 [2] : vector<2x8x8xf32> to vector<2x8xf32>
    %200 = vector.shape_cast %199 : vector<2x8xf32> to vector<2x8x1xf32>
    %201 = tpu.reciprocal %200 {approx = true} : vector<2x8x1xf32> -> vector<2x8x1xf32>
    %202 = vector.broadcast %201 : vector<2x8x1xf32> to vector<2x8x8xf32>
    %203 = arith.mulf %198, %202 : vector<2x8x8xf32>
    "tpu.trace_start"() <{level = 10 : i32, message = "bqk,bkd->bqd"}> : () -> ()
    %cst_84 = arith.constant dense<0.000000e+00> : vector<2x8x8xf32>
    %204 = tpu.matmul %203, %189, %cst_84 {dimension_numbers = #tpu.dot_dimension_numbers<[2], [1], [1], [2], [0, 0, 0, 1, 1, 2], [0], [0]>} : vector<2x8x8xf32>, vector<2x8x8xf32>, vector<2x8x8xf32> -> vector<2x8x8xf32>
    "tpu.trace_stop"() : () -> ()
    %205 = vector.shape_cast %204 : vector<2x8x8xf32> to vector<16x8xf32>
    %206 = vector.extract_strided_slice %181 {offsets = [0, 8], sizes = [16, 8], strides = [1, 1]} : vector<16x32xf32> to vector<16x8xf32>
    %207 = vector.shape_cast %206 : vector<16x8xf32> to vector<2x8x8xf32>
    %208 = vector.extract_strided_slice %182 {offsets = [0, 8], sizes = [16, 8], strides = [1, 1]} : vector<16x32xf32> to vector<16x8xf32>
    %209 = vector.shape_cast %208 : vector<16x8xf32> to vector<2x8x8xf32>
    %210 = vector.extract_strided_slice %183 {offsets = [0, 8], sizes = [16, 8], strides = [1, 1]} : vector<16x32xf32> to vector<16x8xf32>
    %211 = vector.shape_cast %210 : vector<16x8xf32> to vector<2x8x8xf32>
    "tpu.trace_start"() <{level = 10 : i32, message = "bqd,bkd->bqk"}> : () -> ()
    %cst_85 = arith.constant dense<0.000000e+00> : vector<2x8x8xf32>
    %212 = tpu.matmul %207, %209, %cst_85 {dimension_numbers = #tpu.dot_dimension_numbers<[2], [2], [1], [1], [0, 0, 0, 1, 1, 1], [0], [0]>} : vector<2x8x8xf32>, vector<2x8x8xf32>, vector<2x8x8xf32> -> vector<2x8x8xf32>
    "tpu.trace_stop"() : () -> ()
    %cst_86 = arith.constant 0.353553385 : f32
    %213 = vector.broadcast %cst_86 : f32 to vector<2x8x8xf32>
    %214 = arith.mulf %212, %213 : vector<2x8x8xf32>
    %215 = arith.addf %214, %1 : vector<2x8x8xf32>
    %cst_87 = arith.constant dense<0xFF800000> : vector<2x8xf32>
    %216 = vector.multi_reduction <maximumf>, %215, %cst_87 [2] : vector<2x8x8xf32> to vector<2x8xf32>
    %217 = vector.shape_cast %216 : vector<2x8xf32> to vector<2x8x1xf32>
    %218 = vector.broadcast %217 : vector<2x8x1xf32> to vector<2x8x8xf32>
    %219 = arith.subf %215, %218 : vector<2x8x8xf32>
    %220 = math.exp %219 : vector<2x8x8xf32>
    %cst_88 = arith.constant dense<0.000000e+00> : vector<2x8xf32>
    %221 = vector.multi_reduction <add>, %220, %cst_88 [2] : vector<2x8x8xf32> to vector<2x8xf32>
    %222 = vector.shape_cast %221 : vector<2x8xf32> to vector<2x8x1xf32>
    %223 = tpu.reciprocal %222 {approx = true} : vector<2x8x1xf32> -> vector<2x8x1xf32>
    %224 = vector.broadcast %223 : vector<2x8x1xf32> to vector<2x8x8xf32>
    %225 = arith.mulf %220, %224 : vector<2x8x8xf32>
    "tpu.trace_start"() <{level = 10 : i32, message = "bqk,bkd->bqd"}> : () -> ()
    %cst_89 = arith.constant dense<0.000000e+00> : vector<2x8x8xf32>
    %226 = tpu.matmul %225, %211, %cst_89 {dimension_numbers = #tpu.dot_dimension_numbers<[2], [1], [1], [2], [0, 0, 0, 1, 1, 2], [0], [0]>} : vector<2x8x8xf32>, vector<2x8x8xf32>, vector<2x8x8xf32> -> vector<2x8x8xf32>
    "tpu.trace_stop"() : () -> ()
    %227 = vector.shape_cast %226 : vector<2x8x8xf32> to vector<16x8xf32>
    %228 = vector.extract_strided_slice %181 {offsets = [0, 16], sizes = [16, 8], strides = [1, 1]} : vector<16x32xf32> to vector<16x8xf32>
    %229 = vector.shape_cast %228 : vector<16x8xf32> to vector<2x8x8xf32>
    %230 = vector.extract_strided_slice %182 {offsets = [0, 16], sizes = [16, 8], strides = [1, 1]} : vector<16x32xf32> to vector<16x8xf32>
    %231 = vector.shape_cast %230 : vector<16x8xf32> to vector<2x8x8xf32>
    %232 = vector.extract_strided_slice %183 {offsets = [0, 16], sizes = [16, 8], strides = [1, 1]} : vector<16x32xf32> to vector<16x8xf32>
    %233 = vector.shape_cast %232 : vector<16x8xf32> to vector<2x8x8xf32>
    "tpu.trace_start"() <{level = 10 : i32, message = "bqd,bkd->bqk"}> : () -> ()
    %cst_90 = arith.constant dense<0.000000e+00> : vector<2x8x8xf32>
    %234 = tpu.matmul %229, %231, %cst_90 {dimension_numbers = #tpu.dot_dimension_numbers<[2], [2], [1], [1], [0, 0, 0, 1, 1, 1], [0], [0]>} : vector<2x8x8xf32>, vector<2x8x8xf32>, vector<2x8x8xf32> -> vector<2x8x8xf32>
    "tpu.trace_stop"() : () -> ()
    %cst_91 = arith.constant 0.353553385 : f32
    %235 = vector.broadcast %cst_91 : f32 to vector<2x8x8xf32>
    %236 = arith.mulf %234, %235 : vector<2x8x8xf32>
    %237 = arith.addf %236, %1 : vector<2x8x8xf32>
    %cst_92 = arith.constant dense<0xFF800000> : vector<2x8xf32>
    %238 = vector.multi_reduction <maximumf>, %237, %cst_92 [2] : vector<2x8x8xf32> to vector<2x8xf32>
    %239 = vector.shape_cast %238 : vector<2x8xf32> to vector<2x8x1xf32>
    %240 = vector.broadcast %239 : vector<2x8x1xf32> to vector<2x8x8xf32>
    %241 = arith.subf %237, %240 : vector<2x8x8xf32>
    %242 = math.exp %241 : vector<2x8x8xf32>
    %cst_93 = arith.constant dense<0.000000e+00> : vector<2x8xf32>
    %243 = vector.multi_reduction <add>, %242, %cst_93 [2] : vector<2x8x8xf32> to vector<2x8xf32>
    %244 = vector.shape_cast %243 : vector<2x8xf32> to vector<2x8x1xf32>
    %245 = tpu.reciprocal %244 {approx = true} : vector<2x8x1xf32> -> vector<2x8x1xf32>
    %246 = vector.broadcast %245 : vector<2x8x1xf32> to vector<2x8x8xf32>
    %247 = arith.mulf %242, %246 : vector<2x8x8xf32>
    "tpu.trace_start"() <{level = 10 : i32, message = "bqk,bkd->bqd"}> : () -> ()
    %cst_94 = arith.constant dense<0.000000e+00> : vector<2x8x8xf32>
    %248 = tpu.matmul %247, %233, %cst_94 {dimension_numbers = #tpu.dot_dimension_numbers<[2], [1], [1], [2], [0, 0, 0, 1, 1, 2], [0], [0]>} : vector<2x8x8xf32>, vector<2x8x8xf32>, vector<2x8x8xf32> -> vector<2x8x8xf32>
    "tpu.trace_stop"() : () -> ()
    %249 = vector.shape_cast %248 : vector<2x8x8xf32> to vector<16x8xf32>
    %250 = vector.extract_strided_slice %181 {offsets = [0, 24], sizes = [16, 8], strides = [1, 1]} : vector<16x32xf32> to vector<16x8xf32>
    %251 = vector.shape_cast %250 : vector<16x8xf32> to vector<2x8x8xf32>
    %252 = vector.extract_strided_slice %182 {offsets = [0, 24], sizes = [16, 8], strides = [1, 1]} : vector<16x32xf32> to vector<16x8xf32>
    %253 = vector.shape_cast %252 : vector<16x8xf32> to vector<2x8x8xf32>
    %254 = vector.extract_strided_slice %183 {offsets = [0, 24], sizes = [16, 8], strides = [1, 1]} : vector<16x32xf32> to vector<16x8xf32>
    %255 = vector.shape_cast %254 : vector<16x8xf32> to vector<2x8x8xf32>
    "tpu.trace_start"() <{level = 10 : i32, message = "bqd,bkd->bqk"}> : () -> ()
    %cst_95 = arith.constant dense<0.000000e+00> : vector<2x8x8xf32>
    %256 = tpu.matmul %251, %253, %cst_95 {dimension_numbers = #tpu.dot_dimension_numbers<[2], [2], [1], [1], [0, 0, 0, 1, 1, 1], [0], [0]>} : vector<2x8x8xf32>, vector<2x8x8xf32>, vector<2x8x8xf32> -> vector<2x8x8xf32>
    "tpu.trace_stop"() : () -> ()
    %cst_96 = arith.constant 0.353553385 : f32
    %257 = vector.broadcast %cst_96 : f32 to vector<2x8x8xf32>
    %258 = arith.mulf %256, %257 : vector<2x8x8xf32>
    %259 = arith.addf %258, %1 : vector<2x8x8xf32>
    %cst_97 = arith.constant dense<0xFF800000> : vector<2x8xf32>
    %260 = vector.multi_reduction <maximumf>, %259, %cst_97 [2] : vector<2x8x8xf32> to vector<2x8xf32>
    %261 = vector.shape_cast %260 : vector<2x8xf32> to vector<2x8x1xf32>
    %262 = vector.broadcast %261 : vector<2x8x1xf32> to vector<2x8x8xf32>
    %263 = arith.subf %259, %262 : vector<2x8x8xf32>
    %264 = math.exp %263 : vector<2x8x8xf32>
    %cst_98 = arith.constant dense<0.000000e+00> : vector<2x8xf32>
    %265 = vector.multi_reduction <add>, %264, %cst_98 [2] : vector<2x8x8xf32> to vector<2x8xf32>
    %266 = vector.shape_cast %265 : vector<2x8xf32> to vector<2x8x1xf32>
    %267 = tpu.reciprocal %266 {approx = true} : vector<2x8x1xf32> -> vector<2x8x1xf32>
    %268 = vector.broadcast %267 : vector<2x8x1xf32> to vector<2x8x8xf32>
    %269 = arith.mulf %264, %268 : vector<2x8x8xf32>
    "tpu.trace_start"() <{level = 10 : i32, message = "bqk,bkd->bqd"}> : () -> ()
    %cst_99 = arith.constant dense<0.000000e+00> : vector<2x8x8xf32>
    %270 = tpu.matmul %269, %255, %cst_99 {dimension_numbers = #tpu.dot_dimension_numbers<[2], [1], [1], [2], [0, 0, 0, 1, 1, 2], [0], [0]>} : vector<2x8x8xf32>, vector<2x8x8xf32>, vector<2x8x8xf32> -> vector<2x8x8xf32>
    "tpu.trace_stop"() : () -> ()
    %271 = vector.shape_cast %270 : vector<2x8x8xf32> to vector<16x8xf32>
    %272 = tpu.concatenate %205, %227, %249, %271 in 1 : vector<16x8xf32>, vector<16x8xf32>, vector<16x8xf32>, vector<16x8xf32> -> vector<16x32xf32>
    %c1_100 = arith.constant 1 : index
    %c0_101 = arith.constant 0 : index
    %c0_102 = arith.constant 0 : index
    %273 = vector.load %arg7[%c1_100, %c0_101, %c0_102] : memref<2x32x32xf32, #tpu.memory_space<vmem>>, vector<1x32x32xf32>
    %274 = vector.shape_cast %273 : vector<1x32x32xf32> to vector<32x32xf32>
    %c1_103 = arith.constant 1 : index
    %c0_104 = arith.constant 0 : index
    %c0_105 = arith.constant 0 : index
    %275 = vector.load %arg8[%c1_103, %c0_104, %c0_105] : memref<2x1x32xf32, #tpu.memory_space<vmem>>, vector<1x1x32xf32>
    %276 = vector.shape_cast %275 : vector<1x1x32xf32> to vector<1x32xf32>
    %cst_106 = arith.constant dense<0.000000e+00> : vector<16x32xf32>
    %277 = tpu.matmul %272, %274, %cst_106 {dimension_numbers = #tpu.dot_dimension_numbers<[1], [0], [0], [1], [0, 0, 1, 1], [], []>} : vector<16x32xf32>, vector<32x32xf32>, vector<16x32xf32> -> vector<16x32xf32>
    %278 = vector.broadcast %276 : vector<1x32xf32> to vector<16x32xf32>
    %279 = arith.addf %277, %278 : vector<16x32xf32>
    %280 = arith.addf %173, %279 : vector<16x32xf32>
    %c1_107 = arith.constant 1 : index
    %c0_108 = arith.constant 0 : index
    %c0_109 = arith.constant 0 : index
    %281 = vector.load %arg9[%c1_107, %c0_108, %c0_109] : memref<2x1x32xf32, #tpu.memory_space<vmem>>, vector<1x1x32xf32>
    %282 = vector.shape_cast %281 : vector<1x1x32xf32> to vector<1x32xf32>
    %c1_110 = arith.constant 1 : index
    %c0_111 = arith.constant 0 : index
    %c0_112 = arith.constant 0 : index
    %283 = vector.load %arg10[%c1_110, %c0_111, %c0_112] : memref<2x1x32xf32, #tpu.memory_space<vmem>>, vector<1x1x32xf32>
    %284 = vector.shape_cast %283 : vector<1x1x32xf32> to vector<1x32xf32>
    %cst_113 = arith.constant dense<0.000000e+00> : vector<16xf32>
    %285 = vector.multi_reduction <add>, %280, %cst_113 [1] : vector<16x32xf32> to vector<16xf32>
    %286 = vector.shape_cast %285 : vector<16xf32> to vector<16x1xf32>
    %cst_114 = arith.constant 3.200000e+01 : f32
    %287 = vector.broadcast %cst_114 : f32 to vector<16x1xf32>
    %288 = arith.divf %286, %287 : vector<16x1xf32>
    %289 = vector.broadcast %288 : vector<16x1xf32> to vector<16x32xf32>
    %290 = arith.subf %280, %289 : vector<16x32xf32>
    %291 = arith.mulf %290, %290 : vector<16x32xf32>
    %cst_115 = arith.constant dense<0.000000e+00> : vector<16xf32>
    %292 = vector.multi_reduction <add>, %291, %cst_115 [1] : vector<16x32xf32> to vector<16xf32>
    %293 = vector.shape_cast %292 : vector<16xf32> to vector<16x1xf32>
    %cst_116 = arith.constant 3.200000e+01 : f32
    %294 = vector.broadcast %cst_116 : f32 to vector<16x1xf32>
    %295 = arith.divf %293, %294 : vector<16x1xf32>
    %cst_117 = arith.constant 9.99999974E-6 : f32
    %296 = vector.broadcast %cst_117 : f32 to vector<16x1xf32>
    %297 = arith.addf %295, %296 : vector<16x1xf32>
    %298 = math.rsqrt %297 : vector<16x1xf32>
    %299 = vector.broadcast %298 : vector<16x1xf32> to vector<16x32xf32>
    %300 = arith.mulf %290, %299 : vector<16x32xf32>
    %301 = vector.broadcast %282 : vector<1x32xf32> to vector<16x32xf32>
    %302 = arith.mulf %300, %301 : vector<16x32xf32>
    %303 = vector.broadcast %284 : vector<1x32xf32> to vector<16x32xf32>
    %304 = arith.addf %302, %303 : vector<16x32xf32>
    %c1_118 = arith.constant 1 : index
    %c0_119 = arith.constant 0 : index
    %c0_120 = arith.constant 0 : index
    %305 = vector.load %arg11[%c1_118, %c0_119, %c0_120] : memref<2x32x64xf32, #tpu.memory_space<vmem>>, vector<1x32x64xf32>
    %306 = vector.shape_cast %305 : vector<1x32x64xf32> to vector<32x64xf32>
    %c1_121 = arith.constant 1 : index
    %c0_122 = arith.constant 0 : index
    %c0_123 = arith.constant 0 : index
    %307 = vector.load %arg12[%c1_121, %c0_122, %c0_123] : memref<2x1x64xf32, #tpu.memory_space<vmem>>, vector<1x1x64xf32>
    %308 = vector.shape_cast %307 : vector<1x1x64xf32> to vector<1x64xf32>
    %cst_124 = arith.constant dense<0.000000e+00> : vector<16x64xf32>
    %309 = tpu.matmul %304, %306, %cst_124 {dimension_numbers = #tpu.dot_dimension_numbers<[1], [0], [0], [1], [0, 0, 1, 1], [], []>} : vector<16x32xf32>, vector<32x64xf32>, vector<16x64xf32> -> vector<16x64xf32>
    %310 = vector.broadcast %308 : vector<1x64xf32> to vector<16x64xf32>
    %311 = arith.addf %309, %310 : vector<16x64xf32>
    %cst_125 = arith.constant 0.000000e+00 : f32
    %312 = vector.broadcast %cst_125 : f32 to vector<16x64xf32>
    %313 = arith.maximumf %311, %312 : vector<16x64xf32>
    %c1_126 = arith.constant 1 : index
    %c0_127 = arith.constant 0 : index
    %c0_128 = arith.constant 0 : index
    %314 = vector.load %arg13[%c1_126, %c0_127, %c0_128] : memref<2x64x32xf32, #tpu.memory_space<vmem>>, vector<1x64x32xf32>
    %315 = vector.shape_cast %314 : vector<1x64x32xf32> to vector<64x32xf32>
    %c1_129 = arith.constant 1 : index
    %c0_130 = arith.constant 0 : index
    %c0_131 = arith.constant 0 : index
    %316 = vector.load %arg14[%c1_129, %c0_130, %c0_131] : memref<2x1x32xf32, #tpu.memory_space<vmem>>, vector<1x1x32xf32>
    %317 = vector.shape_cast %316 : vector<1x1x32xf32> to vector<1x32xf32>
    %cst_132 = arith.constant dense<0.000000e+00> : vector<16x32xf32>
    %318 = tpu.matmul %313, %315, %cst_132 {dimension_numbers = #tpu.dot_dimension_numbers<[1], [0], [0], [1], [0, 0, 1, 1], [], []>} : vector<16x64xf32>, vector<64x32xf32>, vector<16x32xf32> -> vector<16x32xf32>
    %319 = vector.broadcast %317 : vector<1x32xf32> to vector<16x32xf32>
    %320 = arith.addf %318, %319 : vector<16x32xf32>
    %321 = arith.addf %304, %320 : vector<16x32xf32>
    %c1_133 = arith.constant 1 : index
    %c0_134 = arith.constant 0 : index
    %c0_135 = arith.constant 0 : index
    %322 = vector.load %arg15[%c1_133, %c0_134, %c0_135] : memref<2x1x32xf32, #tpu.memory_space<vmem>>, vector<1x1x32xf32>
    %323 = vector.shape_cast %322 : vector<1x1x32xf32> to vector<1x32xf32>
    %c1_136 = arith.constant 1 : index
    %c0_137 = arith.constant 0 : index
    %c0_138 = arith.constant 0 : index
    %324 = vector.load %arg16[%c1_136, %c0_137, %c0_138] : memref<2x1x32xf32, #tpu.memory_space<vmem>>, vector<1x1x32xf32>
    %325 = vector.shape_cast %324 : vector<1x1x32xf32> to vector<1x32xf32>
    %cst_139 = arith.constant dense<0.000000e+00> : vector<16xf32>
    %326 = vector.multi_reduction <add>, %321, %cst_139 [1] : vector<16x32xf32> to vector<16xf32>
    %327 = vector.shape_cast %326 : vector<16xf32> to vector<16x1xf32>
    %cst_140 = arith.constant 3.200000e+01 : f32
    %328 = vector.broadcast %cst_140 : f32 to vector<16x1xf32>
    %329 = arith.divf %327, %328 : vector<16x1xf32>
    %330 = vector.broadcast %329 : vector<16x1xf32> to vector<16x32xf32>
    %331 = arith.subf %321, %330 : vector<16x32xf32>
    %332 = arith.mulf %331, %331 : vector<16x32xf32>
    %cst_141 = arith.constant dense<0.000000e+00> : vector<16xf32>
    %333 = vector.multi_reduction <add>, %332, %cst_141 [1] : vector<16x32xf32> to vector<16xf32>
    %334 = vector.shape_cast %333 : vector<16xf32> to vector<16x1xf32>
    %cst_142 = arith.constant 3.200000e+01 : f32
    %335 = vector.broadcast %cst_142 : f32 to vector<16x1xf32>
    %336 = arith.divf %334, %335 : vector<16x1xf32>
    %cst_143 = arith.constant 9.99999974E-6 : f32
    %337 = vector.broadcast %cst_143 : f32 to vector<16x1xf32>
    %338 = arith.addf %336, %337 : vector<16x1xf32>
    %339 = math.rsqrt %338 : vector<16x1xf32>
    %340 = vector.broadcast %339 : vector<16x1xf32> to vector<16x32xf32>
    %341 = arith.mulf %331, %340 : vector<16x32xf32>
    %342 = vector.broadcast %323 : vector<1x32xf32> to vector<16x32xf32>
    %343 = arith.mulf %341, %342 : vector<16x32xf32>
    %344 = vector.broadcast %325 : vector<1x32xf32> to vector<16x32xf32>
    %345 = arith.addf %343, %344 : vector<16x32xf32>
    %c0_144 = arith.constant 0 : index
    %c0_145 = arith.constant 0 : index
    %346 = vector.load %arg1[%c0_144, %c0_145] : memref<16x32xf32, #tpu.memory_space<vmem>>, vector<16x32xf32>
    %c0_146 = arith.constant 0 : index
    %c0_147 = arith.constant 0 : index
    %c0_148 = arith.constant 0 : index
    %347 = vector.load %arg3[%c0_146, %c0_147, %c0_148] : memref<2x8x8xf32, #tpu.memory_space<vmem>>, vector<2x8x8xf32>
    %c0_149 = arith.constant 0 : index
    %c0_150 = arith.constant 0 : index
    %c0_151 = arith.constant 0 : index
    %348 = vector.load %arg4[%c0_149, %c0_150, %c0_151] : memref<2x8x8xf32, #tpu.memory_space<vmem>>, vector<2x8x8xf32>
    %c0_152 = arith.constant 0 : index
    %c0_153 = arith.constant 0 : index
    %c0_154 = arith.constant 0 : index
    %349 = vector.load %arg17[%c0_152, %c0_153, %c0_154] : memref<2x32x96xf32, #tpu.memory_space<vmem>>, vector<1x32x96xf32>
    %350 = vector.shape_cast %349 : vector<1x32x96xf32> to vector<32x96xf32>
    %c0_155 = arith.constant 0 : index
    %c0_156 = arith.constant 0 : index
    %c0_157 = arith.constant 0 : index
    %351 = vector.load %arg18[%c0_155, %c0_156, %c0_157] : memref<2x1x96xf32, #tpu.memory_space<vmem>>, vector<1x1x96xf32>
    %352 = vector.shape_cast %351 : vector<1x1x96xf32> to vector<1x96xf32>
    %cst_158 = arith.constant dense<0.000000e+00> : vector<16x96xf32>
    %353 = tpu.matmul %346, %350, %cst_158 {dimension_numbers = #tpu.dot_dimension_numbers<[1], [0], [0], [1], [0, 0, 1, 1], [], []>} : vector<16x32xf32>, vector<32x96xf32>, vector<16x96xf32> -> vector<16x96xf32>
    %354 = vector.broadcast %352 : vector<1x96xf32> to vector<16x96xf32>
    %355 = arith.addf %353, %354 : vector<16x96xf32>
    %356 = vector.extract_strided_slice %355 {offsets = [0, 0], sizes = [16, 32], strides = [1, 1]} : vector<16x96xf32> to vector<16x32xf32>
    %357 = vector.extract_strided_slice %355 {offsets = [0, 32], sizes = [16, 32], strides = [1, 1]} : vector<16x96xf32> to vector<16x32xf32>
    %358 = vector.extract_strided_slice %355 {offsets = [0, 64], sizes = [16, 32], strides = [1, 1]} : vector<16x96xf32> to vector<16x32xf32>
    %359 = vector.extract_strided_slice %356 {offsets = [0, 0], sizes = [16, 8], strides = [1, 1]} : vector<16x32xf32> to vector<16x8xf32>
    %360 = vector.shape_cast %359 : vector<16x8xf32> to vector<2x8x8xf32>
    %361 = vector.extract_strided_slice %357 {offsets = [0, 0], sizes = [16, 8], strides = [1, 1]} : vector<16x32xf32> to vector<16x8xf32>
    %362 = vector.shape_cast %361 : vector<16x8xf32> to vector<2x8x8xf32>
    %363 = vector.extract_strided_slice %358 {offsets = [0, 0], sizes = [16, 8], strides = [1, 1]} : vector<16x32xf32> to vector<16x8xf32>
    %364 = vector.shape_cast %363 : vector<16x8xf32> to vector<2x8x8xf32>
    "tpu.trace_start"() <{level = 10 : i32, message = "bqd,bkd->bqk"}> : () -> ()
    %cst_159 = arith.constant dense<0.000000e+00> : vector<2x8x8xf32>
    %365 = tpu.matmul %360, %362, %cst_159 {dimension_numbers = #tpu.dot_dimension_numbers<[2], [2], [1], [1], [0, 0, 0, 1, 1, 1], [0], [0]>} : vector<2x8x8xf32>, vector<2x8x8xf32>, vector<2x8x8xf32> -> vector<2x8x8xf32>
    "tpu.trace_stop"() : () -> ()
    %cst_160 = arith.constant 0.353553385 : f32
    %366 = vector.broadcast %cst_160 : f32 to vector<2x8x8xf32>
    %367 = arith.mulf %365, %366 : vector<2x8x8xf32>
    %368 = arith.addf %367, %347 : vector<2x8x8xf32>
    %cst_161 = arith.constant dense<0xFF800000> : vector<2x8xf32>
    %369 = vector.multi_reduction <maximumf>, %368, %cst_161 [2] : vector<2x8x8xf32> to vector<2x8xf32>
    %370 = vector.shape_cast %369 : vector<2x8xf32> to vector<2x8x1xf32>
    %371 = vector.broadcast %370 : vector<2x8x1xf32> to vector<2x8x8xf32>
    %372 = arith.subf %368, %371 : vector<2x8x8xf32>
    %373 = math.exp %372 : vector<2x8x8xf32>
    %cst_162 = arith.constant dense<0.000000e+00> : vector<2x8xf32>
    %374 = vector.multi_reduction <add>, %373, %cst_162 [2] : vector<2x8x8xf32> to vector<2x8xf32>
    %375 = vector.shape_cast %374 : vector<2x8xf32> to vector<2x8x1xf32>
    %376 = tpu.reciprocal %375 {approx = true} : vector<2x8x1xf32> -> vector<2x8x1xf32>
    %377 = vector.broadcast %376 : vector<2x8x1xf32> to vector<2x8x8xf32>
    %378 = arith.mulf %373, %377 : vector<2x8x8xf32>
    "tpu.trace_start"() <{level = 10 : i32, message = "bqk,bkd->bqd"}> : () -> ()
    %cst_163 = arith.constant dense<0.000000e+00> : vector<2x8x8xf32>
    %379 = tpu.matmul %378, %364, %cst_163 {dimension_numbers = #tpu.dot_dimension_numbers<[2], [1], [1], [2], [0, 0, 0, 1, 1, 2], [0], [0]>} : vector<2x8x8xf32>, vector<2x8x8xf32>, vector<2x8x8xf32> -> vector<2x8x8xf32>
    "tpu.trace_stop"() : () -> ()
    %380 = vector.shape_cast %379 : vector<2x8x8xf32> to vector<16x8xf32>
    %381 = vector.extract_strided_slice %356 {offsets = [0, 8], sizes = [16, 8], strides = [1, 1]} : vector<16x32xf32> to vector<16x8xf32>
    %382 = vector.shape_cast %381 : vector<16x8xf32> to vector<2x8x8xf32>
    %383 = vector.extract_strided_slice %357 {offsets = [0, 8], sizes = [16, 8], strides = [1, 1]} : vector<16x32xf32> to vector<16x8xf32>
    %384 = vector.shape_cast %383 : vector<16x8xf32> to vector<2x8x8xf32>
    %385 = vector.extract_strided_slice %358 {offsets = [0, 8], sizes = [16, 8], strides = [1, 1]} : vector<16x32xf32> to vector<16x8xf32>
    %386 = vector.shape_cast %385 : vector<16x8xf32> to vector<2x8x8xf32>
    "tpu.trace_start"() <{level = 10 : i32, message = "bqd,bkd->bqk"}> : () -> ()
    %cst_164 = arith.constant dense<0.000000e+00> : vector<2x8x8xf32>
    %387 = tpu.matmul %382, %384, %cst_164 {dimension_numbers = #tpu.dot_dimension_numbers<[2], [2], [1], [1], [0, 0, 0, 1, 1, 1], [0], [0]>} : vector<2x8x8xf32>, vector<2x8x8xf32>, vector<2x8x8xf32> -> vector<2x8x8xf32>
    "tpu.trace_stop"() : () -> ()
    %cst_165 = arith.constant 0.353553385 : f32
    %388 = vector.broadcast %cst_165 : f32 to vector<2x8x8xf32>
    %389 = arith.mulf %387, %388 : vector<2x8x8xf32>
    %390 = arith.addf %389, %347 : vector<2x8x8xf32>
    %cst_166 = arith.constant dense<0xFF800000> : vector<2x8xf32>
    %391 = vector.multi_reduction <maximumf>, %390, %cst_166 [2] : vector<2x8x8xf32> to vector<2x8xf32>
    %392 = vector.shape_cast %391 : vector<2x8xf32> to vector<2x8x1xf32>
    %393 = vector.broadcast %392 : vector<2x8x1xf32> to vector<2x8x8xf32>
    %394 = arith.subf %390, %393 : vector<2x8x8xf32>
    %395 = math.exp %394 : vector<2x8x8xf32>
    %cst_167 = arith.constant dense<0.000000e+00> : vector<2x8xf32>
    %396 = vector.multi_reduction <add>, %395, %cst_167 [2] : vector<2x8x8xf32> to vector<2x8xf32>
    %397 = vector.shape_cast %396 : vector<2x8xf32> to vector<2x8x1xf32>
    %398 = tpu.reciprocal %397 {approx = true} : vector<2x8x1xf32> -> vector<2x8x1xf32>
    %399 = vector.broadcast %398 : vector<2x8x1xf32> to vector<2x8x8xf32>
    %400 = arith.mulf %395, %399 : vector<2x8x8xf32>
    "tpu.trace_start"() <{level = 10 : i32, message = "bqk,bkd->bqd"}> : () -> ()
    %cst_168 = arith.constant dense<0.000000e+00> : vector<2x8x8xf32>
    %401 = tpu.matmul %400, %386, %cst_168 {dimension_numbers = #tpu.dot_dimension_numbers<[2], [1], [1], [2], [0, 0, 0, 1, 1, 2], [0], [0]>} : vector<2x8x8xf32>, vector<2x8x8xf32>, vector<2x8x8xf32> -> vector<2x8x8xf32>
    "tpu.trace_stop"() : () -> ()
    %402 = vector.shape_cast %401 : vector<2x8x8xf32> to vector<16x8xf32>
    %403 = vector.extract_strided_slice %356 {offsets = [0, 16], sizes = [16, 8], strides = [1, 1]} : vector<16x32xf32> to vector<16x8xf32>
    %404 = vector.shape_cast %403 : vector<16x8xf32> to vector<2x8x8xf32>
    %405 = vector.extract_strided_slice %357 {offsets = [0, 16], sizes = [16, 8], strides = [1, 1]} : vector<16x32xf32> to vector<16x8xf32>
    %406 = vector.shape_cast %405 : vector<16x8xf32> to vector<2x8x8xf32>
    %407 = vector.extract_strided_slice %358 {offsets = [0, 16], sizes = [16, 8], strides = [1, 1]} : vector<16x32xf32> to vector<16x8xf32>
    %408 = vector.shape_cast %407 : vector<16x8xf32> to vector<2x8x8xf32>
    "tpu.trace_start"() <{level = 10 : i32, message = "bqd,bkd->bqk"}> : () -> ()
    %cst_169 = arith.constant dense<0.000000e+00> : vector<2x8x8xf32>
    %409 = tpu.matmul %404, %406, %cst_169 {dimension_numbers = #tpu.dot_dimension_numbers<[2], [2], [1], [1], [0, 0, 0, 1, 1, 1], [0], [0]>} : vector<2x8x8xf32>, vector<2x8x8xf32>, vector<2x8x8xf32> -> vector<2x8x8xf32>
    "tpu.trace_stop"() : () -> ()
    %cst_170 = arith.constant 0.353553385 : f32
    %410 = vector.broadcast %cst_170 : f32 to vector<2x8x8xf32>
    %411 = arith.mulf %409, %410 : vector<2x8x8xf32>
    %412 = arith.addf %411, %347 : vector<2x8x8xf32>
    %cst_171 = arith.constant dense<0xFF800000> : vector<2x8xf32>
    %413 = vector.multi_reduction <maximumf>, %412, %cst_171 [2] : vector<2x8x8xf32> to vector<2x8xf32>
    %414 = vector.shape_cast %413 : vector<2x8xf32> to vector<2x8x1xf32>
    %415 = vector.broadcast %414 : vector<2x8x1xf32> to vector<2x8x8xf32>
    %416 = arith.subf %412, %415 : vector<2x8x8xf32>
    %417 = math.exp %416 : vector<2x8x8xf32>
    %cst_172 = arith.constant dense<0.000000e+00> : vector<2x8xf32>
    %418 = vector.multi_reduction <add>, %417, %cst_172 [2] : vector<2x8x8xf32> to vector<2x8xf32>
    %419 = vector.shape_cast %418 : vector<2x8xf32> to vector<2x8x1xf32>
    %420 = tpu.reciprocal %419 {approx = true} : vector<2x8x1xf32> -> vector<2x8x1xf32>
    %421 = vector.broadcast %420 : vector<2x8x1xf32> to vector<2x8x8xf32>
    %422 = arith.mulf %417, %421 : vector<2x8x8xf32>
    "tpu.trace_start"() <{level = 10 : i32, message = "bqk,bkd->bqd"}> : () -> ()
    %cst_173 = arith.constant dense<0.000000e+00> : vector<2x8x8xf32>
    %423 = tpu.matmul %422, %408, %cst_173 {dimension_numbers = #tpu.dot_dimension_numbers<[2], [1], [1], [2], [0, 0, 0, 1, 1, 2], [0], [0]>} : vector<2x8x8xf32>, vector<2x8x8xf32>, vector<2x8x8xf32> -> vector<2x8x8xf32>
    "tpu.trace_stop"() : () -> ()
    %424 = vector.shape_cast %423 : vector<2x8x8xf32> to vector<16x8xf32>
    %425 = vector.extract_strided_slice %356 {offsets = [0, 24], sizes = [16, 8], strides = [1, 1]} : vector<16x32xf32> to vector<16x8xf32>
    %426 = vector.shape_cast %425 : vector<16x8xf32> to vector<2x8x8xf32>
    %427 = vector.extract_strided_slice %357 {offsets = [0, 24], sizes = [16, 8], strides = [1, 1]} : vector<16x32xf32> to vector<16x8xf32>
    %428 = vector.shape_cast %427 : vector<16x8xf32> to vector<2x8x8xf32>
    %429 = vector.extract_strided_slice %358 {offsets = [0, 24], sizes = [16, 8], strides = [1, 1]} : vector<16x32xf32> to vector<16x8xf32>
    %430 = vector.shape_cast %429 : vector<16x8xf32> to vector<2x8x8xf32>
    "tpu.trace_start"() <{level = 10 : i32, message = "bqd,bkd->bqk"}> : () -> ()
    %cst_174 = arith.constant dense<0.000000e+00> : vector<2x8x8xf32>
    %431 = tpu.matmul %426, %428, %cst_174 {dimension_numbers = #tpu.dot_dimension_numbers<[2], [2], [1], [1], [0, 0, 0, 1, 1, 1], [0], [0]>} : vector<2x8x8xf32>, vector<2x8x8xf32>, vector<2x8x8xf32> -> vector<2x8x8xf32>
    "tpu.trace_stop"() : () -> ()
    %cst_175 = arith.constant 0.353553385 : f32
    %432 = vector.broadcast %cst_175 : f32 to vector<2x8x8xf32>
    %433 = arith.mulf %431, %432 : vector<2x8x8xf32>
    %434 = arith.addf %433, %347 : vector<2x8x8xf32>
    %cst_176 = arith.constant dense<0xFF800000> : vector<2x8xf32>
    %435 = vector.multi_reduction <maximumf>, %434, %cst_176 [2] : vector<2x8x8xf32> to vector<2x8xf32>
    %436 = vector.shape_cast %435 : vector<2x8xf32> to vector<2x8x1xf32>
    %437 = vector.broadcast %436 : vector<2x8x1xf32> to vector<2x8x8xf32>
    %438 = arith.subf %434, %437 : vector<2x8x8xf32>
    %439 = math.exp %438 : vector<2x8x8xf32>
    %cst_177 = arith.constant dense<0.000000e+00> : vector<2x8xf32>
    %440 = vector.multi_reduction <add>, %439, %cst_177 [2] : vector<2x8x8xf32> to vector<2x8xf32>
    %441 = vector.shape_cast %440 : vector<2x8xf32> to vector<2x8x1xf32>
    %442 = tpu.reciprocal %441 {approx = true} : vector<2x8x1xf32> -> vector<2x8x1xf32>
    %443 = vector.broadcast %442 : vector<2x8x1xf32> to vector<2x8x8xf32>
    %444 = arith.mulf %439, %443 : vector<2x8x8xf32>
    "tpu.trace_start"() <{level = 10 : i32, message = "bqk,bkd->bqd"}> : () -> ()
    %cst_178 = arith.constant dense<0.000000e+00> : vector<2x8x8xf32>
    %445 = tpu.matmul %444, %430, %cst_178 {dimension_numbers = #tpu.dot_dimension_numbers<[2], [1], [1], [2], [0, 0, 0, 1, 1, 2], [0], [0]>} : vector<2x8x8xf32>, vector<2x8x8xf32>, vector<2x8x8xf32> -> vector<2x8x8xf32>
    "tpu.trace_stop"() : () -> ()
    %446 = vector.shape_cast %445 : vector<2x8x8xf32> to vector<16x8xf32>
    %447 = tpu.concatenate %380, %402, %424, %446 in 1 : vector<16x8xf32>, vector<16x8xf32>, vector<16x8xf32>, vector<16x8xf32> -> vector<16x32xf32>
    %c0_179 = arith.constant 0 : index
    %c0_180 = arith.constant 0 : index
    %c0_181 = arith.constant 0 : index
    %448 = vector.load %arg19[%c0_179, %c0_180, %c0_181] : memref<2x32x32xf32, #tpu.memory_space<vmem>>, vector<1x32x32xf32>
    %449 = vector.shape_cast %448 : vector<1x32x32xf32> to vector<32x32xf32>
    %c0_182 = arith.constant 0 : index
    %c0_183 = arith.constant 0 : index
    %c0_184 = arith.constant 0 : index
    %450 = vector.load %arg20[%c0_182, %c0_183, %c0_184] : memref<2x1x32xf32, #tpu.memory_space<vmem>>, vector<1x1x32xf32>
    %451 = vector.shape_cast %450 : vector<1x1x32xf32> to vector<1x32xf32>
    %cst_185 = arith.constant dense<0.000000e+00> : vector<16x32xf32>
    %452 = tpu.matmul %447, %449, %cst_185 {dimension_numbers = #tpu.dot_dimension_numbers<[1], [0], [0], [1], [0, 0, 1, 1], [], []>} : vector<16x32xf32>, vector<32x32xf32>, vector<16x32xf32> -> vector<16x32xf32>
    %453 = vector.broadcast %451 : vector<1x32xf32> to vector<16x32xf32>
    %454 = arith.addf %452, %453 : vector<16x32xf32>
    %455 = arith.addf %346, %454 : vector<16x32xf32>
    %c0_186 = arith.constant 0 : index
    %c0_187 = arith.constant 0 : index
    %c0_188 = arith.constant 0 : index
    %456 = vector.load %arg21[%c0_186, %c0_187, %c0_188] : memref<2x1x32xf32, #tpu.memory_space<vmem>>, vector<1x1x32xf32>
    %457 = vector.shape_cast %456 : vector<1x1x32xf32> to vector<1x32xf32>
    %c0_189 = arith.constant 0 : index
    %c0_190 = arith.constant 0 : index
    %c0_191 = arith.constant 0 : index
    %458 = vector.load %arg22[%c0_189, %c0_190, %c0_191] : memref<2x1x32xf32, #tpu.memory_space<vmem>>, vector<1x1x32xf32>
    %459 = vector.shape_cast %458 : vector<1x1x32xf32> to vector<1x32xf32>
    %cst_192 = arith.constant dense<0.000000e+00> : vector<16xf32>
    %460 = vector.multi_reduction <add>, %455, %cst_192 [1] : vector<16x32xf32> to vector<16xf32>
    %461 = vector.shape_cast %460 : vector<16xf32> to vector<16x1xf32>
    %cst_193 = arith.constant 3.200000e+01 : f32
    %462 = vector.broadcast %cst_193 : f32 to vector<16x1xf32>
    %463 = arith.divf %461, %462 : vector<16x1xf32>
    %464 = vector.broadcast %463 : vector<16x1xf32> to vector<16x32xf32>
    %465 = arith.subf %455, %464 : vector<16x32xf32>
    %466 = arith.mulf %465, %465 : vector<16x32xf32>
    %cst_194 = arith.constant dense<0.000000e+00> : vector<16xf32>
    %467 = vector.multi_reduction <add>, %466, %cst_194 [1] : vector<16x32xf32> to vector<16xf32>
    %468 = vector.shape_cast %467 : vector<16xf32> to vector<16x1xf32>
    %cst_195 = arith.constant 3.200000e+01 : f32
    %469 = vector.broadcast %cst_195 : f32 to vector<16x1xf32>
    %470 = arith.divf %468, %469 : vector<16x1xf32>
    %cst_196 = arith.constant 9.99999974E-6 : f32
    %471 = vector.broadcast %cst_196 : f32 to vector<16x1xf32>
    %472 = arith.addf %470, %471 : vector<16x1xf32>
    %473 = math.rsqrt %472 : vector<16x1xf32>
    %474 = vector.broadcast %473 : vector<16x1xf32> to vector<16x32xf32>
    %475 = arith.mulf %465, %474 : vector<16x32xf32>
    %476 = vector.broadcast %457 : vector<1x32xf32> to vector<16x32xf32>
    %477 = arith.mulf %475, %476 : vector<16x32xf32>
    %478 = vector.broadcast %459 : vector<1x32xf32> to vector<16x32xf32>
    %479 = arith.addf %477, %478 : vector<16x32xf32>
    %c0_197 = arith.constant 0 : index
    %c0_198 = arith.constant 0 : index
    %c0_199 = arith.constant 0 : index
    %480 = vector.load %arg23[%c0_197, %c0_198, %c0_199] : memref<2x32x32xf32, #tpu.memory_space<vmem>>, vector<1x32x32xf32>
    %481 = vector.shape_cast %480 : vector<1x32x32xf32> to vector<32x32xf32>
    %c0_200 = arith.constant 0 : index
    %c0_201 = arith.constant 0 : index
    %c0_202 = arith.constant 0 : index
    %482 = vector.load %arg24[%c0_200, %c0_201, %c0_202] : memref<2x1x32xf32, #tpu.memory_space<vmem>>, vector<1x1x32xf32>
    %483 = vector.shape_cast %482 : vector<1x1x32xf32> to vector<1x32xf32>
    %cst_203 = arith.constant dense<0.000000e+00> : vector<16x32xf32>
    %484 = tpu.matmul %479, %481, %cst_203 {dimension_numbers = #tpu.dot_dimension_numbers<[1], [0], [0], [1], [0, 0, 1, 1], [], []>} : vector<16x32xf32>, vector<32x32xf32>, vector<16x32xf32> -> vector<16x32xf32>
    %485 = vector.broadcast %483 : vector<1x32xf32> to vector<16x32xf32>
    %486 = arith.addf %484, %485 : vector<16x32xf32>
    %c0_204 = arith.constant 0 : index
    %c0_205 = arith.constant 0 : index
    %c0_206 = arith.constant 0 : index
    %487 = vector.load %arg25[%c0_204, %c0_205, %c0_206] : memref<2x32x64xf32, #tpu.memory_space<vmem>>, vector<1x32x64xf32>
    %488 = vector.shape_cast %487 : vector<1x32x64xf32> to vector<32x64xf32>
    %c0_207 = arith.constant 0 : index
    %c0_208 = arith.constant 0 : index
    %c0_209 = arith.constant 0 : index
    %489 = vector.load %arg26[%c0_207, %c0_208, %c0_209] : memref<2x1x64xf32, #tpu.memory_space<vmem>>, vector<1x1x64xf32>
    %490 = vector.shape_cast %489 : vector<1x1x64xf32> to vector<1x64xf32>
    %cst_210 = arith.constant dense<0.000000e+00> : vector<16x64xf32>
    %491 = tpu.matmul %345, %488, %cst_210 {dimension_numbers = #tpu.dot_dimension_numbers<[1], [0], [0], [1], [0, 0, 1, 1], [], []>} : vector<16x32xf32>, vector<32x64xf32>, vector<16x64xf32> -> vector<16x64xf32>
    %492 = vector.broadcast %490 : vector<1x64xf32> to vector<16x64xf32>
    %493 = arith.addf %491, %492 : vector<16x64xf32>
    %494 = vector.extract_strided_slice %493 {offsets = [0, 0], sizes = [16, 32], strides = [1, 1]} : vector<16x64xf32> to vector<16x32xf32>
    %495 = vector.extract_strided_slice %493 {offsets = [0, 32], sizes = [16, 32], strides = [1, 1]} : vector<16x64xf32> to vector<16x32xf32>
    %496 = vector.extract_strided_slice %486 {offsets = [0, 0], sizes = [16, 8], strides = [1, 1]} : vector<16x32xf32> to vector<16x8xf32>
    %497 = vector.shape_cast %496 : vector<16x8xf32> to vector<2x8x8xf32>
    %498 = vector.extract_strided_slice %494 {offsets = [0, 0], sizes = [16, 8], strides = [1, 1]} : vector<16x32xf32> to vector<16x8xf32>
    %499 = vector.shape_cast %498 : vector<16x8xf32> to vector<2x8x8xf32>
    %500 = vector.extract_strided_slice %495 {offsets = [0, 0], sizes = [16, 8], strides = [1, 1]} : vector<16x32xf32> to vector<16x8xf32>
    %501 = vector.shape_cast %500 : vector<16x8xf32> to vector<2x8x8xf32>
    "tpu.trace_start"() <{level = 10 : i32, message = "bqd,bkd->bqk"}> : () -> ()
    %cst_211 = arith.constant dense<0.000000e+00> : vector<2x8x8xf32>
    %502 = tpu.matmul %497, %499, %cst_211 {dimension_numbers = #tpu.dot_dimension_numbers<[2], [2], [1], [1], [0, 0, 0, 1, 1, 1], [0], [0]>} : vector<2x8x8xf32>, vector<2x8x8xf32>, vector<2x8x8xf32> -> vector<2x8x8xf32>
    "tpu.trace_stop"() : () -> ()
    %cst_212 = arith.constant 0.353553385 : f32
    %503 = vector.broadcast %cst_212 : f32 to vector<2x8x8xf32>
    %504 = arith.mulf %502, %503 : vector<2x8x8xf32>
    %505 = arith.addf %504, %348 : vector<2x8x8xf32>
    %cst_213 = arith.constant dense<0xFF800000> : vector<2x8xf32>
    %506 = vector.multi_reduction <maximumf>, %505, %cst_213 [2] : vector<2x8x8xf32> to vector<2x8xf32>
    %507 = vector.shape_cast %506 : vector<2x8xf32> to vector<2x8x1xf32>
    %508 = vector.broadcast %507 : vector<2x8x1xf32> to vector<2x8x8xf32>
    %509 = arith.subf %505, %508 : vector<2x8x8xf32>
    %510 = math.exp %509 : vector<2x8x8xf32>
    %cst_214 = arith.constant dense<0.000000e+00> : vector<2x8xf32>
    %511 = vector.multi_reduction <add>, %510, %cst_214 [2] : vector<2x8x8xf32> to vector<2x8xf32>
    %512 = vector.shape_cast %511 : vector<2x8xf32> to vector<2x8x1xf32>
    %513 = tpu.reciprocal %512 {approx = true} : vector<2x8x1xf32> -> vector<2x8x1xf32>
    %514 = vector.broadcast %513 : vector<2x8x1xf32> to vector<2x8x8xf32>
    %515 = arith.mulf %510, %514 : vector<2x8x8xf32>
    "tpu.trace_start"() <{level = 10 : i32, message = "bqk,bkd->bqd"}> : () -> ()
    %cst_215 = arith.constant dense<0.000000e+00> : vector<2x8x8xf32>
    %516 = tpu.matmul %515, %501, %cst_215 {dimension_numbers = #tpu.dot_dimension_numbers<[2], [1], [1], [2], [0, 0, 0, 1, 1, 2], [0], [0]>} : vector<2x8x8xf32>, vector<2x8x8xf32>, vector<2x8x8xf32> -> vector<2x8x8xf32>
    "tpu.trace_stop"() : () -> ()
    %517 = vector.shape_cast %516 : vector<2x8x8xf32> to vector<16x8xf32>
    %518 = vector.extract_strided_slice %486 {offsets = [0, 8], sizes = [16, 8], strides = [1, 1]} : vector<16x32xf32> to vector<16x8xf32>
    %519 = vector.shape_cast %518 : vector<16x8xf32> to vector<2x8x8xf32>
    %520 = vector.extract_strided_slice %494 {offsets = [0, 8], sizes = [16, 8], strides = [1, 1]} : vector<16x32xf32> to vector<16x8xf32>
    %521 = vector.shape_cast %520 : vector<16x8xf32> to vector<2x8x8xf32>
    %522 = vector.extract_strided_slice %495 {offsets = [0, 8], sizes = [16, 8], strides = [1, 1]} : vector<16x32xf32> to vector<16x8xf32>
    %523 = vector.shape_cast %522 : vector<16x8xf32> to vector<2x8x8xf32>
    "tpu.trace_start"() <{level = 10 : i32, message = "bqd,bkd->bqk"}> : () -> ()
    %cst_216 = arith.constant dense<0.000000e+00> : vector<2x8x8xf32>
    %524 = tpu.matmul %519, %521, %cst_216 {dimension_numbers = #tpu.dot_dimension_numbers<[2], [2], [1], [1], [0, 0, 0, 1, 1, 1], [0], [0]>} : vector<2x8x8xf32>, vector<2x8x8xf32>, vector<2x8x8xf32> -> vector<2x8x8xf32>
    "tpu.trace_stop"() : () -> ()
    %cst_217 = arith.constant 0.353553385 : f32
    %525 = vector.broadcast %cst_217 : f32 to vector<2x8x8xf32>
    %526 = arith.mulf %524, %525 : vector<2x8x8xf32>
    %527 = arith.addf %526, %348 : vector<2x8x8xf32>
    %cst_218 = arith.constant dense<0xFF800000> : vector<2x8xf32>
    %528 = vector.multi_reduction <maximumf>, %527, %cst_218 [2] : vector<2x8x8xf32> to vector<2x8xf32>
    %529 = vector.shape_cast %528 : vector<2x8xf32> to vector<2x8x1xf32>
    %530 = vector.broadcast %529 : vector<2x8x1xf32> to vector<2x8x8xf32>
    %531 = arith.subf %527, %530 : vector<2x8x8xf32>
    %532 = math.exp %531 : vector<2x8x8xf32>
    %cst_219 = arith.constant dense<0.000000e+00> : vector<2x8xf32>
    %533 = vector.multi_reduction <add>, %532, %cst_219 [2] : vector<2x8x8xf32> to vector<2x8xf32>
    %534 = vector.shape_cast %533 : vector<2x8xf32> to vector<2x8x1xf32>
    %535 = tpu.reciprocal %534 {approx = true} : vector<2x8x1xf32> -> vector<2x8x1xf32>
    %536 = vector.broadcast %535 : vector<2x8x1xf32> to vector<2x8x8xf32>
    %537 = arith.mulf %532, %536 : vector<2x8x8xf32>
    "tpu.trace_start"() <{level = 10 : i32, message = "bqk,bkd->bqd"}> : () -> ()
    %cst_220 = arith.constant dense<0.000000e+00> : vector<2x8x8xf32>
    %538 = tpu.matmul %537, %523, %cst_220 {dimension_numbers = #tpu.dot_dimension_numbers<[2], [1], [1], [2], [0, 0, 0, 1, 1, 2], [0], [0]>} : vector<2x8x8xf32>, vector<2x8x8xf32>, vector<2x8x8xf32> -> vector<2x8x8xf32>
    "tpu.trace_stop"() : () -> ()
    %539 = vector.shape_cast %538 : vector<2x8x8xf32> to vector<16x8xf32>
    %540 = vector.extract_strided_slice %486 {offsets = [0, 16], sizes = [16, 8], strides = [1, 1]} : vector<16x32xf32> to vector<16x8xf32>
    %541 = vector.shape_cast %540 : vector<16x8xf32> to vector<2x8x8xf32>
    %542 = vector.extract_strided_slice %494 {offsets = [0, 16], sizes = [16, 8], strides = [1, 1]} : vector<16x32xf32> to vector<16x8xf32>
    %543 = vector.shape_cast %542 : vector<16x8xf32> to vector<2x8x8xf32>
    %544 = vector.extract_strided_slice %495 {offsets = [0, 16], sizes = [16, 8], strides = [1, 1]} : vector<16x32xf32> to vector<16x8xf32>
    %545 = vector.shape_cast %544 : vector<16x8xf32> to vector<2x8x8xf32>
    "tpu.trace_start"() <{level = 10 : i32, message = "bqd,bkd->bqk"}> : () -> ()
    %cst_221 = arith.constant dense<0.000000e+00> : vector<2x8x8xf32>
    %546 = tpu.matmul %541, %543, %cst_221 {dimension_numbers = #tpu.dot_dimension_numbers<[2], [2], [1], [1], [0, 0, 0, 1, 1, 1], [0], [0]>} : vector<2x8x8xf32>, vector<2x8x8xf32>, vector<2x8x8xf32> -> vector<2x8x8xf32>
    "tpu.trace_stop"() : () -> ()
    %cst_222 = arith.constant 0.353553385 : f32
    %547 = vector.broadcast %cst_222 : f32 to vector<2x8x8xf32>
    %548 = arith.mulf %546, %547 : vector<2x8x8xf32>
    %549 = arith.addf %548, %348 : vector<2x8x8xf32>
    %cst_223 = arith.constant dense<0xFF800000> : vector<2x8xf32>
    %550 = vector.multi_reduction <maximumf>, %549, %cst_223 [2] : vector<2x8x8xf32> to vector<2x8xf32>
    %551 = vector.shape_cast %550 : vector<2x8xf32> to vector<2x8x1xf32>
    %552 = vector.broadcast %551 : vector<2x8x1xf32> to vector<2x8x8xf32>
    %553 = arith.subf %549, %552 : vector<2x8x8xf32>
    %554 = math.exp %553 : vector<2x8x8xf32>
    %cst_224 = arith.constant dense<0.000000e+00> : vector<2x8xf32>
    %555 = vector.multi_reduction <add>, %554, %cst_224 [2] : vector<2x8x8xf32> to vector<2x8xf32>
    %556 = vector.shape_cast %555 : vector<2x8xf32> to vector<2x8x1xf32>
    %557 = tpu.reciprocal %556 {approx = true} : vector<2x8x1xf32> -> vector<2x8x1xf32>
    %558 = vector.broadcast %557 : vector<2x8x1xf32> to vector<2x8x8xf32>
    %559 = arith.mulf %554, %558 : vector<2x8x8xf32>
    "tpu.trace_start"() <{level = 10 : i32, message = "bqk,bkd->bqd"}> : () -> ()
    %cst_225 = arith.constant dense<0.000000e+00> : vector<2x8x8xf32>
    %560 = tpu.matmul %559, %545, %cst_225 {dimension_numbers = #tpu.dot_dimension_numbers<[2], [1], [1], [2], [0, 0, 0, 1, 1, 2], [0], [0]>} : vector<2x8x8xf32>, vector<2x8x8xf32>, vector<2x8x8xf32> -> vector<2x8x8xf32>
    "tpu.trace_stop"() : () -> ()
    %561 = vector.shape_cast %560 : vector<2x8x8xf32> to vector<16x8xf32>
    %562 = vector.extract_strided_slice %486 {offsets = [0, 24], sizes = [16, 8], strides = [1, 1]} : vector<16x32xf32> to vector<16x8xf32>
    %563 = vector.shape_cast %562 : vector<16x8xf32> to vector<2x8x8xf32>
    %564 = vector.extract_strided_slice %494 {offsets = [0, 24], sizes = [16, 8], strides = [1, 1]} : vector<16x32xf32> to vector<16x8xf32>
    %565 = vector.shape_cast %564 : vector<16x8xf32> to vector<2x8x8xf32>
    %566 = vector.extract_strided_slice %495 {offsets = [0, 24], sizes = [16, 8], strides = [1, 1]} : vector<16x32xf32> to vector<16x8xf32>
    %567 = vector.shape_cast %566 : vector<16x8xf32> to vector<2x8x8xf32>
    "tpu.trace_start"() <{level = 10 : i32, message = "bqd,bkd->bqk"}> : () -> ()
    %cst_226 = arith.constant dense<0.000000e+00> : vector<2x8x8xf32>
    %568 = tpu.matmul %563, %565, %cst_226 {dimension_numbers = #tpu.dot_dimension_numbers<[2], [2], [1], [1], [0, 0, 0, 1, 1, 1], [0], [0]>} : vector<2x8x8xf32>, vector<2x8x8xf32>, vector<2x8x8xf32> -> vector<2x8x8xf32>
    "tpu.trace_stop"() : () -> ()
    %cst_227 = arith.constant 0.353553385 : f32
    %569 = vector.broadcast %cst_227 : f32 to vector<2x8x8xf32>
    %570 = arith.mulf %568, %569 : vector<2x8x8xf32>
    %571 = arith.addf %570, %348 : vector<2x8x8xf32>
    %cst_228 = arith.constant dense<0xFF800000> : vector<2x8xf32>
    %572 = vector.multi_reduction <maximumf>, %571, %cst_228 [2] : vector<2x8x8xf32> to vector<2x8xf32>
    %573 = vector.shape_cast %572 : vector<2x8xf32> to vector<2x8x1xf32>
    %574 = vector.broadcast %573 : vector<2x8x1xf32> to vector<2x8x8xf32>
    %575 = arith.subf %571, %574 : vector<2x8x8xf32>
    %576 = math.exp %575 : vector<2x8x8xf32>
    %cst_229 = arith.constant dense<0.000000e+00> : vector<2x8xf32>
    %577 = vector.multi_reduction <add>, %576, %cst_229 [2] : vector<2x8x8xf32> to vector<2x8xf32>
    %578 = vector.shape_cast %577 : vector<2x8xf32> to vector<2x8x1xf32>
    %579 = tpu.reciprocal %578 {approx = true} : vector<2x8x1xf32> -> vector<2x8x1xf32>
    %580 = vector.broadcast %579 : vector<2x8x1xf32> to vector<2x8x8xf32>
    %581 = arith.mulf %576, %580 : vector<2x8x8xf32>
    "tpu.trace_start"() <{level = 10 : i32, message = "bqk,bkd->bqd"}> : () -> ()
    %cst_230 = arith.constant dense<0.000000e+00> : vector<2x8x8xf32>
    %582 = tpu.matmul %581, %567, %cst_230 {dimension_numbers = #tpu.dot_dimension_numbers<[2], [1], [1], [2], [0, 0, 0, 1, 1, 2], [0], [0]>} : vector<2x8x8xf32>, vector<2x8x8xf32>, vector<2x8x8xf32> -> vector<2x8x8xf32>
    "tpu.trace_stop"() : () -> ()
    %583 = vector.shape_cast %582 : vector<2x8x8xf32> to vector<16x8xf32>
    %584 = tpu.concatenate %517, %539, %561, %583 in 1 : vector<16x8xf32>, vector<16x8xf32>, vector<16x8xf32>, vector<16x8xf32> -> vector<16x32xf32>
    %c0_231 = arith.constant 0 : index
    %c0_232 = arith.constant 0 : index
    %c0_233 = arith.constant 0 : index
    %585 = vector.load %arg27[%c0_231, %c0_232, %c0_233] : memref<2x32x32xf32, #tpu.memory_space<vmem>>, vector<1x32x32xf32>
    %586 = vector.shape_cast %585 : vector<1x32x32xf32> to vector<32x32xf32>
    %c0_234 = arith.constant 0 : index
    %c0_235 = arith.constant 0 : index
    %c0_236 = arith.constant 0 : index
    %587 = vector.load %arg28[%c0_234, %c0_235, %c0_236] : memref<2x1x32xf32, #tpu.memory_space<vmem>>, vector<1x1x32xf32>
    %588 = vector.shape_cast %587 : vector<1x1x32xf32> to vector<1x32xf32>
    %cst_237 = arith.constant dense<0.000000e+00> : vector<16x32xf32>
    %589 = tpu.matmul %584, %586, %cst_237 {dimension_numbers = #tpu.dot_dimension_numbers<[1], [0], [0], [1], [0, 0, 1, 1], [], []>} : vector<16x32xf32>, vector<32x32xf32>, vector<16x32xf32> -> vector<16x32xf32>
    %590 = vector.broadcast %588 : vector<1x32xf32> to vector<16x32xf32>
    %591 = arith.addf %589, %590 : vector<16x32xf32>
    %592 = arith.addf %479, %591 : vector<16x32xf32>
    %c0_238 = arith.constant 0 : index
    %c0_239 = arith.constant 0 : index
    %c0_240 = arith.constant 0 : index
    %593 = vector.load %arg29[%c0_238, %c0_239, %c0_240] : memref<2x1x32xf32, #tpu.memory_space<vmem>>, vector<1x1x32xf32>
    %594 = vector.shape_cast %593 : vector<1x1x32xf32> to vector<1x32xf32>
    %c0_241 = arith.constant 0 : index
    %c0_242 = arith.constant 0 : index
    %c0_243 = arith.constant 0 : index
    %595 = vector.load %arg30[%c0_241, %c0_242, %c0_243] : memref<2x1x32xf32, #tpu.memory_space<vmem>>, vector<1x1x32xf32>
    %596 = vector.shape_cast %595 : vector<1x1x32xf32> to vector<1x32xf32>
    %cst_244 = arith.constant dense<0.000000e+00> : vector<16xf32>
    %597 = vector.multi_reduction <add>, %592, %cst_244 [1] : vector<16x32xf32> to vector<16xf32>
    %598 = vector.shape_cast %597 : vector<16xf32> to vector<16x1xf32>
    %cst_245 = arith.constant 3.200000e+01 : f32
    %599 = vector.broadcast %cst_245 : f32 to vector<16x1xf32>
    %600 = arith.divf %598, %599 : vector<16x1xf32>
    %601 = vector.broadcast %600 : vector<16x1xf32> to vector<16x32xf32>
    %602 = arith.subf %592, %601 : vector<16x32xf32>
    %603 = arith.mulf %602, %602 : vector<16x32xf32>
    %cst_246 = arith.constant dense<0.000000e+00> : vector<16xf32>
    %604 = vector.multi_reduction <add>, %603, %cst_246 [1] : vector<16x32xf32> to vector<16xf32>
    %605 = vector.shape_cast %604 : vector<16xf32> to vector<16x1xf32>
    %cst_247 = arith.constant 3.200000e+01 : f32
    %606 = vector.broadcast %cst_247 : f32 to vector<16x1xf32>
    %607 = arith.divf %605, %606 : vector<16x1xf32>
    %cst_248 = arith.constant 9.99999974E-6 : f32
    %608 = vector.broadcast %cst_248 : f32 to vector<16x1xf32>
    %609 = arith.addf %607, %608 : vector<16x1xf32>
    %610 = math.rsqrt %609 : vector<16x1xf32>
    %611 = vector.broadcast %610 : vector<16x1xf32> to vector<16x32xf32>
    %612 = arith.mulf %602, %611 : vector<16x32xf32>
    %613 = vector.broadcast %594 : vector<1x32xf32> to vector<16x32xf32>
    %614 = arith.mulf %612, %613 : vector<16x32xf32>
    %615 = vector.broadcast %596 : vector<1x32xf32> to vector<16x32xf32>
    %616 = arith.addf %614, %615 : vector<16x32xf32>
    %c0_249 = arith.constant 0 : index
    %c0_250 = arith.constant 0 : index
    %c0_251 = arith.constant 0 : index
    %617 = vector.load %arg31[%c0_249, %c0_250, %c0_251] : memref<2x32x64xf32, #tpu.memory_space<vmem>>, vector<1x32x64xf32>
    %618 = vector.shape_cast %617 : vector<1x32x64xf32> to vector<32x64xf32>
    %c0_252 = arith.constant 0 : index
    %c0_253 = arith.constant 0 : index
    %c0_254 = arith.constant 0 : index
    %619 = vector.load %arg32[%c0_252, %c0_253, %c0_254] : memref<2x1x64xf32, #tpu.memory_space<vmem>>, vector<1x1x64xf32>
    %620 = vector.shape_cast %619 : vector<1x1x64xf32> to vector<1x64xf32>
    %cst_255 = arith.constant dense<0.000000e+00> : vector<16x64xf32>
    %621 = tpu.matmul %616, %618, %cst_255 {dimension_numbers = #tpu.dot_dimension_numbers<[1], [0], [0], [1], [0, 0, 1, 1], [], []>} : vector<16x32xf32>, vector<32x64xf32>, vector<16x64xf32> -> vector<16x64xf32>
    %622 = vector.broadcast %620 : vector<1x64xf32> to vector<16x64xf32>
    %623 = arith.addf %621, %622 : vector<16x64xf32>
    %cst_256 = arith.constant 0.000000e+00 : f32
    %624 = vector.broadcast %cst_256 : f32 to vector<16x64xf32>
    %625 = arith.maximumf %623, %624 : vector<16x64xf32>
    %c0_257 = arith.constant 0 : index
    %c0_258 = arith.constant 0 : index
    %c0_259 = arith.constant 0 : index
    %626 = vector.load %arg33[%c0_257, %c0_258, %c0_259] : memref<2x64x32xf32, #tpu.memory_space<vmem>>, vector<1x64x32xf32>
    %627 = vector.shape_cast %626 : vector<1x64x32xf32> to vector<64x32xf32>
    %c0_260 = arith.constant 0 : index
    %c0_261 = arith.constant 0 : index
    %c0_262 = arith.constant 0 : index
    %628 = vector.load %arg34[%c0_260, %c0_261, %c0_262] : memref<2x1x32xf32, #tpu.memory_space<vmem>>, vector<1x1x32xf32>
    %629 = vector.shape_cast %628 : vector<1x1x32xf32> to vector<1x32xf32>
    %cst_263 = arith.constant dense<0.000000e+00> : vector<16x32xf32>
    %630 = tpu.matmul %625, %627, %cst_263 {dimension_numbers = #tpu.dot_dimension_numbers<[1], [0], [0], [1], [0, 0, 1, 1], [], []>} : vector<16x64xf32>, vector<64x32xf32>, vector<16x32xf32> -> vector<16x32xf32>
    %631 = vector.broadcast %629 : vector<1x32xf32> to vector<16x32xf32>
    %632 = arith.addf %630, %631 : vector<16x32xf32>
    %633 = arith.addf %616, %632 : vector<16x32xf32>
    %c0_264 = arith.constant 0 : index
    %c0_265 = arith.constant 0 : index
    %c0_266 = arith.constant 0 : index
    %634 = vector.load %arg35[%c0_264, %c0_265, %c0_266] : memref<2x1x32xf32, #tpu.memory_space<vmem>>, vector<1x1x32xf32>
    %635 = vector.shape_cast %634 : vector<1x1x32xf32> to vector<1x32xf32>
    %c0_267 = arith.constant 0 : index
    %c0_268 = arith.constant 0 : index
    %c0_269 = arith.constant 0 : index
    %636 = vector.load %arg36[%c0_267, %c0_268, %c0_269] : memref<2x1x32xf32, #tpu.memory_space<vmem>>, vector<1x1x32xf32>
    %637 = vector.shape_cast %636 : vector<1x1x32xf32> to vector<1x32xf32>
    %cst_270 = arith.constant dense<0.000000e+00> : vector<16xf32>
    %638 = vector.multi_reduction <add>, %633, %cst_270 [1] : vector<16x32xf32> to vector<16xf32>
    %639 = vector.shape_cast %638 : vector<16xf32> to vector<16x1xf32>
    %cst_271 = arith.constant 3.200000e+01 : f32
    %640 = vector.broadcast %cst_271 : f32 to vector<16x1xf32>
    %641 = arith.divf %639, %640 : vector<16x1xf32>
    %642 = vector.broadcast %641 : vector<16x1xf32> to vector<16x32xf32>
    %643 = arith.subf %633, %642 : vector<16x32xf32>
    %644 = arith.mulf %643, %643 : vector<16x32xf32>
    %cst_272 = arith.constant dense<0.000000e+00> : vector<16xf32>
    %645 = vector.multi_reduction <add>, %644, %cst_272 [1] : vector<16x32xf32> to vector<16xf32>
    %646 = vector.shape_cast %645 : vector<16xf32> to vector<16x1xf32>
    %cst_273 = arith.constant 3.200000e+01 : f32
    %647 = vector.broadcast %cst_273 : f32 to vector<16x1xf32>
    %648 = arith.divf %646, %647 : vector<16x1xf32>
    %cst_274 = arith.constant 9.99999974E-6 : f32
    %649 = vector.broadcast %cst_274 : f32 to vector<16x1xf32>
    %650 = arith.addf %648, %649 : vector<16x1xf32>
    %651 = math.rsqrt %650 : vector<16x1xf32>
    %652 = vector.broadcast %651 : vector<16x1xf32> to vector<16x32xf32>
    %653 = arith.mulf %643, %652 : vector<16x32xf32>
    %654 = vector.broadcast %635 : vector<1x32xf32> to vector<16x32xf32>
    %655 = arith.mulf %653, %654 : vector<16x32xf32>
    %656 = vector.broadcast %637 : vector<1x32xf32> to vector<16x32xf32>
    %657 = arith.addf %655, %656 : vector<16x32xf32>
    %c1_275 = arith.constant 1 : index
    %c0_276 = arith.constant 0 : index
    %c0_277 = arith.constant 0 : index
    %658 = vector.load %arg17[%c1_275, %c0_276, %c0_277] : memref<2x32x96xf32, #tpu.memory_space<vmem>>, vector<1x32x96xf32>
    %659 = vector.shape_cast %658 : vector<1x32x96xf32> to vector<32x96xf32>
    %c1_278 = arith.constant 1 : index
    %c0_279 = arith.constant 0 : index
    %c0_280 = arith.constant 0 : index
    %660 = vector.load %arg18[%c1_278, %c0_279, %c0_280] : memref<2x1x96xf32, #tpu.memory_space<vmem>>, vector<1x1x96xf32>
    %661 = vector.shape_cast %660 : vector<1x1x96xf32> to vector<1x96xf32>
    %cst_281 = arith.constant dense<0.000000e+00> : vector<16x96xf32>
    %662 = tpu.matmul %657, %659, %cst_281 {dimension_numbers = #tpu.dot_dimension_numbers<[1], [0], [0], [1], [0, 0, 1, 1], [], []>} : vector<16x32xf32>, vector<32x96xf32>, vector<16x96xf32> -> vector<16x96xf32>
    %663 = vector.broadcast %661 : vector<1x96xf32> to vector<16x96xf32>
    %664 = arith.addf %662, %663 : vector<16x96xf32>
    %665 = vector.extract_strided_slice %664 {offsets = [0, 0], sizes = [16, 32], strides = [1, 1]} : vector<16x96xf32> to vector<16x32xf32>
    %666 = vector.extract_strided_slice %664 {offsets = [0, 32], sizes = [16, 32], strides = [1, 1]} : vector<16x96xf32> to vector<16x32xf32>
    %667 = vector.extract_strided_slice %664 {offsets = [0, 64], sizes = [16, 32], strides = [1, 1]} : vector<16x96xf32> to vector<16x32xf32>
    %668 = vector.extract_strided_slice %665 {offsets = [0, 0], sizes = [16, 8], strides = [1, 1]} : vector<16x32xf32> to vector<16x8xf32>
    %669 = vector.shape_cast %668 : vector<16x8xf32> to vector<2x8x8xf32>
    %670 = vector.extract_strided_slice %666 {offsets = [0, 0], sizes = [16, 8], strides = [1, 1]} : vector<16x32xf32> to vector<16x8xf32>
    %671 = vector.shape_cast %670 : vector<16x8xf32> to vector<2x8x8xf32>
    %672 = vector.extract_strided_slice %667 {offsets = [0, 0], sizes = [16, 8], strides = [1, 1]} : vector<16x32xf32> to vector<16x8xf32>
    %673 = vector.shape_cast %672 : vector<16x8xf32> to vector<2x8x8xf32>
    "tpu.trace_start"() <{level = 10 : i32, message = "bqd,bkd->bqk"}> : () -> ()
    %cst_282 = arith.constant dense<0.000000e+00> : vector<2x8x8xf32>
    %674 = tpu.matmul %669, %671, %cst_282 {dimension_numbers = #tpu.dot_dimension_numbers<[2], [2], [1], [1], [0, 0, 0, 1, 1, 1], [0], [0]>} : vector<2x8x8xf32>, vector<2x8x8xf32>, vector<2x8x8xf32> -> vector<2x8x8xf32>
    "tpu.trace_stop"() : () -> ()
    %cst_283 = arith.constant 0.353553385 : f32
    %675 = vector.broadcast %cst_283 : f32 to vector<2x8x8xf32>
    %676 = arith.mulf %674, %675 : vector<2x8x8xf32>
    %677 = arith.addf %676, %347 : vector<2x8x8xf32>
    %cst_284 = arith.constant dense<0xFF800000> : vector<2x8xf32>
    %678 = vector.multi_reduction <maximumf>, %677, %cst_284 [2] : vector<2x8x8xf32> to vector<2x8xf32>
    %679 = vector.shape_cast %678 : vector<2x8xf32> to vector<2x8x1xf32>
    %680 = vector.broadcast %679 : vector<2x8x1xf32> to vector<2x8x8xf32>
    %681 = arith.subf %677, %680 : vector<2x8x8xf32>
    %682 = math.exp %681 : vector<2x8x8xf32>
    %cst_285 = arith.constant dense<0.000000e+00> : vector<2x8xf32>
    %683 = vector.multi_reduction <add>, %682, %cst_285 [2] : vector<2x8x8xf32> to vector<2x8xf32>
    %684 = vector.shape_cast %683 : vector<2x8xf32> to vector<2x8x1xf32>
    %685 = tpu.reciprocal %684 {approx = true} : vector<2x8x1xf32> -> vector<2x8x1xf32>
    %686 = vector.broadcast %685 : vector<2x8x1xf32> to vector<2x8x8xf32>
    %687 = arith.mulf %682, %686 : vector<2x8x8xf32>
    "tpu.trace_start"() <{level = 10 : i32, message = "bqk,bkd->bqd"}> : () -> ()
    %cst_286 = arith.constant dense<0.000000e+00> : vector<2x8x8xf32>
    %688 = tpu.matmul %687, %673, %cst_286 {dimension_numbers = #tpu.dot_dimension_numbers<[2], [1], [1], [2], [0, 0, 0, 1, 1, 2], [0], [0]>} : vector<2x8x8xf32>, vector<2x8x8xf32>, vector<2x8x8xf32> -> vector<2x8x8xf32>
    "tpu.trace_stop"() : () -> ()
    %689 = vector.shape_cast %688 : vector<2x8x8xf32> to vector<16x8xf32>
    %690 = vector.extract_strided_slice %665 {offsets = [0, 8], sizes = [16, 8], strides = [1, 1]} : vector<16x32xf32> to vector<16x8xf32>
    %691 = vector.shape_cast %690 : vector<16x8xf32> to vector<2x8x8xf32>
    %692 = vector.extract_strided_slice %666 {offsets = [0, 8], sizes = [16, 8], strides = [1, 1]} : vector<16x32xf32> to vector<16x8xf32>
    %693 = vector.shape_cast %692 : vector<16x8xf32> to vector<2x8x8xf32>
    %694 = vector.extract_strided_slice %667 {offsets = [0, 8], sizes = [16, 8], strides = [1, 1]} : vector<16x32xf32> to vector<16x8xf32>
    %695 = vector.shape_cast %694 : vector<16x8xf32> to vector<2x8x8xf32>
    "tpu.trace_start"() <{level = 10 : i32, message = "bqd,bkd->bqk"}> : () -> ()
    %cst_287 = arith.constant dense<0.000000e+00> : vector<2x8x8xf32>
    %696 = tpu.matmul %691, %693, %cst_287 {dimension_numbers = #tpu.dot_dimension_numbers<[2], [2], [1], [1], [0, 0, 0, 1, 1, 1], [0], [0]>} : vector<2x8x8xf32>, vector<2x8x8xf32>, vector<2x8x8xf32> -> vector<2x8x8xf32>
    "tpu.trace_stop"() : () -> ()
    %cst_288 = arith.constant 0.353553385 : f32
    %697 = vector.broadcast %cst_288 : f32 to vector<2x8x8xf32>
    %698 = arith.mulf %696, %697 : vector<2x8x8xf32>
    %699 = arith.addf %698, %347 : vector<2x8x8xf32>
    %cst_289 = arith.constant dense<0xFF800000> : vector<2x8xf32>
    %700 = vector.multi_reduction <maximumf>, %699, %cst_289 [2] : vector<2x8x8xf32> to vector<2x8xf32>
    %701 = vector.shape_cast %700 : vector<2x8xf32> to vector<2x8x1xf32>
    %702 = vector.broadcast %701 : vector<2x8x1xf32> to vector<2x8x8xf32>
    %703 = arith.subf %699, %702 : vector<2x8x8xf32>
    %704 = math.exp %703 : vector<2x8x8xf32>
    %cst_290 = arith.constant dense<0.000000e+00> : vector<2x8xf32>
    %705 = vector.multi_reduction <add>, %704, %cst_290 [2] : vector<2x8x8xf32> to vector<2x8xf32>
    %706 = vector.shape_cast %705 : vector<2x8xf32> to vector<2x8x1xf32>
    %707 = tpu.reciprocal %706 {approx = true} : vector<2x8x1xf32> -> vector<2x8x1xf32>
    %708 = vector.broadcast %707 : vector<2x8x1xf32> to vector<2x8x8xf32>
    %709 = arith.mulf %704, %708 : vector<2x8x8xf32>
    "tpu.trace_start"() <{level = 10 : i32, message = "bqk,bkd->bqd"}> : () -> ()
    %cst_291 = arith.constant dense<0.000000e+00> : vector<2x8x8xf32>
    %710 = tpu.matmul %709, %695, %cst_291 {dimension_numbers = #tpu.dot_dimension_numbers<[2], [1], [1], [2], [0, 0, 0, 1, 1, 2], [0], [0]>} : vector<2x8x8xf32>, vector<2x8x8xf32>, vector<2x8x8xf32> -> vector<2x8x8xf32>
    "tpu.trace_stop"() : () -> ()
    %711 = vector.shape_cast %710 : vector<2x8x8xf32> to vector<16x8xf32>
    %712 = vector.extract_strided_slice %665 {offsets = [0, 16], sizes = [16, 8], strides = [1, 1]} : vector<16x32xf32> to vector<16x8xf32>
    %713 = vector.shape_cast %712 : vector<16x8xf32> to vector<2x8x8xf32>
    %714 = vector.extract_strided_slice %666 {offsets = [0, 16], sizes = [16, 8], strides = [1, 1]} : vector<16x32xf32> to vector<16x8xf32>
    %715 = vector.shape_cast %714 : vector<16x8xf32> to vector<2x8x8xf32>
    %716 = vector.extract_strided_slice %667 {offsets = [0, 16], sizes = [16, 8], strides = [1, 1]} : vector<16x32xf32> to vector<16x8xf32>
    %717 = vector.shape_cast %716 : vector<16x8xf32> to vector<2x8x8xf32>
    "tpu.trace_start"() <{level = 10 : i32, message = "bqd,bkd->bqk"}> : () -> ()
    %cst_292 = arith.constant dense<0.000000e+00> : vector<2x8x8xf32>
    %718 = tpu.matmul %713, %715, %cst_292 {dimension_numbers = #tpu.dot_dimension_numbers<[2], [2], [1], [1], [0, 0, 0, 1, 1, 1], [0], [0]>} : vector<2x8x8xf32>, vector<2x8x8xf32>, vector<2x8x8xf32> -> vector<2x8x8xf32>
    "tpu.trace_stop"() : () -> ()
    %cst_293 = arith.constant 0.353553385 : f32
    %719 = vector.broadcast %cst_293 : f32 to vector<2x8x8xf32>
    %720 = arith.mulf %718, %719 : vector<2x8x8xf32>
    %721 = arith.addf %720, %347 : vector<2x8x8xf32>
    %cst_294 = arith.constant dense<0xFF800000> : vector<2x8xf32>
    %722 = vector.multi_reduction <maximumf>, %721, %cst_294 [2] : vector<2x8x8xf32> to vector<2x8xf32>
    %723 = vector.shape_cast %722 : vector<2x8xf32> to vector<2x8x1xf32>
    %724 = vector.broadcast %723 : vector<2x8x1xf32> to vector<2x8x8xf32>
    %725 = arith.subf %721, %724 : vector<2x8x8xf32>
    %726 = math.exp %725 : vector<2x8x8xf32>
    %cst_295 = arith.constant dense<0.000000e+00> : vector<2x8xf32>
    %727 = vector.multi_reduction <add>, %726, %cst_295 [2] : vector<2x8x8xf32> to vector<2x8xf32>
    %728 = vector.shape_cast %727 : vector<2x8xf32> to vector<2x8x1xf32>
    %729 = tpu.reciprocal %728 {approx = true} : vector<2x8x1xf32> -> vector<2x8x1xf32>
    %730 = vector.broadcast %729 : vector<2x8x1xf32> to vector<2x8x8xf32>
    %731 = arith.mulf %726, %730 : vector<2x8x8xf32>
    "tpu.trace_start"() <{level = 10 : i32, message = "bqk,bkd->bqd"}> : () -> ()
    %cst_296 = arith.constant dense<0.000000e+00> : vector<2x8x8xf32>
    %732 = tpu.matmul %731, %717, %cst_296 {dimension_numbers = #tpu.dot_dimension_numbers<[2], [1], [1], [2], [0, 0, 0, 1, 1, 2], [0], [0]>} : vector<2x8x8xf32>, vector<2x8x8xf32>, vector<2x8x8xf32> -> vector<2x8x8xf32>
    "tpu.trace_stop"() : () -> ()
    %733 = vector.shape_cast %732 : vector<2x8x8xf32> to vector<16x8xf32>
    %734 = vector.extract_strided_slice %665 {offsets = [0, 24], sizes = [16, 8], strides = [1, 1]} : vector<16x32xf32> to vector<16x8xf32>
    %735 = vector.shape_cast %734 : vector<16x8xf32> to vector<2x8x8xf32>
    %736 = vector.extract_strided_slice %666 {offsets = [0, 24], sizes = [16, 8], strides = [1, 1]} : vector<16x32xf32> to vector<16x8xf32>
    %737 = vector.shape_cast %736 : vector<16x8xf32> to vector<2x8x8xf32>
    %738 = vector.extract_strided_slice %667 {offsets = [0, 24], sizes = [16, 8], strides = [1, 1]} : vector<16x32xf32> to vector<16x8xf32>
    %739 = vector.shape_cast %738 : vector<16x8xf32> to vector<2x8x8xf32>
    "tpu.trace_start"() <{level = 10 : i32, message = "bqd,bkd->bqk"}> : () -> ()
    %cst_297 = arith.constant dense<0.000000e+00> : vector<2x8x8xf32>
    %740 = tpu.matmul %735, %737, %cst_297 {dimension_numbers = #tpu.dot_dimension_numbers<[2], [2], [1], [1], [0, 0, 0, 1, 1, 1], [0], [0]>} : vector<2x8x8xf32>, vector<2x8x8xf32>, vector<2x8x8xf32> -> vector<2x8x8xf32>
    "tpu.trace_stop"() : () -> ()
    %cst_298 = arith.constant 0.353553385 : f32
    %741 = vector.broadcast %cst_298 : f32 to vector<2x8x8xf32>
    %742 = arith.mulf %740, %741 : vector<2x8x8xf32>
    %743 = arith.addf %742, %347 : vector<2x8x8xf32>
    %cst_299 = arith.constant dense<0xFF800000> : vector<2x8xf32>
    %744 = vector.multi_reduction <maximumf>, %743, %cst_299 [2] : vector<2x8x8xf32> to vector<2x8xf32>
    %745 = vector.shape_cast %744 : vector<2x8xf32> to vector<2x8x1xf32>
    %746 = vector.broadcast %745 : vector<2x8x1xf32> to vector<2x8x8xf32>
    %747 = arith.subf %743, %746 : vector<2x8x8xf32>
    %748 = math.exp %747 : vector<2x8x8xf32>
    %cst_300 = arith.constant dense<0.000000e+00> : vector<2x8xf32>
    %749 = vector.multi_reduction <add>, %748, %cst_300 [2] : vector<2x8x8xf32> to vector<2x8xf32>
    %750 = vector.shape_cast %749 : vector<2x8xf32> to vector<2x8x1xf32>
    %751 = tpu.reciprocal %750 {approx = true} : vector<2x8x1xf32> -> vector<2x8x1xf32>
    %752 = vector.broadcast %751 : vector<2x8x1xf32> to vector<2x8x8xf32>
    %753 = arith.mulf %748, %752 : vector<2x8x8xf32>
    "tpu.trace_start"() <{level = 10 : i32, message = "bqk,bkd->bqd"}> : () -> ()
    %cst_301 = arith.constant dense<0.000000e+00> : vector<2x8x8xf32>
    %754 = tpu.matmul %753, %739, %cst_301 {dimension_numbers = #tpu.dot_dimension_numbers<[2], [1], [1], [2], [0, 0, 0, 1, 1, 2], [0], [0]>} : vector<2x8x8xf32>, vector<2x8x8xf32>, vector<2x8x8xf32> -> vector<2x8x8xf32>
    "tpu.trace_stop"() : () -> ()
    %755 = vector.shape_cast %754 : vector<2x8x8xf32> to vector<16x8xf32>
    %756 = tpu.concatenate %689, %711, %733, %755 in 1 : vector<16x8xf32>, vector<16x8xf32>, vector<16x8xf32>, vector<16x8xf32> -> vector<16x32xf32>
    %c1_302 = arith.constant 1 : index
    %c0_303 = arith.constant 0 : index
    %c0_304 = arith.constant 0 : index
    %757 = vector.load %arg19[%c1_302, %c0_303, %c0_304] : memref<2x32x32xf32, #tpu.memory_space<vmem>>, vector<1x32x32xf32>
    %758 = vector.shape_cast %757 : vector<1x32x32xf32> to vector<32x32xf32>
    %c1_305 = arith.constant 1 : index
    %c0_306 = arith.constant 0 : index
    %c0_307 = arith.constant 0 : index
    %759 = vector.load %arg20[%c1_305, %c0_306, %c0_307] : memref<2x1x32xf32, #tpu.memory_space<vmem>>, vector<1x1x32xf32>
    %760 = vector.shape_cast %759 : vector<1x1x32xf32> to vector<1x32xf32>
    %cst_308 = arith.constant dense<0.000000e+00> : vector<16x32xf32>
    %761 = tpu.matmul %756, %758, %cst_308 {dimension_numbers = #tpu.dot_dimension_numbers<[1], [0], [0], [1], [0, 0, 1, 1], [], []>} : vector<16x32xf32>, vector<32x32xf32>, vector<16x32xf32> -> vector<16x32xf32>
    %762 = vector.broadcast %760 : vector<1x32xf32> to vector<16x32xf32>
    %763 = arith.addf %761, %762 : vector<16x32xf32>
    %764 = arith.addf %657, %763 : vector<16x32xf32>
    %c1_309 = arith.constant 1 : index
    %c0_310 = arith.constant 0 : index
    %c0_311 = arith.constant 0 : index
    %765 = vector.load %arg21[%c1_309, %c0_310, %c0_311] : memref<2x1x32xf32, #tpu.memory_space<vmem>>, vector<1x1x32xf32>
    %766 = vector.shape_cast %765 : vector<1x1x32xf32> to vector<1x32xf32>
    %c1_312 = arith.constant 1 : index
    %c0_313 = arith.constant 0 : index
    %c0_314 = arith.constant 0 : index
    %767 = vector.load %arg22[%c1_312, %c0_313, %c0_314] : memref<2x1x32xf32, #tpu.memory_space<vmem>>, vector<1x1x32xf32>
    %768 = vector.shape_cast %767 : vector<1x1x32xf32> to vector<1x32xf32>
    %cst_315 = arith.constant dense<0.000000e+00> : vector<16xf32>
    %769 = vector.multi_reduction <add>, %764, %cst_315 [1] : vector<16x32xf32> to vector<16xf32>
    %770 = vector.shape_cast %769 : vector<16xf32> to vector<16x1xf32>
    %cst_316 = arith.constant 3.200000e+01 : f32
    %771 = vector.broadcast %cst_316 : f32 to vector<16x1xf32>
    %772 = arith.divf %770, %771 : vector<16x1xf32>
    %773 = vector.broadcast %772 : vector<16x1xf32> to vector<16x32xf32>
    %774 = arith.subf %764, %773 : vector<16x32xf32>
    %775 = arith.mulf %774, %774 : vector<16x32xf32>
    %cst_317 = arith.constant dense<0.000000e+00> : vector<16xf32>
    %776 = vector.multi_reduction <add>, %775, %cst_317 [1] : vector<16x32xf32> to vector<16xf32>
    %777 = vector.shape_cast %776 : vector<16xf32> to vector<16x1xf32>
    %cst_318 = arith.constant 3.200000e+01 : f32
    %778 = vector.broadcast %cst_318 : f32 to vector<16x1xf32>
    %779 = arith.divf %777, %778 : vector<16x1xf32>
    %cst_319 = arith.constant 9.99999974E-6 : f32
    %780 = vector.broadcast %cst_319 : f32 to vector<16x1xf32>
    %781 = arith.addf %779, %780 : vector<16x1xf32>
    %782 = math.rsqrt %781 : vector<16x1xf32>
    %783 = vector.broadcast %782 : vector<16x1xf32> to vector<16x32xf32>
    %784 = arith.mulf %774, %783 : vector<16x32xf32>
    %785 = vector.broadcast %766 : vector<1x32xf32> to vector<16x32xf32>
    %786 = arith.mulf %784, %785 : vector<16x32xf32>
    %787 = vector.broadcast %768 : vector<1x32xf32> to vector<16x32xf32>
    %788 = arith.addf %786, %787 : vector<16x32xf32>
    %c1_320 = arith.constant 1 : index
    %c0_321 = arith.constant 0 : index
    %c0_322 = arith.constant 0 : index
    %789 = vector.load %arg23[%c1_320, %c0_321, %c0_322] : memref<2x32x32xf32, #tpu.memory_space<vmem>>, vector<1x32x32xf32>
    %790 = vector.shape_cast %789 : vector<1x32x32xf32> to vector<32x32xf32>
    %c1_323 = arith.constant 1 : index
    %c0_324 = arith.constant 0 : index
    %c0_325 = arith.constant 0 : index
    %791 = vector.load %arg24[%c1_323, %c0_324, %c0_325] : memref<2x1x32xf32, #tpu.memory_space<vmem>>, vector<1x1x32xf32>
    %792 = vector.shape_cast %791 : vector<1x1x32xf32> to vector<1x32xf32>
    %cst_326 = arith.constant dense<0.000000e+00> : vector<16x32xf32>
    %793 = tpu.matmul %788, %790, %cst_326 {dimension_numbers = #tpu.dot_dimension_numbers<[1], [0], [0], [1], [0, 0, 1, 1], [], []>} : vector<16x32xf32>, vector<32x32xf32>, vector<16x32xf32> -> vector<16x32xf32>
    %794 = vector.broadcast %792 : vector<1x32xf32> to vector<16x32xf32>
    %795 = arith.addf %793, %794 : vector<16x32xf32>
    %c1_327 = arith.constant 1 : index
    %c0_328 = arith.constant 0 : index
    %c0_329 = arith.constant 0 : index
    %796 = vector.load %arg25[%c1_327, %c0_328, %c0_329] : memref<2x32x64xf32, #tpu.memory_space<vmem>>, vector<1x32x64xf32>
    %797 = vector.shape_cast %796 : vector<1x32x64xf32> to vector<32x64xf32>
    %c1_330 = arith.constant 1 : index
    %c0_331 = arith.constant 0 : index
    %c0_332 = arith.constant 0 : index
    %798 = vector.load %arg26[%c1_330, %c0_331, %c0_332] : memref<2x1x64xf32, #tpu.memory_space<vmem>>, vector<1x1x64xf32>
    %799 = vector.shape_cast %798 : vector<1x1x64xf32> to vector<1x64xf32>
    %cst_333 = arith.constant dense<0.000000e+00> : vector<16x64xf32>
    %800 = tpu.matmul %345, %797, %cst_333 {dimension_numbers = #tpu.dot_dimension_numbers<[1], [0], [0], [1], [0, 0, 1, 1], [], []>} : vector<16x32xf32>, vector<32x64xf32>, vector<16x64xf32> -> vector<16x64xf32>
    %801 = vector.broadcast %799 : vector<1x64xf32> to vector<16x64xf32>
    %802 = arith.addf %800, %801 : vector<16x64xf32>
    %803 = vector.extract_strided_slice %802 {offsets = [0, 0], sizes = [16, 32], strides = [1, 1]} : vector<16x64xf32> to vector<16x32xf32>
    %804 = vector.extract_strided_slice %802 {offsets = [0, 32], sizes = [16, 32], strides = [1, 1]} : vector<16x64xf32> to vector<16x32xf32>
    %805 = vector.extract_strided_slice %795 {offsets = [0, 0], sizes = [16, 8], strides = [1, 1]} : vector<16x32xf32> to vector<16x8xf32>
    %806 = vector.shape_cast %805 : vector<16x8xf32> to vector<2x8x8xf32>
    %807 = vector.extract_strided_slice %803 {offsets = [0, 0], sizes = [16, 8], strides = [1, 1]} : vector<16x32xf32> to vector<16x8xf32>
    %808 = vector.shape_cast %807 : vector<16x8xf32> to vector<2x8x8xf32>
    %809 = vector.extract_strided_slice %804 {offsets = [0, 0], sizes = [16, 8], strides = [1, 1]} : vector<16x32xf32> to vector<16x8xf32>
    %810 = vector.shape_cast %809 : vector<16x8xf32> to vector<2x8x8xf32>
    "tpu.trace_start"() <{level = 10 : i32, message = "bqd,bkd->bqk"}> : () -> ()
    %cst_334 = arith.constant dense<0.000000e+00> : vector<2x8x8xf32>
    %811 = tpu.matmul %806, %808, %cst_334 {dimension_numbers = #tpu.dot_dimension_numbers<[2], [2], [1], [1], [0, 0, 0, 1, 1, 1], [0], [0]>} : vector<2x8x8xf32>, vector<2x8x8xf32>, vector<2x8x8xf32> -> vector<2x8x8xf32>
    "tpu.trace_stop"() : () -> ()
    %cst_335 = arith.constant 0.353553385 : f32
    %812 = vector.broadcast %cst_335 : f32 to vector<2x8x8xf32>
    %813 = arith.mulf %811, %812 : vector<2x8x8xf32>
    %814 = arith.addf %813, %348 : vector<2x8x8xf32>
    %cst_336 = arith.constant dense<0xFF800000> : vector<2x8xf32>
    %815 = vector.multi_reduction <maximumf>, %814, %cst_336 [2] : vector<2x8x8xf32> to vector<2x8xf32>
    %816 = vector.shape_cast %815 : vector<2x8xf32> to vector<2x8x1xf32>
    %817 = vector.broadcast %816 : vector<2x8x1xf32> to vector<2x8x8xf32>
    %818 = arith.subf %814, %817 : vector<2x8x8xf32>
    %819 = math.exp %818 : vector<2x8x8xf32>
    %cst_337 = arith.constant dense<0.000000e+00> : vector<2x8xf32>
    %820 = vector.multi_reduction <add>, %819, %cst_337 [2] : vector<2x8x8xf32> to vector<2x8xf32>
    %821 = vector.shape_cast %820 : vector<2x8xf32> to vector<2x8x1xf32>
    %822 = tpu.reciprocal %821 {approx = true} : vector<2x8x1xf32> -> vector<2x8x1xf32>
    %823 = vector.broadcast %822 : vector<2x8x1xf32> to vector<2x8x8xf32>
    %824 = arith.mulf %819, %823 : vector<2x8x8xf32>
    %c0_338 = arith.constant 0 : index
    %c0_339 = arith.constant 0 : index
    %c0_340 = arith.constant 0 : index
    %c0_341 = arith.constant 0 : index
    %825 = vector.load %arg40[%c0_338, %c0_339, %c0_340, %c0_341] : memref<4x2x8x8xf32, #tpu.memory_space<vmem>>, vector<1x2x8x8xf32>
    %826 = vector.shape_cast %825 : vector<1x2x8x8xf32> to vector<2x8x8xf32>
    %827 = vector.shape_cast %824 : vector<2x8x8xf32> to vector<1x2x8x8xf32>
    tpu.vector_store %arg40[%c0_338, %c0_339, %c0_340, %c0_341], %827 {strides = array<i32>} : memref<4x2x8x8xf32, #tpu.memory_space<vmem>>, vector<1x2x8x8xf32>,
    "tpu.trace_start"() <{level = 10 : i32, message = "bqk,bkd->bqd"}> : () -> ()
    %cst_342 = arith.constant dense<0.000000e+00> : vector<2x8x8xf32>
    %828 = tpu.matmul %824, %810, %cst_342 {dimension_numbers = #tpu.dot_dimension_numbers<[2], [1], [1], [2], [0, 0, 0, 1, 1, 2], [0], [0]>} : vector<2x8x8xf32>, vector<2x8x8xf32>, vector<2x8x8xf32> -> vector<2x8x8xf32>
    "tpu.trace_stop"() : () -> ()
    %829 = vector.shape_cast %828 : vector<2x8x8xf32> to vector<16x8xf32>
    %830 = vector.extract_strided_slice %795 {offsets = [0, 8], sizes = [16, 8], strides = [1, 1]} : vector<16x32xf32> to vector<16x8xf32>
    %831 = vector.shape_cast %830 : vector<16x8xf32> to vector<2x8x8xf32>
    %832 = vector.extract_strided_slice %803 {offsets = [0, 8], sizes = [16, 8], strides = [1, 1]} : vector<16x32xf32> to vector<16x8xf32>
    %833 = vector.shape_cast %832 : vector<16x8xf32> to vector<2x8x8xf32>
    %834 = vector.extract_strided_slice %804 {offsets = [0, 8], sizes = [16, 8], strides = [1, 1]} : vector<16x32xf32> to vector<16x8xf32>
    %835 = vector.shape_cast %834 : vector<16x8xf32> to vector<2x8x8xf32>
    "tpu.trace_start"() <{level = 10 : i32, message = "bqd,bkd->bqk"}> : () -> ()
    %cst_343 = arith.constant dense<0.000000e+00> : vector<2x8x8xf32>
    %836 = tpu.matmul %831, %833, %cst_343 {dimension_numbers = #tpu.dot_dimension_numbers<[2], [2], [1], [1], [0, 0, 0, 1, 1, 1], [0], [0]>} : vector<2x8x8xf32>, vector<2x8x8xf32>, vector<2x8x8xf32> -> vector<2x8x8xf32>
    "tpu.trace_stop"() : () -> ()
    %cst_344 = arith.constant 0.353553385 : f32
    %837 = vector.broadcast %cst_344 : f32 to vector<2x8x8xf32>
    %838 = arith.mulf %836, %837 : vector<2x8x8xf32>
    %839 = arith.addf %838, %348 : vector<2x8x8xf32>
    %cst_345 = arith.constant dense<0xFF800000> : vector<2x8xf32>
    %840 = vector.multi_reduction <maximumf>, %839, %cst_345 [2] : vector<2x8x8xf32> to vector<2x8xf32>
    %841 = vector.shape_cast %840 : vector<2x8xf32> to vector<2x8x1xf32>
    %842 = vector.broadcast %841 : vector<2x8x1xf32> to vector<2x8x8xf32>
    %843 = arith.subf %839, %842 : vector<2x8x8xf32>
    %844 = math.exp %843 : vector<2x8x8xf32>
    %cst_346 = arith.constant dense<0.000000e+00> : vector<2x8xf32>
    %845 = vector.multi_reduction <add>, %844, %cst_346 [2] : vector<2x8x8xf32> to vector<2x8xf32>
    %846 = vector.shape_cast %845 : vector<2x8xf32> to vector<2x8x1xf32>
    %847 = tpu.reciprocal %846 {approx = true} : vector<2x8x1xf32> -> vector<2x8x1xf32>
    %848 = vector.broadcast %847 : vector<2x8x1xf32> to vector<2x8x8xf32>
    %849 = arith.mulf %844, %848 : vector<2x8x8xf32>
    %c1_347 = arith.constant 1 : index
    %c0_348 = arith.constant 0 : index
    %c0_349 = arith.constant 0 : index
    %c0_350 = arith.constant 0 : index
    %850 = vector.load %arg40[%c1_347, %c0_348, %c0_349, %c0_350] : memref<4x2x8x8xf32, #tpu.memory_space<vmem>>, vector<1x2x8x8xf32>
    %851 = vector.shape_cast %850 : vector<1x2x8x8xf32> to vector<2x8x8xf32>
    %852 = vector.shape_cast %849 : vector<2x8x8xf32> to vector<1x2x8x8xf32>
    tpu.vector_store %arg40[%c1_347, %c0_348, %c0_349, %c0_350], %852 {strides = array<i32>} : memref<4x2x8x8xf32, #tpu.memory_space<vmem>>, vector<1x2x8x8xf32>,
    "tpu.trace_start"() <{level = 10 : i32, message = "bqk,bkd->bqd"}> : () -> ()
    %cst_351 = arith.constant dense<0.000000e+00> : vector<2x8x8xf32>
    %853 = tpu.matmul %849, %835, %cst_351 {dimension_numbers = #tpu.dot_dimension_numbers<[2], [1], [1], [2], [0, 0, 0, 1, 1, 2], [0], [0]>} : vector<2x8x8xf32>, vector<2x8x8xf32>, vector<2x8x8xf32> -> vector<2x8x8xf32>
    "tpu.trace_stop"() : () -> ()
    %854 = vector.shape_cast %853 : vector<2x8x8xf32> to vector<16x8xf32>
    %855 = vector.extract_strided_slice %795 {offsets = [0, 16], sizes = [16, 8], strides = [1, 1]} : vector<16x32xf32> to vector<16x8xf32>
    %856 = vector.shape_cast %855 : vector<16x8xf32> to vector<2x8x8xf32>
    %857 = vector.extract_strided_slice %803 {offsets = [0, 16], sizes = [16, 8], strides = [1, 1]} : vector<16x32xf32> to vector<16x8xf32>
    %858 = vector.shape_cast %857 : vector<16x8xf32> to vector<2x8x8xf32>
    %859 = vector.extract_strided_slice %804 {offsets = [0, 16], sizes = [16, 8], strides = [1, 1]} : vector<16x32xf32> to vector<16x8xf32>
    %860 = vector.shape_cast %859 : vector<16x8xf32> to vector<2x8x8xf32>
    "tpu.trace_start"() <{level = 10 : i32, message = "bqd,bkd->bqk"}> : () -> ()
    %cst_352 = arith.constant dense<0.000000e+00> : vector<2x8x8xf32>
    %861 = tpu.matmul %856, %858, %cst_352 {dimension_numbers = #tpu.dot_dimension_numbers<[2], [2], [1], [1], [0, 0, 0, 1, 1, 1], [0], [0]>} : vector<2x8x8xf32>, vector<2x8x8xf32>, vector<2x8x8xf32> -> vector<2x8x8xf32>
    "tpu.trace_stop"() : () -> ()
    %cst_353 = arith.constant 0.353553385 : f32
    %862 = vector.broadcast %cst_353 : f32 to vector<2x8x8xf32>
    %863 = arith.mulf %861, %862 : vector<2x8x8xf32>
    %864 = arith.addf %863, %348 : vector<2x8x8xf32>
    %cst_354 = arith.constant dense<0xFF800000> : vector<2x8xf32>
    %865 = vector.multi_reduction <maximumf>, %864, %cst_354 [2] : vector<2x8x8xf32> to vector<2x8xf32>
    %866 = vector.shape_cast %865 : vector<2x8xf32> to vector<2x8x1xf32>
    %867 = vector.broadcast %866 : vector<2x8x1xf32> to vector<2x8x8xf32>
    %868 = arith.subf %864, %867 : vector<2x8x8xf32>
    %869 = math.exp %868 : vector<2x8x8xf32>
    %cst_355 = arith.constant dense<0.000000e+00> : vector<2x8xf32>
    %870 = vector.multi_reduction <add>, %869, %cst_355 [2] : vector<2x8x8xf32> to vector<2x8xf32>
    %871 = vector.shape_cast %870 : vector<2x8xf32> to vector<2x8x1xf32>
    %872 = tpu.reciprocal %871 {approx = true} : vector<2x8x1xf32> -> vector<2x8x1xf32>
    %873 = vector.broadcast %872 : vector<2x8x1xf32> to vector<2x8x8xf32>
    %874 = arith.mulf %869, %873 : vector<2x8x8xf32>
    %c2 = arith.constant 2 : index
    %c0_356 = arith.constant 0 : index
    %c0_357 = arith.constant 0 : index
    %c0_358 = arith.constant 0 : index
    %875 = vector.load %arg40[%c2, %c0_356, %c0_357, %c0_358] : memref<4x2x8x8xf32, #tpu.memory_space<vmem>>, vector<1x2x8x8xf32>
    %876 = vector.shape_cast %875 : vector<1x2x8x8xf32> to vector<2x8x8xf32>
    %877 = vector.shape_cast %874 : vector<2x8x8xf32> to vector<1x2x8x8xf32>
    tpu.vector_store %arg40[%c2, %c0_356, %c0_357, %c0_358], %877 {strides = array<i32>} : memref<4x2x8x8xf32, #tpu.memory_space<vmem>>, vector<1x2x8x8xf32>,
    "tpu.trace_start"() <{level = 10 : i32, message = "bqk,bkd->bqd"}> : () -> ()
    %cst_359 = arith.constant dense<0.000000e+00> : vector<2x8x8xf32>
    %878 = tpu.matmul %874, %860, %cst_359 {dimension_numbers = #tpu.dot_dimension_numbers<[2], [1], [1], [2], [0, 0, 0, 1, 1, 2], [0], [0]>} : vector<2x8x8xf32>, vector<2x8x8xf32>, vector<2x8x8xf32> -> vector<2x8x8xf32>
    "tpu.trace_stop"() : () -> ()
    %879 = vector.shape_cast %878 : vector<2x8x8xf32> to vector<16x8xf32>
    %880 = vector.extract_strided_slice %795 {offsets = [0, 24], sizes = [16, 8], strides = [1, 1]} : vector<16x32xf32> to vector<16x8xf32>
    %881 = vector.shape_cast %880 : vector<16x8xf32> to vector<2x8x8xf32>
    %882 = vector.extract_strided_slice %803 {offsets = [0, 24], sizes = [16, 8], strides = [1, 1]} : vector<16x32xf32> to vector<16x8xf32>
    %883 = vector.shape_cast %882 : vector<16x8xf32> to vector<2x8x8xf32>
    %884 = vector.extract_strided_slice %804 {offsets = [0, 24], sizes = [16, 8], strides = [1, 1]} : vector<16x32xf32> to vector<16x8xf32>
    %885 = vector.shape_cast %884 : vector<16x8xf32> to vector<2x8x8xf32>
    "tpu.trace_start"() <{level = 10 : i32, message = "bqd,bkd->bqk"}> : () -> ()
    %cst_360 = arith.constant dense<0.000000e+00> : vector<2x8x8xf32>
    %886 = tpu.matmul %881, %883, %cst_360 {dimension_numbers = #tpu.dot_dimension_numbers<[2], [2], [1], [1], [0, 0, 0, 1, 1, 1], [0], [0]>} : vector<2x8x8xf32>, vector<2x8x8xf32>, vector<2x8x8xf32> -> vector<2x8x8xf32>
    "tpu.trace_stop"() : () -> ()
    %cst_361 = arith.constant 0.353553385 : f32
    %887 = vector.broadcast %cst_361 : f32 to vector<2x8x8xf32>
    %888 = arith.mulf %886, %887 : vector<2x8x8xf32>
    %889 = arith.addf %888, %348 : vector<2x8x8xf32>
    %cst_362 = arith.constant dense<0xFF800000> : vector<2x8xf32>
    %890 = vector.multi_reduction <maximumf>, %889, %cst_362 [2] : vector<2x8x8xf32> to vector<2x8xf32>
    %891 = vector.shape_cast %890 : vector<2x8xf32> to vector<2x8x1xf32>
    %892 = vector.broadcast %891 : vector<2x8x1xf32> to vector<2x8x8xf32>
    %893 = arith.subf %889, %892 : vector<2x8x8xf32>
    %894 = math.exp %893 : vector<2x8x8xf32>
    %cst_363 = arith.constant dense<0.000000e+00> : vector<2x8xf32>
    %895 = vector.multi_reduction <add>, %894, %cst_363 [2] : vector<2x8x8xf32> to vector<2x8xf32>
    %896 = vector.shape_cast %895 : vector<2x8xf32> to vector<2x8x1xf32>
    %897 = tpu.reciprocal %896 {approx = true} : vector<2x8x1xf32> -> vector<2x8x1xf32>
    %898 = vector.broadcast %897 : vector<2x8x1xf32> to vector<2x8x8xf32>
    %899 = arith.mulf %894, %898 : vector<2x8x8xf32>
    %c3 = arith.constant 3 : index
    %c0_364 = arith.constant 0 : index
    %c0_365 = arith.constant 0 : index
    %c0_366 = arith.constant 0 : index
    %900 = vector.load %arg40[%c3, %c0_364, %c0_365, %c0_366] : memref<4x2x8x8xf32, #tpu.memory_space<vmem>>, vector<1x2x8x8xf32>
    %901 = vector.shape_cast %900 : vector<1x2x8x8xf32> to vector<2x8x8xf32>
    %902 = vector.shape_cast %899 : vector<2x8x8xf32> to vector<1x2x8x8xf32>
    tpu.vector_store %arg40[%c3, %c0_364, %c0_365, %c0_366], %902 {strides = array<i32>} : memref<4x2x8x8xf32, #tpu.memory_space<vmem>>, vector<1x2x8x8xf32>,
    "tpu.trace_start"() <{level = 10 : i32, message = "bqk,bkd->bqd"}> : () -> ()
    %cst_367 = arith.constant dense<0.000000e+00> : vector<2x8x8xf32>
    %903 = tpu.matmul %899, %885, %cst_367 {dimension_numbers = #tpu.dot_dimension_numbers<[2], [1], [1], [2], [0, 0, 0, 1, 1, 2], [0], [0]>} : vector<2x8x8xf32>, vector<2x8x8xf32>, vector<2x8x8xf32> -> vector<2x8x8xf32>
    "tpu.trace_stop"() : () -> ()
    %904 = vector.shape_cast %903 : vector<2x8x8xf32> to vector<16x8xf32>
    %905 = tpu.concatenate %829, %854, %879, %904 in 1 : vector<16x8xf32>, vector<16x8xf32>, vector<16x8xf32>, vector<16x8xf32> -> vector<16x32xf32>
    %c1_368 = arith.constant 1 : index
    %c0_369 = arith.constant 0 : index
    %c0_370 = arith.constant 0 : index
    %906 = vector.load %arg27[%c1_368, %c0_369, %c0_370] : memref<2x32x32xf32, #tpu.memory_space<vmem>>, vector<1x32x32xf32>
    %907 = vector.shape_cast %906 : vector<1x32x32xf32> to vector<32x32xf32>
    %c1_371 = arith.constant 1 : index
    %c0_372 = arith.constant 0 : index
    %c0_373 = arith.constant 0 : index
    %908 = vector.load %arg28[%c1_371, %c0_372, %c0_373] : memref<2x1x32xf32, #tpu.memory_space<vmem>>, vector<1x1x32xf32>
    %909 = vector.shape_cast %908 : vector<1x1x32xf32> to vector<1x32xf32>
    %cst_374 = arith.constant dense<0.000000e+00> : vector<16x32xf32>
    %910 = tpu.matmul %905, %907, %cst_374 {dimension_numbers = #tpu.dot_dimension_numbers<[1], [0], [0], [1], [0, 0, 1, 1], [], []>} : vector<16x32xf32>, vector<32x32xf32>, vector<16x32xf32> -> vector<16x32xf32>
    %911 = vector.broadcast %909 : vector<1x32xf32> to vector<16x32xf32>
    %912 = arith.addf %910, %911 : vector<16x32xf32>
    %913 = arith.addf %788, %912 : vector<16x32xf32>
    %c1_375 = arith.constant 1 : index
    %c0_376 = arith.constant 0 : index
    %c0_377 = arith.constant 0 : index
    %914 = vector.load %arg29[%c1_375, %c0_376, %c0_377] : memref<2x1x32xf32, #tpu.memory_space<vmem>>, vector<1x1x32xf32>
    %915 = vector.shape_cast %914 : vector<1x1x32xf32> to vector<1x32xf32>
    %c1_378 = arith.constant 1 : index
    %c0_379 = arith.constant 0 : index
    %c0_380 = arith.constant 0 : index
    %916 = vector.load %arg30[%c1_378, %c0_379, %c0_380] : memref<2x1x32xf32, #tpu.memory_space<vmem>>, vector<1x1x32xf32>
    %917 = vector.shape_cast %916 : vector<1x1x32xf32> to vector<1x32xf32>
    %cst_381 = arith.constant dense<0.000000e+00> : vector<16xf32>
    %918 = vector.multi_reduction <add>, %913, %cst_381 [1] : vector<16x32xf32> to vector<16xf32>
    %919 = vector.shape_cast %918 : vector<16xf32> to vector<16x1xf32>
    %cst_382 = arith.constant 3.200000e+01 : f32
    %920 = vector.broadcast %cst_382 : f32 to vector<16x1xf32>
    %921 = arith.divf %919, %920 : vector<16x1xf32>
    %922 = vector.broadcast %921 : vector<16x1xf32> to vector<16x32xf32>
    %923 = arith.subf %913, %922 : vector<16x32xf32>
    %924 = arith.mulf %923, %923 : vector<16x32xf32>
    %cst_383 = arith.constant dense<0.000000e+00> : vector<16xf32>
    %925 = vector.multi_reduction <add>, %924, %cst_383 [1] : vector<16x32xf32> to vector<16xf32>
    %926 = vector.shape_cast %925 : vector<16xf32> to vector<16x1xf32>
    %cst_384 = arith.constant 3.200000e+01 : f32
    %927 = vector.broadcast %cst_384 : f32 to vector<16x1xf32>
    %928 = arith.divf %926, %927 : vector<16x1xf32>
    %cst_385 = arith.constant 9.99999974E-6 : f32
    %929 = vector.broadcast %cst_385 : f32 to vector<16x1xf32>
    %930 = arith.addf %928, %929 : vector<16x1xf32>
    %931 = math.rsqrt %930 : vector<16x1xf32>
    %932 = vector.broadcast %931 : vector<16x1xf32> to vector<16x32xf32>
    %933 = arith.mulf %923, %932 : vector<16x32xf32>
    %934 = vector.broadcast %915 : vector<1x32xf32> to vector<16x32xf32>
    %935 = arith.mulf %933, %934 : vector<16x32xf32>
    %936 = vector.broadcast %917 : vector<1x32xf32> to vector<16x32xf32>
    %937 = arith.addf %935, %936 : vector<16x32xf32>
    %c1_386 = arith.constant 1 : index
    %c0_387 = arith.constant 0 : index
    %c0_388 = arith.constant 0 : index
    %938 = vector.load %arg31[%c1_386, %c0_387, %c0_388] : memref<2x32x64xf32, #tpu.memory_space<vmem>>, vector<1x32x64xf32>
    %939 = vector.shape_cast %938 : vector<1x32x64xf32> to vector<32x64xf32>
    %c1_389 = arith.constant 1 : index
    %c0_390 = arith.constant 0 : index
    %c0_391 = arith.constant 0 : index
    %940 = vector.load %arg32[%c1_389, %c0_390, %c0_391] : memref<2x1x64xf32, #tpu.memory_space<vmem>>, vector<1x1x64xf32>
    %941 = vector.shape_cast %940 : vector<1x1x64xf32> to vector<1x64xf32>
    %cst_392 = arith.constant dense<0.000000e+00> : vector<16x64xf32>
    %942 = tpu.matmul %937, %939, %cst_392 {dimension_numbers = #tpu.dot_dimension_numbers<[1], [0], [0], [1], [0, 0, 1, 1], [], []>} : vector<16x32xf32>, vector<32x64xf32>, vector<16x64xf32> -> vector<16x64xf32>
    %943 = vector.broadcast %941 : vector<1x64xf32> to vector<16x64xf32>
    %944 = arith.addf %942, %943 : vector<16x64xf32>
    %cst_393 = arith.constant 0.000000e+00 : f32
    %945 = vector.broadcast %cst_393 : f32 to vector<16x64xf32>
    %946 = arith.maximumf %944, %945 : vector<16x64xf32>
    %c1_394 = arith.constant 1 : index
    %c0_395 = arith.constant 0 : index
    %c0_396 = arith.constant 0 : index
    %947 = vector.load %arg33[%c1_394, %c0_395, %c0_396] : memref<2x64x32xf32, #tpu.memory_space<vmem>>, vector<1x64x32xf32>
    %948 = vector.shape_cast %947 : vector<1x64x32xf32> to vector<64x32xf32>
    %c1_397 = arith.constant 1 : index
    %c0_398 = arith.constant 0 : index
    %c0_399 = arith.constant 0 : index
    %949 = vector.load %arg34[%c1_397, %c0_398, %c0_399] : memref<2x1x32xf32, #tpu.memory_space<vmem>>, vector<1x1x32xf32>
    %950 = vector.shape_cast %949 : vector<1x1x32xf32> to vector<1x32xf32>
    %cst_400 = arith.constant dense<0.000000e+00> : vector<16x32xf32>
    %951 = tpu.matmul %946, %948, %cst_400 {dimension_numbers = #tpu.dot_dimension_numbers<[1], [0], [0], [1], [0, 0, 1, 1], [], []>} : vector<16x64xf32>, vector<64x32xf32>, vector<16x32xf32> -> vector<16x32xf32>
    %952 = vector.broadcast %950 : vector<1x32xf32> to vector<16x32xf32>
    %953 = arith.addf %951, %952 : vector<16x32xf32>
    %954 = arith.addf %937, %953 : vector<16x32xf32>
    %c1_401 = arith.constant 1 : index
    %c0_402 = arith.constant 0 : index
    %c0_403 = arith.constant 0 : index
    %955 = vector.load %arg35[%c1_401, %c0_402, %c0_403] : memref<2x1x32xf32, #tpu.memory_space<vmem>>, vector<1x1x32xf32>
    %956 = vector.shape_cast %955 : vector<1x1x32xf32> to vector<1x32xf32>
    %c1_404 = arith.constant 1 : index
    %c0_405 = arith.constant 0 : index
    %c0_406 = arith.constant 0 : index
    %957 = vector.load %arg36[%c1_404, %c0_405, %c0_406] : memref<2x1x32xf32, #tpu.memory_space<vmem>>, vector<1x1x32xf32>
    %958 = vector.shape_cast %957 : vector<1x1x32xf32> to vector<1x32xf32>
    %cst_407 = arith.constant dense<0.000000e+00> : vector<16xf32>
    %959 = vector.multi_reduction <add>, %954, %cst_407 [1] : vector<16x32xf32> to vector<16xf32>
    %960 = vector.shape_cast %959 : vector<16xf32> to vector<16x1xf32>
    %cst_408 = arith.constant 3.200000e+01 : f32
    %961 = vector.broadcast %cst_408 : f32 to vector<16x1xf32>
    %962 = arith.divf %960, %961 : vector<16x1xf32>
    %963 = vector.broadcast %962 : vector<16x1xf32> to vector<16x32xf32>
    %964 = arith.subf %954, %963 : vector<16x32xf32>
    %965 = arith.mulf %964, %964 : vector<16x32xf32>
    %cst_409 = arith.constant dense<0.000000e+00> : vector<16xf32>
    %966 = vector.multi_reduction <add>, %965, %cst_409 [1] : vector<16x32xf32> to vector<16xf32>
    %967 = vector.shape_cast %966 : vector<16xf32> to vector<16x1xf32>
    %cst_410 = arith.constant 3.200000e+01 : f32
    %968 = vector.broadcast %cst_410 : f32 to vector<16x1xf32>
    %969 = arith.divf %967, %968 : vector<16x1xf32>
    %cst_411 = arith.constant 9.99999974E-6 : f32
    %970 = vector.broadcast %cst_411 : f32 to vector<16x1xf32>
    %971 = arith.addf %969, %970 : vector<16x1xf32>
    %972 = math.rsqrt %971 : vector<16x1xf32>
    %973 = vector.broadcast %972 : vector<16x1xf32> to vector<16x32xf32>
    %974 = arith.mulf %964, %973 : vector<16x32xf32>
    %975 = vector.broadcast %956 : vector<1x32xf32> to vector<16x32xf32>
    %976 = arith.mulf %974, %975 : vector<16x32xf32>
    %977 = vector.broadcast %958 : vector<1x32xf32> to vector<16x32xf32>
    %978 = arith.addf %976, %977 : vector<16x32xf32>
    %c0_412 = arith.constant 0 : index
    %c0_413 = arith.constant 0 : index
    %979 = vector.load %arg37[%c0_412, %c0_413] : memref<32x128xf32, #tpu.memory_space<vmem>>, vector<32x128xf32>
    %c0_414 = arith.constant 0 : index
    %c0_415 = arith.constant 0 : index
    %980 = vector.load %arg38[%c0_414, %c0_415] : memref<1x128xf32, #tpu.memory_space<vmem>>, vector<1x128xf32>
    %cst_416 = arith.constant dense<0.000000e+00> : vector<16x128xf32>
    %981 = tpu.matmul %978, %979, %cst_416 {dimension_numbers = #tpu.dot_dimension_numbers<[1], [0], [0], [1], [0, 0, 1, 1], [], []>} : vector<16x32xf32>, vector<32x128xf32>, vector<16x128xf32> -> vector<16x128xf32>
    %982 = vector.broadcast %980 : vector<1x128xf32> to vector<16x128xf32>
    %983 = arith.addf %981, %982 : vector<16x128xf32>
    %c0_417 = arith.constant 0 : index
    %c0_418 = arith.constant 0 : index
    %984 = vector.load %arg39[%c0_417, %c0_418] : memref<16x128xf32, #tpu.memory_space<vmem>>, vector<16x128xf32>
    tpu.vector_store %arg39[%c0_417, %c0_418], %983 {strides = array<i32>} : memref<16x128xf32, #tpu.memory_space<vmem>>, vector<16x128xf32>,
    return
  }
}

</mosaic_0001>

<bundles_post_ra>
// kernel: seq2seq_forward.1
= control target key start
LH: loop header
LB: loop body
LE: loop exit
PB: predicated region body
PF: predicated region fallthrough
CT: control target
= control target key end

     0   :  { %s12977_s3 = smov 5   ;;  %vm180_vm0 = vcmask 261120   ;;  %v12978_v8 = vmov 0.0   ;;  %s12979_s10 = smov 6   ;;  %vm12980_vm1 = vmmov 0   ;;  %vm265_vm2 = vcmask 64512   ;;  %s14611_s0 = inlined_call_operand.smem [shape: u32[41], index: -1, kind: input, shape index: {}] }
   0x1   :  { %s13037_s6 = sld [smem:[%s14611_s0 + %s12977_s3]]   ;;  %11717 = vmatprep.subr.mxu1 %v12978_v8  ;;  %11719 = vmatprep.mubr.msk.f32.mxu1 %vm12980_vm1, %v12978_v8  ;;  %s12981_s14 = smov 96   ;;  %vm1626_vm3 = vcmask 195584   ;;  %vm1623_vm4 = vcmask 130048   ;;  %vm1877_vm5 = vcmask 523264  }
   0x2   :  { %s1_s9 = sld [smem:[%s14611_s0]]   ;;  %s12982_s15 = smov 2  }
   0x3   :  { %s13059_s13 = sld [smem:[%s14611_s0 + %s12979_s10]]   ;;  %s12983_s19 = smov 64  }
   0x4   :  { %s13089_s18 = sld [smem:[%s14611_s0 + %s12982_s15]]   ;;  %s14634_s20 = smov 88  }
   0x5   :  { %s14632_s21 = smov 120   ;;  %s14630_s22 = smov 56  }
   0x6   :  { %s14626_s23 = smov 112   ;;  %s14628_s24 = smov 80  }
   0x7   :  { %v169_v0 = vld [vmem:[%s13037_s6] sm:$0xff]  ;;  %v170_v1 = vld [vmem:[%s13037_s6 + $0x8] sm:$0xff]  ;;  %v171_v2 = vld [vmem:[%s13037_s6 + $0x10] sm:$0xff]  ;;  %s14624_s25 = smov 48   ;;  %s14622_s26 = smov 72  }
   0x8   :  { %v12471_v3 = vpack.c.bf16 %v170_v1, %v169_v0  ;;  %v172_v4 = vld [vmem:[%s13037_s6 + $0x18] sm:$0xff]  ;;  %v13046_v5 = vld [vmem:[%s1_s9] sm:$0xff]  ;;  %v13050_v7 = vld [vmem:[%s1_s9 + $0x8] sm:$0xff]  ;;  %s14620_s27 = smov 104   ;;  %s14618_s28 = smov 40  }
   0x9   :  { %v12475_v6 = vpack.c.bf16 %v172_v4, %v171_v2  ;;  %11714 = vmatprep.mubr.msk.f32.mxu0 %vm180_vm0, %v13046_v5  ;;  %v11048_v9 = vld [vmem:[%s13059_s13] ss:$0 sm:$0xff]  ;;  %s14616_s29 = smov 8   ;;  %s14614_s30 = smov 16  }
   0xa   :  { %12472 = vmatprep.subr.bf16.mxu0 %v12471_v3  ;;  %v13092_v17 = vld [vmem:[%s13089_s18] sm:$0xff]  ;;  %v13096_v22 = vld [vmem:[%s13089_s18 + $0x8] sm:$0xff]  ;;  %s12995_s1 = smov 7   ;;  %s14612_s5 = smov 24  }
   0xb   :  { %12474 = vmatpush3.bf16.msra.mxu0 %v12471_v3  ;;  %s13234_s4 = sld [smem:[%s14611_s0 + %s12995_s1]]   ;;  %s12997_s10 = smov 11  }
   0xc   :  { %12476 = vmatprep.subr.bf16.mxu0 %v12475_v6  ;;  %s13256_s9 = sld [smem:[%s14611_s0 + %s14616_s29]]   ;;  %s12998_s16 = smov 13  }
   0xd   :  { %s13268_s15 = sld [smem:[%s14611_s0 + %s12997_s10]]   ;;  %s12999_s3 = smov 9  }
   0xe   :  { %s13277_s2 = sld [smem:[%s14611_s0 + %s12998_s16]]   ;;  %s13000_s11 = smov 10  }
   0xf   :  { %12478 = vmatpush3.bf16.msra.mxu0 %v12475_v6  ;;  %s13288_s10 = sld [smem:[%s14611_s0 + %s12999_s3]]   ;;  %s13001_s1 = smov 12  }
  0x10   :  { %11737 = vmatprep.subr.mxu0 %v12978_v8  ;;  %s13293_s17 = sld [smem:[%s14611_s0 + %s13000_s11]]   ;;  %s13002_s11 = smov 14  }
  0x11   :  { %s13305_s8 = sld [smem:[%s14611_s0 + %s13001_s1]]   ;;  %s13003_s3 = smov 15  }
  0x12   :  { %11715 = vmatmul.mubr.msk.f32.vlgmr.msra.gmra.mrb[0].mxu0 %vm180_vm0, %v13050_v7  ;;  %s13315_s1 = sld [smem:[%s14611_s0 + %s13002_s11]]   ;;  %s13014_s7 = smov 26  }
  0x13   :  { %11739 = vmatprep.mubr.msk.f32.mxu0 %vm12980_vm1, %v12978_v8 }
  0xe5   :  { %v11716_v10 = vpop.f32.mrb[0].mxu0 }
  0xe6   :  { %v253_v11 = vpop.f32.mrb[1].mxu0  ;;  %v13070_v13 = vadd.f32 %v11716_v10, %v11048_v9 }
  0xe7   :  { %v13066_v12 = vadd.f32 %v11048_v9, %v253_v11 }
  0xe9   :  { %263 = vrot.lane.b32.xlu0 %v13066_v12, %s12981_s14 }
  0xed   :  { %341 = vrot.lane.b32.xlu0 %v13070_v13, %s12981_s14 }
 0x15b   :  { %v264_v14 = vpop.permute.xlu0 %263 }
 0x15c   :  { %11718 = vmatpush3.xpose.msk.msra.mxu1 %vm265_vm2, %v264_v14 }
 0x15d   :  { %11722 = vmatprep.subr.mxu1 %v12978_v8 }
 0x15f   :  { %11720 = vmatmul.mubr.msk.f32.vlgmr.msra.gmra.mrb[0].mxu1 %vm265_vm2, %v13066_v12  ;;  %v342_v15 = vpop.permute.xlu0 %341 }
 0x160   :  { %11723 = vmatpush3.xpose.msk.msra.mxu1 %vm265_vm2, %v342_v15  ;;  %11724 = vmatprep.mubr.msk.f32.mxu1 %vm12980_vm1, %v12978_v8 }
 0x161   :  { %11727 = vmatprep.subr.mxu1 %v12978_v8 }
 0x163   :  { %11725 = vmatmul.mubr.msk.f32.vlgmr.msra.gmra.mrb[2].mxu1 %vm265_vm2, %v13070_v13 }
 0x164   :  { %11729 = vmatprep.mubr.msk.f32.mxu1 %vm12980_vm1, %v12978_v8 }
 0x232   :  { %v336_v16 = vpop.f32.mrb[0].mxu1 }
 0x233   :  { %v417_v18 = vmul.f32 0.35355338, %v336_v16  ;;  %v11721_v19 = vpop.f32.mrb[1].mxu1 }
 0x235   :  { %v419_v20 = vadd.f32 %v417_v18, %v13092_v17 }
 0x236   :  { %v413_v21 = vpop.f32.mrb[2].mxu1 }
 0x237   :  { %v418_v23 = vmul.f32 0.35355338, %v413_v21  ;;  %v11726_v24 = vpop.f32.mrb[3].mxu1  ;;  %v421_v25 = vsel %vm265_vm2, %v419_v20, -inf }
 0x238   :  { %422 = vmax.xlane.f32.xlu1 %v421_v25 }
 0x239   :  { %v420_v26 = vadd.f32 %v418_v23, %v13096_v22 }
 0x23b   :  { %v424_v27 = vsel %vm265_vm2, %v420_v26, -inf }
 0x23c   :  { %425 = vmax.xlane.f32.xlu1 %v424_v27 }
 0x24d   :  { %443 = vrot.lane.b32.xlu1 %v13066_v12, %s12983_s19 }
 0x251   :  { %519 = vrot.lane.b32.xlu1 %v13070_v13, %s12983_s19 }
 0x255   :  { %597 = vrot.lane.b32.xlu1 %v13066_v12, %s14634_s20 }
 0x259   :  { %675 = vrot.lane.b32.xlu1 %v13070_v13, %s14634_s20 }
 0x2c5   :  { %v423_v28 = vpop.xlane.xlu1 %422 }
 0x2c6   :  { %v427_v29 = vsub.f32 %v419_v20, %v423_v28 }
 0x2c8   :  { %v429_v30 = vmul.f32 1.442695, %v427_v29 }
 0x2c9   :  { %v426_v31 = vpop.xlane.xlu1 %425 }
 0x2ca   :  { %12739 = vpow2.f32 %v429_v30  ;;  %v428_v32 = vsub.f32 %v420_v26, %v426_v31 }
 0x2cc   :  { %v431_v33 = vmul.f32 1.442695, %v428_v32 }
 0x2cd   :  { %v444_v34 = vpop.permute.xlu1 %443 }
 0x2ce   :  { %12741 = vpow2.f32 %v431_v33  ;;  %11728 = vmatpush3.msra.mxu1 %v444_v34 }
 0x2cf   :  { %11732 = vmatprep.subr.mxu1 %v12978_v8 }
 0x2d1   :  { %v520_v35 = vpop.permute.xlu1 %519 }
 0x2d4   :  { %v12740_v36 = vpop.eup %12739 }
 0x2d5   :  { %v598_v37 = vpop.permute.xlu1 %597  ;;  %v433_v38 = vsel %vm265_vm2, %v12740_v36, 0.0 }
 0x2d6   :  { %434 = vadd.xlane.f32.xlu0 %v433_v38  ;;  %11738 = vmatpush3.xpose.msk.msra.mxu0 %vm265_vm2, %v598_v37 }
 0x2d7   :  { %11747 = vmatprep.subr.mxu0 %v12978_v8 }
 0x2d8   :  { %v12742_v39 = vpop.eup %12741 }
 0x2d9   :  { %v436_v40 = vsel %vm265_vm2, %v12742_v39, 0.0  ;;  %v676_v41 = vpop.permute.xlu1 %675 }
 0x2da   :  { %437 = vadd.xlane.f32.xlu1 %v436_v40 }
 0x2eb   :  { %673 = vrot.lane.b32.xlu1 %v13070_v13, %s14632_s21 }
 0x2ec   :  { %595 = vrot.lane.b32.xlu0 %v13066_v12, %s14632_s21 }
 0x363   :  { %v435_v42 = vpop.xlane.xlu0 %434 }
 0x364   :  { %12743 = vrcp.f32 %v435_v42 }
 0x367   :  { %v438_v43 = vpop.xlane.xlu1 %437  ;;  %v596_v44 = vpop.permute.xlu0 %595 }
 0x368   :  { %12745 = vrcp.f32 %v438_v43  ;;  %11740 = vmatmul.mubr.msk.f32.vlgmr.msra.gmra.mrb[2].mxu0 %vm265_vm2, %v596_v44 }
 0x369   :  { %11749 = vmatprep.mubr.msk.f32.mxu0 %vm12980_vm1, %v12978_v8 }
 0x36b   :  { %v674_v49 = vpop.permute.xlu1 %673 }
 0x36e   :  { %v12744_v45 = vpop.eup %12743 }
 0x36f   :  { %v441_v46 = vmul.f32 %v12744_v45, %v12740_v36 }
 0x371   :  { %11730 = vmatmul.mubr.msk.f32.vlgmr.msra.gmra.mrb[4].mxu1 %vm265_vm2, %v441_v46 }
 0x372   :  { %v12746_v47 = vpop.eup %12745  ;;  %11733 = vmatpush3.msra.mxu1 %v520_v35  ;;  %11734 = vmatprep.mubr.msk.f32.mxu1 %vm12980_vm1, %v12978_v8 }
 0x373   :  { %v442_v48 = vmul.f32 %v12746_v47, %v12742_v39  ;;  %11742 = vmatprep.subr.mxu1 %v12978_v8 }
 0x375   :  { %11735 = vmatmul.mubr.msk.f32.vlgmr.msra.gmra.mrb[6].mxu1 %vm265_vm2, %v442_v48 }
 0x376   :  { %11744 = vmatprep.mubr.msk.f32.mxu1 %vm12980_vm1, %v12978_v8 }
 0x379   :  { %11743 = vmatpush3.xpose.msk.msra.mxu1 %vm265_vm2, %v676_v41 }
 0x37a   :  { %11752 = vmatprep.subr.mxu1 %v12978_v8 }
 0x37c   :  { %11745 = vmatmul.mubr.msk.f32.vlgmr.msra.gmra.mrb[8].mxu1 %vm265_vm2, %v674_v49 }
 0x37d   :  { %11754 = vmatprep.mubr.msk.f32.mxu1 %vm12980_vm1, %v12978_v8 }
 0x43b   :  { %v669_v50 = vpop.f32.mrb[2].mxu0 }
 0x43c   :  { %v751_v51 = vmul.f32 0.35355338, %v669_v50  ;;  %v11741_v52 = vpop.f32.mrb[3].mxu0 }
 0x43e   :  { %v753_v53 = vadd.f32 %v751_v51, %v13092_v17 }
 0x440   :  { %v755_v54 = vsel %vm265_vm2, %v753_v53, -inf }
 0x441   :  { %756 = vmax.xlane.f32.xlu1 %v755_v54 }
 0x444   :  { %v13135_v55 = vpop.f32.mrb[4].mxu1 }
 0x445   :  { %v11731_v56 = vpop.f32.mrb[5].mxu1 }
 0x448   :  { %v13137_v57 = vpop.f32.mrb[6].mxu1 }
 0x449   :  { %v11736_v58 = vpop.f32.mrb[7].mxu1 }
 0x44f   :  { %v747_v59 = vpop.f32.mrb[8].mxu1 }
 0x450   :  { %v752_v60 = vmul.f32 0.35355338, %v747_v59  ;;  %v11746_v61 = vpop.f32.mrb[9].mxu1 }
 0x452   :  { %v754_v62 = vadd.f32 %v752_v60, %v13096_v22 }
 0x454   :  { %v758_v63 = vsel %vm265_vm2, %v754_v62, -inf }
 0x455   :  { %759 = vmax.xlane.f32.xlu0 %v758_v63 }
 0x46b   :  { %853 = vrot.lane.b32.xlu0 %v13070_v13, %s14630_s22 }
 0x46f   :  { %929 = vrot.lane.b32.xlu0 %v13066_v12, %s14626_s23 }
 0x4ce   :  { %v757_v0 = vpop.xlane.xlu1 %756 }
 0x4cf   :  { %v761_v1 = vsub.f32 %v753_v53, %v757_v0 }
 0x4d1   :  { %v763_v2 = vmul.f32 1.442695, %v761_v1 }
 0x4d3   :  { %12747 = vpow2.f32 %v763_v2 }
 0x4dd   :  { %v12748_v3 = vpop.eup %12747 }
 0x4de   :  { %v767_v4 = vsel %vm265_vm2, %v12748_v3, 0.0 }
 0x4df   :  { %768 = vadd.xlane.f32.xlu1 %v767_v4 }
 0x4e2   :  { %v760_v6 = vpop.xlane.xlu0 %759 }
 0x4e3   :  { %v762_v10 = vsub.f32 %v754_v62, %v760_v6 }
 0x4e5   :  { %v765_v11 = vmul.f32 1.442695, %v762_v10 }
 0x4e6   :  { %v854_v9 = vpop.permute.xlu0 %853 }
 0x4e7   :  { %11753 = vmatpush3.msra.mxu1 %v854_v9  ;;  %12749 = vpow2.f32 %v765_v11 }
 0x4e8   :  { %11762 = vmatprep.subr.mxu1 %v12978_v8 }
 0x4ea   :  { %v930_v23 = vpop.permute.xlu0 %929 }
 0x4f0   :  { %777 = vrot.lane.b32.xlu1 %v13066_v12, %s14630_s22 }
 0x4f1   :  { %v12750_v14 = vpop.eup %12749 }
 0x4f2   :  { %v770_v15 = vsel %vm265_vm2, %v12750_v14, 0.0 }
 0x4f4   :  { %931 = vrot.lane.b32.xlu1 %v13066_v12, %s14628_s24 }
 0x4f8   :  { %1009 = vrot.lane.b32.xlu1 %v13070_v13, %s14628_s24 }
 0x51c   :  { %771 = vadd.xlane.f32.xlu1 %v770_v15 }
 0x52d   :  { %1007 = vrot.lane.b32.xlu1 %v13070_v13, %s14626_s23 }
 0x56c   :  { %v769_v16 = vpop.xlane.xlu1 %768 }
 0x56d   :  { %12751 = vrcp.f32 %v769_v16 }
 0x570   :  { %v778_v18 = vpop.permute.xlu1 %777 }
 0x571   :  { %11748 = vmatpush3.msra.mxu0 %v778_v18 }
 0x572   :  { %11757 = vmatprep.subr.mxu0 %v12978_v8 }
 0x574   :  { %v932_v21 = vpop.permute.xlu1 %931 }
 0x577   :  { %v12752_v19 = vpop.eup %12751 }
 0x578   :  { %v775_v20 = vmul.f32 %v12752_v19, %v12748_v3  ;;  %v1010_v24 = vpop.permute.xlu1 %1009 }
 0x57a   :  { %11750 = vmatmul.mubr.msk.f32.vlgmr.msra.gmra.mrb[4].mxu0 %vm265_vm2, %v775_v20 }
 0x57b   :  { %11758 = vmatpush3.xpose.msk.msra.mxu0 %vm265_vm2, %v932_v21  ;;  %11759 = vmatprep.mubr.msk.f32.mxu0 %vm12980_vm1, %v12978_v8 }
 0x57c   :  { %11767 = vmatprep.subr.mxu0 %v12978_v8 }
 0x57e   :  { %11760 = vmatmul.mubr.msk.f32.vlgmr.msra.gmra.mrb[6].mxu0 %vm265_vm2, %v930_v23 }
 0x57f   :  { %11769 = vmatprep.mubr.msk.f32.mxu0 %vm12980_vm1, %v12978_v8 }
 0x5a9   :  { %v772_v25 = vpop.xlane.xlu1 %771 }
 0x5aa   :  { %12753 = vrcp.f32 %v772_v25 }
 0x5ad   :  { %v1008_v28 = vpop.permute.xlu1 %1007 }
 0x5b4   :  { %v12754_v26 = vpop.eup %12753 }
 0x5b5   :  { %v776_v27 = vmul.f32 %v12754_v26, %v12750_v14 }
 0x5b7   :  { %11755 = vmatmul.mubr.msk.f32.vlgmr.msra.gmra.mrb[10].mxu1 %vm265_vm2, %v776_v27 }
 0x5b8   :  { %11763 = vmatpush3.xpose.msk.msra.mxu1 %vm265_vm2, %v1010_v24  ;;  %11764 = vmatprep.mubr.msk.f32.mxu1 %vm12980_vm1, %v12978_v8 }
 0x5b9   :  { %11772 = vmatprep.subr.mxu1 %v12978_v8 }
 0x5bb   :  { %11765 = vmatmul.mubr.msk.f32.vlgmr.msra.gmra.mrb[12].mxu1 %vm265_vm2, %v1008_v28 }
 0x5bc   :  { %11774 = vmatprep.mubr.msk.f32.mxu1 %vm12980_vm1, %v12978_v8 }
 0x64d   :  { %v13173_v29 = vpop.f32.mrb[4].mxu0 }
 0x64e   :  { %v11751_v30 = vpop.f32.mrb[5].mxu0 }
 0x651   :  { %v1003_v31 = vpop.f32.mrb[6].mxu0 }
 0x652   :  { %v1085_v32 = vmul.f32 0.35355338, %v1003_v31  ;;  %v11761_v33 = vpop.f32.mrb[7].mxu0 }
 0x654   :  { %v1087_v34 = vadd.f32 %v1085_v32, %v13092_v17 }
 0x656   :  { %v1089_v35 = vsel %vm265_vm2, %v1087_v34, -inf }
 0x657   :  { %1090 = vmax.xlane.f32.xlu0 %v1089_v35 }
 0x68a   :  { %v13177_v36 = vpop.f32.mrb[10].mxu1 }
 0x68b   :  { %v11756_v37 = vpop.f32.mrb[11].mxu1 }
 0x68e   :  { %v1081_v38 = vpop.f32.mrb[12].mxu1 }
 0x68f   :  { %v1086_v39 = vmul.f32 0.35355338, %v1081_v38  ;;  %v11766_v40 = vpop.f32.mrb[13].mxu1 }
 0x691   :  { %v1088_v41 = vadd.f32 %v1086_v39, %v13096_v22 }
 0x693   :  { %v1092_v42 = vsel %vm265_vm2, %v1088_v41, -inf }
 0x694   :  { %1093 = vmax.xlane.f32.xlu1 %v1092_v42  ;;  %v1631_v42 = vld [vmem:[%s13234_s4 + $0x10] sm:$0xff] }
 0x6a5   :  { %1111 = vrot.lane.b32.xlu1 %v13066_v12, %s14624_s25 }
 0x6a9   :  { %1265 = vrot.lane.b32.xlu1 %v13066_v12, %s14622_s26 }
 0x6ad   :  { %1343 = vrot.lane.b32.xlu1 %v13070_v13, %s14622_s26 }
 0x6b1   :  { %1341 = vrot.lane.b32.xlu1 %v13070_v13, %s14620_s27 }
 0x6e4   :  { %v1091_v43 = vpop.xlane.xlu0 %1090 }
 0x6e5   :  { %v1095_v44 = vsub.f32 %v1087_v34, %v1091_v43 }
 0x6e7   :  { %v1097_v45 = vmul.f32 1.442695, %v1095_v44  ;;  %v1632_v44 = vld [vmem:[%s13234_s4 + $0x18] sm:$0xff] }
 0x6e9   :  { %12755 = vpow2.f32 %v1097_v45  ;;  %v12483_v45 = vpack.c.bf16 %v1632_v44, %v1631_v42  ;;  %v11078_v42 = vld [vmem:[%s13288_s10] ss:$0 sm:$0xff] }
 0x6ea   :  { %v11079_v44 = vld [vmem:[%s13293_s17] ss:$0 sm:$0xff] }
 0x6f3   :  { %v12756_v46 = vpop.eup %12755 }
 0x6f4   :  { %v1101_v47 = vsel %vm265_vm2, %v12756_v46, 0.0 }
 0x6f5   :  { %1102 = vadd.xlane.f32.xlu0 %v1101_v47 }
 0x70b   :  { %1187 = vrot.lane.b32.xlu0 %v13070_v13, %s14624_s25 }
 0x721   :  { %v1094_v48 = vpop.xlane.xlu1 %1093 }
 0x722   :  { %v1096_v49 = vsub.f32 %v1088_v41, %v1094_v48  ;;  %v1630_v41 = vld [vmem:[%s13234_s4 + $0x8] sm:$0xff] }
 0x724   :  { %v1099_v50 = vmul.f32 1.442695, %v1096_v49 }
 0x725   :  { %v1112_v51 = vpop.permute.xlu1 %1111 }
 0x726   :  { %12757 = vpow2.f32 %v1099_v50  ;;  %11768 = vmatpush3.msra.mxu0 %v1112_v51 }
 0x727   :  { %11777 = vmatprep.subr.mxu0 %v12978_v8 }
 0x729   :  { %v1266_v60 = vpop.permute.xlu1 %1265 }
 0x72d   :  { %v1344_v0 = vpop.permute.xlu1 %1343 }
 0x730   :  { %v12758_v52 = vpop.eup %12757 }
 0x731   :  { %v1104_v53 = vsel %vm265_vm2, %v12758_v52, 0.0  ;;  %v1342_v2 = vpop.permute.xlu1 %1341 }
 0x732   :  { %1105 = vadd.xlane.f32.xlu0 %v1104_v53 }
 0x748   :  { %1263 = vrot.lane.b32.xlu0 %v13066_v12, %s14620_s27 }
 0x782   :  { %v1103_v54 = vpop.xlane.xlu0 %1102 }
 0x783   :  { %12759 = vrcp.f32 %v1103_v54 }
 0x786   :  { %v1188_v56 = vpop.permute.xlu0 %1187 }
 0x787   :  { %11773 = vmatpush3.msra.mxu1 %v1188_v56 }
 0x788   :  { %11782 = vmatprep.subr.mxu1 %v12978_v8 }
 0x78d   :  { %v12760_v58 = vpop.eup %12759 }
 0x78e   :  { %v1109_v59 = vmul.f32 %v12760_v58, %v12756_v46 }
 0x790   :  { %11770 = vmatmul.mubr.msk.f32.vlgmr.msra.gmra.mrb[8].mxu0 %vm265_vm2, %v1109_v59 }
 0x791   :  { %11778 = vmatpush3.xpose.msk.msra.mxu0 %vm265_vm2, %v1266_v60  ;;  %11779 = vmatprep.mubr.msk.f32.mxu0 %vm12980_vm1, %v12978_v8 }
 0x792   :  { %11787 = vmatprep.subr.mxu0 %v12978_v8 }
 0x7bf   :  { %v1106_v61 = vpop.xlane.xlu0 %1105 }
 0x7c0   :  { %12761 = vrcp.f32 %v1106_v61 }
 0x7c3   :  { %v1264_v62 = vpop.permute.xlu0 %1263 }
 0x7c4   :  { %11780 = vmatmul.mubr.msk.f32.vlgmr.msra.gmra.mrb[10].mxu0 %vm265_vm2, %v1264_v62 }
 0x7c5   :  { %11789 = vmatprep.mubr.msk.f32.mxu0 %vm12980_vm1, %v12978_v8 }
 0x7ca   :  { %v12762_v63 = vpop.eup %12761 }
 0x7cb   :  { %v1110_v1 = vmul.f32 %v12762_v63, %v12758_v52 }
 0x7cd   :  { %11775 = vmatmul.mubr.msk.f32.vlgmr.msra.gmra.mrb[14].mxu1 %vm265_vm2, %v1110_v1 }
 0x7ce   :  { %11783 = vmatpush3.xpose.msk.msra.mxu1 %vm265_vm2, %v1344_v0  ;;  %11784 = vmatprep.mubr.msk.f32.mxu1 %vm12980_vm1, %v12978_v8 }
 0x7cf   :  { %11792 = vmatprep.subr.mxu1 %v12978_v8 }
 0x7d1   :  { %11785 = vmatmul.mubr.msk.f32.vlgmr.msra.gmra.mrb[16].mxu1 %vm265_vm2, %v1342_v2 }
 0x7d2   :  { %11794 = vmatprep.mubr.msk.f32.mxu1 %vm12980_vm1, %v12978_v8 }
 0x863   :  { %v1183_v3 = vpop.f32.mrb[8].mxu0 }
 0x864   :  { %v11771_v4 = vpop.f32.mrb[9].mxu0 }
 0x897   :  { %v1337_v6 = vpop.f32.mrb[10].mxu0 }
 0x898   :  { %v1419_v9 = vmul.f32 0.35355338, %v1337_v6  ;;  %v11781_v10 = vpop.f32.mrb[11].mxu0 }
 0x89a   :  { %v1421_v11 = vadd.f32 %v1419_v9, %v13092_v17 }
 0x89c   :  { %v1423_v14 = vsel %vm265_vm2, %v1421_v11, -inf }
 0x89d   :  { %1424 = vmax.xlane.f32.xlu0 %v1423_v14 }
 0x8a0   :  { %v1259_v15 = vpop.f32.mrb[14].mxu1 }
 0x8a1   :  { %v11776_v16 = vpop.f32.mrb[15].mxu1 }
 0x8a4   :  { %v1415_v18 = vpop.f32.mrb[16].mxu1 }
 0x8a5   :  { %v1420_v19 = vmul.f32 0.35355338, %v1415_v18  ;;  %v11786_v20 = vpop.f32.mrb[17].mxu1 }
 0x8a7   :  { %v1422_v21 = vadd.f32 %v1420_v19, %v13096_v22 }
 0x8a9   :  { %v1426_v23 = vsel %vm265_vm2, %v1422_v21, -inf }
 0x8aa   :  { %1427 = vmax.xlane.f32.xlu1 %v1426_v23  ;;  %v1769_v23 = vld [vmem:[%s13268_s15 + $0x8] sm:$0xff] }
 0x8bb   :  { %1445 = vrot.lane.b32.xlu1 %v13066_v12, %s14618_s28 }
 0x8bf   :  { %1599 = vrot.lane.b32.xlu1 %v13173_v29, %s14616_s29 }
 0x8c3   :  { %1601 = vrot.lane.b32.xlu1 %v13177_v36, %s14616_s29 }
 0x8c7   :  { %1609 = vrot.lane.b32.xlu1 %v1259_v15, %s14614_s30 }
 0x92a   :  { %v1425_v24 = vpop.xlane.xlu0 %1424 }
 0x92b   :  { %v1429_v25 = vsub.f32 %v1421_v11, %v1425_v24  ;;  %v1770_v24 = vld [vmem:[%s13268_s15 + $0x10] sm:$0xff] }
 0x92d   :  { %v1431_v26 = vmul.f32 1.442695, %v1429_v25 }
 0x92f   :  { %12763 = vpow2.f32 %v1431_v26  ;;  %v1771_v26 = vld [vmem:[%s13268_s15 + $0x18] sm:$0xff] }
 0x937   :  { %v1428_v27 = vpop.xlane.xlu1 %1427 }
 0x938   :  { %v1430_v28 = vsub.f32 %v1422_v21, %v1428_v27  ;;  %v12491_v27 = vpack.c.bf16 %v1771_v26, %v1770_v24 }
 0x939   :  { %v12764_v30 = vpop.eup %12763 }
 0x93a   :  { %v1433_v31 = vmul.f32 1.442695, %v1430_v28  ;;  %v1435_v12 = vsel %vm265_vm2, %v12764_v30, 0.0  ;;  %v1862_v28 = vld [vmem:[%s13277_s2] sm:$0xff] }
 0x93b   :  { %v1446_v32 = vpop.permute.xlu1 %1445  ;;  %1436 = vadd.xlane.f32.xlu0 %v1435_v12 }
 0x93c   :  { %12765 = vpow2.f32 %v1433_v31  ;;  %11788 = vmatpush3.msra.mxu0 %v1446_v32  ;;  %v1864_v31 = vld [vmem:[%s13277_s2 + $0x10] sm:$0xff]  ;;  %v1865_v32 = vld [vmem:[%s13277_s2 + $0x18] sm:$0xff] }
 0x93f   :  { %v1600_v50 = vpop.permute.xlu1 %1599 }
 0x940   :  { %v1621_v52 = vsel %vm265_vm2, %v13135_v55, %v1600_v50  ;;  %v11075_v55 = vld [vmem:[%s13256_s9] ss:$0 sm:$0xff] }
 0x943   :  { %v1602_v58 = vpop.permute.xlu1 %1601 }
 0x944   :  { %v1622_v60 = vsel %vm265_vm2, %v13137_v57, %v1602_v58 }
 0x946   :  { %v12766_v29 = vpop.eup %12765 }
 0x947   :  { %v1438_v33 = vsel %vm265_vm2, %v12766_v29, 0.0  ;;  %v1610_v59 = vpop.permute.xlu1 %1609 }
 0x948   :  { %1439 = vadd.xlane.f32.xlu0 %v1438_v33  ;;  %v1625_v61 = vsel %vm1623_vm4, %v1622_v60, %v1610_v59  ;;  %v1866_v33 = vld [vmem:[%s13277_s2 + $0x20] sm:$0xff] }
 0x95e   :  { %1521 = vrot.lane.b32.xlu0 %v13070_v13, %s14618_s28  ;;  %v1629_v13 = vld [vmem:[%s13234_s4] sm:$0xff] }
 0x95f   :  { %v12479_v43 = vpack.c.bf16 %v1630_v41, %v1629_v13 }
 0x961   :  { %12480 = vmatprep.subr.bf16.mxu0 %v12479_v43 }
 0x962   :  { %1607 = vrot.lane.b32.xlu0 %v1183_v3, %s14614_s30 }
 0x9c8   :  { %v1437_v34 = vpop.xlane.xlu0 %1436 }
 0x9c9   :  { %12767 = vrcp.f32 %v1437_v34  ;;  %v1867_v34 = vld [vmem:[%s13277_s2 + $0x28] sm:$0xff] }
 0x9d3   :  { %v12768_v35 = vpop.eup %12767 }
 0x9d4   :  { %v1443_v36 = vmul.f32 %v12768_v35, %v12764_v30  ;;  %v1863_v30 = vld [vmem:[%s13277_s2 + $0x8] sm:$0xff]  ;;  %v12503_v35 = vpack.c.bf16 %v1867_v34, %v1866_v33 }
 0x9d5   :  { %v1440_v37 = vpop.xlane.xlu0 %1439  ;;  %v12495_v12 = vpack.c.bf16 %v1863_v30, %v1862_v28 }
 0x9d6   :  { %12769 = vrcp.f32 %v1440_v37  ;;  %11790 = vmatmul.mubr.msk.f32.vlgmr.msra.gmra.mrb[12].mxu0 %vm265_vm2, %v1443_v36 }
 0x9d7   :  { %12482 = vmatpush3.bf16.msra.mxu0 %v12479_v43 }
 0x9d8   :  { %12484 = vmatprep.subr.bf16.mxu0 %v12483_v45 }
 0x9d9   :  { %v1522_v38 = vpop.permute.xlu0 %1521 }
 0x9da   :  { %11793 = vmatpush3.msra.mxu1 %v1522_v38 }
 0x9db   :  { %12486 = vmatpush3.bf16.msra.mxu0 %v12483_v45 }
 0x9dc   :  { %12496 = vmatprep.subr.bf16.mxu0 %v12495_v12 }
 0x9dd   :  { %v1608_v51 = vpop.permute.xlu0 %1607 }
 0x9de   :  { %v1624_v53 = vsel %vm1623_vm4, %v1621_v52, %v1608_v51  ;;  %v1868_v51 = vld [vmem:[%s13277_s2 + $0x30] sm:$0xff]  ;;  %v1869_v52 = vld [vmem:[%s13277_s2 + $0x38] sm:$0xff] }
 0x9e0   :  { %v12770_v39 = vpop.eup %12769 }
 0x9e1   :  { %v1444_v40 = vmul.f32 %v12770_v39, %v12766_v29  ;;  %v12499_v29 = vpack.c.bf16 %v1865_v32, %v1864_v31 }
 0x9e3   :  { %11795 = vmatmul.mubr.msk.f32.vlgmr.msra.gmra.mrb[18].mxu1 %vm265_vm2, %v1444_v40 }
 0xaa9   :  { %v1517_v46 = vpop.f32.mrb[12].mxu0 }
 0xaaa   :  { %1615 = vrot.lane.b32.xlu0 %v1517_v46, %s14612_s5  ;;  %v11791_v47 = vpop.f32.mrb[13].mxu0 }
 0xab6   :  { %v1593_v48 = vpop.f32.mrb[18].mxu1 }
 0xab7   :  { %1617 = vrot.lane.b32.xlu1 %v1593_v48, %s14612_s5  ;;  %v11796_v49 = vpop.f32.mrb[19].mxu1  ;;  %s13336_s5 = sld [smem:[%s14611_s0 + %s14614_s30]]  }
 0xb1c   :  { %v1616_v54 = vpop.permute.xlu0 %1615 }
 0xb1d   :  { %v1627_v56 = vsel %vm1626_vm3, %v1624_v53, %v1616_v54  ;;  %v12507_v53 = vpack.c.bf16 %v1869_v52, %v1868_v51  ;;  %v11080_v54 = vld [vmem:[%s13305_s8] ss:$0 sm:$0xff] }
 0xb1e   :  { %11805 = vmatprep.mubr.msk.f32.mxu0 %vm180_vm0, %v1627_v56 }
 0xb29   :  { %v1618_v62 = vpop.permute.xlu1 %1617 }
 0xb2a   :  { %v1628_v63 = vsel %vm1626_vm3, %v1625_v61, %v1618_v62 }
 0xb2b   :  { %11806 = vmatmul.mubr.msk.f32.vlgmr.msra.gmra.mrb[14].mxu0 %vm180_vm0, %v1628_v63  ;;  %v11083_v63 = vld [vmem:[%s13315_s1] ss:$0 sm:$0xff] }
 0xb2c   :  { %12498 = vmatpush3.bf16.msra.mxu0 %v12495_v12 }
 0xb2d   :  { %12500 = vmatprep.subr.bf16.mxu0 %v12499_v29 }
 0xb30   :  { %12502 = vmatpush3.bf16.msra.mxu0 %v12499_v29 }
 0xb31   :  { %12504 = vmatprep.subr.bf16.mxu0 %v12503_v35 }
 0xb34   :  { %12506 = vmatpush3.bf16.msra.mxu0 %v12503_v35 }
 0xb35   :  { %12508 = vmatprep.subr.bf16.mxu0 %v12507_v53 }
 0xb38   :  { %12510 = vmatpush3.bf16.msra.mxu0 %v12507_v53 }
 0xb39   :  { %11859 = vmatprep.subr.mxu0 %v12978_v8 }
 0xbfe   :  { %v11807_v0 = vpop.f32.mrb[14].mxu0 }
 0xbff   :  { %v1718_v1 = vadd.f32 %v11807_v0, %v11075_v55  ;;  %v1712_v2 = vpop.f32.mrb[15].mxu0 }
 0xc00   :  { %v1713_v3 = vadd.f32 %v11075_v55, %v1712_v2 }
 0xc01   :  { %v1722_v57 = vadd.f32 %v1718_v1, %v13050_v7 }
 0xc02   :  { %v1721_v4 = vadd.f32 %v1713_v3, %v13046_v5  ;;  %v1768_v5 = vld [vmem:[%s13268_s15] sm:$0xff] }
 0xc03   :  { %v1728_v6 = vsel %vm180_vm0, %v1722_v57, 0.0  ;;  %v12487_v25 = vpack.c.bf16 %v1769_v23, %v1768_v5  ;;  %v11089_v5 = vld [vmem:[%s13037_s6 + $0x28] sm:$0xff]  ;;  %v11090_v23 = vld [vmem:[%s13037_s6 + $0x30] sm:$0xff] }
 0xc04   :  { %1729 = vadd.xlane.f32.xlu1 %v1728_v6  ;;  %v1725_v9 = vsel %vm180_vm0, %v1721_v4, 0.0 }
 0xc05   :  { %1726 = vadd.xlane.f32.xlu0 %v1725_v9  ;;  %12488 = vmatprep.subr.bf16.mxu1 %v12487_v25 }
 0xc06   :  { %12490 = vmatpush3.bf16.msra.mxu1 %v12487_v25  ;;  %v11091_v25 = vld [vmem:[%s13037_s6 + $0x38] sm:$0xff] }
 0xc07   :  { %12492 = vmatprep.subr.bf16.mxu1 %v12491_v27  ;;  %v12515_v26 = vpack.c.bf16 %v11091_v25, %v11090_v23 }
 0xc0a   :  { %12494 = vmatpush3.bf16.msra.mxu1 %v12491_v27 }
 0xc91   :  { %v1730_v10 = vpop.xlane.xlu1 %1729 }
 0xc92   :  { %v1733_v11 = vmul.f32 0.03125, %v1730_v10  ;;  %v1727_v14 = vpop.xlane.xlu0 %1726 }
 0xc93   :  { %v1732_v15 = vmul.f32 0.03125, %v1727_v14 }
 0xc94   :  { %v1735_v16 = vsub.f32 %v1722_v57, %v1733_v11 }
 0xc95   :  { %v1734_v18 = vsub.f32 %v1721_v4, %v1732_v15 }
 0xc96   :  { %v1737_v21 = vmul.f32 %v1735_v16, %v1735_v16 }
 0xc97   :  { %v1736_v19 = vmul.f32 %v1734_v18, %v1734_v18 }
 0xc98   :  { %v1741_v7 = vsel %vm180_vm0, %v1737_v21, 0.0 }
 0xc99   :  { %v1738_v20 = vsel %vm180_vm0, %v1736_v19, 0.0 }
 0xc9a   :  { %1739 = vadd.xlane.f32.xlu0 %v1738_v20 }
 0xc9e   :  { %1742 = vadd.xlane.f32.xlu0 %v1741_v7  ;;  %v11088_v7 = vld [vmem:[%s13037_s6 + $0x20] sm:$0xff]  ;;  %s13330_s6 = sld [smem:[%s14611_s0 + %s13003_s3]]  }
 0xc9f   :  { %v12511_v24 = vpack.c.bf16 %v11089_v5, %v11088_v7 }
 0xca1   :  { %12512 = vmatprep.subr.bf16.mxu1 %v12511_v24 }
 0xca4   :  { %v11086_v33 = vld [vmem:[%s13330_s6] ss:$0 sm:$0xff] }
 0xd27   :  { %v1740_v36 = vpop.xlane.xlu0 %1739 }
 0xd28   :  { %v1744_v37 = vmul.f32 0.03125, %v1740_v36 }
 0xd2a   :  { %v1746_v38 = vadd.f32 1e-05, %v1744_v37  ;;  %v11087_v37 = vld [vmem:[%s13336_s5] ss:$0 sm:$0xff] }
 0xd2b   :  { %v1743_v39 = vpop.xlane.xlu0 %1742 }
 0xd2c   :  { %12771 = vrsqrt.f32 %v1746_v38  ;;  %v1745_v40 = vmul.f32 0.03125, %v1743_v39 }
 0xd2e   :  { %v1747_v13 = vadd.f32 1e-05, %v1745_v40 }
 0xd30   :  { %12773 = vrsqrt.f32 %v1747_v13 }
 0xd36   :  { %v12772_v41 = vpop.eup %12771 }
 0xd37   :  { %v1750_v43 = vmul.f32 %v12772_v41, %v1734_v18  ;;  %v11093_v41 = vld [vmem:[%s13059_s13 + $0x1] ss:$0 sm:$0xff]  ;;  %s14636_s13 = smov 24  }
 0xd39   :  { %v1758_v45 = vmul.f32 %v11078_v42, %v1750_v43 }
 0xd3a   :  { %v12774_v46 = vpop.eup %12773 }
 0xd3b   :  { %v1751_v47 = vmul.f32 %v12774_v46, %v1735_v16  ;;  %v1766_v48 = vadd.f32 %v11079_v44, %v1758_v45 }
 0xd3d   :  { %v1759_v49 = vmul.f32 %v11078_v42, %v1751_v47  ;;  %11816 = vmatprep.mubr.msk.f32.mxu1 %vm180_vm0, %v1766_v48 }
 0xd3f   :  { %v1767_v50 = vadd.f32 %v11079_v44, %v1759_v49 }
 0xd41   :  { %11817 = vmatmul.mubr.msk.f32.vlgmr.msra.gmra.mrb[20].mxu1 %vm180_vm0, %v1767_v50 }
 0xd42   :  { %12514 = vmatpush3.bf16.msra.mxu1 %v12511_v24 }
 0xd43   :  { %12516 = vmatprep.subr.bf16.mxu1 %v12515_v26 }
 0xd46   :  { %12518 = vmatpush3.bf16.msra.mxu1 %v12515_v26  ;;  %v13412_v26 = vld [vmem:[%s13089_s18] sm:$0xff] }
 0xd47   :  { %11849 = vmatprep.subr.mxu1 %v12978_v8 }
 0xe14   :  { %v11818_v56 = vpop.f32.mrb[20].mxu1 }
 0xe15   :  { %v1857_v58 = vadd.f32 %v11818_v56, %v11080_v54  ;;  %v1851_v59 = vpop.f32.mrb[21].mxu1 }
 0xe16   :  { %v1852_v60 = vadd.f32 %v11080_v54, %v1851_v59 }
 0xe17   :  { %v1861_v62 = vmax.f32 %v1857_v58, 0.0 }
 0xe18   :  { %v1860_v61 = vmax.f32 %v1852_v60, 0.0 }
 0xe1a   :  { %11835 = vmatprep.mubr.msk.f32.mxu0 %vm1877_vm5, %v1860_v61 }
 0xe1b   :  { %11836 = vmatmul.mubr.msk.f32.vlgmr.msra.gmra.mrb[16].mxu0 %vm1877_vm5, %v1861_v62 }
 0xe1c   :  { %11861 = vmatprep.mubr.msk.f32.mxu0 %vm12980_vm1, %v12978_v8 }
 0xeee   :  { %v11837_v55 = vpop.f32.mrb[16].mxu0 }
 0xeef   :  { %v1956_v0 = vadd.f32 %v11837_v55, %v11083_v63  ;;  %v1950_v1 = vpop.f32.mrb[17].mxu0 }
 0xef0   :  { %v1951_v2 = vadd.f32 %v11083_v63, %v1950_v1 }
 0xef1   :  { %v1960_v3 = vadd.f32 %v1956_v0, %v1767_v50 }
 0xef2   :  { %v1959_v57 = vadd.f32 %v1951_v2, %v1766_v48 }
 0xef3   :  { %v1966_v4 = vsel %vm180_vm0, %v1960_v3, 0.0 }
 0xef4   :  { %1967 = vadd.xlane.f32.xlu0 %v1966_v4  ;;  %v1963_v6 = vsel %vm180_vm0, %v1959_v57, 0.0 }
 0xef5   :  { %1964 = vadd.xlane.f32.xlu1 %v1963_v6 }
 0xf81   :  { %v1968_v9 = vpop.xlane.xlu0 %1967 }
 0xf82   :  { %v1970_v10 = vmul.f32 0.03125, %v1968_v9  ;;  %v1965_v11 = vpop.xlane.xlu1 %1964 }
 0xf83   :  { %v1969_v14 = vmul.f32 0.03125, %v1965_v11 }
 0xf84   :  { %v1972_v15 = vsub.f32 %v1960_v3, %v1970_v10 }
 0xf85   :  { %v1971_v16 = vsub.f32 %v1959_v57, %v1969_v14 }
 0xf86   :  { %v1974_v18 = vmul.f32 %v1972_v15, %v1972_v15 }
 0xf87   :  { %v1973_v19 = vmul.f32 %v1971_v16, %v1971_v16 }
 0xf88   :  { %v1978_v20 = vsel %vm180_vm0, %v1974_v18, 0.0 }
 0xf89   :  { %1979 = vadd.xlane.f32.xlu0 %v1978_v20  ;;  %v1975_v21 = vsel %vm180_vm0, %v1973_v19, 0.0 }
 0xf8a   :  { %1976 = vadd.xlane.f32.xlu1 %v1975_v21 }
0x1016   :  { %v1980_v27 = vpop.xlane.xlu0 %1979 }
0x1017   :  { %v1982_v28 = vmul.f32 0.03125, %v1980_v27  ;;  %v1977_v30 = vpop.xlane.xlu1 %1976 }
0x1018   :  { %v1981_v31 = vmul.f32 0.03125, %v1977_v30 }
0x1019   :  { %v1984_v12 = vadd.f32 1e-05, %v1982_v28 }
0x101a   :  { %v1983_v32 = vadd.f32 1e-05, %v1981_v31 }
0x101b   :  { %12775 = vrsqrt.f32 %v1984_v12 }
0x101c   :  { %12777 = vrsqrt.f32 %v1983_v32  ;;  %v13417_v32 = vld [vmem:[%s13089_s18 + $0x8] sm:$0xff]  ;;  %s13004_s18 = smov 17  }
0x101d   :  { %s13541_s3 = sld [smem:[%s14611_s0 + %s13004_s18]]  }
0x1025   :  { %v12776_v29 = vpop.eup %12775 }
0x1026   :  { %v12778_v34 = vpop.eup %12777  ;;  %v1988_v35 = vmul.f32 %v12776_v29, %v1972_v15 }
0x1027   :  { %v1987_v36 = vmul.f32 %v12778_v34, %v1971_v16 }
0x1028   :  { %v1996_v38 = vmul.f32 %v11086_v33, %v1988_v35 }
0x1029   :  { %v1995_v39 = vmul.f32 %v11086_v33, %v1987_v36 }
0x102a   :  { %v13342_v13 = vadd.f32 %v11087_v37, %v1996_v38 }
0x102b   :  { %v13340_v40 = vadd.f32 %v11087_v37, %v1995_v39 }
0x102d   :  { %11846 = vmatprep.mubr.msk.f32.mxu1 %vm180_vm0, %v13340_v40 }
0x102e   :  { %11847 = vmatmul.mubr.msk.f32.vlgmr.msra.gmra.mrb[22].mxu1 %vm180_vm0, %v13342_v13 }
0x102f   :  { %11851 = vmatprep.mubr.msk.f32.mxu1 %vm12980_vm1, %v12978_v8 }
0x1101   :  { %v11848_v42 = vpop.f32.mrb[22].mxu1 }
0x1102   :  { %v13351_v43 = vadd.f32 %v11848_v42, %v11093_v41  ;;  %v2090_v44 = vpop.f32.mrb[23].mxu1 }
0x1103   :  { %v13353_v45 = vadd.f32 %v11093_v41, %v2090_v44 }
0x1104   :  { %2177 = vrot.lane.b32.xlu0 %v13351_v43, %s12981_s14 }
0x1105   :  { %2100 = vrot.lane.b32.xlu1 %v13353_v45, %s12981_s14 }
0x1176   :  { %v2178_v47 = vpop.permute.xlu0 %2177 }
0x1177   :  { %v2101_v46 = vpop.permute.xlu1 %2100 }
0x1178   :  { %11850 = vmatpush3.xpose.msk.msra.mxu1 %vm265_vm2, %v2101_v46 }
0x1179   :  { %11854 = vmatprep.subr.mxu1 %v12978_v8 }
0x117b   :  { %11852 = vmatmul.mubr.msk.f32.vlgmr.msra.gmra.mrb[24].mxu1 %vm265_vm2, %v13353_v45 }
0x117c   :  { %11855 = vmatpush3.xpose.msk.msra.mxu1 %vm265_vm2, %v2178_v47  ;;  %11856 = vmatprep.mubr.msk.f32.mxu1 %vm12980_vm1, %v12978_v8 }
0x117d   :  { %11864 = vmatprep.subr.mxu1 %v12978_v8 }
0x117f   :  { %11857 = vmatmul.mubr.msk.f32.vlgmr.msra.gmra.mrb[26].mxu1 %vm265_vm2, %v13351_v43 }
0x1180   :  { %11866 = vmatprep.mubr.msk.f32.mxu1 %vm12980_vm1, %v12978_v8 }
0x124e   :  { %v2172_v48 = vpop.f32.mrb[24].mxu1 }
0x124f   :  { %v2253_v49 = vmul.f32 0.35355338, %v2172_v48  ;;  %v11853_v50 = vpop.f32.mrb[25].mxu1 }
0x1251   :  { %v2255_v51 = vadd.f32 %v2253_v49, %v13092_v17 }
0x1252   :  { %v2249_v52 = vpop.f32.mrb[26].mxu1 }
0x1253   :  { %v2254_v53 = vmul.f32 0.35355338, %v2249_v52  ;;  %v11858_v54 = vpop.f32.mrb[27].mxu1  ;;  %v2257_v56 = vsel %vm265_vm2, %v2255_v51, -inf }
0x1254   :  { %2258 = vmax.xlane.f32.xlu1 %v2257_v56 }
0x1255   :  { %v2256_v58 = vadd.f32 %v2254_v53, %v13096_v22 }
0x1257   :  { %v2260_v59 = vsel %vm265_vm2, %v2256_v58, -inf }
0x1258   :  { %2261 = vmax.xlane.f32.xlu0 %v2260_v59 }
0x1265   :  { %2279 = vrot.lane.b32.xlu1 %v13353_v45, %s12983_s19 }
0x1269   :  { %2433 = vrot.lane.b32.xlu1 %v13353_v45, %s14634_s20 }
0x126d   :  { %2511 = vrot.lane.b32.xlu1 %v13351_v43, %s14634_s20 }
0x126e   :  { %2355 = vrot.lane.b32.xlu0 %v13351_v43, %s12983_s19 }
0x12e1   :  { %v2259_v17 = vpop.xlane.xlu1 %2258 }
0x12e2   :  { %v2263_v60 = vsub.f32 %v2255_v51, %v2259_v17 }
0x12e4   :  { %v2265_v61 = vmul.f32 1.442695, %v2263_v60 }
0x12e5   :  { %v2280_v62 = vpop.permute.xlu1 %2279  ;;  %v2262_v22 = vpop.xlane.xlu0 %2261 }
0x12e6   :  { %12779 = vpow2.f32 %v2265_v61  ;;  %v2264_v63 = vsub.f32 %v2256_v58, %v2262_v22  ;;  %11860 = vmatpush3.msra.mxu0 %v2280_v62 }
0x12e7   :  { %11869 = vmatprep.subr.mxu0 %v12978_v8 }
0x12e8   :  { %v2267_v55 = vmul.f32 1.442695, %v2264_v63 }
0x12e9   :  { %v2356_v0 = vpop.permute.xlu0 %2355  ;;  %v2434_v4 = vpop.permute.xlu1 %2433 }
0x12ea   :  { %12781 = vpow2.f32 %v2267_v55  ;;  %11865 = vmatpush3.msra.mxu1 %v2356_v0 }
0x12eb   :  { %11874 = vmatprep.subr.mxu1 %v12978_v8 }
0x12ed   :  { %v2512_v6 = vpop.permute.xlu1 %2511 }
0x12f0   :  { %v12780_v1 = vpop.eup %12779 }
0x12f1   :  { %v2269_v2 = vsel %vm265_vm2, %v12780_v1, 0.0 }
0x12f2   :  { %2270 = vadd.xlane.f32.xlu1 %v2269_v2 }
0x12f4   :  { %v12782_v3 = vpop.eup %12781 }
0x12f5   :  { %v2272_v57 = vsel %vm265_vm2, %v12782_v3, 0.0 }
0x12f6   :  { %2273 = vadd.xlane.f32.xlu0 %v2272_v57 }
0x1303   :  { %2509 = vrot.lane.b32.xlu1 %v13351_v43, %s14632_s21 }
0x130c   :  { %2431 = vrot.lane.b32.xlu0 %v13353_v45, %s14632_s21 }
0x137f   :  { %v2271_v9 = vpop.xlane.xlu1 %2270 }
0x1380   :  { %12783 = vrcp.f32 %v2271_v9 }
0x1383   :  { %v2274_v10 = vpop.xlane.xlu0 %2273  ;;  %v2510_v19 = vpop.permute.xlu1 %2509 }
0x1384   :  { %12785 = vrcp.f32 %v2274_v10 }
0x1387   :  { %v2432_v18 = vpop.permute.xlu0 %2431 }
0x138a   :  { %v12784_v11 = vpop.eup %12783 }
0x138b   :  { %v2277_v14 = vmul.f32 %v12784_v11, %v12780_v1 }
0x138d   :  { %11862 = vmatmul.mubr.msk.f32.vlgmr.msra.gmra.mrb[18].mxu0 %vm265_vm2, %v2277_v14 }
0x138e   :  { %v12786_v15 = vpop.eup %12785  ;;  %11870 = vmatpush3.xpose.msk.msra.mxu0 %vm265_vm2, %v2434_v4  ;;  %11871 = vmatprep.mubr.msk.f32.mxu0 %vm12980_vm1, %v12978_v8 }
0x138f   :  { %v2278_v16 = vmul.f32 %v12786_v15, %v12782_v3  ;;  %11879 = vmatprep.subr.mxu0 %v12978_v8 }
0x1391   :  { %11867 = vmatmul.mubr.msk.f32.vlgmr.msra.gmra.mrb[28].mxu1 %vm265_vm2, %v2278_v16  ;;  %11872 = vmatmul.mubr.msk.f32.vlgmr.msra.gmra.mrb[20].mxu0 %vm265_vm2, %v2432_v18 }
0x1392   :  { %11875 = vmatpush3.xpose.msk.msra.mxu1 %vm265_vm2, %v2512_v6  ;;  %11876 = vmatprep.mubr.msk.f32.mxu1 %vm12980_vm1, %v12978_v8 }
0x1393   :  { %11884 = vmatprep.subr.mxu1 %v12978_v8  ;;  %11881 = vmatprep.mubr.msk.f32.mxu0 %vm12980_vm1, %v12978_v8 }
0x1395   :  { %11877 = vmatmul.mubr.msk.f32.vlgmr.msra.gmra.mrb[30].mxu1 %vm265_vm2, %v2510_v19 }
0x1396   :  { %11886 = vmatprep.mubr.msk.f32.mxu1 %vm12980_vm1, %v12978_v8 }
0x1460   :  { %v13407_v20 = vpop.f32.mrb[18].mxu0 }
0x1461   :  { %v11863_v21 = vpop.f32.mrb[19].mxu0 }
0x1464   :  { %v13409_v7 = vpop.f32.mrb[28].mxu1  ;;  %v2505_v5 = vpop.f32.mrb[20].mxu0 }
0x1465   :  { %v2587_v23 = vmul.f32 0.35355338, %v2505_v5  ;;  %v11868_v24 = vpop.f32.mrb[29].mxu1  ;;  %v11873_v25 = vpop.f32.mrb[21].mxu0 }
0x1467   :  { %v2589_v27 = vadd.f32 %v13412_v26, %v2587_v23 }
0x1468   :  { %v2583_v28 = vpop.f32.mrb[30].mxu1 }
0x1469   :  { %v2588_v30 = vmul.f32 0.35355338, %v2583_v28  ;;  %v11878_v31 = vpop.f32.mrb[31].mxu1  ;;  %v2591_v12 = vsel %vm265_vm2, %v2589_v27, -inf }
0x146a   :  { %2592 = vmax.xlane.f32.xlu0 %v2591_v12 }
0x146b   :  { %v2590_v29 = vadd.f32 %v13417_v32, %v2588_v30 }
0x146d   :  { %v2594_v33 = vsel %vm265_vm2, %v2590_v29, -inf }
0x146e   :  { %2595 = vmax.xlane.f32.xlu1 %v2594_v33 }
0x147f   :  { %2613 = vrot.lane.b32.xlu1 %v13353_v45, %s14630_s22 }
0x1480   :  { %2689 = vrot.lane.b32.xlu0 %v13351_v43, %s14630_s22 }
0x1483   :  { %2767 = vrot.lane.b32.xlu1 %v13353_v45, %s14628_s24 }
0x1487   :  { %2845 = vrot.lane.b32.xlu1 %v13351_v43, %s14628_s24 }
0x148b   :  { %2843 = vrot.lane.b32.xlu1 %v13351_v43, %s14626_s23 }
0x14f7   :  { %v2593_v34 = vpop.xlane.xlu0 %2592 }
0x14f8   :  { %v2597_v35 = vsub.f32 %v2589_v27, %v2593_v34 }
0x14fa   :  { %v2599_v36 = vmul.f32 1.442695, %v2597_v35 }
0x14fb   :  { %v2690_v37 = vpop.permute.xlu0 %2689  ;;  %v2596_v38 = vpop.xlane.xlu1 %2595 }
0x14fc   :  { %12787 = vpow2.f32 %v2599_v36  ;;  %v2598_v39 = vsub.f32 %v2590_v29, %v2596_v38  ;;  %11885 = vmatpush3.msra.mxu1 %v2690_v37 }
0x14fd   :  { %11894 = vmatprep.subr.mxu1 %v12978_v8 }
0x14fe   :  { %v2601_v41 = vmul.f32 1.442695, %v2598_v39 }
0x14ff   :  { %v2614_v42 = vpop.permute.xlu1 %2613 }
0x1500   :  { %12789 = vpow2.f32 %v2601_v41  ;;  %11880 = vmatpush3.msra.mxu0 %v2614_v42 }
0x1501   :  { %11889 = vmatprep.subr.mxu0 %v12978_v8 }
0x1503   :  { %v2768_v51 = vpop.permute.xlu1 %2767 }
0x1506   :  { %v12788_v44 = vpop.eup %12787 }
0x1507   :  { %v2603_v46 = vsel %vm265_vm2, %v12788_v44, 0.0  ;;  %v2846_v56 = vpop.permute.xlu1 %2845 }
0x1508   :  { %2604 = vadd.xlane.f32.xlu0 %v2603_v46 }
0x150a   :  { %v12790_v47 = vpop.eup %12789 }
0x150b   :  { %v2606_v48 = vsel %vm265_vm2, %v12790_v47, 0.0  ;;  %v2844_v17 = vpop.permute.xlu1 %2843 }
0x150c   :  { %2607 = vadd.xlane.f32.xlu0 %v2606_v48 }
0x1522   :  { %2765 = vrot.lane.b32.xlu0 %v13353_v45, %s14626_s23 }
0x1595   :  { %v2605_v49 = vpop.xlane.xlu0 %2604 }
0x1596   :  { %12791 = vrcp.f32 %v2605_v49 }
0x1599   :  { %v2608_v50 = vpop.xlane.xlu0 %2607 }
0x159a   :  { %12793 = vrcp.f32 %v2608_v50 }
0x159d   :  { %v2766_v59 = vpop.permute.xlu0 %2765 }
0x15a0   :  { %v12792_v52 = vpop.eup %12791 }
0x15a1   :  { %v2611_v53 = vmul.f32 %v12792_v52, %v12788_v44 }
0x15a3   :  { %11882 = vmatmul.mubr.msk.f32.vlgmr.msra.gmra.mrb[22].mxu0 %vm265_vm2, %v2611_v53 }
0x15a4   :  { %v12794_v54 = vpop.eup %12793  ;;  %11890 = vmatpush3.xpose.msk.msra.mxu0 %vm265_vm2, %v2768_v51  ;;  %11891 = vmatprep.mubr.msk.f32.mxu0 %vm12980_vm1, %v12978_v8 }
0x15a5   :  { %v2612_v58 = vmul.f32 %v12794_v54, %v12790_v47  ;;  %11899 = vmatprep.subr.mxu0 %v12978_v8 }
0x15a7   :  { %11887 = vmatmul.mubr.msk.f32.vlgmr.msra.gmra.mrb[32].mxu1 %vm265_vm2, %v2612_v58  ;;  %11892 = vmatmul.mubr.msk.f32.vlgmr.msra.gmra.mrb[24].mxu0 %vm265_vm2, %v2766_v59 }
0x15a8   :  { %11895 = vmatpush3.xpose.msk.msra.mxu1 %vm265_vm2, %v2846_v56  ;;  %11896 = vmatprep.mubr.msk.f32.mxu1 %vm12980_vm1, %v12978_v8 }
0x15a9   :  { %11904 = vmatprep.subr.mxu1 %v12978_v8  ;;  %11901 = vmatprep.mubr.msk.f32.mxu0 %vm12980_vm1, %v12978_v8 }
0x15ab   :  { %11897 = vmatmul.mubr.msk.f32.vlgmr.msra.gmra.mrb[34].mxu1 %vm265_vm2, %v2844_v17 }
0x15ac   :  { %11906 = vmatprep.mubr.msk.f32.mxu1 %vm12980_vm1, %v12978_v8 }
0x1676   :  { %v13453_v60 = vpop.f32.mrb[22].mxu0 }
0x1677   :  { %v11883_v61 = vpop.f32.mrb[23].mxu0 }
0x167a   :  { %v13455_v62 = vpop.f32.mrb[32].mxu1  ;;  %v2839_v22 = vpop.f32.mrb[24].mxu0 }
0x167b   :  { %v2921_v63 = vmul.f32 0.35355338, %v2839_v22  ;;  %v11888_v55 = vpop.f32.mrb[33].mxu1  ;;  %v11893_v0 = vpop.f32.mrb[25].mxu0 }
0x167d   :  { %v2923_v1 = vadd.f32 %v13412_v26, %v2921_v63 }
0x167e   :  { %v2917_v2 = vpop.f32.mrb[34].mxu1 }
0x167f   :  { %v2922_v3 = vmul.f32 0.35355338, %v2917_v2  ;;  %v11898_v57 = vpop.f32.mrb[35].mxu1  ;;  %v2925_v4 = vsel %vm265_vm2, %v2923_v1, -inf }
0x1680   :  { %2926 = vmax.xlane.f32.xlu0 %v2925_v4  ;;  %v11120_v57 = vld [vmem:[%s13234_s4 + $0x20] sm:$0xff] }
0x1681   :  { %v2924_v6 = vadd.f32 %v13417_v32, %v2922_v3 }
0x1683   :  { %v2928_v9 = vsel %vm265_vm2, %v2924_v6, -inf }
0x1684   :  { %2929 = vmax.xlane.f32.xlu1 %v2928_v9  ;;  %v11123_v9 = vld [vmem:[%s13234_s4 + $0x38] sm:$0xff] }
0x1695   :  { %2947 = vrot.lane.b32.xlu1 %v13353_v45, %s14624_s25 }
0x1696   :  { %3023 = vrot.lane.b32.xlu0 %v13351_v43, %s14624_s25 }
0x1699   :  { %3101 = vrot.lane.b32.xlu1 %v13353_v45, %s14622_s26 }
0x169d   :  { %3179 = vrot.lane.b32.xlu1 %v13351_v43, %s14622_s26 }
0x16a1   :  { %3177 = vrot.lane.b32.xlu1 %v13351_v43, %s14620_s27 }
0x170d   :  { %v2927_v10 = vpop.xlane.xlu0 %2926 }
0x170e   :  { %v2931_v11 = vsub.f32 %v2923_v1, %v2927_v10 }
0x1710   :  { %v2933_v14 = vmul.f32 1.442695, %v2931_v11 }
0x1711   :  { %v3024_v15 = vpop.permute.xlu0 %3023  ;;  %v2930_v16 = vpop.xlane.xlu1 %2929 }
0x1712   :  { %12795 = vpow2.f32 %v2933_v14  ;;  %v2932_v18 = vsub.f32 %v2924_v6, %v2930_v16  ;;  %11905 = vmatpush3.msra.mxu1 %v3024_v15  ;;  %v11122_v6 = vld [vmem:[%s13234_s4 + $0x30] sm:$0xff] }
0x1713   :  { %11914 = vmatprep.subr.mxu1 %v12978_v8  ;;  %v12523_v10 = vpack.c.bf16 %v11123_v9, %v11122_v6  ;;  %v11130_v6 = vld [vmem:[%s13288_s10 + $0x1] ss:$0 sm:$0xff]  ;;  %s13006_s10 = smov 18  }
0x1714   :  { %v2935_v19 = vmul.f32 1.442695, %v2932_v18  ;;  %s13584_s18 = sld [smem:[%s14611_s0 + %s13006_s10]]  }
0x1715   :  { %v2948_v21 = vpop.permute.xlu1 %2947 }
0x1716   :  { %12797 = vpow2.f32 %v2935_v19  ;;  %11900 = vmatpush3.msra.mxu0 %v2948_v21 }
0x1717   :  { %11909 = vmatprep.subr.mxu0 %v12978_v8 }
0x1719   :  { %v3102_v30 = vpop.permute.xlu1 %3101 }
0x171c   :  { %v12796_v5 = vpop.eup %12795 }
0x171d   :  { %v2937_v23 = vsel %vm265_vm2, %v12796_v5, 0.0  ;;  %v3180_v33 = vpop.permute.xlu1 %3179 }
0x171e   :  { %2938 = vadd.xlane.f32.xlu0 %v2937_v23 }
0x1720   :  { %v12798_v24 = vpop.eup %12797 }
0x1721   :  { %v2940_v25 = vsel %vm265_vm2, %v12798_v24, 0.0  ;;  %v3178_v36 = vpop.permute.xlu1 %3177 }
0x1722   :  { %2941 = vadd.xlane.f32.xlu0 %v2940_v25 }
0x1738   :  { %3099 = vrot.lane.b32.xlu0 %v13353_v45, %s14620_s27 }
0x17ab   :  { %v2939_v27 = vpop.xlane.xlu0 %2938 }
0x17ac   :  { %12799 = vrcp.f32 %v2939_v27 }
0x17af   :  { %v2942_v28 = vpop.xlane.xlu0 %2941 }
0x17b0   :  { %12801 = vrcp.f32 %v2942_v28 }
0x17b3   :  { %v3100_v35 = vpop.permute.xlu0 %3099 }
0x17b6   :  { %v12800_v31 = vpop.eup %12799 }
0x17b7   :  { %v2945_v12 = vmul.f32 %v12800_v31, %v12796_v5 }
0x17b9   :  { %11902 = vmatmul.mubr.msk.f32.vlgmr.msra.gmra.mrb[26].mxu0 %vm265_vm2, %v2945_v12 }
0x17ba   :  { %v12802_v29 = vpop.eup %12801  ;;  %11910 = vmatpush3.xpose.msk.msra.mxu0 %vm265_vm2, %v3102_v30  ;;  %11911 = vmatprep.mubr.msk.f32.mxu0 %vm12980_vm1, %v12978_v8 }
0x17bb   :  { %v2946_v34 = vmul.f32 %v12802_v29, %v12798_v24  ;;  %11919 = vmatprep.subr.mxu0 %v12978_v8  ;;  %v11125_v29 = vld [vmem:[%s13256_s9 + $0x1] ss:$0 sm:$0xff] }
0x17bd   :  { %11907 = vmatmul.mubr.msk.f32.vlgmr.msra.gmra.mrb[36].mxu1 %vm265_vm2, %v2946_v34  ;;  %11912 = vmatmul.mubr.msk.f32.vlgmr.msra.gmra.mrb[28].mxu0 %vm265_vm2, %v3100_v35 }
0x17be   :  { %11915 = vmatpush3.xpose.msk.msra.mxu1 %vm265_vm2, %v3180_v33  ;;  %11916 = vmatprep.mubr.msk.f32.mxu1 %vm12980_vm1, %v12978_v8 }
0x17bf   :  { %11924 = vmatprep.subr.mxu1 %v12978_v8  ;;  %11921 = vmatprep.mubr.msk.f32.mxu0 %vm12980_vm1, %v12978_v8 }
0x17c1   :  { %11917 = vmatmul.mubr.msk.f32.vlgmr.msra.gmra.mrb[38].mxu1 %vm265_vm2, %v3178_v36 }
0x17c2   :  { %11926 = vmatprep.mubr.msk.f32.mxu1 %vm12980_vm1, %v12978_v8 }
0x188c   :  { %v3019_v37 = vpop.f32.mrb[26].mxu0 }
0x188d   :  { %v11903_v38 = vpop.f32.mrb[27].mxu0 }
0x1890   :  { %v3095_v39 = vpop.f32.mrb[36].mxu1  ;;  %v3173_v41 = vpop.f32.mrb[28].mxu0 }
0x1891   :  { %v3255_v42 = vmul.f32 0.35355338, %v3173_v41  ;;  %v11908_v44 = vpop.f32.mrb[37].mxu1  ;;  %v11913_v46 = vpop.f32.mrb[29].mxu0 }
0x1893   :  { %v3257_v47 = vadd.f32 %v13412_v26, %v3255_v42 }
0x1894   :  { %v3251_v48 = vpop.f32.mrb[38].mxu1 }
0x1895   :  { %v3256_v49 = vmul.f32 0.35355338, %v3251_v48  ;;  %v11918_v50 = vpop.f32.mrb[39].mxu1  ;;  %v3259_v51 = vsel %vm265_vm2, %v3257_v47, -inf }
0x1896   :  { %3260 = vmax.xlane.f32.xlu0 %v3259_v51  ;;  %v11132_v50 = vld [vmem:[%s13268_s15 + $0x20] sm:$0xff]  ;;  %v11133_v51 = vld [vmem:[%s13268_s15 + $0x28] sm:$0xff] }
0x1897   :  { %v3258_v52 = vadd.f32 %v13417_v32, %v3256_v49 }
0x1899   :  { %v3262_v53 = vsel %vm265_vm2, %v3258_v52, -inf }
0x189a   :  { %3263 = vmax.xlane.f32.xlu1 %v3262_v53  ;;  %v12527_v53 = vpack.c.bf16 %v11133_v51, %v11132_v50 }
0x18ab   :  { %3281 = vrot.lane.b32.xlu1 %v13353_v45, %s14618_s28 }
0x18af   :  { %3435 = vrot.lane.b32.xlu1 %v13453_v60, %s14616_s29 }
0x18b3   :  { %3437 = vrot.lane.b32.xlu1 %v13455_v62, %s14616_s29 }
0x18b7   :  { %3445 = vrot.lane.b32.xlu1 %v3095_v39, %s14614_s30 }
0x1923   :  { %v3261_v26 = vpop.xlane.xlu0 %3260 }
0x1924   :  { %v3265_v54 = vsub.f32 %v3257_v47, %v3261_v26  ;;  %v11135_v26 = vld [vmem:[%s13268_s15 + $0x38] sm:$0xff] }
0x1926   :  { %v3267_v56 = vmul.f32 1.442695, %v3265_v54 }
0x1927   :  { %v3264_v58 = vpop.xlane.xlu1 %3263 }
0x1928   :  { %12803 = vpow2.f32 %v3267_v56  ;;  %v3266_v32 = vsub.f32 %v3258_v52, %v3264_v58  ;;  %v11134_v52 = vld [vmem:[%s13268_s15 + $0x30] sm:$0xff]  ;;  %v3853_v56 = vld [vmem:[%s13541_s3] sm:$0xff]  ;;  %v3854_v58 = vld [vmem:[%s13541_s3 + $0x8] sm:$0xff]  ;;  %s13005_s15 = smov 1  }
0x1929   :  { %v12531_v54 = vpack.c.bf16 %v11135_v26, %v11134_v52  ;;  %s11008_s12 = sld [smem:[%s14611_s0 + %s13005_s15]]   ;;  %s13008_s15 = smov 19  }
0x192a   :  { %v3269_v59 = vmul.f32 1.442695, %v3266_v32  ;;  %v12551_v32 = vpack.c.bf16 %v3854_v58, %v3853_v56 }
0x192b   :  { %v3282_v17 = vpop.permute.xlu1 %3281 }
0x192c   :  { %12805 = vpow2.f32 %v3269_v59  ;;  %11920 = vmatpush3.msra.mxu0 %v3282_v17  ;;  %v11140_v59 = vld [vmem:[%s13277_s2 + $0x40] sm:$0xff]  ;;  %v11141_v17 = vld [vmem:[%s13277_s2 + $0x48] sm:$0xff] }
0x192f   :  { %v3436_v18 = vpop.permute.xlu1 %3435 }
0x1930   :  { %v3457_v5 = vsel %vm265_vm2, %v13407_v20, %v3436_v18  ;;  %v3855_v18 = vld [vmem:[%s13541_s3 + $0x10] sm:$0xff] }
0x1932   :  { %v12804_v61 = vpop.eup %12803 }
0x1933   :  { %v3271_v45 = vsel %vm265_vm2, %v12804_v61, 0.0  ;;  %v3438_v19 = vpop.permute.xlu1 %3437 }
0x1934   :  { %3272 = vadd.xlane.f32.xlu0 %v3271_v45  ;;  %v3458_v28 = vsel %vm265_vm2, %v13409_v7, %v3438_v19  ;;  %v12535_v45 = vpack.c.bf16 %v11141_v17, %v11140_v59  ;;  %v3856_v19 = vld [vmem:[%s13541_s3 + $0x18] sm:$0xff] }
0x1936   :  { %v12806_v60 = vpop.eup %12805 }
0x1937   :  { %v3274_v22 = vsel %vm265_vm2, %v12806_v60, 0.0  ;;  %v3446_v23 = vpop.permute.xlu1 %3445 }
0x1938   :  { %3275 = vadd.xlane.f32.xlu0 %v3274_v22  ;;  %v3460_v30 = vsel %vm1623_vm4, %v3458_v28, %v3446_v23  ;;  %v12555_v23 = vpack.c.bf16 %v3856_v19, %v3855_v18  ;;  %v11147_v28 = vld [vmem:[%s13277_s2 + $0x78] sm:$0xff] }
0x194e   :  { %3357 = vrot.lane.b32.xlu0 %v13351_v43, %s14618_s28  ;;  %v11121_v43 = vld [vmem:[%s13234_s4 + $0x28] sm:$0xff] }
0x194f   :  { %v12519_v4 = vpack.c.bf16 %v11121_v43, %v11120_v57 }
0x1951   :  { %12520 = vmatprep.subr.bf16.mxu0 %v12519_v4 }
0x1952   :  { %3443 = vrot.lane.b32.xlu0 %v3019_v37, %s14614_s30 }
0x19c1   :  { %v3273_v62 = vpop.xlane.xlu0 %3272 }
0x19c2   :  { %12807 = vrcp.f32 %v3273_v62  ;;  %v11144_v62 = vld [vmem:[%s13277_s2 + $0x60] sm:$0xff] }
0x19c5   :  { %v3276_v63 = vpop.xlane.xlu0 %3275 }
0x19c6   :  { %12809 = vrcp.f32 %v3276_v63  ;;  %v11145_v63 = vld [vmem:[%s13277_s2 + $0x68] sm:$0xff] }
0x19c9   :  { %v3358_v55 = vpop.permute.xlu0 %3357 }
0x19ca   :  { %11925 = vmatpush3.msra.mxu1 %v3358_v55  ;;  %v12543_v55 = vpack.c.bf16 %v11145_v63, %v11144_v62 }
0x19cb   :  { %12528 = vmatprep.subr.bf16.mxu1 %v12527_v53 }
0x19cc   :  { %v12808_v0 = vpop.eup %12807 }
0x19cd   :  { %v3279_v1 = vmul.f32 %v12808_v0, %v12804_v61  ;;  %v3444_v21 = vpop.permute.xlu0 %3443  ;;  %v11142_v61 = vld [vmem:[%s13277_s2 + $0x50] sm:$0xff] }
0x19ce   :  { %v3459_v24 = vsel %vm1623_vm4, %v3457_v5, %v3444_v21 }
0x19cf   :  { %11922 = vmatmul.mubr.msk.f32.vlgmr.msra.gmra.mrb[30].mxu0 %vm265_vm2, %v3279_v1 }
0x19d0   :  { %v12810_v2 = vpop.eup %12809  ;;  %12522 = vmatpush3.bf16.msra.mxu0 %v12519_v4 }
0x19d1   :  { %v3280_v3 = vmul.f32 %v12810_v2, %v12806_v60  ;;  %12524 = vmatprep.subr.bf16.mxu0 %v12523_v10  ;;  %v11143_v60 = vld [vmem:[%s13277_s2 + $0x58] sm:$0xff] }
0x19d2   :  { %v12539_v22 = vpack.c.bf16 %v11143_v60, %v11142_v61 }
0x19d3   :  { %11927 = vmatmul.mubr.msk.f32.vlgmr.msra.gmra.mrb[40].mxu1 %vm265_vm2, %v3280_v3 }
0x19d4   :  { %12526 = vmatpush3.bf16.msra.mxu0 %v12523_v10  ;;  %12530 = vmatpush3.bf16.msra.mxu1 %v12527_v53  ;;  %v11131_v10 = vld [vmem:[%s13293_s17 + $0x1] ss:$0 sm:$0xff]  ;;  %s13859_s17 = sld [smem:[%s14611_s0 + %s13014_s7]]   ;;  %s13015_s7 = smov 4  }
0x19d5   :  { %12532 = vmatprep.subr.bf16.mxu1 %v12531_v54  ;;  %12536 = vmatprep.subr.bf16.mxu0 %v12535_v45 }
0x19d8   :  { %12534 = vmatpush3.bf16.msra.mxu1 %v12531_v54 }
0x19d9   :  { %12552 = vmatprep.subr.bf16.mxu1 %v12551_v32 }
0x1aa2   :  { %v3353_v11 = vpop.f32.mrb[30].mxu0 }
0x1aa3   :  { %3451 = vrot.lane.b32.xlu0 %v3353_v11, %s14636_s13  ;;  %v11923_v14 = vpop.f32.mrb[31].mxu0 }
0x1aa6   :  { %v3429_v15 = vpop.f32.mrb[40].mxu1 }
0x1aa7   :  { %3453 = vrot.lane.b32.xlu1 %v3429_v15, %s14636_s13  ;;  %v11928_v16 = vpop.f32.mrb[41].mxu1 }
0x1b15   :  { %v3452_v25 = vpop.permute.xlu0 %3451 }
0x1b16   :  { %v3461_v27 = vsel %vm1626_vm3, %v3459_v24, %v3452_v25  ;;  %v13564_v24 = vld [vmem:[%s11008_s12] sm:$0xff]  ;;  %v13570_v25 = vld [vmem:[%s11008_s12 + $0x8] sm:$0xff]  ;;  %s13763_s12 = sld [smem:[%s14611_s0 + %s13008_s15]]  }
0x1b17   :  { %11937 = vmatprep.mubr.msk.f32.mxu0 %vm180_vm0, %v3461_v27  ;;  %v11146_v27 = vld [vmem:[%s13277_s2 + $0x70] sm:$0xff]  ;;  %s13007_s2 = smov 3  }
0x1b18   :  { %s13618_s9 = sld [smem:[%s14611_s0 + %s13007_s2]]   ;;  %s13013_s2 = smov 22  }
0x1b19   :  { %v3454_v31 = vpop.permute.xlu1 %3453  ;;  %s13842_s15 = sld [smem:[%s14611_s0 + %s13013_s2]]  }
0x1b1a   :  { %v3462_v12 = vsel %vm1626_vm3, %v3460_v30, %v3454_v31  ;;  %v12547_v30 = vpack.c.bf16 %v11147_v28, %v11146_v27  ;;  %v11137_v31 = vld [vmem:[%s13305_s8 + $0x1] ss:$0 sm:$0xff]  ;;  %s13894_s2 = sld [smem:[%s14611_s0 + %s13015_s7]]   ;;  %s13016_s8 = smov 27  }
0x1b1b   :  { %11938 = vmatmul.mubr.msk.f32.vlgmr.msra.gmra.mrb[32].mxu0 %vm180_vm0, %v3462_v12  ;;  %s14039_s10 = sld [smem:[%s14611_s0 + %s13016_s8]]   ;;  %s13017_s8 = smov 28  }
0x1b1c   :  { %12538 = vmatpush3.bf16.msra.mxu0 %v12535_v45 }
0x1b1d   :  { %12540 = vmatprep.subr.bf16.mxu0 %v12539_v22 }
0x1b1e   :  { %v13625_v51 = vld [vmem:[%s13618_s9 + $0x8] sm:$0xff] }
0x1b20   :  { %12542 = vmatpush3.bf16.msra.mxu0 %v12539_v22 }
0x1b21   :  { %12544 = vmatprep.subr.bf16.mxu0 %v12543_v55 }
0x1b24   :  { %12546 = vmatpush3.bf16.msra.mxu0 %v12543_v55 }
0x1b25   :  { %12548 = vmatprep.subr.bf16.mxu0 %v12547_v30 }
0x1b28   :  { %12550 = vmatpush3.bf16.msra.mxu0 %v12547_v30 }
0x1b29   :  { %11991 = vmatprep.subr.mxu0 %v12978_v8 }
0x1bee   :  { %v11939_v20 = vpop.f32.mrb[32].mxu0 }
0x1bef   :  { %v3554_v33 = vadd.f32 %v11939_v20, %v11125_v29  ;;  %v3548_v34 = vpop.f32.mrb[33].mxu0 }
0x1bf0   :  { %v3549_v35 = vadd.f32 %v11125_v29, %v3548_v34 }
0x1bf1   :  { %v3558_v36 = vadd.f32 %v3554_v33, %v13342_v13 }
0x1bf2   :  { %v3557_v37 = vadd.f32 %v3549_v35, %v13340_v40 }
0x1bf3   :  { %v3566_v38 = vsel %vm180_vm0, %v3558_v36, 0.0 }
0x1bf4   :  { %3567 = vadd.xlane.f32.xlu1 %v3566_v38  ;;  %v3563_v7 = vsel %vm180_vm0, %v3557_v37, 0.0 }
0x1bf5   :  { %3564 = vadd.xlane.f32.xlu0 %v3563_v7 }
0x1c81   :  { %v3568_v39 = vpop.xlane.xlu1 %3567 }
0x1c82   :  { %v3570_v41 = vmul.f32 0.03125, %v3568_v39  ;;  %v3565_v42 = vpop.xlane.xlu0 %3564 }
0x1c83   :  { %v3569_v44 = vmul.f32 0.03125, %v3565_v42 }
0x1c84   :  { %v3572_v46 = vsub.f32 %v3558_v36, %v3570_v41  ;;  %v11156_v36 = vld [vmem:[%s13584_s18] ss:$0 sm:$0xff] }
0x1c85   :  { %v3571_v47 = vsub.f32 %v3557_v37, %v3569_v44 }
0x1c86   :  { %v3574_v40 = vmul.f32 %v3572_v46, %v3572_v46 }
0x1c87   :  { %v3573_v48 = vmul.f32 %v3571_v47, %v3571_v47 }
0x1c88   :  { %v3578_v49 = vsel %vm180_vm0, %v3574_v40, 0.0 }
0x1c89   :  { %v3575_v13 = vsel %vm180_vm0, %v3573_v48, 0.0 }
0x1c8a   :  { %3576 = vadd.xlane.f32.xlu0 %v3575_v13 }
0x1c8e   :  { %3579 = vadd.xlane.f32.xlu0 %v3578_v49 }
0x1d17   :  { %v3577_v0 = vpop.xlane.xlu0 %3576 }
0x1d18   :  { %v3581_v1 = vmul.f32 0.03125, %v3577_v0 }
0x1d1a   :  { %v3583_v2 = vadd.f32 1e-05, %v3581_v1 }
0x1d1b   :  { %v3580_v3 = vpop.xlane.xlu0 %3579 }
0x1d1c   :  { %12811 = vrsqrt.f32 %v3583_v2  ;;  %v3582_v57 = vmul.f32 0.03125, %v3580_v3 }
0x1d1e   :  { %v3584_v43 = vadd.f32 1e-05, %v3582_v57 }
0x1d20   :  { %12813 = vrsqrt.f32 %v3584_v43 }
0x1d26   :  { %v12812_v4 = vpop.eup %12811 }
0x1d27   :  { %v3587_v9 = vmul.f32 %v12812_v4, %v3571_v47  ;;  %v13621_v47 = vld [vmem:[%s13618_s9] sm:$0xff] }
0x1d29   :  { %v3595_v11 = vmul.f32 %v11130_v6, %v3587_v9 }
0x1d2a   :  { %v12814_v14 = vpop.eup %12813 }
0x1d2b   :  { %v3588_v15 = vmul.f32 %v12814_v14, %v3572_v46  ;;  %v13556_v16 = vadd.f32 %v11131_v10, %v3595_v11 }
0x1d2d   :  { %v3596_v21 = vmul.f32 %v11130_v6, %v3588_v15  ;;  %11948 = vmatprep.mubr.msk.f32.mxu1 %vm180_vm0, %v13556_v16 }
0x1d2f   :  { %v13562_v5 = vadd.f32 %v11131_v10, %v3596_v21 }
0x1d31   :  { %11949 = vmatmul.mubr.msk.f32.vlgmr.msra.gmra.mrb[42].mxu1 %vm180_vm0, %v13562_v5 }
0x1d32   :  { %12554 = vmatpush3.bf16.msra.mxu1 %v12551_v32  ;;  %11978 = vmatprep.mubr.msk.f32.mxu1 %vm180_vm0, %v13564_v24 }
0x1d33   :  { %12556 = vmatprep.subr.bf16.mxu1 %v12555_v23 }
0x1d36   :  { %12558 = vmatpush3.bf16.msra.mxu1 %v12555_v23 }
0x1d37   :  { %11981 = vmatprep.subr.mxu1 %v12978_v8 }
0x1d39   :  { %11979 = vmatmul.mubr.msk.f32.vlgmr.msra.gmra.mrb[44].mxu1 %vm180_vm0, %v13570_v25 }
0x1d3a   :  { %11983 = vmatprep.mubr.msk.f32.mxu1 %vm12980_vm1, %v12978_v8 }
0x1e04   :  { %v11950_v12 = vpop.f32.mrb[42].mxu1 }
0x1e05   :  { %v3696_v29 = vadd.f32 %v11950_v12, %v11137_v31  ;;  %v3690_v20 = vpop.f32.mrb[43].mxu1 }
0x1e06   :  { %v3691_v33 = vadd.f32 %v11137_v31, %v3690_v20 }
0x1e07   :  { %v3700_v35 = vmax.f32 %v3696_v29, 0.0 }
0x1e08   :  { %v3699_v34 = vmax.f32 %v3691_v33, 0.0 }
0x1e0a   :  { %11967 = vmatprep.mubr.msk.f32.mxu0 %vm1877_vm5, %v3699_v34 }
0x1e0b   :  { %11968 = vmatmul.mubr.msk.f32.vlgmr.msra.gmra.mrb[34].mxu0 %vm1877_vm5, %v3700_v35 }
0x1e0c   :  { %v11980_v37 = vpop.f32.mrb[44].mxu1  ;;  %11993 = vmatprep.mubr.msk.f32.mxu0 %vm12980_vm1, %v12978_v8 }
0x1e0d   :  { %v13591_v38 = vadd.f32 %v11980_v37, %v11156_v36  ;;  %v3936_v7 = vpop.f32.mrb[45].mxu1 }
0x1e0e   :  { %v13593_v39 = vadd.f32 %v11156_v36, %v3936_v7 }
0x1e0f   :  { %4023 = vrot.lane.b32.xlu0 %v13591_v38, %s12981_s14 }
0x1e10   :  { %3946 = vrot.lane.b32.xlu1 %v13593_v39, %s12981_s14 }
0x1e81   :  { %v4024_v42 = vpop.permute.xlu0 %4023 }
0x1e82   :  { %v3947_v41 = vpop.permute.xlu1 %3946 }
0x1e83   :  { %11982 = vmatpush3.xpose.msk.msra.mxu1 %vm265_vm2, %v3947_v41 }
0x1e84   :  { %11986 = vmatprep.subr.mxu1 %v12978_v8 }
0x1e86   :  { %11984 = vmatmul.mubr.msk.f32.vlgmr.msra.gmra.mrb[46].mxu1 %vm265_vm2, %v13593_v39 }
0x1e87   :  { %11987 = vmatpush3.xpose.msk.msra.mxu1 %vm265_vm2, %v4024_v42  ;;  %11988 = vmatprep.mubr.msk.f32.mxu1 %vm12980_vm1, %v12978_v8 }
0x1e88   :  { %11996 = vmatprep.subr.mxu1 %v12978_v8 }
0x1e8a   :  { %11989 = vmatmul.mubr.msk.f32.vlgmr.msra.gmra.mrb[48].mxu1 %vm265_vm2, %v13591_v38 }
0x1e8b   :  { %11998 = vmatprep.mubr.msk.f32.mxu1 %vm12980_vm1, %v12978_v8 }
0x1ede   :  { %v13611_v44 = vpop.f32.mrb[34].mxu0 }
0x1edf   :  { %v13613_v46 = vpop.f32.mrb[35].mxu0 }
0x1f59   :  { %v4018_v48 = vpop.f32.mrb[46].mxu1 }
0x1f5a   :  { %v4099_v13 = vmul.f32 0.35355338, %v4018_v48  ;;  %v11985_v40 = vpop.f32.mrb[47].mxu1 }
0x1f5c   :  { %v4101_v49 = vadd.f32 %v4099_v13, %v13621_v47 }
0x1f5d   :  { %v4095_v50 = vpop.f32.mrb[48].mxu1 }
0x1f5e   :  { %v4100_v52 = vmul.f32 0.35355338, %v4095_v50  ;;  %v11990_v53 = vpop.f32.mrb[49].mxu1  ;;  %v4103_v26 = vsel %vm265_vm2, %v4101_v49, -inf }
0x1f5f   :  { %4104 = vmax.xlane.f32.xlu1 %v4103_v26 }
0x1f60   :  { %v4102_v54 = vadd.f32 %v4100_v52, %v13625_v51 }
0x1f62   :  { %v4106_v56 = vsel %vm265_vm2, %v4102_v54, -inf }
0x1f63   :  { %4107 = vmax.xlane.f32.xlu0 %v4106_v56 }
0x1f70   :  { %4125 = vrot.lane.b32.xlu1 %v13593_v39, %s12983_s19 }
0x1f74   :  { %4279 = vrot.lane.b32.xlu1 %v13593_v39, %s14634_s20 }
0x1f78   :  { %4357 = vrot.lane.b32.xlu1 %v13591_v38, %s14634_s20 }
0x1f79   :  { %4201 = vrot.lane.b32.xlu0 %v13591_v38, %s12983_s19 }
0x1fec   :  { %v4105_v58 = vpop.xlane.xlu1 %4104 }
0x1fed   :  { %v4109_v32 = vsub.f32 %v4101_v49, %v4105_v58 }
0x1fef   :  { %v4111_v59 = vmul.f32 1.442695, %v4109_v32 }
0x1ff0   :  { %v4126_v17 = vpop.permute.xlu1 %4125  ;;  %v4108_v61 = vpop.xlane.xlu0 %4107 }
0x1ff1   :  { %12815 = vpow2.f32 %v4111_v59  ;;  %v4110_v45 = vsub.f32 %v4102_v54, %v4108_v61  ;;  %11992 = vmatpush3.msra.mxu0 %v4126_v17 }
0x1ff2   :  { %12001 = vmatprep.subr.mxu0 %v12978_v8 }
0x1ff3   :  { %v4113_v60 = vmul.f32 1.442695, %v4110_v45 }
0x1ff4   :  { %v4202_v22 = vpop.permute.xlu0 %4201  ;;  %v4280_v1 = vpop.permute.xlu1 %4279 }
0x1ff5   :  { %12817 = vpow2.f32 %v4113_v60  ;;  %11997 = vmatpush3.msra.mxu1 %v4202_v22 }
0x1ff6   :  { %12006 = vmatprep.subr.mxu1 %v12978_v8 }
0x1ff8   :  { %v4358_v2 = vpop.permute.xlu1 %4357 }
0x1ffb   :  { %v12816_v62 = vpop.eup %12815 }
0x1ffc   :  { %v4115_v63 = vsel %vm265_vm2, %v12816_v62, 0.0 }
0x1ffd   :  { %4116 = vadd.xlane.f32.xlu1 %v4115_v63 }
0x1fff   :  { %v12818_v55 = vpop.eup %12817 }
0x2000   :  { %v4118_v0 = vsel %vm265_vm2, %v12818_v55, 0.0 }
0x2001   :  { %4119 = vadd.xlane.f32.xlu0 %v4118_v0 }
0x200e   :  { %4355 = vrot.lane.b32.xlu1 %v13591_v38, %s14632_s21 }
0x2017   :  { %4277 = vrot.lane.b32.xlu0 %v13593_v39, %s14632_s21 }
0x208a   :  { %v4117_v3 = vpop.xlane.xlu1 %4116 }
0x208b   :  { %12819 = vrcp.f32 %v4117_v3 }
0x208e   :  { %v4120_v57 = vpop.xlane.xlu0 %4119  ;;  %v4356_v11 = vpop.permute.xlu1 %4355 }
0x208f   :  { %12821 = vrcp.f32 %v4120_v57 }
0x2092   :  { %v4278_v10 = vpop.permute.xlu0 %4277 }
0x2095   :  { %v12820_v43 = vpop.eup %12819 }
0x2096   :  { %v4123_v4 = vmul.f32 %v12820_v43, %v12816_v62 }
0x2098   :  { %11994 = vmatmul.mubr.msk.f32.vlgmr.msra.gmra.mrb[36].mxu0 %vm265_vm2, %v4123_v4 }
0x2099   :  { %v12822_v6 = vpop.eup %12821  ;;  %12002 = vmatpush3.xpose.msk.msra.mxu0 %vm265_vm2, %v4280_v1  ;;  %12003 = vmatprep.mubr.msk.f32.mxu0 %vm12980_vm1, %v12978_v8 }
0x209a   :  { %v4124_v9 = vmul.f32 %v12822_v6, %v12818_v55  ;;  %12011 = vmatprep.subr.mxu0 %v12978_v8 }
0x209c   :  { %11999 = vmatmul.mubr.msk.f32.vlgmr.msra.gmra.mrb[50].mxu1 %vm265_vm2, %v4124_v9  ;;  %12004 = vmatmul.mubr.msk.f32.vlgmr.msra.gmra.mrb[38].mxu0 %vm265_vm2, %v4278_v10 }
0x209d   :  { %12007 = vmatpush3.xpose.msk.msra.mxu1 %vm265_vm2, %v4358_v2  ;;  %12008 = vmatprep.mubr.msk.f32.mxu1 %vm12980_vm1, %v12978_v8 }
0x209e   :  { %12016 = vmatprep.subr.mxu1 %v12978_v8  ;;  %12013 = vmatprep.mubr.msk.f32.mxu0 %vm12980_vm1, %v12978_v8 }
0x20a0   :  { %12009 = vmatmul.mubr.msk.f32.vlgmr.msra.gmra.mrb[52].mxu1 %vm265_vm2, %v4356_v11 }
0x20a1   :  { %12018 = vmatprep.mubr.msk.f32.mxu1 %vm12980_vm1, %v12978_v8 }
0x216b   :  { %v13662_v14 = vpop.f32.mrb[36].mxu0 }
0x216c   :  { %v11995_v15 = vpop.f32.mrb[37].mxu0 }
0x216f   :  { %v13664_v18 = vpop.f32.mrb[50].mxu1  ;;  %v4351_v19 = vpop.f32.mrb[38].mxu0 }
0x2170   :  { %v4433_v21 = vmul.f32 0.35355338, %v4351_v19  ;;  %v12000_v23 = vpop.f32.mrb[51].mxu1  ;;  %v12005_v27 = vpop.f32.mrb[39].mxu0 }
0x2172   :  { %v4435_v28 = vadd.f32 %v4433_v21, %v13621_v47 }
0x2173   :  { %v4429_v30 = vpop.f32.mrb[52].mxu1 }
0x2174   :  { %v4434_v31 = vmul.f32 0.35355338, %v4429_v30  ;;  %v12010_v12 = vpop.f32.mrb[53].mxu1  ;;  %v4437_v29 = vsel %vm265_vm2, %v4435_v28, -inf }
0x2175   :  { %4438 = vmax.xlane.f32.xlu0 %v4437_v29 }
0x2176   :  { %v4436_v20 = vadd.f32 %v4434_v31, %v13625_v51 }
0x2178   :  { %v4440_v33 = vsel %vm265_vm2, %v4436_v20, -inf }
0x2179   :  { %4441 = vmax.xlane.f32.xlu1 %v4440_v33 }
0x218a   :  { %4459 = vrot.lane.b32.xlu1 %v13593_v39, %s14630_s22 }
0x218b   :  { %4535 = vrot.lane.b32.xlu0 %v13591_v38, %s14630_s22  ;;  %s14639_s22 = smov 56  }
0x218e   :  { %4613 = vrot.lane.b32.xlu1 %v13593_v39, %s14628_s24 }
0x2192   :  { %4691 = vrot.lane.b32.xlu1 %v13591_v38, %s14628_s24 }
0x2196   :  { %4689 = vrot.lane.b32.xlu1 %v13591_v38, %s14626_s23 }
0x2202   :  { %v4439_v34 = vpop.xlane.xlu0 %4438 }
0x2203   :  { %v4443_v35 = vsub.f32 %v4435_v28, %v4439_v34 }
0x2205   :  { %v4445_v36 = vmul.f32 1.442695, %v4443_v35 }
0x2206   :  { %v4442_v37 = vpop.xlane.xlu1 %4441  ;;  %v4536_v7 = vpop.permute.xlu0 %4535 }
0x2207   :  { %12823 = vpow2.f32 %v4445_v36  ;;  %v4444_v41 = vsub.f32 %v4436_v20, %v4442_v37  ;;  %12017 = vmatpush3.msra.mxu1 %v4536_v7 }
0x2208   :  { %12026 = vmatprep.subr.mxu1 %v12978_v8 }
0x2209   :  { %v4447_v42 = vmul.f32 1.442695, %v4444_v41 }
0x220a   :  { %v4460_v48 = vpop.permute.xlu1 %4459 }
0x220b   :  { %12825 = vpow2.f32 %v4447_v42  ;;  %12012 = vmatpush3.msra.mxu0 %v4460_v48 }
0x220c   :  { %12021 = vmatprep.subr.mxu0 %v12978_v8 }
0x220e   :  { %v4614_v26 = vpop.permute.xlu1 %4613 }
0x2211   :  { %v12824_v13 = vpop.eup %12823 }
0x2212   :  { %v4449_v40 = vsel %vm265_vm2, %v12824_v13, 0.0  ;;  %v4692_v32 = vpop.permute.xlu1 %4691 }
0x2213   :  { %4450 = vadd.xlane.f32.xlu0 %v4449_v40 }
0x2215   :  { %v12826_v49 = vpop.eup %12825 }
0x2216   :  { %v4452_v50 = vsel %vm265_vm2, %v12826_v49, 0.0  ;;  %v4690_v61 = vpop.permute.xlu1 %4689 }
0x2217   :  { %4453 = vadd.xlane.f32.xlu0 %v4452_v50 }
0x222d   :  { %4611 = vrot.lane.b32.xlu0 %v13593_v39, %s14626_s23 }
0x22a0   :  { %v4451_v52 = vpop.xlane.xlu0 %4450 }
0x22a1   :  { %12827 = vrcp.f32 %v4451_v52 }
0x22a4   :  { %v4454_v53 = vpop.xlane.xlu0 %4453 }
0x22a5   :  { %12829 = vrcp.f32 %v4454_v53 }
0x22a8   :  { %v4612_v17 = vpop.permute.xlu0 %4611 }
0x22ab   :  { %v12828_v54 = vpop.eup %12827 }
0x22ac   :  { %v4457_v56 = vmul.f32 %v12828_v54, %v12824_v13 }
0x22ae   :  { %12014 = vmatmul.mubr.msk.f32.vlgmr.msra.gmra.mrb[40].mxu0 %vm265_vm2, %v4457_v56 }
0x22af   :  { %v12830_v58 = vpop.eup %12829  ;;  %12022 = vmatpush3.xpose.msk.msra.mxu0 %vm265_vm2, %v4614_v26  ;;  %12023 = vmatprep.mubr.msk.f32.mxu0 %vm12980_vm1, %v12978_v8 }
0x22b0   :  { %v4458_v59 = vmul.f32 %v12830_v58, %v12826_v49  ;;  %12031 = vmatprep.subr.mxu0 %v12978_v8 }
0x22b2   :  { %12019 = vmatmul.mubr.msk.f32.vlgmr.msra.gmra.mrb[54].mxu1 %vm265_vm2, %v4458_v59  ;;  %12024 = vmatmul.mubr.msk.f32.vlgmr.msra.gmra.mrb[42].mxu0 %vm265_vm2, %v4612_v17 }
0x22b3   :  { %12027 = vmatpush3.xpose.msk.msra.mxu1 %vm265_vm2, %v4692_v32  ;;  %12028 = vmatprep.mubr.msk.f32.mxu1 %vm12980_vm1, %v12978_v8 }
0x22b4   :  { %12036 = vmatprep.subr.mxu1 %v12978_v8  ;;  %12033 = vmatprep.mubr.msk.f32.mxu0 %vm12980_vm1, %v12978_v8 }
0x22b6   :  { %12029 = vmatmul.mubr.msk.f32.vlgmr.msra.gmra.mrb[56].mxu1 %vm265_vm2, %v4690_v61 }
0x22b7   :  { %12038 = vmatprep.mubr.msk.f32.mxu1 %vm12980_vm1, %v12978_v8 }
0x2381   :  { %v13702_v45 = vpop.f32.mrb[40].mxu0 }
0x2382   :  { %v12015_v60 = vpop.f32.mrb[41].mxu0 }
0x2385   :  { %v13704_v22 = vpop.f32.mrb[54].mxu1  ;;  %v4685_v62 = vpop.f32.mrb[42].mxu0 }
0x2386   :  { %v4767_v63 = vmul.f32 0.35355338, %v4685_v62  ;;  %v12020_v55 = vpop.f32.mrb[55].mxu1  ;;  %v12025_v0 = vpop.f32.mrb[43].mxu0 }
0x2388   :  { %v4769_v1 = vadd.f32 %v4767_v63, %v13621_v47 }
0x2389   :  { %v4763_v2 = vpop.f32.mrb[56].mxu1 }
0x238a   :  { %v4768_v3 = vmul.f32 0.35355338, %v4763_v2  ;;  %v12030_v57 = vpop.f32.mrb[57].mxu1  ;;  %v4771_v43 = vsel %vm265_vm2, %v4769_v1, -inf }
0x238b   :  { %4772 = vmax.xlane.f32.xlu0 %v4771_v43 }
0x238c   :  { %v4770_v4 = vadd.f32 %v4768_v3, %v13625_v51 }
0x238e   :  { %v4774_v6 = vsel %vm265_vm2, %v4770_v4, -inf }
0x238f   :  { %4775 = vmax.xlane.f32.xlu1 %v4774_v6 }
0x23a0   :  { %4793 = vrot.lane.b32.xlu1 %v13593_v39, %s14624_s25 }
0x23a1   :  { %4869 = vrot.lane.b32.xlu0 %v13591_v38, %s14624_s25  ;;  %s13025_s25 = smov 36  }
0x23a4   :  { %4947 = vrot.lane.b32.xlu1 %v13593_v39, %s14622_s26 }
0x23a8   :  { %5025 = vrot.lane.b32.xlu1 %v13591_v38, %s14622_s26 }
0x23ac   :  { %5023 = vrot.lane.b32.xlu1 %v13591_v38, %s14620_s27 }
0x2418   :  { %v4773_v9 = vpop.xlane.xlu0 %4772 }
0x2419   :  { %v4777_v10 = vsub.f32 %v4769_v1, %v4773_v9  ;;  %v5310_v9 = vld [vmem:[%s13763_s12 + $0x8] sm:$0xff] }
0x241b   :  { %v4779_v11 = vmul.f32 1.442695, %v4777_v10 }
0x241c   :  { %v4776_v15 = vpop.xlane.xlu1 %4775  ;;  %v4870_v19 = vpop.permute.xlu0 %4869 }
0x241d   :  { %12831 = vpow2.f32 %v4779_v11  ;;  %v4778_v21 = vsub.f32 %v4770_v4, %v4776_v15  ;;  %12037 = vmatpush3.msra.mxu1 %v4870_v19  ;;  %v5311_v11 = vld [vmem:[%s13763_s12 + $0x10] sm:$0xff]  ;;  %v5312_v15 = vld [vmem:[%s13763_s12 + $0x18] sm:$0xff] }
0x241e   :  { %12046 = vmatprep.subr.mxu1 %v12978_v8  ;;  %v12563_v19 = vpack.c.bf16 %v5312_v15, %v5311_v11 }
0x241f   :  { %v4781_v23 = vmul.f32 1.442695, %v4778_v21 }
0x2420   :  { %v4794_v27 = vpop.permute.xlu1 %4793 }
0x2421   :  { %12833 = vpow2.f32 %v4781_v23  ;;  %12032 = vmatpush3.msra.mxu0 %v4794_v27 }
0x2422   :  { %12041 = vmatprep.subr.mxu0 %v12978_v8 }
0x2424   :  { %v4948_v33 = vpop.permute.xlu1 %4947 }
0x2427   :  { %v12832_v28 = vpop.eup %12831 }
0x2428   :  { %v4783_v30 = vsel %vm265_vm2, %v12832_v28, 0.0  ;;  %v5026_v37 = vpop.permute.xlu1 %5025 }
0x2429   :  { %4784 = vadd.xlane.f32.xlu0 %v4783_v30  ;;  %v11149_v30 = vld [vmem:[%s13315_s1 + $0x1] ss:$0 sm:$0xff]  ;;  %s13009_s1 = smov 20  }
0x242a   :  { %s13792_s16 = sld [smem:[%s14611_s0 + %s13009_s1]]   ;;  %s13012_s1 = smov 21  }
0x242b   :  { %v12834_v31 = vpop.eup %12833 }
0x242c   :  { %v4786_v12 = vsel %vm265_vm2, %v12834_v31, 0.0  ;;  %v5024_v42 = vpop.permute.xlu1 %5023 }
0x242d   :  { %4787 = vadd.xlane.f32.xlu0 %v4786_v12 }
0x2443   :  { %4945 = vrot.lane.b32.xlu0 %v13593_v39, %s14620_s27 }
0x24b6   :  { %v4785_v29 = vpop.xlane.xlu0 %4784 }
0x24b7   :  { %12835 = vrcp.f32 %v4785_v29 }
0x24ba   :  { %v4788_v20 = vpop.xlane.xlu0 %4787 }
0x24bb   :  { %12837 = vrcp.f32 %v4788_v20  ;;  %v3796_v20 = vadd.f32 %v13611_v44, %v11149_v30 }
0x24be   :  { %v4946_v41 = vpop.permute.xlu0 %4945 }
0x24c1   :  { %v12836_v34 = vpop.eup %12835 }
0x24c2   :  { %v4791_v35 = vmul.f32 %v12836_v34, %v12832_v28 }
0x24c4   :  { %12034 = vmatmul.mubr.msk.f32.vlgmr.msra.gmra.mrb[44].mxu0 %vm265_vm2, %v4791_v35 }
0x24c5   :  { %v12838_v36 = vpop.eup %12837  ;;  %12042 = vmatpush3.xpose.msk.msra.mxu0 %vm265_vm2, %v4948_v33  ;;  %12043 = vmatprep.mubr.msk.f32.mxu0 %vm12980_vm1, %v12978_v8  ;;  %v3800_v33 = vadd.f32 %v3796_v20, %v13562_v5 }
0x24c6   :  { %v4792_v7 = vmul.f32 %v12838_v36, %v12834_v31  ;;  %12051 = vmatprep.subr.mxu0 %v12978_v8  ;;  %v3791_v31 = vadd.f32 %v11149_v30, %v13613_v46 }
0x24c7   :  { %v3808_v34 = vsel %vm180_vm0, %v3800_v33, 0.0 }
0x24c8   :  { %12039 = vmatmul.mubr.msk.f32.vlgmr.msra.gmra.mrb[58].mxu1 %vm265_vm2, %v4792_v7  ;;  %12044 = vmatmul.mubr.msk.f32.vlgmr.msra.gmra.mrb[46].mxu0 %vm265_vm2, %v4946_v41  ;;  %v3799_v12 = vadd.f32 %v3791_v31, %v13556_v16 }
0x24c9   :  { %12047 = vmatpush3.xpose.msk.msra.mxu1 %vm265_vm2, %v5026_v37  ;;  %12048 = vmatprep.mubr.msk.f32.mxu1 %vm12980_vm1, %v12978_v8 }
0x24ca   :  { %12056 = vmatprep.subr.mxu1 %v12978_v8  ;;  %12053 = vmatprep.mubr.msk.f32.mxu0 %vm12980_vm1, %v12978_v8  ;;  %v3805_v29 = vsel %vm180_vm0, %v3799_v12, 0.0 }
0x24cc   :  { %12049 = vmatmul.mubr.msk.f32.vlgmr.msra.gmra.mrb[60].mxu1 %vm265_vm2, %v5024_v42 }
0x24cd   :  { %12058 = vmatprep.mubr.msk.f32.mxu1 %vm12980_vm1, %v12978_v8 }
0x2597   :  { %v4865_v48 = vpop.f32.mrb[44].mxu0 }
0x2598   :  { %v12035_v13 = vpop.f32.mrb[45].mxu0 }
0x259b   :  { %v4941_v40 = vpop.f32.mrb[58].mxu1  ;;  %v5019_v49 = vpop.f32.mrb[46].mxu0 }
0x259c   :  { %v5101_v50 = vmul.f32 0.35355338, %v5019_v49  ;;  %v12040_v52 = vpop.f32.mrb[59].mxu1  ;;  %v12045_v53 = vpop.f32.mrb[47].mxu0 }
0x259e   :  { %v5103_v26 = vadd.f32 %v5101_v50, %v13621_v47 }
0x259f   :  { %v5097_v54 = vpop.f32.mrb[60].mxu1 }
0x25a0   :  { %v5102_v56 = vmul.f32 0.35355338, %v5097_v54  ;;  %v12050_v58 = vpop.f32.mrb[61].mxu1  ;;  %v5105_v32 = vsel %vm265_vm2, %v5103_v26, -inf }
0x25a1   :  { %5106 = vmax.xlane.f32.xlu0 %v5105_v32 }
0x25a2   :  { %v5104_v59 = vadd.f32 %v5102_v56, %v13625_v51  ;;  %v11183_v56 = vld [vmem:[%s13792_s16] ss:$0 sm:$0xff] }
0x25a4   :  { %v5108_v17 = vsel %vm265_vm2, %v5104_v59, -inf }
0x25a5   :  { %5109 = vmax.xlane.f32.xlu1 %v5108_v17 }
0x25b6   :  { %5127 = vrot.lane.b32.xlu1 %v13593_v39, %s14618_s28 }
0x25ba   :  { %5281 = vrot.lane.b32.xlu1 %v13702_v45, %s14616_s29 }
0x25be   :  { %5283 = vrot.lane.b32.xlu1 %v13704_v22, %s14616_s29 }
0x25c2   :  { %5291 = vrot.lane.b32.xlu1 %v4941_v40, %s14614_s30 }
0x262e   :  { %v5107_v47 = vpop.xlane.xlu0 %5106 }
0x262f   :  { %v5111_v61 = vsub.f32 %v5103_v26, %v5107_v47 }
0x2631   :  { %v5113_v60 = vmul.f32 1.442695, %v5111_v61 }
0x2632   :  { %v5110_v62 = vpop.xlane.xlu1 %5109 }
0x2633   :  { %12839 = vpow2.f32 %v5113_v60  ;;  %v5112_v51 = vsub.f32 %v5104_v59, %v5110_v62  ;;  %v11154_v62 = vld [vmem:[%s13330_s6 + $0x1] ss:$0 sm:$0xff]  ;;  %s13010_s6 = smov 25  }
0x2634   :  { %s13809_s4 = sld [smem:[%s14611_s0 + %s13010_s6]]  }
0x2635   :  { %v5115_v63 = vmul.f32 1.442695, %v5112_v51  ;;  %s13837_s6 = sld [smem:[%s14611_s0 + %s13012_s1]]   ;;  %s13021_s1 = smov 30  }
0x2636   :  { %v5128_v55 = vpop.permute.xlu1 %5127 }
0x2637   :  { %12841 = vpow2.f32 %v5115_v63  ;;  %12052 = vmatpush3.msra.mxu0 %v5128_v55 }
0x263a   :  { %v5282_v35 = vpop.permute.xlu1 %5281 }
0x263b   :  { %v5303_v7 = vsel %vm265_vm2, %v13662_v14, %v5282_v35 }
0x263d   :  { %v12840_v0 = vpop.eup %12839 }
0x263e   :  { %v5117_v39 = vsel %vm265_vm2, %v12840_v0, 0.0  ;;  %v5284_v36 = vpop.permute.xlu1 %5283 }
0x263f   :  { %5118 = vadd.xlane.f32.xlu0 %v5117_v39  ;;  %v5304_v5 = vsel %vm265_vm2, %v13664_v18, %v5284_v36  ;;  %v11155_v39 = vld [vmem:[%s13336_s5 + $0x1] ss:$0 sm:$0xff]  ;;  %s13011_s5 = smov 23  }
0x2640   :  { %s13825_s11 = sld [smem:[%s14611_s0 + %s13011_s5]]  }
0x2641   :  { %v12842_v45 = vpop.eup %12841  ;;  %s13873_s5 = sld [smem:[%s14611_s0 + %s14636_s13]]  }
0x2642   :  { %v5120_v1 = vsel %vm265_vm2, %v12842_v45, 0.0  ;;  %v5292_v41 = vpop.permute.xlu1 %5291 }
0x2643   :  { %5121 = vadd.xlane.f32.xlu0 %v5120_v1  ;;  %v5306_v44 = vsel %vm1623_vm4, %v5304_v5, %v5292_v41 }
0x2646   :  { %v5447_v35 = vld [vmem:[%s13825_s11] sm:$0xff]  ;;  %v5448_v36 = vld [vmem:[%s13825_s11 + $0x8] sm:$0xff]  ;;  %v5450_v41 = vld [vmem:[%s13825_s11 + $0x18] sm:$0xff] }
0x2659   :  { %5203 = vrot.lane.b32.xlu0 %v13591_v38, %s14618_s28  ;;  %v5309_v38 = vld [vmem:[%s13763_s12] sm:$0xff]  ;;  %s13019_s28 = smov 33  }
0x265a   :  { %v12559_v10 = vpack.c.bf16 %v5310_v9, %v5309_v38 }
0x265c   :  { %12560 = vmatprep.subr.bf16.mxu0 %v12559_v10 }
0x265d   :  { %5289 = vrot.lane.b32.xlu0 %v4865_v48, %s14614_s30 }
0x26cc   :  { %v5119_v22 = vpop.xlane.xlu0 %5118 }
0x26cd   :  { %12843 = vrcp.f32 %v5119_v22 }
0x26d0   :  { %v5122_v2 = vpop.xlane.xlu0 %5121 }
0x26d1   :  { %12845 = vrcp.f32 %v5122_v2 }
0x26d4   :  { %v5204_v3 = vpop.permute.xlu0 %5203 }
0x26d5   :  { %12057 = vmatpush3.msra.mxu1 %v5204_v3  ;;  %v5540_v3 = vld [vmem:[%s13809_s4 + $0x8] sm:$0xff] }
0x26d7   :  { %v12844_v57 = vpop.eup %12843 }
0x26d8   :  { %v5125_v43 = vmul.f32 %v12844_v57, %v12840_v0  ;;  %v5290_v37 = vpop.permute.xlu0 %5289 }
0x26d9   :  { %v5305_v46 = vsel %vm1623_vm4, %v5303_v7, %v5290_v37  ;;  %v5449_v37 = vld [vmem:[%s13825_s11 + $0x10] sm:$0xff]  ;;  %v12567_v7 = vpack.c.bf16 %v5448_v36, %v5447_v35 }
0x26da   :  { %12054 = vmatmul.mubr.msk.f32.vlgmr.msra.gmra.mrb[48].mxu0 %vm265_vm2, %v5125_v43  ;;  %v5541_v43 = vld [vmem:[%s13809_s4 + $0x10] sm:$0xff] }
0x26db   :  { %v12846_v4 = vpop.eup %12845  ;;  %12562 = vmatpush3.bf16.msra.mxu0 %v12559_v10  ;;  %12568 = vmatprep.subr.bf16.mxu1 %v12567_v7 }
0x26dc   :  { %v5126_v6 = vmul.f32 %v12846_v4, %v12842_v45  ;;  %12564 = vmatprep.subr.bf16.mxu0 %v12563_v19  ;;  %v5542_v4 = vld [vmem:[%s13809_s4 + $0x18] sm:$0xff] }
0x26de   :  { %12059 = vmatmul.mubr.msk.f32.vlgmr.msra.gmra.mrb[62].mxu1 %vm265_vm2, %v5126_v6  ;;  %v12579_v6 = vpack.c.bf16 %v5542_v4, %v5541_v43 }
0x26df   :  { %12566 = vmatpush3.bf16.msra.mxu0 %v12563_v19  ;;  %12570 = vmatpush3.bf16.msra.mxu1 %v12567_v7 }
0x27ad   :  { %v5199_v21 = vpop.f32.mrb[48].mxu0 }
0x27ae   :  { %5297 = vrot.lane.b32.xlu0 %v5199_v21, %s14636_s13  ;;  %v12055_v23 = vpop.f32.mrb[49].mxu0 }
0x27b1   :  { %v5275_v27 = vpop.f32.mrb[62].mxu1 }
0x27b2   :  { %5299 = vrot.lane.b32.xlu1 %v5275_v27, %s14636_s13  ;;  %v12060_v28 = vpop.f32.mrb[63].mxu1 }
0x27cd   :  { %3806 = vadd.xlane.f32.xlu0 %v3805_v29 }
0x27d6   :  { %3809 = vadd.xlane.f32.xlu1 %v3808_v34 }
0x2820   :  { %v5298_v16 = vpop.permute.xlu0 %5297 }
0x2821   :  { %v5307_v42 = vsel %vm1626_vm3, %v5305_v46, %v5298_v16  ;;  %v12571_v46 = vpack.c.bf16 %v5450_v41, %v5449_v37 }
0x2822   :  { %12069 = vmatprep.mubr.msk.f32.mxu0 %vm180_vm0, %v5307_v42 }
0x2823   :  { %12572 = vmatprep.subr.bf16.mxu1 %v12571_v46 }
0x2824   :  { %v5300_v48 = vpop.permute.xlu1 %5299  ;;  %12574 = vmatpush3.bf16.msra.mxu1 %v12571_v46 }
0x2825   :  { %v5308_v13 = vsel %vm1626_vm3, %v5306_v44, %v5300_v48  ;;  %12094 = vmatprep.subr.mxu1 %v12978_v8 }
0x2826   :  { %12070 = vmatmul.mubr.msk.f32.vlgmr.msra.gmra.mrb[50].mxu0 %vm180_vm0, %v5308_v13 }
0x285a   :  { %v3807_v40 = vpop.xlane.xlu0 %3806 }
0x285b   :  { %v3811_v14 = vmul.f32 0.03125, %v3807_v40 }
0x285d   :  { %v3813_v49 = vsub.f32 %v3799_v12, %v3811_v14  ;;  %v11186_v14 = vld [vmem:[%s13837_s6] ss:$0 sm:$0xff] }
0x285f   :  { %v3815_v50 = vmul.f32 %v3813_v49, %v3813_v49 }
0x2861   :  { %v3817_v52 = vsel %vm180_vm0, %v3815_v50, 0.0  ;;  %v11187_v50 = vld [vmem:[%s13842_s15] ss:$0 sm:$0xff] }
0x2862   :  { %3818 = vadd.xlane.f32.xlu1 %v3817_v52 }
0x2863   :  { %v3810_v53 = vpop.xlane.xlu1 %3809 }
0x2864   :  { %v3812_v59 = vmul.f32 0.03125, %v3810_v53 }
0x2866   :  { %v3814_v51 = vsub.f32 %v3800_v33, %v3812_v59 }
0x2868   :  { %v3816_v2 = vmul.f32 %v3814_v51, %v3814_v51 }
0x28ef   :  { %v3819_v26 = vpop.xlane.xlu1 %3818 }
0x28f0   :  { %v3823_v54 = vmul.f32 0.03125, %v3819_v26 }
0x28f2   :  { %v3825_v18 = vadd.f32 1e-05, %v3823_v54 }
0x28f4   :  { %12847 = vrsqrt.f32 %v3825_v18 }
0x28f9   :  { %v12071_v58 = vpop.f32.mrb[50].mxu0 }
0x28fa   :  { %v5392_v32 = vpop.f32.mrb[51].mxu0  ;;  %v5398_v17 = vadd.f32 %v12071_v58, %v11183_v56  ;;  %v11191_v58 = vld [vmem:[%s13859_s17] ss:$0 sm:$0xff] }
0x28fb   :  { %v5393_v47 = vadd.f32 %v11183_v56, %v5392_v32 }
0x28fc   :  { %v5402_v63 = vadd.f32 %v5398_v17, %v13570_v25  ;;  %v5539_v25 = vld [vmem:[%s13809_s4] sm:$0xff] }
0x28fd   :  { %v5401_v61 = vadd.f32 %v5393_v47, %v13564_v24  ;;  %v3820_v24 = vsel %vm180_vm0, %v3816_v2, 0.0  ;;  %v12575_v57 = vpack.c.bf16 %v5540_v3, %v5539_v25  ;;  %v13901_v2 = vld [vmem:[%s13894_s2 + $0x8] sm:$0xff] }
0x28fe   :  { %v12848_v60 = vpop.eup %12847  ;;  %v5408_v1 = vsel %vm180_vm0, %v5402_v63, 0.0 }
0x28ff   :  { %v5405_v55 = vsel %vm180_vm0, %v5401_v61, 0.0  ;;  %v3829_v0 = vmul.f32 %v12848_v60, %v3813_v49  ;;  %12576 = vmatprep.subr.bf16.mxu0 %v12575_v57 }
0x2900   :  { %5406 = vadd.xlane.f32.xlu0 %v5405_v55  ;;  %12578 = vmatpush3.bf16.msra.mxu0 %v12575_v57  ;;  %v13897_v55 = vld [vmem:[%s13894_s2] sm:$0xff] }
0x2901   :  { %v3837_v45 = vmul.f32 %v11154_v62, %v3829_v0  ;;  %12580 = vmatprep.subr.bf16.mxu0 %v12579_v6 }
0x2903   :  { %v13801_v22 = vadd.f32 %v11155_v39, %v3837_v45 }
0x2904   :  { %5409 = vadd.xlane.f32.xlu0 %v5408_v1  ;;  %12582 = vmatpush3.bf16.msra.mxu0 %v12579_v6 }
0x2905   :  { %12091 = vmatprep.mubr.msk.f32.mxu0 %vm180_vm0, %v13801_v22  ;;  %12104 = vmatprep.subr.mxu0 %v12978_v8 }
0x2908   :  { %3821 = vadd.xlane.f32.xlu0 %v3820_v24 }
0x298d   :  { %v5407_v38 = vpop.xlane.xlu0 %5406 }
0x298e   :  { %v5411_v9 = vmul.f32 0.03125, %v5407_v38 }
0x2990   :  { %v5413_v10 = vsub.f32 %v5401_v61, %v5411_v9  ;;  %v11188_v61 = vld [vmem:[%s13873_s5] ss:$0 sm:$0xff] }
0x2991   :  { %v5410_v11 = vpop.xlane.xlu0 %5409 }
0x2992   :  { %v5412_v15 = vmul.f32 0.03125, %v5410_v11  ;;  %v5415_v19 = vmul.f32 %v5413_v10, %v5413_v10 }
0x2994   :  { %v5414_v21 = vsub.f32 %v5402_v63, %v5412_v15  ;;  %v5417_v23 = vsel %vm180_vm0, %v5415_v19, 0.0 }
0x2995   :  { %5418 = vadd.xlane.f32.xlu1 %v5417_v23  ;;  %v3822_v27 = vpop.xlane.xlu0 %3821 }
0x2996   :  { %v3824_v28 = vmul.f32 0.03125, %v3822_v27  ;;  %v5416_v30 = vmul.f32 %v5414_v21, %v5414_v21 }
0x2998   :  { %v3826_v31 = vadd.f32 1e-05, %v3824_v28  ;;  %v5420_v12 = vsel %vm180_vm0, %v5416_v30, 0.0 }
0x2999   :  { %5421 = vadd.xlane.f32.xlu0 %v5420_v12 }
0x299a   :  { %12849 = vrsqrt.f32 %v3826_v31 }
0x29a4   :  { %v12850_v29 = vpop.eup %12849 }
0x29a5   :  { %v3830_v20 = vmul.f32 %v12850_v29, %v3814_v51 }
0x29a7   :  { %v3838_v33 = vmul.f32 %v11154_v62, %v3830_v20 }
0x29a9   :  { %v13818_v34 = vadd.f32 %v11155_v39, %v3838_v33 }
0x29ab   :  { %12092 = vmatmul.mubr.msk.f32.vlgmr.msra.gmra.mrb[52].mxu0 %vm180_vm0, %v13818_v34 }
0x29ac   :  { %12106 = vmatprep.mubr.msk.f32.mxu0 %vm12980_vm1, %v12978_v8 }
0x2a22   :  { %v5419_v16 = vpop.xlane.xlu1 %5418 }
0x2a23   :  { %v5423_v42 = vmul.f32 0.03125, %v5419_v16 }
0x2a25   :  { %v5425_v5 = vadd.f32 1e-05, %v5423_v42 }
0x2a26   :  { %v5422_v44 = vpop.xlane.xlu0 %5421 }
0x2a27   :  { %12851 = vrsqrt.f32 %v5425_v5  ;;  %v5424_v48 = vmul.f32 0.03125, %v5422_v44 }
0x2a29   :  { %v5426_v13 = vadd.f32 1e-05, %v5424_v48 }
0x2a2b   :  { %12853 = vrsqrt.f32 %v5426_v13 }
0x2a31   :  { %v12852_v40 = vpop.eup %12851 }
0x2a32   :  { %v5429_v49 = vmul.f32 %v12852_v40, %v5413_v10 }
0x2a34   :  { %v5437_v52 = vmul.f32 %v11186_v14, %v5429_v49 }
0x2a35   :  { %v12854_v53 = vpop.eup %12853 }
0x2a36   :  { %v5430_v26 = vmul.f32 %v12854_v53, %v5414_v21  ;;  %v13846_v54 = vadd.f32 %v11187_v50, %v5437_v52 }
0x2a38   :  { %v5438_v18 = vmul.f32 %v11186_v14, %v5430_v26  ;;  %12080 = vmatprep.mubr.msk.f32.mxu1 %vm180_vm0, %v13846_v54 }
0x2a3a   :  { %v13850_v56 = vadd.f32 %v11187_v50, %v5438_v18 }
0x2a3c   :  { %12081 = vmatmul.mubr.msk.f32.vlgmr.msra.gmra.mrb[64].mxu1 %vm180_vm0, %v13850_v56 }
0x2a3d   :  { %12096 = vmatprep.mubr.msk.f32.mxu1 %vm12980_vm1, %v12978_v8 }
0x2a7e   :  { %v12093_v32 = vpop.f32.mrb[52].mxu0 }
0x2a7f   :  { %v13862_v59 = vadd.f32 %v12093_v32, %v11191_v58  ;;  %v5622_v17 = vpop.f32.mrb[53].mxu0 }
0x2a80   :  { %v13864_v47 = vadd.f32 %v11191_v58, %v5622_v17 }
0x2a82   :  { %12095 = vmatpush3.xpose.msk.msra.mxu1 %vm265_vm2, %v13864_v47 }
0x2a83   :  { %12099 = vmatprep.subr.mxu1 %v12978_v8 }
0x2b0f   :  { %v12082_v60 = vpop.f32.mrb[64].mxu1 }
0x2b10   :  { %v5530_v62 = vpop.f32.mrb[65].mxu1  ;;  %v13884_v63 = vadd.f32 %v12082_v60, %v11188_v61 }
0x2b11   :  { %v13876_v51 = vadd.f32 %v11188_v61, %v5530_v62 }
0x2b13   :  { %12097 = vmatmul.mubr.msk.f32.vlgmr.msra.gmra.mrb[66].mxu1 %vm265_vm2, %v13876_v51 }
0x2b14   :  { %12100 = vmatpush3.xpose.msk.msra.mxu1 %vm265_vm2, %v13862_v59  ;;  %12101 = vmatprep.mubr.msk.f32.mxu1 %vm12980_vm1, %v12978_v8 }
0x2b15   :  { %12109 = vmatprep.subr.mxu1 %v12978_v8 }
0x2b17   :  { %12102 = vmatmul.mubr.msk.f32.vlgmr.msra.gmra.mrb[68].mxu1 %vm265_vm2, %v13884_v63 }
0x2b18   :  { %12111 = vmatprep.mubr.msk.f32.mxu1 %vm12980_vm1, %v12978_v8 }
0x2be6   :  { %v5703_v0 = vpop.f32.mrb[66].mxu1 }
0x2be7   :  { %v5783_v39 = vmul.f32 0.35355338, %v5703_v0  ;;  %v12098_v45 = vpop.f32.mrb[67].mxu1 }
0x2be9   :  { %v5785_v1 = vadd.f32 %v5783_v39, %v13897_v55 }
0x2bea   :  { %v5779_v24 = vpop.f32.mrb[68].mxu1 }
0x2beb   :  { %v5784_v25 = vmul.f32 0.35355338, %v5779_v24  ;;  %v12103_v3 = vpop.f32.mrb[69].mxu1  ;;  %v5787_v57 = vsel %vm265_vm2, %v5785_v1, -inf }
0x2bec   :  { %5788 = vmax.xlane.f32.xlu1 %v5787_v57 }
0x2bed   :  { %v5786_v43 = vadd.f32 %v5784_v25, %v13901_v2 }
0x2bef   :  { %v5790_v4 = vsel %vm265_vm2, %v5786_v43, -inf }
0x2bf0   :  { %5791 = vmax.xlane.f32.xlu0 %v5790_v4 }
0x2bfd   :  { %5809 = vrot.lane.b32.xlu1 %v13864_v47, %s12981_s14 }
0x2c01   :  { %5963 = vrot.lane.b32.xlu1 %v13864_v47, %s14632_s21 }
0x2c05   :  { %6041 = vrot.lane.b32.xlu1 %v13862_v59, %s14632_s21 }
0x2c06   :  { %5885 = vrot.lane.b32.xlu0 %v13862_v59, %s12981_s14 }
0x2c79   :  { %v5789_v6 = vpop.xlane.xlu1 %5788 }
0x2c7a   :  { %v5793_v38 = vsub.f32 %v5785_v1, %v5789_v6 }
0x2c7c   :  { %v5795_v9 = vmul.f32 1.442695, %v5793_v38 }
0x2c7d   :  { %v5810_v10 = vpop.permute.xlu1 %5809  ;;  %v5792_v11 = vpop.xlane.xlu0 %5791 }
0x2c7e   :  { %12855 = vpow2.f32 %v5795_v9  ;;  %v5794_v15 = vsub.f32 %v5786_v43, %v5792_v11  ;;  %12105 = vmatpush3.msra.mxu0 %v5810_v10 }
0x2c7f   :  { %12114 = vmatprep.subr.mxu0 %v12978_v8 }
0x2c80   :  { %v5797_v19 = vmul.f32 1.442695, %v5794_v15 }
0x2c81   :  { %v5886_v21 = vpop.permute.xlu0 %5885  ;;  %v5964_v31 = vpop.permute.xlu1 %5963 }
0x2c82   :  { %12857 = vpow2.f32 %v5797_v19  ;;  %12110 = vmatpush3.msra.mxu1 %v5886_v21 }
0x2c83   :  { %12119 = vmatprep.subr.mxu1 %v12978_v8 }
0x2c85   :  { %v6042_v12 = vpop.permute.xlu1 %6041 }
0x2c88   :  { %v12856_v23 = vpop.eup %12855 }
0x2c89   :  { %v5799_v27 = vsel %vm265_vm2, %v12856_v23, 0.0 }
0x2c8a   :  { %5800 = vadd.xlane.f32.xlu1 %v5799_v27 }
0x2c8c   :  { %v12858_v28 = vpop.eup %12857 }
0x2c8d   :  { %v5802_v30 = vsel %vm265_vm2, %v12858_v28, 0.0 }
0x2c8e   :  { %5803 = vadd.xlane.f32.xlu0 %v5802_v30 }
0x2c9b   :  { %6039 = vrot.lane.b32.xlu1 %v13884_v63, %s14632_s21 }
0x2ca4   :  { %5961 = vrot.lane.b32.xlu0 %v13876_v51, %s14632_s21  ;;  %s14637_s21 = smov 88  }
0x2d17   :  { %v5801_v29 = vpop.xlane.xlu1 %5800 }
0x2d18   :  { %12859 = vrcp.f32 %v5801_v29 }
0x2d1b   :  { %v5804_v20 = vpop.xlane.xlu0 %5803  ;;  %v6040_v41 = vpop.permute.xlu1 %6039 }
0x2d1c   :  { %12861 = vrcp.f32 %v5804_v20 }
0x2d1f   :  { %v5962_v7 = vpop.permute.xlu0 %5961 }
0x2d22   :  { %v12860_v33 = vpop.eup %12859 }
0x2d23   :  { %v5807_v35 = vmul.f32 %v12860_v33, %v12856_v23 }
0x2d25   :  { %12107 = vmatmul.mubr.msk.f32.vlgmr.msra.gmra.mrb[54].mxu0 %vm265_vm2, %v5807_v35 }
0x2d26   :  { %v12862_v36 = vpop.eup %12861  ;;  %12115 = vmatpush3.xpose.msk.msra.mxu0 %vm265_vm2, %v5964_v31  ;;  %12116 = vmatprep.mubr.msk.f32.mxu0 %vm12980_vm1, %v12978_v8 }
0x2d27   :  { %v5808_v37 = vmul.f32 %v12862_v36, %v12858_v28  ;;  %12124 = vmatprep.subr.mxu0 %v12978_v8 }
0x2d29   :  { %12112 = vmatmul.mubr.msk.f32.vlgmr.msra.gmra.mrb[70].mxu1 %vm265_vm2, %v5808_v37  ;;  %12117 = vmatmul.mubr.msk.f32.vlgmr.msra.gmra.mrb[56].mxu0 %vm265_vm2, %v5962_v7 }
0x2d2a   :  { %12120 = vmatpush3.xpose.msk.msra.mxu1 %vm265_vm2, %v6042_v12  ;;  %12121 = vmatprep.mubr.msk.f32.mxu1 %vm12980_vm1, %v12978_v8 }
0x2d2b   :  { %12129 = vmatprep.subr.mxu1 %v12978_v8  ;;  %12126 = vmatprep.mubr.msk.f32.mxu0 %vm12980_vm1, %v12978_v8 }
0x2d2d   :  { %12122 = vmatmul.mubr.msk.f32.vlgmr.msra.gmra.mrb[72].mxu1 %vm265_vm2, %v6040_v41 }
0x2d2e   :  { %12131 = vmatprep.mubr.msk.f32.mxu1 %vm12980_vm1, %v12978_v8 }
0x2df8   :  { %v13938_v46 = vpop.f32.mrb[54].mxu0 }
0x2df9   :  { %v12108_v16 = vpop.f32.mrb[55].mxu0 }
0x2dfc   :  { %v13940_v42 = vpop.f32.mrb[70].mxu1  ;;  %v6035_v5 = vpop.f32.mrb[56].mxu0 }
0x2dfd   :  { %v6117_v44 = vmul.f32 0.35355338, %v6035_v5  ;;  %v12113_v48 = vpop.f32.mrb[71].mxu1  ;;  %v12118_v13 = vpop.f32.mrb[57].mxu0 }
0x2dff   :  { %v6119_v40 = vadd.f32 %v6117_v44, %v13897_v55 }
0x2e00   :  { %v6113_v14 = vpop.f32.mrb[72].mxu1 }
0x2e01   :  { %v6118_v49 = vmul.f32 0.35355338, %v6113_v14  ;;  %v12123_v50 = vpop.f32.mrb[73].mxu1  ;;  %v6121_v52 = vsel %vm265_vm2, %v6119_v40, -inf }
0x2e02   :  { %6122 = vmax.xlane.f32.xlu0 %v6121_v52 }
0x2e03   :  { %v6120_v53 = vadd.f32 %v6118_v49, %v13901_v2 }
0x2e05   :  { %v6124_v26 = vsel %vm265_vm2, %v6120_v53, -inf }
0x2e06   :  { %6125 = vmax.xlane.f32.xlu1 %v6124_v26 }
0x2e17   :  { %6143 = vrot.lane.b32.xlu1 %v13864_v47, %s14634_s20 }
0x2e18   :  { %6219 = vrot.lane.b32.xlu0 %v13862_v59, %s14634_s20  ;;  %s14139_s20 = sld [smem:[%s14611_s0 + %s13025_s25]]   ;;  %s14645_s25 = smov 40  }
0x2e1b   :  { %6297 = vrot.lane.b32.xlu1 %v13864_v47, %s14626_s23 }
0x2e1f   :  { %6375 = vrot.lane.b32.xlu1 %v13862_v59, %s14626_s23 }
0x2e23   :  { %6373 = vrot.lane.b32.xlu1 %v13884_v63, %s14626_s23 }
0x2e8f   :  { %v6123_v18 = vpop.xlane.xlu0 %6122 }
0x2e90   :  { %v6127_v58 = vsub.f32 %v6119_v40, %v6123_v18 }
0x2e92   :  { %v6129_v32 = vmul.f32 1.442695, %v6127_v58 }
0x2e93   :  { %v6220_v17 = vpop.permute.xlu0 %6219  ;;  %v6126_v61 = vpop.xlane.xlu1 %6125 }
0x2e94   :  { %12863 = vpow2.f32 %v6129_v32  ;;  %v6128_v60 = vsub.f32 %v6120_v53, %v6126_v61  ;;  %12130 = vmatpush3.msra.mxu1 %v6220_v17 }
0x2e95   :  { %12139 = vmatprep.subr.mxu1 %v12978_v8 }
0x2e96   :  { %v6131_v62 = vmul.f32 1.442695, %v6128_v60 }
0x2e97   :  { %v6144_v0 = vpop.permute.xlu1 %6143 }
0x2e98   :  { %12865 = vpow2.f32 %v6131_v62  ;;  %12125 = vmatpush3.msra.mxu0 %v6144_v0 }
0x2e99   :  { %12134 = vmatprep.subr.mxu0 %v12978_v8 }
0x2e9b   :  { %v6298_v57 = vpop.permute.xlu1 %6297 }
0x2e9e   :  { %v12864_v39 = vpop.eup %12863 }
0x2e9f   :  { %v6133_v45 = vsel %vm265_vm2, %v12864_v39, 0.0  ;;  %v6376_v38 = vpop.permute.xlu1 %6375 }
0x2ea0   :  { %6134 = vadd.xlane.f32.xlu0 %v6133_v45 }
0x2ea2   :  { %v12866_v1 = vpop.eup %12865 }
0x2ea3   :  { %v6136_v24 = vsel %vm265_vm2, %v12866_v1, 0.0  ;;  %v6374_v11 = vpop.permute.xlu1 %6373 }
0x2ea4   :  { %6137 = vadd.xlane.f32.xlu0 %v6136_v24 }
0x2eba   :  { %6295 = vrot.lane.b32.xlu0 %v13876_v51, %s14626_s23  ;;  %s13022_s23 = smov 32  }
0x2f2d   :  { %v6135_v25 = vpop.xlane.xlu0 %6134 }
0x2f2e   :  { %12867 = vrcp.f32 %v6135_v25 }
0x2f31   :  { %v6138_v3 = vpop.xlane.xlu0 %6137 }
0x2f32   :  { %12869 = vrcp.f32 %v6138_v3 }
0x2f35   :  { %v6296_v10 = vpop.permute.xlu0 %6295 }
0x2f38   :  { %v12868_v43 = vpop.eup %12867 }
0x2f39   :  { %v6141_v4 = vmul.f32 %v12868_v43, %v12864_v39 }
0x2f3b   :  { %12127 = vmatmul.mubr.msk.f32.vlgmr.msra.gmra.mrb[58].mxu0 %vm265_vm2, %v6141_v4 }
0x2f3c   :  { %v12870_v6 = vpop.eup %12869  ;;  %12135 = vmatpush3.xpose.msk.msra.mxu0 %vm265_vm2, %v6298_v57  ;;  %12136 = vmatprep.mubr.msk.f32.mxu0 %vm12980_vm1, %v12978_v8 }
0x2f3d   :  { %v6142_v9 = vmul.f32 %v12870_v6, %v12866_v1  ;;  %12144 = vmatprep.subr.mxu0 %v12978_v8 }
0x2f3f   :  { %12132 = vmatmul.mubr.msk.f32.vlgmr.msra.gmra.mrb[74].mxu1 %vm265_vm2, %v6142_v9  ;;  %12137 = vmatmul.mubr.msk.f32.vlgmr.msra.gmra.mrb[60].mxu0 %vm265_vm2, %v6296_v10 }
0x2f40   :  { %12140 = vmatpush3.xpose.msk.msra.mxu1 %vm265_vm2, %v6376_v38  ;;  %12141 = vmatprep.mubr.msk.f32.mxu1 %vm12980_vm1, %v12978_v8 }
0x2f41   :  { %12149 = vmatprep.subr.mxu1 %v12978_v8  ;;  %12146 = vmatprep.mubr.msk.f32.mxu0 %vm12980_vm1, %v12978_v8 }
0x2f43   :  { %12142 = vmatmul.mubr.msk.f32.vlgmr.msra.gmra.mrb[76].mxu1 %vm265_vm2, %v6374_v11 }
0x2f44   :  { %12151 = vmatprep.mubr.msk.f32.mxu1 %vm12980_vm1, %v12978_v8 }
0x300e   :  { %v13978_v15 = vpop.f32.mrb[58].mxu0 }
0x300f   :  { %v12128_v19 = vpop.f32.mrb[59].mxu0 }
0x3012   :  { %v13980_v21 = vpop.f32.mrb[74].mxu1  ;;  %v6369_v23 = vpop.f32.mrb[60].mxu0 }
0x3013   :  { %v6451_v27 = vmul.f32 0.35355338, %v6369_v23  ;;  %v12133_v28 = vpop.f32.mrb[75].mxu1  ;;  %v12138_v30 = vpop.f32.mrb[61].mxu0 }
0x3015   :  { %v6453_v31 = vadd.f32 %v6451_v27, %v13897_v55 }
0x3016   :  { %v6447_v12 = vpop.f32.mrb[76].mxu1 }
0x3017   :  { %v6452_v29 = vmul.f32 0.35355338, %v6447_v12  ;;  %v12143_v20 = vpop.f32.mrb[77].mxu1  ;;  %v6455_v33 = vsel %vm265_vm2, %v6453_v31, -inf }
0x3018   :  { %6456 = vmax.xlane.f32.xlu0 %v6455_v33 }
0x3019   :  { %v6454_v35 = vadd.f32 %v6452_v29, %v13901_v2 }
0x301b   :  { %v6458_v36 = vsel %vm265_vm2, %v6454_v35, -inf }
0x301c   :  { %6459 = vmax.xlane.f32.xlu1 %v6458_v36 }
0x302d   :  { %6477 = vrot.lane.b32.xlu1 %v13864_v47, %s14628_s24 }
0x302e   :  { %6553 = vrot.lane.b32.xlu0 %v13862_v59, %s14628_s24  ;;  %s14097_s24 = sld [smem:[%s14611_s0 + %s13021_s1]]   ;;  %s14644_s1 = smov 104  }
0x3031   :  { %6631 = vrot.lane.b32.xlu1 %v13864_v47, %s14620_s27 }
0x3035   :  { %6709 = vrot.lane.b32.xlu1 %v13862_v59, %s14620_s27 }
0x3039   :  { %6707 = vrot.lane.b32.xlu1 %v13884_v63, %s14620_s27 }
0x30a5   :  { %v6457_v37 = vpop.xlane.xlu0 %6456 }
0x30a6   :  { %v6461_v7 = vsub.f32 %v6453_v31, %v6457_v37  ;;  %v6995_v37 = vld [vmem:[%s14039_s10 + $0x10] sm:$0xff] }
0x30a8   :  { %v6463_v41 = vmul.f32 1.442695, %v6461_v7  ;;  %v6996_v7 = vld [vmem:[%s14039_s10 + $0x18] sm:$0xff] }
0x30a9   :  { %v6554_v16 = vpop.permute.xlu0 %6553  ;;  %v6460_v5 = vpop.xlane.xlu1 %6459 }
0x30aa   :  { %12871 = vpow2.f32 %v6463_v41  ;;  %v6462_v44 = vsub.f32 %v6454_v35, %v6460_v5  ;;  %12150 = vmatpush3.msra.mxu1 %v6554_v16  ;;  %v6994_v35 = vld [vmem:[%s14039_s10 + $0x8] sm:$0xff]  ;;  %v12587_v41 = vpack.c.bf16 %v6996_v7, %v6995_v37  ;;  %v11222_v7 = vld [vmem:[%s14097_s24] ss:$0 sm:$0xff] }
0x30ab   :  { %12159 = vmatprep.subr.mxu1 %v12978_v8 }
0x30ac   :  { %v6465_v48 = vmul.f32 1.442695, %v6462_v44 }
0x30ad   :  { %v6478_v13 = vpop.permute.xlu1 %6477 }
0x30ae   :  { %12873 = vpow2.f32 %v6465_v48  ;;  %12145 = vmatpush3.msra.mxu0 %v6478_v13 }
0x30af   :  { %12154 = vmatprep.subr.mxu0 %v12978_v8 }
0x30b1   :  { %v6632_v53 = vpop.permute.xlu1 %6631 }
0x30b4   :  { %v12872_v40 = vpop.eup %12871 }
0x30b5   :  { %v6467_v14 = vsel %vm265_vm2, %v12872_v40, 0.0  ;;  %v6710_v32 = vpop.permute.xlu1 %6709 }
0x30b6   :  { %6468 = vadd.xlane.f32.xlu0 %v6467_v14 }
0x30b8   :  { %v12874_v63 = vpop.eup %12873 }
0x30b9   :  { %v6470_v49 = vsel %vm265_vm2, %v12874_v63, 0.0  ;;  %v6708_v61 = vpop.permute.xlu1 %6707 }
0x30ba   :  { %6471 = vadd.xlane.f32.xlu0 %v6470_v49 }
0x30d0   :  { %6629 = vrot.lane.b32.xlu0 %v13876_v51, %s14620_s27  ;;  %s14109_s27 = sld [smem:[%s14611_s0 + %s13022_s23]]  }
0x3143   :  { %v6469_v50 = vpop.xlane.xlu0 %6468 }
0x3144   :  { %12875 = vrcp.f32 %v6469_v50 }
0x3147   :  { %v6472_v52 = vpop.xlane.xlu0 %6471 }
0x3148   :  { %12877 = vrcp.f32 %v6472_v52 }
0x314b   :  { %v6630_v51 = vpop.permute.xlu0 %6629 }
0x314e   :  { %v12876_v26 = vpop.eup %12875 }
0x314f   :  { %v6475_v18 = vmul.f32 %v12876_v26, %v12872_v40 }
0x3151   :  { %12147 = vmatmul.mubr.msk.f32.vlgmr.msra.gmra.mrb[62].mxu0 %vm265_vm2, %v6475_v18 }
0x3152   :  { %v12878_v58 = vpop.eup %12877  ;;  %12155 = vmatpush3.xpose.msk.msra.mxu0 %vm265_vm2, %v6632_v53  ;;  %12156 = vmatprep.mubr.msk.f32.mxu0 %vm12980_vm1, %v12978_v8 }
0x3153   :  { %v6476_v17 = vmul.f32 %v12878_v58, %v12874_v63  ;;  %12164 = vmatprep.subr.mxu0 %v12978_v8 }
0x3155   :  { %12152 = vmatmul.mubr.msk.f32.vlgmr.msra.gmra.mrb[78].mxu1 %vm265_vm2, %v6476_v17  ;;  %12157 = vmatmul.mubr.msk.f32.vlgmr.msra.gmra.mrb[64].mxu0 %vm265_vm2, %v6630_v51 }
0x3156   :  { %12160 = vmatpush3.xpose.msk.msra.mxu1 %vm265_vm2, %v6710_v32  ;;  %12161 = vmatprep.mubr.msk.f32.mxu1 %vm12980_vm1, %v12978_v8 }
0x3157   :  { %12169 = vmatprep.subr.mxu1 %v12978_v8  ;;  %12166 = vmatprep.mubr.msk.f32.mxu0 %vm12980_vm1, %v12978_v8 }
0x3159   :  { %12162 = vmatmul.mubr.msk.f32.vlgmr.msra.gmra.mrb[80].mxu1 %vm265_vm2, %v6708_v61 }
0x315a   :  { %12171 = vmatprep.mubr.msk.f32.mxu1 %vm12980_vm1, %v12978_v8 }
0x3224   :  { %v6549_v60 = vpop.f32.mrb[62].mxu0 }
0x3225   :  { %v12148_v62 = vpop.f32.mrb[63].mxu0 }
0x3228   :  { %v6625_v0 = vpop.f32.mrb[78].mxu1  ;;  %v6703_v39 = vpop.f32.mrb[64].mxu0 }
0x3229   :  { %v6785_v45 = vmul.f32 0.35355338, %v6703_v39  ;;  %v12153_v1 = vpop.f32.mrb[79].mxu1  ;;  %v12158_v24 = vpop.f32.mrb[65].mxu0 }
0x322b   :  { %v6787_v25 = vadd.f32 %v6785_v45, %v13897_v55 }
0x322c   :  { %v6781_v3 = vpop.f32.mrb[80].mxu1 }
0x322d   :  { %v6786_v57 = vmul.f32 0.35355338, %v6781_v3  ;;  %v12163_v43 = vpop.f32.mrb[81].mxu1  ;;  %v6789_v4 = vsel %vm265_vm2, %v6787_v25, -inf }
0x322e   :  { %6790 = vmax.xlane.f32.xlu0 %v6789_v4 }
0x322f   :  { %v6788_v6 = vadd.f32 %v6786_v57, %v13901_v2 }
0x3231   :  { %v6792_v38 = vsel %vm265_vm2, %v6788_v6, -inf }
0x3232   :  { %6793 = vmax.xlane.f32.xlu1 %v6792_v38 }
0x3243   :  { %6811 = vrot.lane.b32.xlu1 %v13864_v47, %s14622_s26 }
0x3247   :  { %6965 = vrot.lane.b32.xlu1 %v13978_v15, %s14616_s29 }
0x324b   :  { %6967 = vrot.lane.b32.xlu1 %v13980_v21, %s14616_s29 }
0x324f   :  { %6975 = vrot.lane.b32.xlu1 %v6625_v0, %s14614_s30 }
0x32bb   :  { %v6791_v55 = vpop.xlane.xlu0 %6790 }
0x32bc   :  { %v6795_v9 = vsub.f32 %v6787_v25, %v6791_v55 }
0x32be   :  { %v6797_v10 = vmul.f32 1.442695, %v6795_v9 }
0x32bf   :  { %v6794_v11 = vpop.xlane.xlu1 %6793 }
0x32c0   :  { %12879 = vpow2.f32 %v6797_v10  ;;  %v6796_v2 = vsub.f32 %v6788_v6, %v6794_v11 }
0x32c2   :  { %v6799_v19 = vmul.f32 1.442695, %v6796_v2 }
0x32c3   :  { %v6812_v23 = vpop.permute.xlu1 %6811 }
0x32c4   :  { %12881 = vpow2.f32 %v6799_v19  ;;  %12165 = vmatpush3.msra.mxu0 %v6812_v23 }
0x32c7   :  { %v6966_v13 = vpop.permute.xlu1 %6965 }
0x32c8   :  { %v6987_v63 = vsel %vm265_vm2, %v13938_v46, %v6966_v13 }
0x32ca   :  { %v12880_v27 = vpop.eup %12879 }
0x32cb   :  { %v6801_v47 = vsel %vm265_vm2, %v12880_v27, 0.0  ;;  %v6968_v40 = vpop.permute.xlu1 %6967 }
0x32cc   :  { %6802 = vadd.xlane.f32.xlu0 %v6801_v47  ;;  %v6988_v26 = vsel %vm265_vm2, %v13940_v42, %v6968_v40 }
0x32ce   :  { %v12882_v15 = vpop.eup %12881 }
0x32cf   :  { %v6804_v28 = vsel %vm265_vm2, %v12882_v15, 0.0  ;;  %v6976_v49 = vpop.permute.xlu1 %6975 }
0x32d0   :  { %6805 = vadd.xlane.f32.xlu0 %v6804_v28  ;;  %v6990_v18 = vsel %vm1623_vm4, %v6988_v26, %v6976_v49  ;;  %v11223_v49 = vld [vmem:[%s14109_s27] ss:$0 sm:$0xff] }
0x32e6   :  { %6887 = vrot.lane.b32.xlu0 %v13862_v59, %s14622_s26  ;;  %v6993_v59 = vld [vmem:[%s14039_s10] sm:$0xff]  ;;  %s13020_s26 = smov 29  }
0x32e7   :  { %v12583_v36 = vpack.c.bf16 %v6994_v35, %v6993_v59  ;;  %s14092_s7 = sld [smem:[%s14611_s0 + %s13020_s26]]   ;;  %s13024_s26 = smov 35  }
0x32e9   :  { %12584 = vmatprep.subr.bf16.mxu0 %v12583_v36 }
0x32ea   :  { %6973 = vrot.lane.b32.xlu0 %v6549_v60, %s14614_s30  ;;  %s14060_s30 = sld [smem:[%s14611_s0 + %s13017_s8]]   ;;  %s13018_s8 = smov 31  }
0x32eb   :  { %s14072_s29 = sld [smem:[%s14611_s0 + %s13018_s8]]  }
0x32ec   :  { %s14081_s8 = sld [smem:[%s14611_s0 + %s13019_s28]]   ;;  %s13023_s28 = smov 34  }
0x32ed   :  { %s14119_s23 = sld [smem:[%s14611_s0 + %s13023_s28]]   ;;  %s14643_s28 = smov 72  }
0x32f0   :  { %v11218_v46 = vld [vmem:[%s14060_s30] ss:$0 sm:$0xff] }
0x32f1   :  { %v7132_v38 = vld [vmem:[%s14072_s29 + $0x8] sm:$0xff]  ;;  %v7133_v55 = vld [vmem:[%s14072_s29 + $0x10] sm:$0xff]  ;;  %v7134_v10 = vld [vmem:[%s14072_s29 + $0x18] sm:$0xff] }
0x32f2   :  { %v12595_v11 = vpack.c.bf16 %v7134_v10, %v7133_v55  ;;  %v7225_v2 = vld [vmem:[%s14081_s8] sm:$0xff]  ;;  %v7226_v19 = vld [vmem:[%s14081_s8 + $0x8] sm:$0xff]  ;;  %v7227_v23 = vld [vmem:[%s14081_s8 + $0x10] sm:$0xff] }
0x32f3   :  { %v7228_v47 = vld [vmem:[%s14081_s8 + $0x18] sm:$0xff]  ;;  %v7229_v28 = vld [vmem:[%s14081_s8 + $0x20] sm:$0xff]  ;;  %v7231_v40 = vld [vmem:[%s14081_s8 + $0x30] sm:$0xff] }
0x3359   :  { %v6803_v21 = vpop.xlane.xlu0 %6802 }
0x335a   :  { %12883 = vrcp.f32 %v6803_v21  ;;  %v7230_v21 = vld [vmem:[%s14081_s8 + $0x28] sm:$0xff] }
0x335d   :  { %v6806_v30 = vpop.xlane.xlu0 %6805 }
0x335e   :  { %12885 = vrcp.f32 %v6806_v30  ;;  %v12607_v30 = vpack.c.bf16 %v7230_v21, %v7229_v28 }
0x3361   :  { %v6888_v31 = vpop.permute.xlu0 %6887 }
0x3362   :  { %12170 = vmatpush3.msra.mxu1 %v6888_v31 }
0x3364   :  { %v12884_v12 = vpop.eup %12883 }
0x3365   :  { %v6809_v29 = vmul.f32 %v12884_v12, %v12880_v27  ;;  %v6974_v14 = vpop.permute.xlu0 %6973  ;;  %v12599_v27 = vpack.c.bf16 %v7226_v19, %v7225_v2 }
0x3366   :  { %v6989_v50 = vsel %vm1623_vm4, %v6987_v63, %v6974_v14  ;;  %v7232_v14 = vld [vmem:[%s14081_s8 + $0x38] sm:$0xff] }
0x3367   :  { %12167 = vmatmul.mubr.msk.f32.vlgmr.msra.gmra.mrb[66].mxu0 %vm265_vm2, %v6809_v29  ;;  %v12611_v63 = vpack.c.bf16 %v7232_v14, %v7231_v40  ;;  %v14175_v40 = vld [vmem:[%s13618_s9] sm:$0xff] }
0x3368   :  { %v12886_v20 = vpop.eup %12885  ;;  %12586 = vmatpush3.bf16.msra.mxu0 %v12583_v36  ;;  %v11221_v36 = vld [vmem:[%s14092_s7] ss:$0 sm:$0xff] }
0x3369   :  { %v6810_v33 = vmul.f32 %v12886_v20, %v12882_v15  ;;  %12588 = vmatprep.subr.bf16.mxu0 %v12587_v41  ;;  %v12603_v15 = vpack.c.bf16 %v7228_v47, %v7227_v23 }
0x336b   :  { %12172 = vmatmul.mubr.msk.f32.vlgmr.msra.gmra.mrb[82].mxu1 %vm265_vm2, %v6810_v33 }
0x336c   :  { %12590 = vmatpush3.bf16.msra.mxu0 %v12587_v41 }
0x336d   :  { %12600 = vmatprep.subr.bf16.mxu0 %v12599_v27 }
0x343a   :  { %v6883_v16 = vpop.f32.mrb[66].mxu0 }
0x343b   :  { %6981 = vrot.lane.b32.xlu0 %v6883_v16, %s14636_s13  ;;  %v12168_v5 = vpop.f32.mrb[67].mxu0 }
0x343e   :  { %v6959_v44 = vpop.f32.mrb[82].mxu1 }
0x343f   :  { %6983 = vrot.lane.b32.xlu1 %v6959_v44, %s14636_s13  ;;  %v12173_v48 = vpop.f32.mrb[83].mxu1 }
0x34ad   :  { %v6982_v52 = vpop.permute.xlu0 %6981 }
0x34ae   :  { %v6991_v53 = vsel %vm1626_vm3, %v6989_v50, %v6982_v52 }
0x34af   :  { %12182 = vmatprep.mubr.msk.f32.mxu0 %vm180_vm0, %v6991_v53 }
0x34b1   :  { %v6984_v58 = vpop.permute.xlu1 %6983 }
0x34b2   :  { %v6992_v32 = vsel %vm1626_vm3, %v6990_v18, %v6984_v58 }
0x34b3   :  { %12183 = vmatmul.mubr.msk.f32.vlgmr.msra.gmra.mrb[68].mxu0 %vm180_vm0, %v6992_v32  ;;  %v11226_v32 = vld [vmem:[%s14119_s23] ss:$0 sm:$0xff] }
0x34b4   :  { %12602 = vmatpush3.bf16.msra.mxu0 %v12599_v27 }
0x34b5   :  { %12604 = vmatprep.subr.bf16.mxu0 %v12603_v15 }
0x34b8   :  { %12606 = vmatpush3.bf16.msra.mxu0 %v12603_v15 }
0x34b9   :  { %12608 = vmatprep.subr.bf16.mxu0 %v12607_v30 }
0x34bc   :  { %12610 = vmatpush3.bf16.msra.mxu0 %v12607_v30 }
0x34bd   :  { %12612 = vmatprep.subr.bf16.mxu0 %v12611_v63 }
0x34c0   :  { %12614 = vmatpush3.bf16.msra.mxu0 %v12611_v63 }
0x34c1   :  { %12236 = vmatprep.subr.mxu0 %v12978_v8 }
0x3586   :  { %v12184_v17 = vpop.f32.mrb[68].mxu0 }
0x3587   :  { %v7082_v51 = vadd.f32 %v12184_v17, %v11218_v46  ;;  %v7076_v61 = vpop.f32.mrb[69].mxu0 }
0x3588   :  { %v7077_v60 = vadd.f32 %v11218_v46, %v7076_v61 }
0x3589   :  { %v7086_v42 = vadd.f32 %v7082_v51, %v13850_v56 }
0x358a   :  { %v7085_v62 = vadd.f32 %v7077_v60, %v13846_v54  ;;  %v7131_v54 = vld [vmem:[%s14072_s29] sm:$0xff] }
0x358b   :  { %v7092_v0 = vsel %vm180_vm0, %v7086_v42, 0.0  ;;  %v12591_v9 = vpack.c.bf16 %v7132_v38, %v7131_v54  ;;  %v11232_v54 = vld [vmem:[%s13541_s3 + $0x28] sm:$0xff]  ;;  %v11233_v38 = vld [vmem:[%s13541_s3 + $0x30] sm:$0xff] }
0x358c   :  { %7093 = vadd.xlane.f32.xlu1 %v7092_v0  ;;  %v7089_v39 = vsel %vm180_vm0, %v7085_v62, 0.0 }
0x358d   :  { %7090 = vadd.xlane.f32.xlu0 %v7089_v39  ;;  %12592 = vmatprep.subr.bf16.mxu1 %v12591_v9 }
0x358e   :  { %12594 = vmatpush3.bf16.msra.mxu1 %v12591_v9  ;;  %v11234_v9 = vld [vmem:[%s13541_s3 + $0x38] sm:$0xff] }
0x358f   :  { %12596 = vmatprep.subr.bf16.mxu1 %v12595_v11  ;;  %v12619_v10 = vpack.c.bf16 %v11234_v9, %v11233_v38 }
0x3592   :  { %12598 = vmatpush3.bf16.msra.mxu1 %v12595_v11 }
0x3619   :  { %v7094_v45 = vpop.xlane.xlu1 %7093 }
0x361a   :  { %v7096_v1 = vmul.f32 0.03125, %v7094_v45  ;;  %v7091_v24 = vpop.xlane.xlu0 %7090 }
0x361b   :  { %v7095_v25 = vmul.f32 0.03125, %v7091_v24 }
0x361c   :  { %v7098_v3 = vsub.f32 %v7086_v42, %v7096_v1 }
0x361d   :  { %v7097_v57 = vsub.f32 %v7085_v62, %v7095_v25 }
0x361e   :  { %v7100_v6 = vmul.f32 %v7098_v3, %v7098_v3 }
0x361f   :  { %v7099_v43 = vmul.f32 %v7097_v57, %v7097_v57 }
0x3620   :  { %v7104_v56 = vsel %vm180_vm0, %v7100_v6, 0.0 }
0x3621   :  { %v7101_v4 = vsel %vm180_vm0, %v7099_v43, 0.0 }
0x3622   :  { %7102 = vadd.xlane.f32.xlu0 %v7101_v4 }
0x3626   :  { %7105 = vadd.xlane.f32.xlu0 %v7104_v56  ;;  %v11231_v56 = vld [vmem:[%s13541_s3 + $0x20] sm:$0xff]  ;;  %s14134_s3 = sld [smem:[%s14611_s0 + %s13024_s26]]   ;;  %s14642_s26 = smov 48  }
0x3627   :  { %v12615_v55 = vpack.c.bf16 %v11232_v54, %v11231_v56 }
0x3629   :  { %12616 = vmatprep.subr.bf16.mxu1 %v12615_v55 }
0x362c   :  { %v11229_v28 = vld [vmem:[%s14134_s3] ss:$0 sm:$0xff] }
0x36af   :  { %v7103_v31 = vpop.xlane.xlu0 %7102 }
0x36b0   :  { %v7107_v12 = vmul.f32 0.03125, %v7103_v31 }
0x36b2   :  { %v7109_v29 = vadd.f32 1e-05, %v7107_v12  ;;  %v11230_v12 = vld [vmem:[%s14139_s20] ss:$0 sm:$0xff] }
0x36b3   :  { %v7106_v20 = vpop.xlane.xlu0 %7105 }
0x36b4   :  { %12887 = vrsqrt.f32 %v7109_v29  ;;  %v7108_v33 = vmul.f32 0.03125, %v7106_v20 }
0x36b6   :  { %v7110_v59 = vadd.f32 1e-05, %v7108_v33 }
0x36b8   :  { %12889 = vrsqrt.f32 %v7110_v59 }
0x36be   :  { %v12888_v35 = vpop.eup %12887 }
0x36bf   :  { %v7113_v37 = vmul.f32 %v12888_v35, %v7097_v57  ;;  %v11236_v35 = vld [vmem:[%s13584_s18 + $0x1] ss:$0 sm:$0xff]  ;;  %s14640_s18 = smov 80  }
0x36c1   :  { %v7121_v41 = vmul.f32 %v11221_v36, %v7113_v37 }
0x36c2   :  { %v12890_v16 = vpop.eup %12889 }
0x36c3   :  { %v7114_v5 = vmul.f32 %v12890_v16, %v7098_v3  ;;  %v7129_v44 = vadd.f32 %v11222_v7, %v7121_v41 }
0x36c5   :  { %v7122_v48 = vmul.f32 %v11221_v36, %v7114_v5  ;;  %12193 = vmatprep.mubr.msk.f32.mxu1 %vm180_vm0, %v7129_v44 }
0x36c7   :  { %v7130_v13 = vadd.f32 %v11222_v7, %v7122_v48 }
0x36c9   :  { %12194 = vmatmul.mubr.msk.f32.vlgmr.msra.gmra.mrb[84].mxu1 %vm180_vm0, %v7130_v13 }
0x36ca   :  { %12618 = vmatpush3.bf16.msra.mxu1 %v12615_v55 }
0x36cb   :  { %12620 = vmatprep.subr.bf16.mxu1 %v12619_v10 }
0x36ce   :  { %12622 = vmatpush3.bf16.msra.mxu1 %v12619_v10 }
0x36cf   :  { %12226 = vmatprep.subr.mxu1 %v12978_v8 }
0x379c   :  { %v12195_v50 = vpop.f32.mrb[84].mxu1 }
0x379d   :  { %v7220_v52 = vadd.f32 %v12195_v50, %v11223_v49  ;;  %v7214_v53 = vpop.f32.mrb[85].mxu1 }
0x379e   :  { %v7215_v26 = vadd.f32 %v11223_v49, %v7214_v53  ;;  %v14180_v53 = vld [vmem:[%s13618_s9 + $0x8] sm:$0xff]  ;;  %s14641_s9 = smov 112  }
0x379f   :  { %v7224_v58 = vmax.f32 %v7220_v52, 0.0 }
0x37a0   :  { %v7223_v18 = vmax.f32 %v7215_v26, 0.0 }
0x37a2   :  { %12212 = vmatprep.mubr.msk.f32.mxu0 %vm1877_vm5, %v7223_v18 }
0x37a3   :  { %12213 = vmatmul.mubr.msk.f32.vlgmr.msra.gmra.mrb[70].mxu0 %vm1877_vm5, %v7224_v58 }
0x37a4   :  { %12238 = vmatprep.mubr.msk.f32.mxu0 %vm12980_vm1, %v12978_v8 }
0x3876   :  { %v12214_v46 = vpop.f32.mrb[70].mxu0 }
0x3877   :  { %v7318_v17 = vadd.f32 %v12214_v46, %v11226_v32  ;;  %v7312_v51 = vpop.f32.mrb[71].mxu0 }
0x3878   :  { %v7313_v61 = vadd.f32 %v11226_v32, %v7312_v51 }
0x3879   :  { %v7322_v60 = vadd.f32 %v7318_v17, %v7130_v13 }
0x387a   :  { %v7321_v42 = vadd.f32 %v7313_v61, %v7129_v44 }
0x387b   :  { %v7328_v62 = vsel %vm180_vm0, %v7322_v60, 0.0 }
0x387c   :  { %7329 = vadd.xlane.f32.xlu0 %v7328_v62  ;;  %v7325_v0 = vsel %vm180_vm0, %v7321_v42, 0.0 }
0x387d   :  { %7326 = vadd.xlane.f32.xlu1 %v7325_v0 }
0x3909   :  { %v7330_v39 = vpop.xlane.xlu0 %7329 }
0x390a   :  { %v7332_v45 = vmul.f32 0.03125, %v7330_v39  ;;  %v7327_v1 = vpop.xlane.xlu1 %7326 }
0x390b   :  { %v7331_v24 = vmul.f32 0.03125, %v7327_v1 }
0x390c   :  { %v7334_v25 = vsub.f32 %v7322_v60, %v7332_v45 }
0x390d   :  { %v7333_v3 = vsub.f32 %v7321_v42, %v7331_v24 }
0x390e   :  { %v7336_v57 = vmul.f32 %v7334_v25, %v7334_v25 }
0x390f   :  { %v7335_v43 = vmul.f32 %v7333_v3, %v7333_v3 }
0x3910   :  { %v7340_v4 = vsel %vm180_vm0, %v7336_v57, 0.0 }
0x3911   :  { %7341 = vadd.xlane.f32.xlu0 %v7340_v4  ;;  %v7337_v6 = vsel %vm180_vm0, %v7335_v43, 0.0 }
0x3912   :  { %7338 = vadd.xlane.f32.xlu1 %v7337_v6 }
0x399e   :  { %v7342_v11 = vpop.xlane.xlu0 %7341 }
0x399f   :  { %v7344_v2 = vmul.f32 0.03125, %v7342_v11  ;;  %v7339_v19 = vpop.xlane.xlu1 %7338 }
0x39a0   :  { %v7343_v23 = vmul.f32 0.03125, %v7339_v19 }
0x39a1   :  { %v7346_v27 = vadd.f32 1e-05, %v7344_v2 }
0x39a2   :  { %v7345_v47 = vadd.f32 1e-05, %v7343_v23 }
0x39a3   :  { %12891 = vrsqrt.f32 %v7346_v27 }
0x39a4   :  { %12893 = vrsqrt.f32 %v7345_v47 }
0x39ad   :  { %v12892_v15 = vpop.eup %12891 }
0x39ae   :  { %v12894_v21 = vpop.eup %12893  ;;  %v7350_v30 = vmul.f32 %v12892_v15, %v7334_v25 }
0x39af   :  { %v7349_v31 = vmul.f32 %v12894_v21, %v7333_v3 }
0x39b0   :  { %v7358_v29 = vmul.f32 %v11229_v28, %v7350_v30 }
0x39b1   :  { %v7357_v20 = vmul.f32 %v11229_v28, %v7349_v31 }
0x39b2   :  { %v14145_v59 = vadd.f32 %v11230_v12, %v7358_v29 }
0x39b3   :  { %v14143_v33 = vadd.f32 %v11230_v12, %v7357_v20 }
0x39b5   :  { %12223 = vmatprep.mubr.msk.f32.mxu1 %vm180_vm0, %v14143_v33 }
0x39b6   :  { %12224 = vmatmul.mubr.msk.f32.vlgmr.msra.gmra.mrb[86].mxu1 %vm180_vm0, %v14145_v59 }
0x39b7   :  { %12228 = vmatprep.mubr.msk.f32.mxu1 %vm12980_vm1, %v12978_v8 }
0x3a89   :  { %v12225_v36 = vpop.f32.mrb[86].mxu1 }
0x3a8a   :  { %v14154_v37 = vadd.f32 %v12225_v36, %v11236_v35  ;;  %v7452_v7 = vpop.f32.mrb[87].mxu1 }
0x3a8b   :  { %v14156_v41 = vadd.f32 %v11236_v35, %v7452_v7 }
0x3a8c   :  { %7539 = vrot.lane.b32.xlu0 %v14154_v37, %s12981_s14 }
0x3a8d   :  { %7462 = vrot.lane.b32.xlu1 %v14156_v41, %s12981_s14 }
0x3afe   :  { %v7540_v5 = vpop.permute.xlu0 %7539 }
0x3aff   :  { %v7463_v16 = vpop.permute.xlu1 %7462 }
0x3b00   :  { %12227 = vmatpush3.xpose.msk.msra.mxu1 %vm265_vm2, %v7463_v16 }
0x3b01   :  { %12231 = vmatprep.subr.mxu1 %v12978_v8 }
0x3b03   :  { %12229 = vmatmul.mubr.msk.f32.vlgmr.msra.gmra.mrb[88].mxu1 %vm265_vm2, %v14156_v41 }
0x3b04   :  { %12232 = vmatpush3.xpose.msk.msra.mxu1 %vm265_vm2, %v7540_v5  ;;  %12233 = vmatprep.mubr.msk.f32.mxu1 %vm12980_vm1, %v12978_v8 }
0x3b05   :  { %12241 = vmatprep.subr.mxu1 %v12978_v8 }
0x3b07   :  { %12234 = vmatmul.mubr.msk.f32.vlgmr.msra.gmra.mrb[90].mxu1 %vm265_vm2, %v14154_v37 }
0x3b08   :  { %12243 = vmatprep.mubr.msk.f32.mxu1 %vm12980_vm1, %v12978_v8 }
0x3bd6   :  { %v7534_v44 = vpop.f32.mrb[88].mxu1 }
0x3bd7   :  { %v7615_v48 = vmul.f32 0.35355338, %v7534_v44  ;;  %v12230_v13 = vpop.f32.mrb[89].mxu1 }
0x3bd9   :  { %v7617_v14 = vadd.f32 %v14175_v40, %v7615_v48 }
0x3bda   :  { %v7611_v63 = vpop.f32.mrb[90].mxu1 }
0x3bdb   :  { %v7616_v49 = vmul.f32 0.35355338, %v7611_v63  ;;  %v12235_v50 = vpop.f32.mrb[91].mxu1  ;;  %v7619_v52 = vsel %vm265_vm2, %v7617_v14, -inf }
0x3bdc   :  { %7620 = vmax.xlane.f32.xlu1 %v7619_v52 }
0x3bdd   :  { %v7618_v26 = vadd.f32 %v14180_v53, %v7616_v49 }
0x3bdf   :  { %v7622_v18 = vsel %vm265_vm2, %v7618_v26, -inf }
0x3be0   :  { %7623 = vmax.xlane.f32.xlu0 %v7622_v18 }
0x3bed   :  { %7641 = vrot.lane.b32.xlu1 %v14156_v41, %s12983_s19 }
0x3bf1   :  { %7795 = vrot.lane.b32.xlu1 %v14156_v41, %s14637_s21 }
0x3bf5   :  { %7873 = vrot.lane.b32.xlu1 %v14154_v37, %s14637_s21 }
0x3bf6   :  { %7717 = vrot.lane.b32.xlu0 %v14154_v37, %s12983_s19  ;;  %s14638_s19 = smov 120  }
0x3c69   :  { %v7621_v58 = vpop.xlane.xlu1 %7620 }
0x3c6a   :  { %v7625_v32 = vsub.f32 %v7617_v14, %v7621_v58 }
0x3c6c   :  { %v7627_v46 = vmul.f32 1.442695, %v7625_v32 }
0x3c6d   :  { %v7642_v17 = vpop.permute.xlu1 %7641  ;;  %v7624_v51 = vpop.xlane.xlu0 %7623 }
0x3c6e   :  { %12895 = vpow2.f32 %v7627_v46  ;;  %v7626_v61 = vsub.f32 %v7618_v26, %v7624_v51  ;;  %12237 = vmatpush3.msra.mxu0 %v7642_v17 }
0x3c6f   :  { %12246 = vmatprep.subr.mxu0 %v12978_v8 }
0x3c70   :  { %v7629_v60 = vmul.f32 1.442695, %v7626_v61 }
0x3c71   :  { %v7718_v42 = vpop.permute.xlu0 %7717  ;;  %v7796_v1 = vpop.permute.xlu1 %7795 }
0x3c72   :  { %12897 = vpow2.f32 %v7629_v60  ;;  %12242 = vmatpush3.msra.mxu1 %v7718_v42 }
0x3c73   :  { %12251 = vmatprep.subr.mxu1 %v12978_v8 }
0x3c75   :  { %v7874_v24 = vpop.permute.xlu1 %7873 }
0x3c78   :  { %v12896_v62 = vpop.eup %12895 }
0x3c79   :  { %v7631_v0 = vsel %vm265_vm2, %v12896_v62, 0.0 }
0x3c7a   :  { %7632 = vadd.xlane.f32.xlu1 %v7631_v0 }
0x3c7c   :  { %v12898_v39 = vpop.eup %12897 }
0x3c7d   :  { %v7634_v45 = vsel %vm265_vm2, %v12898_v39, 0.0 }
0x3c7e   :  { %7635 = vadd.xlane.f32.xlu0 %v7634_v45 }
0x3c8b   :  { %7871 = vrot.lane.b32.xlu1 %v14154_v37, %s14638_s19 }
0x3c94   :  { %7793 = vrot.lane.b32.xlu0 %v14156_v41, %s14638_s19 }
0x3d07   :  { %v7633_v25 = vpop.xlane.xlu1 %7632 }
0x3d08   :  { %12899 = vrcp.f32 %v7633_v25 }
0x3d0b   :  { %v7636_v3 = vpop.xlane.xlu0 %7635  ;;  %v7872_v54 = vpop.permute.xlu1 %7871 }
0x3d0c   :  { %12901 = vrcp.f32 %v7636_v3 }
0x3d0f   :  { %v7794_v56 = vpop.permute.xlu0 %7793 }
0x3d12   :  { %v12900_v57 = vpop.eup %12899 }
0x3d13   :  { %v7639_v43 = vmul.f32 %v12900_v57, %v12896_v62 }
0x3d15   :  { %12239 = vmatmul.mubr.msk.f32.vlgmr.msra.gmra.mrb[72].mxu0 %vm265_vm2, %v7639_v43 }
0x3d16   :  { %v12902_v4 = vpop.eup %12901  ;;  %12247 = vmatpush3.xpose.msk.msra.mxu0 %vm265_vm2, %v7796_v1  ;;  %12248 = vmatprep.mubr.msk.f32.mxu0 %vm12980_vm1, %v12978_v8 }
0x3d17   :  { %v7640_v6 = vmul.f32 %v12902_v4, %v12898_v39  ;;  %12256 = vmatprep.subr.mxu0 %v12978_v8 }
0x3d19   :  { %12244 = vmatmul.mubr.msk.f32.vlgmr.msra.gmra.mrb[92].mxu1 %vm265_vm2, %v7640_v6  ;;  %12249 = vmatmul.mubr.msk.f32.vlgmr.msra.gmra.mrb[74].mxu0 %vm265_vm2, %v7794_v56 }
0x3d1a   :  { %12252 = vmatpush3.xpose.msk.msra.mxu1 %vm265_vm2, %v7874_v24  ;;  %12253 = vmatprep.mubr.msk.f32.mxu1 %vm12980_vm1, %v12978_v8 }
0x3d1b   :  { %12261 = vmatprep.subr.mxu1 %v12978_v8  ;;  %12258 = vmatprep.mubr.msk.f32.mxu0 %vm12980_vm1, %v12978_v8 }
0x3d1d   :  { %12254 = vmatmul.mubr.msk.f32.vlgmr.msra.gmra.mrb[94].mxu1 %vm265_vm2, %v7872_v54 }
0x3d1e   :  { %12263 = vmatprep.mubr.msk.f32.mxu1 %vm12980_vm1, %v12978_v8 }
0x3de8   :  { %v14216_v38 = vpop.f32.mrb[72].mxu0 }
0x3de9   :  { %v12240_v55 = vpop.f32.mrb[73].mxu0 }
0x3dec   :  { %v14218_v9 = vpop.f32.mrb[92].mxu1  ;;  %v7867_v10 = vpop.f32.mrb[74].mxu0 }
0x3ded   :  { %v7949_v11 = vmul.f32 0.35355338, %v7867_v10  ;;  %v12245_v2 = vpop.f32.mrb[93].mxu1  ;;  %v12250_v19 = vpop.f32.mrb[75].mxu0 }
0x3def   :  { %v7951_v23 = vadd.f32 %v14175_v40, %v7949_v11 }
0x3df0   :  { %v7945_v27 = vpop.f32.mrb[94].mxu1 }
0x3df1   :  { %v7950_v47 = vmul.f32 0.35355338, %v7945_v27  ;;  %v12255_v15 = vpop.f32.mrb[95].mxu1  ;;  %v7953_v28 = vsel %vm265_vm2, %v7951_v23, -inf }
0x3df2   :  { %7954 = vmax.xlane.f32.xlu0 %v7953_v28 }
0x3df3   :  { %v7952_v21 = vadd.f32 %v14180_v53, %v7950_v47 }
0x3df5   :  { %v7956_v30 = vsel %vm265_vm2, %v7952_v21, -inf }
0x3df6   :  { %7957 = vmax.xlane.f32.xlu1 %v7956_v30 }
0x3e07   :  { %7975 = vrot.lane.b32.xlu1 %v14156_v41, %s14639_s22 }
0x3e08   :  { %8051 = vrot.lane.b32.xlu0 %v14154_v37, %s14639_s22  ;;  %s14646_s22 = smov 8  }
0x3e0b   :  { %8129 = vrot.lane.b32.xlu1 %v14156_v41, %s14640_s18 }
0x3e0f   :  { %8207 = vrot.lane.b32.xlu1 %v14154_v37, %s14640_s18 }
0x3e13   :  { %8205 = vrot.lane.b32.xlu1 %v14154_v37, %s14641_s9 }
0x3e7f   :  { %v7955_v31 = vpop.xlane.xlu0 %7954 }
0x3e80   :  { %v7959_v12 = vsub.f32 %v7951_v23, %v7955_v31 }
0x3e82   :  { %v7961_v29 = vmul.f32 1.442695, %v7959_v12 }
0x3e83   :  { %v8052_v20 = vpop.permute.xlu0 %8051  ;;  %v7958_v35 = vpop.xlane.xlu1 %7957 }
0x3e84   :  { %12903 = vpow2.f32 %v7961_v29  ;;  %v7960_v36 = vsub.f32 %v7952_v21, %v7958_v35  ;;  %12262 = vmatpush3.msra.mxu1 %v8052_v20 }
0x3e85   :  { %12271 = vmatprep.subr.mxu1 %v12978_v8 }
0x3e86   :  { %v7963_v7 = vmul.f32 1.442695, %v7960_v36 }
0x3e87   :  { %v7976_v16 = vpop.permute.xlu1 %7975 }
0x3e88   :  { %12905 = vpow2.f32 %v7963_v7  ;;  %12257 = vmatpush3.msra.mxu0 %v7976_v16 }
0x3e89   :  { %12266 = vmatprep.subr.mxu0 %v12978_v8 }
0x3e8b   :  { %v8130_v49 = vpop.permute.xlu1 %8129 }
0x3e8e   :  { %v12904_v5 = vpop.eup %12903 }
0x3e8f   :  { %v7965_v44 = vsel %vm265_vm2, %v12904_v5, 0.0  ;;  %v8208_v18 = vpop.permute.xlu1 %8207 }
0x3e90   :  { %7966 = vadd.xlane.f32.xlu0 %v7965_v44 }
0x3e92   :  { %v12906_v48 = vpop.eup %12905 }
0x3e93   :  { %v7968_v13 = vsel %vm265_vm2, %v12906_v48, 0.0  ;;  %v8206_v46 = vpop.permute.xlu1 %8205 }
0x3e94   :  { %7969 = vadd.xlane.f32.xlu0 %v7968_v13 }
0x3eaa   :  { %8127 = vrot.lane.b32.xlu0 %v14156_v41, %s14641_s9 }
0x3f1d   :  { %v7967_v14 = vpop.xlane.xlu0 %7966 }
0x3f1e   :  { %12907 = vrcp.f32 %v7967_v14 }
0x3f21   :  { %v7970_v63 = vpop.xlane.xlu0 %7969 }
0x3f22   :  { %12909 = vrcp.f32 %v7970_v63 }
0x3f25   :  { %v8128_v32 = vpop.permute.xlu0 %8127 }
0x3f28   :  { %v12908_v50 = vpop.eup %12907 }
0x3f29   :  { %v7973_v52 = vmul.f32 %v12908_v50, %v12904_v5 }
0x3f2b   :  { %12259 = vmatmul.mubr.msk.f32.vlgmr.msra.gmra.mrb[76].mxu0 %vm265_vm2, %v7973_v52 }
0x3f2c   :  { %v12910_v26 = vpop.eup %12909  ;;  %12267 = vmatpush3.xpose.msk.msra.mxu0 %vm265_vm2, %v8130_v49  ;;  %12268 = vmatprep.mubr.msk.f32.mxu0 %vm12980_vm1, %v12978_v8 }
0x3f2d   :  { %v7974_v58 = vmul.f32 %v12910_v26, %v12906_v48  ;;  %12276 = vmatprep.subr.mxu0 %v12978_v8 }
0x3f2f   :  { %12264 = vmatmul.mubr.msk.f32.vlgmr.msra.gmra.mrb[96].mxu1 %vm265_vm2, %v7974_v58  ;;  %12269 = vmatmul.mubr.msk.f32.vlgmr.msra.gmra.mrb[78].mxu0 %vm265_vm2, %v8128_v32 }
0x3f30   :  { %12272 = vmatpush3.xpose.msk.msra.mxu1 %vm265_vm2, %v8208_v18  ;;  %12273 = vmatprep.mubr.msk.f32.mxu1 %vm12980_vm1, %v12978_v8 }
0x3f31   :  { %12281 = vmatprep.subr.mxu1 %v12978_v8  ;;  %12278 = vmatprep.mubr.msk.f32.mxu0 %vm12980_vm1, %v12978_v8 }
0x3f33   :  { %12274 = vmatmul.mubr.msk.f32.vlgmr.msra.gmra.mrb[98].mxu1 %vm265_vm2, %v8206_v46 }
0x3f34   :  { %12283 = vmatprep.mubr.msk.f32.mxu1 %vm12980_vm1, %v12978_v8 }
0x3ffe   :  { %v14256_v17 = vpop.f32.mrb[76].mxu0 }
0x3fff   :  { %v12260_v51 = vpop.f32.mrb[77].mxu0 }
0x4002   :  { %v14258_v61 = vpop.f32.mrb[96].mxu1  ;;  %v8201_v60 = vpop.f32.mrb[78].mxu0 }
0x4003   :  { %v8283_v42 = vmul.f32 0.35355338, %v8201_v60  ;;  %v12265_v62 = vpop.f32.mrb[97].mxu1  ;;  %v12270_v0 = vpop.f32.mrb[79].mxu0 }
0x4005   :  { %v8285_v39 = vadd.f32 %v14175_v40, %v8283_v42 }
0x4006   :  { %v8279_v45 = vpop.f32.mrb[98].mxu1 }
0x4007   :  { %v8284_v1 = vmul.f32 0.35355338, %v8279_v45  ;;  %v12275_v24 = vpop.f32.mrb[99].mxu1  ;;  %v8287_v25 = vsel %vm265_vm2, %v8285_v39, -inf }
0x4008   :  { %8288 = vmax.xlane.f32.xlu0 %v8287_v25 }
0x4009   :  { %v8286_v3 = vadd.f32 %v14180_v53, %v8284_v1 }
0x400b   :  { %v8290_v57 = vsel %vm265_vm2, %v8286_v3, -inf }
0x400c   :  { %8291 = vmax.xlane.f32.xlu1 %v8290_v57 }
0x401d   :  { %8309 = vrot.lane.b32.xlu1 %v14156_v41, %s14642_s26 }
0x401e   :  { %8385 = vrot.lane.b32.xlu0 %v14154_v37, %s14642_s26  ;;  %s14647_s26 = smov 16  }
0x4021   :  { %8463 = vrot.lane.b32.xlu1 %v14156_v41, %s14643_s28 }
0x4025   :  { %8541 = vrot.lane.b32.xlu1 %v14154_v37, %s14643_s28 }
0x4029   :  { %8539 = vrot.lane.b32.xlu1 %v14154_v37, %s14644_s1 }
0x4095   :  { %v8289_v43 = vpop.xlane.xlu0 %8288 }
0x4096   :  { %v8293_v4 = vsub.f32 %v8285_v39, %v8289_v43  ;;  %v11265_v43 = vld [vmem:[%s13763_s12 + $0x30] sm:$0xff] }
0x4098   :  { %v8295_v6 = vmul.f32 1.442695, %v8293_v4  ;;  %v11266_v4 = vld [vmem:[%s13763_s12 + $0x38] sm:$0xff] }
0x4099   :  { %v8386_v56 = vpop.permute.xlu0 %8385  ;;  %v8292_v54 = vpop.xlane.xlu1 %8291 }
0x409a   :  { %12911 = vpow2.f32 %v8295_v6  ;;  %v8294_v55 = vsub.f32 %v8286_v3, %v8292_v54  ;;  %12282 = vmatpush3.msra.mxu1 %v8386_v56  ;;  %v11264_v3 = vld [vmem:[%s13763_s12 + $0x28] sm:$0xff]  ;;  %v12627_v6 = vpack.c.bf16 %v11266_v4, %v11265_v43  ;;  %v11283_v56 = vld [vmem:[%s13809_s4 + $0x20] sm:$0xff] }
0x409b   :  { %12291 = vmatprep.subr.mxu1 %v12978_v8  ;;  %v11284_v54 = vld [vmem:[%s13809_s4 + $0x28] sm:$0xff]  ;;  %v11274_v43 = vld [vmem:[%s13842_s15 + $0x1] ss:$0 sm:$0xff] }
0x409c   :  { %v8297_v10 = vmul.f32 1.442695, %v8294_v55  ;;  %v12639_v55 = vpack.c.bf16 %v11284_v54, %v11283_v56 }
0x409d   :  { %v8310_v11 = vpop.permute.xlu1 %8309 }
0x409e   :  { %12913 = vpow2.f32 %v8297_v10  ;;  %12277 = vmatpush3.msra.mxu0 %v8310_v11 }
0x409f   :  { %12286 = vmatprep.subr.mxu0 %v12978_v8 }
0x40a1   :  { %v8464_v28 = vpop.permute.xlu1 %8463 }
0x40a4   :  { %v12912_v2 = vpop.eup %12911 }
0x40a5   :  { %v8299_v19 = vsel %vm265_vm2, %v12912_v2, 0.0  ;;  %v8542_v12 = vpop.permute.xlu1 %8541 }
0x40a6   :  { %8300 = vadd.xlane.f32.xlu0 %v8299_v19 }
0x40a8   :  { %v12914_v23 = vpop.eup %12913 }
0x40a9   :  { %v8302_v27 = vsel %vm265_vm2, %v12914_v23, 0.0  ;;  %v8540_v35 = vpop.permute.xlu1 %8539 }
0x40aa   :  { %8303 = vadd.xlane.f32.xlu0 %v8302_v27 }
0x40c0   :  { %8461 = vrot.lane.b32.xlu0 %v14156_v41, %s14644_s1 }
0x4133   :  { %v8301_v47 = vpop.xlane.xlu0 %8300 }
0x4134   :  { %12915 = vrcp.f32 %v8301_v47 }
0x4137   :  { %v8304_v15 = vpop.xlane.xlu0 %8303 }
0x4138   :  { %12917 = vrcp.f32 %v8304_v15 }
0x413b   :  { %v8462_v20 = vpop.permute.xlu0 %8461 }
0x413e   :  { %v12916_v21 = vpop.eup %12915 }
0x413f   :  { %v8307_v30 = vmul.f32 %v12916_v21, %v12912_v2 }
0x4141   :  { %12279 = vmatmul.mubr.msk.f32.vlgmr.msra.gmra.mrb[80].mxu0 %vm265_vm2, %v8307_v30 }
0x4142   :  { %v12918_v31 = vpop.eup %12917  ;;  %12287 = vmatpush3.xpose.msk.msra.mxu0 %vm265_vm2, %v8464_v28  ;;  %12288 = vmatprep.mubr.msk.f32.mxu0 %vm12980_vm1, %v12978_v8 }
0x4143   :  { %v8308_v29 = vmul.f32 %v12918_v31, %v12914_v23  ;;  %12296 = vmatprep.subr.mxu0 %v12978_v8 }
0x4145   :  { %12284 = vmatmul.mubr.msk.f32.vlgmr.msra.gmra.mrb[100].mxu1 %vm265_vm2, %v8308_v29  ;;  %12289 = vmatmul.mubr.msk.f32.vlgmr.msra.gmra.mrb[82].mxu0 %vm265_vm2, %v8462_v20  ;;  %v11286_v29 = vld [vmem:[%s13809_s4 + $0x38] sm:$0xff] }
0x4146   :  { %12292 = vmatpush3.xpose.msk.msra.mxu1 %vm265_vm2, %v8542_v12  ;;  %12293 = vmatprep.mubr.msk.f32.mxu1 %vm12980_vm1, %v12978_v8  ;;  %v11285_v12 = vld [vmem:[%s13809_s4 + $0x30] sm:$0xff]  ;;  %s13027_s4 = smov 38  }
0x4147   :  { %12301 = vmatprep.subr.mxu1 %v12978_v8  ;;  %12298 = vmatprep.mubr.msk.f32.mxu0 %vm12980_vm1, %v12978_v8  ;;  %s11045_s15 = sld [smem:[%s14611_s0 + %s13027_s4]]  }
0x4149   :  { %12294 = vmatmul.mubr.msk.f32.vlgmr.msra.gmra.mrb[102].mxu1 %vm265_vm2, %v8540_v35 }
0x414a   :  { %12303 = vmatprep.mubr.msk.f32.mxu1 %vm12980_vm1, %v12978_v8 }
0x4214   :  { %v8381_v36 = vpop.f32.mrb[80].mxu0 }
0x4215   :  { %v12280_v7 = vpop.f32.mrb[81].mxu0 }
0x4216   :  { %v12643_v7 = vpack.c.bf16 %v11286_v29, %v11285_v12 }
0x4218   :  { %v8457_v16 = vpop.f32.mrb[100].mxu1  ;;  %v8535_v5 = vpop.f32.mrb[82].mxu0 }
0x4219   :  { %v8617_v44 = vmul.f32 0.35355338, %v8535_v5  ;;  %v12285_v48 = vpop.f32.mrb[101].mxu1  ;;  %v12290_v13 = vpop.f32.mrb[83].mxu0 }
0x421b   :  { %v8619_v14 = vadd.f32 %v14175_v40, %v8617_v44 }
0x421c   :  { %v8613_v63 = vpop.f32.mrb[102].mxu1 }
0x421d   :  { %v8618_v49 = vmul.f32 0.35355338, %v8613_v63  ;;  %v12295_v50 = vpop.f32.mrb[103].mxu1  ;;  %v8621_v52 = vsel %vm265_vm2, %v8619_v14, -inf  ;;  %v11288_v63 = vld [vmem:[%s13859_s17 + $0x1] ss:$0 sm:$0xff] }
0x421e   :  { %8622 = vmax.xlane.f32.xlu0 %v8621_v52  ;;  %s13028_s17 = smov 39  }
0x421f   :  { %v8620_v26 = vadd.f32 %v14180_v53, %v8618_v49 }
0x4221   :  { %v8624_v18 = vsel %vm265_vm2, %v8620_v26, -inf }
0x4222   :  { %8625 = vmax.xlane.f32.xlu1 %v8624_v18 }
0x4233   :  { %8643 = vrot.lane.b32.xlu1 %v14156_v41, %s14645_s25 }
0x4237   :  { %8797 = vrot.lane.b32.xlu1 %v14256_v17, %s14646_s22 }
0x423b   :  { %8799 = vrot.lane.b32.xlu1 %v14258_v61, %s14646_s22 }
0x423f   :  { %8807 = vrot.lane.b32.xlu1 %v8457_v16, %s14647_s26 }
0x42ab   :  { %v8623_v40 = vpop.xlane.xlu0 %8622 }
0x42ac   :  { %v8627_v58 = vsub.f32 %v8619_v14, %v8623_v40 }
0x42ae   :  { %v8629_v32 = vmul.f32 1.442695, %v8627_v58 }
0x42af   :  { %v8626_v46 = vpop.xlane.xlu1 %8625 }
0x42b0   :  { %12919 = vpow2.f32 %v8629_v32  ;;  %v8628_v53 = vsub.f32 %v8620_v26, %v8626_v46 }
0x42b2   :  { %v8631_v51 = vmul.f32 1.442695, %v8628_v53 }
0x42b3   :  { %v8644_v60 = vpop.permute.xlu1 %8643 }
0x42b4   :  { %12921 = vpow2.f32 %v8631_v51  ;;  %12297 = vmatpush3.msra.mxu0 %v8644_v60  ;;  %v11275_v60 = vld [vmem:[%s13825_s11 + $0x20] sm:$0xff] }
0x42b7   :  { %v8798_v23 = vpop.permute.xlu1 %8797 }
0x42b8   :  { %v8819_v15 = vsel %vm265_vm2, %v14216_v38, %v8798_v23 }
0x42ba   :  { %v12920_v42 = vpop.eup %12919 }
0x42bb   :  { %v8633_v41 = vsel %vm265_vm2, %v12920_v42, 0.0  ;;  %v8800_v27 = vpop.permute.xlu1 %8799 }
0x42bc   :  { %8634 = vadd.xlane.f32.xlu0 %v8633_v41  ;;  %v8820_v20 = vsel %vm265_vm2, %v14218_v9, %v8800_v27  ;;  %v11268_v9 = vld [vmem:[%s13792_s16 + $0x1] ss:$0 sm:$0xff]  ;;  %s14419_s16 = sld [smem:[%s14611_s0 + %s14645_s25]]  }
0x42be   :  { %v12922_v17 = vpop.eup %12921 }
0x42bf   :  { %v8636_v62 = vsel %vm265_vm2, %v12922_v17, 0.0  ;;  %v8808_v28 = vpop.permute.xlu1 %8807 }
0x42c0   :  { %8637 = vadd.xlane.f32.xlu0 %v8636_v62  ;;  %v8822_v35 = vsel %vm1623_vm4, %v8820_v20, %v8808_v28  ;;  %v11278_v62 = vld [vmem:[%s13825_s11 + $0x38] sm:$0xff] }
0x42d6   :  { %8719 = vrot.lane.b32.xlu0 %v14154_v37, %s14645_s25  ;;  %v11263_v37 = vld [vmem:[%s13763_s12 + $0x20] sm:$0xff] }
0x42d7   :  { %v12623_v57 = vpack.c.bf16 %v11264_v3, %v11263_v37  ;;  %v11273_v3 = vld [vmem:[%s13837_s6 + $0x1] ss:$0 sm:$0xff] }
0x42d9   :  { %12624 = vmatprep.subr.bf16.mxu0 %v12623_v57 }
0x42da   :  { %8805 = vrot.lane.b32.xlu0 %v8381_v36, %s14647_s26 }
0x4349   :  { %v8635_v61 = vpop.xlane.xlu0 %8634 }
0x434a   :  { %12923 = vrcp.f32 %v8635_v61 }
0x434d   :  { %v8638_v0 = vpop.xlane.xlu0 %8637 }
0x434e   :  { %12925 = vrcp.f32 %v8638_v0 }
0x4351   :  { %v8720_v39 = vpop.permute.xlu0 %8719 }
0x4352   :  { %12302 = vmatpush3.msra.mxu1 %v8720_v39 }
0x4354   :  { %v12924_v45 = vpop.eup %12923 }
0x4355   :  { %v8641_v1 = vmul.f32 %v12924_v45, %v12920_v42  ;;  %v8806_v47 = vpop.permute.xlu0 %8805  ;;  %v11276_v42 = vld [vmem:[%s13825_s11 + $0x28] sm:$0xff] }
0x4356   :  { %v8821_v21 = vsel %vm1623_vm4, %v8819_v15, %v8806_v47  ;;  %v12631_v41 = vpack.c.bf16 %v11276_v42, %v11275_v60 }
0x4357   :  { %12299 = vmatmul.mubr.msk.f32.vlgmr.msra.gmra.mrb[84].mxu0 %vm265_vm2, %v8641_v1 }
0x4358   :  { %v12926_v24 = vpop.eup %12925  ;;  %12626 = vmatpush3.bf16.msra.mxu0 %v12623_v57  ;;  %12632 = vmatprep.subr.bf16.mxu1 %v12631_v41 }
0x4359   :  { %v8642_v25 = vmul.f32 %v12926_v24, %v12922_v17  ;;  %12628 = vmatprep.subr.bf16.mxu0 %v12627_v6  ;;  %v11277_v17 = vld [vmem:[%s13825_s11 + $0x30] sm:$0xff] }
0x435a   :  { %v12635_v61 = vpack.c.bf16 %v11278_v62, %v11277_v17 }
0x435b   :  { %12304 = vmatmul.mubr.msk.f32.vlgmr.msra.gmra.mrb[104].mxu1 %vm265_vm2, %v8642_v25 }
0x435c   :  { %12630 = vmatpush3.bf16.msra.mxu0 %v12627_v6  ;;  %12634 = vmatpush3.bf16.msra.mxu1 %v12631_v41 }
0x435d   :  { %12640 = vmatprep.subr.bf16.mxu0 %v12639_v55  ;;  %12636 = vmatprep.subr.bf16.mxu1 %v12635_v61 }
0x4360   :  { %12638 = vmatpush3.bf16.msra.mxu1 %v12635_v61 }
0x4361   :  { %12339 = vmatprep.subr.mxu1 %v12978_v8 }
0x442a   :  { %v8715_v10 = vpop.f32.mrb[84].mxu0 }
0x442b   :  { %8813 = vrot.lane.b32.xlu0 %v8715_v10, %s14636_s13  ;;  %v12300_v11 = vpop.f32.mrb[85].mxu0 }
0x442e   :  { %v8791_v2 = vpop.f32.mrb[104].mxu1 }
0x442f   :  { %8815 = vrot.lane.b32.xlu1 %v8791_v2, %s14636_s13  ;;  %v12305_v19 = vpop.f32.mrb[105].mxu1  ;;  %v11280_v2 = vld [vmem:[%s13873_s5 + $0x1] ss:$0 sm:$0xff] }
0x449d   :  { %v8814_v30 = vpop.permute.xlu0 %8813 }
0x449e   :  { %v8823_v31 = vsel %vm1626_vm3, %v8821_v21, %v8814_v30  ;;  %v14390_v30 = vld [vmem:[%s13894_s2] sm:$0xff] }
0x449f   :  { %12314 = vmatprep.mubr.msk.f32.mxu0 %vm180_vm0, %v8823_v31 }
0x44a1   :  { %v8816_v36 = vpop.permute.xlu1 %8815 }
0x44a2   :  { %v8824_v38 = vsel %vm1626_vm3, %v8822_v35, %v8816_v36  ;;  %v14395_v36 = vld [vmem:[%s13894_s2 + $0x8] sm:$0xff] }
0x44a3   :  { %12315 = vmatmul.mubr.msk.f32.vlgmr.msra.gmra.mrb[86].mxu0 %vm180_vm0, %v8824_v38 }
0x44a4   :  { %12642 = vmatpush3.bf16.msra.mxu0 %v12639_v55  ;;  %12336 = vmatprep.mubr.msk.f32.mxu0 %vm180_vm0, %v13801_v22 }
0x44a5   :  { %12644 = vmatprep.subr.bf16.mxu0 %v12643_v7 }
0x44a8   :  { %12646 = vmatpush3.bf16.msra.mxu0 %v12643_v7 }
0x44a9   :  { %12349 = vmatprep.subr.mxu0 %v12978_v8 }
0x44ab   :  { %12337 = vmatmul.mubr.msk.f32.vlgmr.msra.gmra.mrb[88].mxu0 %vm180_vm0, %v13818_v34 }
0x44ac   :  { %12351 = vmatprep.mubr.msk.f32.mxu0 %vm12980_vm1, %v12978_v8 }
0x4576   :  { %v12316_v16 = vpop.f32.mrb[86].mxu0 }
0x4577   :  { %v8916_v5 = vadd.f32 %v12316_v16, %v11268_v9  ;;  %v8910_v44 = vpop.f32.mrb[87].mxu0 }
0x4578   :  { %v8911_v48 = vadd.f32 %v11268_v9, %v8910_v44 }
0x4579   :  { %v8920_v13 = vadd.f32 %v8916_v5, %v14145_v59 }
0x457a   :  { %v8919_v14 = vadd.f32 %v8911_v48, %v14143_v33 }
0x457b   :  { %v8928_v22 = vsel %vm180_vm0, %v8920_v13, 0.0 }
0x457c   :  { %8929 = vadd.xlane.f32.xlu1 %v8928_v22  ;;  %v8925_v49 = vsel %vm180_vm0, %v8919_v14, 0.0 }
0x457d   :  { %8926 = vadd.xlane.f32.xlu0 %v8925_v49 }
0x457e   :  { %v12338_v34 = vpop.f32.mrb[88].mxu0 }
0x457f   :  { %v14347_v50 = vadd.f32 %v12338_v34, %v11288_v63  ;;  %v9140_v52 = vpop.f32.mrb[89].mxu0 }
0x4580   :  { %v14364_v11 = vadd.f32 %v11288_v63, %v9140_v52 }
0x4609   :  { %v8930_v26 = vpop.xlane.xlu1 %8929 }
0x460a   :  { %v8932_v18 = vmul.f32 0.03125, %v8930_v26  ;;  %v8927_v40 = vpop.xlane.xlu0 %8926 }
0x460b   :  { %v8931_v59 = vmul.f32 0.03125, %v8927_v40 }
0x460c   :  { %v8934_v33 = vsub.f32 %v8920_v13, %v8932_v18 }
0x460d   :  { %v8933_v58 = vsub.f32 %v8919_v14, %v8931_v59 }
0x460e   :  { %v8936_v53 = vmul.f32 %v8934_v33, %v8934_v33 }
0x460f   :  { %v8935_v32 = vmul.f32 %v8933_v58, %v8933_v58 }
0x4610   :  { %v8940_v51 = vsel %vm180_vm0, %v8936_v53, 0.0 }
0x4611   :  { %v8937_v46 = vsel %vm180_vm0, %v8935_v32, 0.0 }
0x4612   :  { %8938 = vadd.xlane.f32.xlu0 %v8937_v46 }
0x4616   :  { %8941 = vadd.xlane.f32.xlu0 %v8940_v51 }
0x469f   :  { %v8939_v0 = vpop.xlane.xlu0 %8938 }
0x46a0   :  { %v8943_v39 = vmul.f32 0.03125, %v8939_v0 }
0x46a2   :  { %v8945_v45 = vadd.f32 1e-05, %v8943_v39 }
0x46a3   :  { %v8942_v1 = vpop.xlane.xlu0 %8941 }
0x46a4   :  { %12927 = vrsqrt.f32 %v8945_v45  ;;  %v8944_v24 = vmul.f32 0.03125, %v8942_v1 }
0x46a6   :  { %v8946_v25 = vadd.f32 1e-05, %v8944_v24 }
0x46a8   :  { %12929 = vrsqrt.f32 %v8946_v25 }
0x46ae   :  { %v12928_v37 = vpop.eup %12927 }
0x46af   :  { %v8949_v57 = vmul.f32 %v12928_v37, %v8933_v58 }
0x46b1   :  { %v8957_v4 = vmul.f32 %v11273_v3, %v8949_v57 }
0x46b2   :  { %v12930_v6 = vpop.eup %12929 }
0x46b3   :  { %v8950_v56 = vmul.f32 %v12930_v6, %v8934_v33  ;;  %v14358_v54 = vadd.f32 %v11274_v43, %v8957_v4 }
0x46b5   :  { %v8958_v55 = vmul.f32 %v11273_v3, %v8950_v56  ;;  %12325 = vmatprep.mubr.msk.f32.mxu1 %vm180_vm0, %v14358_v54 }
0x46b7   :  { %v14362_v10 = vadd.f32 %v11274_v43, %v8958_v55 }
0x46b9   :  { %12326 = vmatmul.mubr.msk.f32.vlgmr.msra.gmra.mrb[106].mxu1 %vm180_vm0, %v14362_v10 }
0x46ba   :  { %12340 = vmatpush3.xpose.msk.msra.mxu1 %vm265_vm2, %v14364_v11  ;;  %12341 = vmatprep.mubr.msk.f32.mxu1 %vm12980_vm1, %v12978_v8 }
0x46bb   :  { %12344 = vmatprep.subr.mxu1 %v12978_v8 }
0x478c   :  { %v12327_v19 = vpop.f32.mrb[106].mxu1 }
0x478d   :  { %v9052_v23 = vpop.f32.mrb[107].mxu1  ;;  %v14382_v47 = vadd.f32 %v12327_v19, %v11280_v2 }
0x478e   :  { %v14374_v27 = vadd.f32 %v11280_v2, %v9052_v23 }
0x4790   :  { %12342 = vmatmul.mubr.msk.f32.vlgmr.msra.gmra.mrb[108].mxu1 %vm265_vm2, %v14374_v27 }
0x4791   :  { %12345 = vmatpush3.xpose.msk.msra.mxu1 %vm265_vm2, %v14347_v50  ;;  %12346 = vmatprep.mubr.msk.f32.mxu1 %vm12980_vm1, %v12978_v8 }
0x4792   :  { %12354 = vmatprep.subr.mxu1 %v12978_v8 }
0x4794   :  { %12347 = vmatmul.mubr.msk.f32.vlgmr.msra.gmra.mrb[110].mxu1 %vm265_vm2, %v14382_v47 }
0x4795   :  { %12356 = vmatprep.mubr.msk.f32.mxu1 %vm12980_vm1, %v12978_v8 }
0x4863   :  { %v9221_v15 = vpop.f32.mrb[108].mxu1 }
0x4864   :  { %v9301_v28 = vmul.f32 0.35355338, %v9221_v15  ;;  %v12343_v21 = vpop.f32.mrb[109].mxu1 }
0x4866   :  { %v9303_v31 = vadd.f32 %v14390_v30, %v9301_v28 }
0x4867   :  { %v9297_v12 = vpop.f32.mrb[110].mxu1 }
0x4868   :  { %v9302_v29 = vmul.f32 0.35355338, %v9297_v12  ;;  %v12348_v20 = vpop.f32.mrb[111].mxu1  ;;  %v9305_v35 = vsel %vm265_vm2, %v9303_v31, -inf }
0x4869   :  { %9306 = vmax.xlane.f32.xlu1 %v9305_v35 }
0x486a   :  { %v9304_v7 = vadd.f32 %v14395_v36, %v9302_v29 }
0x486c   :  { %v9308_v38 = vsel %vm265_vm2, %v9304_v7, -inf }
0x486d   :  { %9309 = vmax.xlane.f32.xlu0 %v9308_v38 }
0x487a   :  { %9329 = vrot.lane.b32.xlu1 %v14364_v11, %s12981_s14 }
0x487e   :  { %9483 = vrot.lane.b32.xlu1 %v14364_v11, %s14638_s19 }
0x4882   :  { %9561 = vrot.lane.b32.xlu1 %v14347_v50, %s14638_s19 }
0x4883   :  { %9405 = vrot.lane.b32.xlu0 %v14347_v50, %s12981_s14 }
0x48f6   :  { %v9307_v9 = vpop.xlane.xlu1 %9306 }
0x48f7   :  { %v9311_v16 = vsub.f32 %v9303_v31, %v9307_v9 }
0x48f9   :  { %v9313_v5 = vmul.f32 1.442695, %v9311_v16 }
0x48fa   :  { %v9330_v44 = vpop.permute.xlu1 %9329  ;;  %v9310_v48 = vpop.xlane.xlu0 %9309 }
0x48fb   :  { %12931 = vpow2.f32 %v9313_v5  ;;  %v9312_v13 = vsub.f32 %v9304_v7, %v9310_v48  ;;  %12350 = vmatpush3.msra.mxu0 %v9330_v44 }
0x48fc   :  { %12359 = vmatprep.subr.mxu0 %v12978_v8 }
0x48fd   :  { %v9315_v14 = vmul.f32 1.442695, %v9312_v13 }
0x48fe   :  { %v9406_v22 = vpop.permute.xlu0 %9405  ;;  %v9484_v26 = vpop.permute.xlu1 %9483 }
0x48ff   :  { %12933 = vpow2.f32 %v9315_v14  ;;  %12355 = vmatpush3.msra.mxu1 %v9406_v22 }
0x4900   :  { %12364 = vmatprep.subr.mxu1 %v12978_v8 }
0x4902   :  { %v9562_v18 = vpop.permute.xlu1 %9561 }
0x4905   :  { %v12932_v63 = vpop.eup %12931 }
0x4906   :  { %v9317_v49 = vsel %vm265_vm2, %v12932_v63, 0.0 }
0x4907   :  { %9318 = vadd.xlane.f32.xlu1 %v9317_v49 }
0x4909   :  { %v12934_v34 = vpop.eup %12933 }
0x490a   :  { %v9320_v52 = vsel %vm265_vm2, %v12934_v34, 0.0 }
0x490b   :  { %9321 = vadd.xlane.f32.xlu0 %v9320_v52 }
0x4918   :  { %9559 = vrot.lane.b32.xlu1 %v14382_v47, %s14638_s19 }
0x4921   :  { %9481 = vrot.lane.b32.xlu0 %v14374_v27, %s14638_s19 }
0x4994   :  { %v9319_v40 = vpop.xlane.xlu1 %9318 }
0x4995   :  { %12935 = vrcp.f32 %v9319_v40 }
0x4998   :  { %v9322_v59 = vpop.xlane.xlu0 %9321  ;;  %v9560_v51 = vpop.permute.xlu1 %9559 }
0x4999   :  { %12937 = vrcp.f32 %v9322_v59 }
0x499c   :  { %v9482_v53 = vpop.permute.xlu0 %9481 }
0x499f   :  { %v12936_v33 = vpop.eup %12935 }
0x49a0   :  { %v9325_v58 = vmul.f32 %v12936_v33, %v12932_v63 }
0x49a2   :  { %9327 = vst.msk [vmem:[%s14419_s16] sm:$0xff] %vm265_vm2, %v9325_v58  ;;  %12352 = vmatmul.mubr.msk.f32.vlgmr.msra.gmra.mrb[90].mxu0 %vm265_vm2, %v9325_v58 }
0x49a3   :  { %v12938_v32 = vpop.eup %12937  ;;  %12360 = vmatpush3.xpose.msk.msra.mxu0 %vm265_vm2, %v9484_v26  ;;  %12361 = vmatprep.mubr.msk.f32.mxu0 %vm12980_vm1, %v12978_v8 }
0x49a4   :  { %v9326_v46 = vmul.f32 %v12938_v32, %v12934_v34  ;;  %12369 = vmatprep.subr.mxu0 %v12978_v8 }
0x49a6   :  { %9328 = vst.msk [vmem:[%s14419_s16 + $0x8] sm:$0xff] %vm265_vm2, %v9326_v46  ;;  %12357 = vmatmul.mubr.msk.f32.vlgmr.msra.gmra.mrb[112].mxu1 %vm265_vm2, %v9326_v46  ;;  %12362 = vmatmul.mubr.msk.f32.vlgmr.msra.gmra.mrb[92].mxu0 %vm265_vm2, %v9482_v53 }
0x49a7   :  { %12365 = vmatpush3.xpose.msk.msra.mxu1 %vm265_vm2, %v9562_v18  ;;  %12366 = vmatprep.mubr.msk.f32.mxu1 %vm12980_vm1, %v12978_v8 }
0x49a8   :  { %12374 = vmatprep.subr.mxu1 %v12978_v8  ;;  %12371 = vmatprep.mubr.msk.f32.mxu0 %vm12980_vm1, %v12978_v8 }
0x49aa   :  { %12367 = vmatmul.mubr.msk.f32.vlgmr.msra.gmra.mrb[114].mxu1 %vm265_vm2, %v9560_v51 }
0x49ab   :  { %12376 = vmatprep.mubr.msk.f32.mxu1 %vm12980_vm1, %v12978_v8 }
0x4a75   :  { %v14441_v60 = vpop.f32.mrb[90].mxu0 }
0x4a76   :  { %v12353_v42 = vpop.f32.mrb[91].mxu0 }
0x4a79   :  { %v14443_v41 = vpop.f32.mrb[112].mxu1  ;;  %v9555_v17 = vpop.f32.mrb[92].mxu0 }
0x4a7a   :  { %v9637_v62 = vmul.f32 0.35355338, %v9555_v17  ;;  %v12358_v61 = vpop.f32.mrb[113].mxu1  ;;  %v12363_v0 = vpop.f32.mrb[93].mxu0 }
0x4a7c   :  { %v9639_v39 = vadd.f32 %v14390_v30, %v9637_v62 }
0x4a7d   :  { %v9633_v45 = vpop.f32.mrb[114].mxu1 }
0x4a7e   :  { %v9638_v1 = vmul.f32 0.35355338, %v9633_v45  ;;  %v12368_v24 = vpop.f32.mrb[115].mxu1  ;;  %v9641_v25 = vsel %vm265_vm2, %v9639_v39, -inf }
0x4a7f   :  { %9642 = vmax.xlane.f32.xlu0 %v9641_v25 }
0x4a80   :  { %v9640_v37 = vadd.f32 %v14395_v36, %v9638_v1 }
0x4a82   :  { %v9644_v3 = vsel %vm265_vm2, %v9640_v37, -inf }
0x4a83   :  { %9645 = vmax.xlane.f32.xlu1 %v9644_v3 }
0x4a94   :  { %9666 = vrot.lane.b32.xlu1 %v14364_v11, %s14637_s21 }
0x4a95   :  { %9742 = vrot.lane.b32.xlu0 %v14347_v50, %s14637_s21 }
0x4a98   :  { %9820 = vrot.lane.b32.xlu1 %v14364_v11, %s14641_s9 }
0x4a9c   :  { %9898 = vrot.lane.b32.xlu1 %v14347_v50, %s14641_s9 }
0x4aa0   :  { %9896 = vrot.lane.b32.xlu1 %v14382_v47, %s14641_s9 }
0x4b0c   :  { %v9643_v57 = vpop.xlane.xlu0 %9642 }
0x4b0d   :  { %v9647_v43 = vsub.f32 %v9639_v39, %v9643_v57 }
0x4b0f   :  { %v9649_v4 = vmul.f32 1.442695, %v9647_v43 }
0x4b10   :  { %v9743_v6 = vpop.permute.xlu0 %9742  ;;  %v9646_v56 = vpop.xlane.xlu1 %9645 }
0x4b11   :  { %12939 = vpow2.f32 %v9649_v4  ;;  %v9648_v55 = vsub.f32 %v9640_v37, %v9646_v56  ;;  %12375 = vmatpush3.msra.mxu1 %v9743_v6 }
0x4b12   :  { %12384 = vmatprep.subr.mxu1 %v12978_v8 }
0x4b13   :  { %v9651_v2 = vmul.f32 1.442695, %v9648_v55 }
0x4b14   :  { %v9667_v19 = vpop.permute.xlu1 %9666 }
0x4b15   :  { %12941 = vpow2.f32 %v9651_v2  ;;  %12370 = vmatpush3.msra.mxu0 %v9667_v19 }
0x4b16   :  { %12379 = vmatprep.subr.mxu0 %v12978_v8 }
0x4b18   :  { %v9821_v29 = vpop.permute.xlu1 %9820 }
0x4b1b   :  { %v12940_v23 = vpop.eup %12939 }
0x4b1c   :  { %v9653_v15 = vsel %vm265_vm2, %v12940_v23, 0.0  ;;  %v9899_v38 = vpop.permute.xlu1 %9898 }
0x4b1d   :  { %9654 = vadd.xlane.f32.xlu0 %v9653_v15 }
0x4b1f   :  { %v12942_v28 = vpop.eup %12941 }
0x4b20   :  { %v9656_v21 = vsel %vm265_vm2, %v12942_v28, 0.0  ;;  %v9897_v5 = vpop.permute.xlu1 %9896 }
0x4b21   :  { %9657 = vadd.xlane.f32.xlu0 %v9656_v21 }
0x4b37   :  { %9818 = vrot.lane.b32.xlu0 %v14374_v27, %s14641_s9 }
0x4baa   :  { %v9655_v31 = vpop.xlane.xlu0 %9654 }
0x4bab   :  { %12943 = vrcp.f32 %v9655_v31 }
0x4bae   :  { %v9658_v12 = vpop.xlane.xlu0 %9657 }
0x4baf   :  { %12945 = vrcp.f32 %v9658_v12 }
0x4bb2   :  { %v9819_v16 = vpop.permute.xlu0 %9818 }
0x4bb5   :  { %v12944_v20 = vpop.eup %12943 }
0x4bb6   :  { %v9661_v35 = vmul.f32 %v12944_v20, %v12940_v23 }
0x4bb8   :  { %11301 = vst.msk [vmem:[%s14419_s16 + $0x10] sm:$0xff] %vm265_vm2, %v9661_v35  ;;  %12372 = vmatmul.mubr.msk.f32.vlgmr.msra.gmra.mrb[94].mxu0 %vm265_vm2, %v9661_v35 }
0x4bb9   :  { %v12946_v7 = vpop.eup %12945  ;;  %12380 = vmatpush3.xpose.msk.msra.mxu0 %vm265_vm2, %v9821_v29  ;;  %12381 = vmatprep.mubr.msk.f32.mxu0 %vm12980_vm1, %v12978_v8 }
0x4bba   :  { %v9662_v9 = vmul.f32 %v12946_v7, %v12942_v28  ;;  %12389 = vmatprep.subr.mxu0 %v12978_v8 }
0x4bbc   :  { %11302 = vst.msk [vmem:[%s14419_s16 + $0x18] sm:$0xff] %vm265_vm2, %v9662_v9  ;;  %12377 = vmatmul.mubr.msk.f32.vlgmr.msra.gmra.mrb[116].mxu1 %vm265_vm2, %v9662_v9  ;;  %12382 = vmatmul.mubr.msk.f32.vlgmr.msra.gmra.mrb[96].mxu0 %vm265_vm2, %v9819_v16 }
0x4bbd   :  { %12385 = vmatpush3.xpose.msk.msra.mxu1 %vm265_vm2, %v9899_v38  ;;  %12386 = vmatprep.mubr.msk.f32.mxu1 %vm12980_vm1, %v12978_v8 }
0x4bbe   :  { %12394 = vmatprep.subr.mxu1 %v12978_v8  ;;  %12391 = vmatprep.mubr.msk.f32.mxu0 %vm12980_vm1, %v12978_v8 }
0x4bc0   :  { %12387 = vmatmul.mubr.msk.f32.vlgmr.msra.gmra.mrb[118].mxu1 %vm265_vm2, %v9897_v5 }
0x4bc1   :  { %12396 = vmatprep.mubr.msk.f32.mxu1 %vm12980_vm1, %v12978_v8 }
0x4c8b   :  { %v14485_v44 = vpop.f32.mrb[94].mxu0 }
0x4c8c   :  { %v12373_v48 = vpop.f32.mrb[95].mxu0 }
0x4c8f   :  { %v14487_v13 = vpop.f32.mrb[116].mxu1  ;;  %v9892_v14 = vpop.f32.mrb[96].mxu0 }
0x4c90   :  { %v9974_v22 = vmul.f32 0.35355338, %v9892_v14  ;;  %v12378_v63 = vpop.f32.mrb[117].mxu1  ;;  %v12383_v49 = vpop.f32.mrb[97].mxu0 }
0x4c92   :  { %v9976_v34 = vadd.f32 %v14390_v30, %v9974_v22 }
0x4c93   :  { %v9970_v52 = vpop.f32.mrb[118].mxu1 }
0x4c94   :  { %v9975_v26 = vmul.f32 0.35355338, %v9970_v52  ;;  %v12388_v18 = vpop.f32.mrb[119].mxu1  ;;  %v9978_v40 = vsel %vm265_vm2, %v9976_v34, -inf  ;;  %v11321_v52 = vld [vmem:[%s14039_s10 + $0x20] sm:$0xff] }
0x4c95   :  { %9979 = vmax.xlane.f32.xlu0 %v9978_v40  ;;  %v11323_v40 = vld [vmem:[%s14039_s10 + $0x30] sm:$0xff] }
0x4c96   :  { %v9977_v59 = vadd.f32 %v14395_v36, %v9975_v26  ;;  %v11322_v26 = vld [vmem:[%s14039_s10 + $0x28] sm:$0xff] }
0x4c97   :  { %v12647_v18 = vpack.c.bf16 %v11322_v26, %v11321_v52  ;;  %v11332_v26 = vld [vmem:[%s14097_s24 + $0x1] ss:$0 sm:$0xff]  ;;  %s13026_s24 = smov 37  }
0x4c98   :  { %v9981_v33 = vsel %vm265_vm2, %v9977_v59, -inf }
0x4c99   :  { %9982 = vmax.xlane.f32.xlu1 %v9981_v33 }
0x4caa   :  { %10003 = vrot.lane.b32.xlu1 %v14364_v11, %s14640_s18 }
0x4cab   :  { %10079 = vrot.lane.b32.xlu0 %v14347_v50, %s14640_s18 }
0x4cae   :  { %10157 = vrot.lane.b32.xlu1 %v14364_v11, %s14644_s1 }
0x4cb2   :  { %10235 = vrot.lane.b32.xlu1 %v14347_v50, %s14644_s1 }
0x4cb6   :  { %10233 = vrot.lane.b32.xlu1 %v14382_v47, %s14644_s1 }
0x4d22   :  { %v9980_v58 = vpop.xlane.xlu0 %9979 }
0x4d23   :  { %v9984_v32 = vsub.f32 %v9976_v34, %v9980_v58 }
0x4d25   :  { %v9986_v46 = vmul.f32 1.442695, %v9984_v32 }
0x4d26   :  { %v10080_v53 = vpop.permute.xlu0 %10079  ;;  %v9983_v51 = vpop.xlane.xlu1 %9982 }
0x4d27   :  { %12947 = vpow2.f32 %v9986_v46  ;;  %v9985_v42 = vsub.f32 %v9977_v59, %v9983_v51  ;;  %12395 = vmatpush3.msra.mxu1 %v10080_v53  ;;  %v11324_v59 = vld [vmem:[%s14039_s10 + $0x38] sm:$0xff]  ;;  %s11046_s10 = sld [smem:[%s14611_s0 + %s13028_s17]]  }
0x4d28   :  { %12404 = vmatprep.subr.mxu1 %v12978_v8  ;;  %v12651_v33 = vpack.c.bf16 %v11324_v59, %v11323_v40 }
0x4d29   :  { %v9988_v17 = vmul.f32 1.442695, %v9985_v42 }
0x4d2a   :  { %v10004_v62 = vpop.permute.xlu1 %10003 }
0x4d2b   :  { %12949 = vpow2.f32 %v9988_v17  ;;  %12390 = vmatpush3.msra.mxu0 %v10004_v62 }
0x4d2c   :  { %12399 = vmatprep.subr.mxu0 %v12978_v8 }
0x4d2e   :  { %v10158_v24 = vpop.permute.xlu1 %10157 }
0x4d31   :  { %v12948_v61 = vpop.eup %12947 }
0x4d32   :  { %v9990_v47 = vsel %vm265_vm2, %v12948_v61, 0.0  ;;  %v10236_v57 = vpop.permute.xlu1 %10235 }
0x4d33   :  { %9991 = vadd.xlane.f32.xlu0 %v9990_v47 }
0x4d35   :  { %v12950_v0 = vpop.eup %12949 }
0x4d36   :  { %v9993_v39 = vsel %vm265_vm2, %v12950_v0, 0.0  ;;  %v10234_v4 = vpop.permute.xlu1 %10233 }
0x4d37   :  { %9994 = vadd.xlane.f32.xlu0 %v9993_v39 }
0x4d4d   :  { %10155 = vrot.lane.b32.xlu0 %v14374_v27, %s14644_s1 }
0x4dc0   :  { %v9992_v45 = vpop.xlane.xlu0 %9991 }
0x4dc1   :  { %12951 = vrcp.f32 %v9992_v45 }
0x4dc4   :  { %v9995_v1 = vpop.xlane.xlu0 %9994 }
0x4dc5   :  { %12953 = vrcp.f32 %v9995_v1 }
0x4dc8   :  { %v10156_v43 = vpop.permute.xlu0 %10155 }
0x4dcb   :  { %v12952_v25 = vpop.eup %12951 }
0x4dcc   :  { %v9998_v37 = vmul.f32 %v12952_v25, %v12948_v61 }
0x4dce   :  { %11309 = vst.msk [vmem:[%s14419_s16 + $0x20] sm:$0xff] %vm265_vm2, %v9998_v37  ;;  %12392 = vmatmul.mubr.msk.f32.vlgmr.msra.gmra.mrb[98].mxu0 %vm265_vm2, %v9998_v37  ;;  %v11326_v37 = vld [vmem:[%s14060_s30 + $0x1] ss:$0 sm:$0xff] }
0x4dcf   :  { %v12954_v3 = vpop.eup %12953  ;;  %12400 = vmatpush3.xpose.msk.msra.mxu0 %vm265_vm2, %v10158_v24  ;;  %12401 = vmatprep.mubr.msk.f32.mxu0 %vm12980_vm1, %v12978_v8 }
0x4dd0   :  { %v9999_v27 = vmul.f32 %v12954_v3, %v12950_v0  ;;  %12409 = vmatprep.subr.mxu0 %v12978_v8 }
0x4dd2   :  { %11310 = vst.msk [vmem:[%s14419_s16 + $0x28] sm:$0xff] %vm265_vm2, %v9999_v27  ;;  %12397 = vmatmul.mubr.msk.f32.vlgmr.msra.gmra.mrb[120].mxu1 %vm265_vm2, %v9999_v27  ;;  %12402 = vmatmul.mubr.msk.f32.vlgmr.msra.gmra.mrb[100].mxu0 %vm265_vm2, %v10156_v43 }
0x4dd3   :  { %12405 = vmatpush3.xpose.msk.msra.mxu1 %vm265_vm2, %v10236_v57  ;;  %12406 = vmatprep.mubr.msk.f32.mxu1 %vm12980_vm1, %v12978_v8 }
0x4dd4   :  { %12414 = vmatprep.subr.mxu1 %v12978_v8  ;;  %12411 = vmatprep.mubr.msk.f32.mxu0 %vm12980_vm1, %v12978_v8 }
0x4dd6   :  { %12407 = vmatmul.mubr.msk.f32.vlgmr.msra.gmra.mrb[122].mxu1 %vm265_vm2, %v10234_v4 }
0x4dd7   :  { %12416 = vmatprep.mubr.msk.f32.mxu1 %vm12980_vm1, %v12978_v8 }
0x4ea1   :  { %v10075_v6 = vpop.f32.mrb[98].mxu0 }
0x4ea2   :  { %v12393_v56 = vpop.f32.mrb[99].mxu0 }
0x4ea5   :  { %v10151_v55 = vpop.f32.mrb[120].mxu1  ;;  %v10229_v2 = vpop.f32.mrb[100].mxu0 }
0x4ea6   :  { %v10311_v19 = vmul.f32 0.35355338, %v10229_v2  ;;  %v12398_v23 = vpop.f32.mrb[121].mxu1  ;;  %v12403_v15 = vpop.f32.mrb[101].mxu0 }
0x4ea8   :  { %v10313_v28 = vadd.f32 %v14390_v30, %v10311_v19 }
0x4ea9   :  { %v10307_v21 = vpop.f32.mrb[122].mxu1 }
0x4eaa   :  { %v10312_v31 = vmul.f32 0.35355338, %v10307_v21  ;;  %v12408_v12 = vpop.f32.mrb[123].mxu1  ;;  %v10315_v29 = vsel %vm265_vm2, %v10313_v28, -inf }
0x4eab   :  { %10316 = vmax.xlane.f32.xlu0 %v10315_v29  ;;  %v11334_v12 = vld [vmem:[%s14072_s29 + $0x28] sm:$0xff] }
0x4eac   :  { %v10314_v20 = vadd.f32 %v14395_v36, %v10312_v31  ;;  %v11333_v31 = vld [vmem:[%s14072_s29 + $0x20] sm:$0xff] }
0x4ead   :  { %v12655_v29 = vpack.c.bf16 %v11334_v12, %v11333_v31 }
0x4eae   :  { %v10318_v35 = vsel %vm265_vm2, %v10314_v20, -inf }
0x4eaf   :  { %10319 = vmax.xlane.f32.xlu1 %v10318_v35  ;;  %v11336_v35 = vld [vmem:[%s14072_s29 + $0x38] sm:$0xff] }
0x4ec0   :  { %10340 = vrot.lane.b32.xlu1 %v14364_v11, %s14643_s28 }
0x4ec4   :  { %10494 = vrot.lane.b32.xlu1 %v14485_v44, %s14646_s22 }
0x4ec8   :  { %10496 = vrot.lane.b32.xlu1 %v14487_v13, %s14646_s22 }
0x4ecc   :  { %10504 = vrot.lane.b32.xlu1 %v10151_v55, %s14647_s26 }
0x4f38   :  { %v10317_v8 = vpop.xlane.xlu0 %10316 }
0x4f39   :  { %v10321_v30 = vsub.f32 %v10313_v28, %v10317_v8 }
0x4f3b   :  { %v10323_v7 = vmul.f32 1.442695, %v10321_v30  ;;  %v11341_v30 = vld [vmem:[%s14081_s8 + $0x40] sm:$0xff] }
0x4f3c   :  { %v10320_v38 = vpop.xlane.xlu1 %10319 }
0x4f3d   :  { %12955 = vpow2.f32 %v10323_v7  ;;  %v10322_v36 = vsub.f32 %v10314_v20, %v10320_v38  ;;  %v11335_v20 = vld [vmem:[%s14072_s29 + $0x30] sm:$0xff]  ;;  %v11342_v7 = vld [vmem:[%s14081_s8 + $0x48] sm:$0xff] }
0x4f3e   :  { %v12659_v8 = vpack.c.bf16 %v11336_v35, %v11335_v20  ;;  %v11343_v38 = vld [vmem:[%s14081_s8 + $0x50] sm:$0xff] }
0x4f3f   :  { %v10325_v9 = vmul.f32 1.442695, %v10322_v36  ;;  %v12663_v36 = vpack.c.bf16 %v11342_v7, %v11341_v30 }
0x4f40   :  { %v10341_v16 = vpop.permute.xlu1 %10340 }
0x4f41   :  { %12957 = vpow2.f32 %v10325_v9  ;;  %12410 = vmatpush3.msra.mxu0 %v10341_v16  ;;  %v11344_v9 = vld [vmem:[%s14081_s8 + $0x58] sm:$0xff] }
0x4f42   :  { %12648 = vmatprep.subr.bf16.mxu0 %v12647_v18  ;;  %v12667_v16 = vpack.c.bf16 %v11344_v9, %v11343_v38 }
0x4f44   :  { %v10495_v51 = vpop.permute.xlu1 %10494 }
0x4f45   :  { %v10516_v62 = vsel %vm265_vm2, %v14441_v60, %v10495_v51 }
0x4f47   :  { %v12956_v5 = vpop.eup %12955 }
0x4f48   :  { %v10327_v11 = vsel %vm265_vm2, %v12956_v5, 0.0  ;;  %v10497_v42 = vpop.permute.xlu1 %10496 }
0x4f49   :  { %10328 = vadd.xlane.f32.xlu0 %v10327_v11  ;;  %v10517_v45 = vsel %vm265_vm2, %v14443_v41, %v10497_v42  ;;  %v11346_v11 = vld [vmem:[%s14081_s8 + $0x68] sm:$0xff]  ;;  %v11338_v42 = vld [vmem:[%s14109_s27 + $0x1] ss:$0 sm:$0xff] }
0x4f4b   :  { %v12958_v44 = vpop.eup %12957 }
0x4f4c   :  { %v10330_v48 = vsel %vm265_vm2, %v12958_v44, 0.0  ;;  %v10505_v61 = vpop.permute.xlu1 %10504 }
0x4f4d   :  { %10331 = vadd.xlane.f32.xlu0 %v10330_v48  ;;  %v10519_v1 = vsel %vm1623_vm4, %v10517_v45, %v10505_v61  ;;  %v11350_v45 = vld [vmem:[%s14119_s23 + $0x1] ss:$0 sm:$0xff] }
0x4f63   :  { %10416 = vrot.lane.b32.xlu0 %v14347_v50, %s14643_s28 }
0x4f67   :  { %10502 = vrot.lane.b32.xlu0 %v10075_v6, %s14647_s26 }
0x4fd6   :  { %v10329_v13 = vpop.xlane.xlu0 %10328 }
0x4fd7   :  { %12959 = vrcp.f32 %v10329_v13 }
0x4fda   :  { %v10332_v14 = vpop.xlane.xlu0 %10331 }
0x4fdb   :  { %12961 = vrcp.f32 %v10332_v14 }
0x4fde   :  { %v10417_v22 = vpop.permute.xlu0 %10416 }
0x4fdf   :  { %12415 = vmatpush3.msra.mxu1 %v10417_v22 }
0x4fe0   :  { %12656 = vmatprep.subr.bf16.mxu1 %v12655_v29 }
0x4fe1   :  { %v12960_v63 = vpop.eup %12959 }
0x4fe2   :  { %v10335_v49 = vmul.f32 %v12960_v63, %v12956_v5  ;;  %v10503_v17 = vpop.permute.xlu0 %10502  ;;  %v11345_v5 = vld [vmem:[%s14081_s8 + $0x60] sm:$0xff] }
0x4fe3   :  { %v10518_v47 = vsel %vm1623_vm4, %v10516_v62, %v10503_v17 }
0x4fe4   :  { %11317 = vst.msk [vmem:[%s14419_s16 + $0x30] sm:$0xff] %vm265_vm2, %v10335_v49  ;;  %12412 = vmatmul.mubr.msk.f32.vlgmr.msra.gmra.mrb[102].mxu0 %vm265_vm2, %v10335_v49 }
0x4fe5   :  { %v12962_v34 = vpop.eup %12961  ;;  %12650 = vmatpush3.bf16.msra.mxu0 %v12647_v18 }
0x4fe6   :  { %v10336_v50 = vmul.f32 %v12962_v34, %v12958_v44  ;;  %12652 = vmatprep.subr.bf16.mxu0 %v12651_v33  ;;  %v12671_v44 = vpack.c.bf16 %v11346_v11, %v11345_v5  ;;  %v11356_v11 = vld [vmem:[%s14139_s20 + $0x1] ss:$0 sm:$0xff] }
0x4fe8   :  { %11318 = vst.msk [vmem:[%s14419_s16 + $0x38] sm:$0xff] %vm265_vm2, %v10336_v50  ;;  %12417 = vmatmul.mubr.msk.f32.vlgmr.msra.gmra.mrb[124].mxu1 %vm265_vm2, %v10336_v50  ;;  %v11331_v50 = vld [vmem:[%s14092_s7 + $0x1] ss:$0 sm:$0xff] }
0x4fe9   :  { %12654 = vmatpush3.bf16.msra.mxu0 %v12651_v33  ;;  %12658 = vmatpush3.bf16.msra.mxu1 %v12655_v29 }
0x4fea   :  { %12660 = vmatprep.subr.bf16.mxu1 %v12659_v8  ;;  %12664 = vmatprep.subr.bf16.mxu0 %v12663_v36 }
0x4fed   :  { %12662 = vmatpush3.bf16.msra.mxu1 %v12659_v8 }
0x50b7   :  { %v10412_v58 = vpop.f32.mrb[102].mxu0 }
0x50b8   :  { %10510 = vrot.lane.b32.xlu0 %v10412_v58, %s14636_s13  ;;  %v12413_v32 = vpop.f32.mrb[103].mxu0 }
0x50bb   :  { %v10488_v46 = vpop.f32.mrb[124].mxu1 }
0x50bc   :  { %10512 = vrot.lane.b32.xlu1 %v10488_v46, %s14636_s13  ;;  %v12418_v53 = vpop.f32.mrb[125].mxu1  ;;  %v11347_v46 = vld [vmem:[%s14081_s8 + $0x70] sm:$0xff]  ;;  %s11044_s13 = sld [smem:[%s14611_s0 + %s13026_s24]]  }
0x50bd   :  { %v11348_v53 = vld [vmem:[%s14081_s8 + $0x78] sm:$0xff] }
0x50be   :  { %v12675_v51 = vpack.c.bf16 %v11348_v53, %v11347_v46 }
0x50c2   :  { %v10909_v31 = vld [vmem:[%s11044_s13 + $0x18] sm:$0xff] }
0x512a   :  { %v10511_v0 = vpop.permute.xlu0 %10510 }
0x512b   :  { %v10520_v39 = vsel %vm1626_vm3, %v10518_v47, %v10511_v0 }
0x512c   :  { %12427 = vmatprep.mubr.msk.f32.mxu0 %vm180_vm0, %v10520_v39 }
0x512e   :  { %v10513_v24 = vpop.permute.xlu1 %10512 }
0x512f   :  { %v10521_v25 = vsel %vm1626_vm3, %v10519_v1, %v10513_v24 }
0x5130   :  { %12428 = vmatmul.mubr.msk.f32.vlgmr.msra.gmra.mrb[104].mxu0 %vm180_vm0, %v10521_v25 }
0x5131   :  { %12666 = vmatpush3.bf16.msra.mxu0 %v12663_v36  ;;  %v11355_v36 = vld [vmem:[%s14134_s3 + $0x1] ss:$0 sm:$0xff] }
0x5132   :  { %12668 = vmatprep.subr.bf16.mxu0 %v12667_v16 }
0x5135   :  { %12670 = vmatpush3.bf16.msra.mxu0 %v12667_v16 }
0x5136   :  { %12672 = vmatprep.subr.bf16.mxu0 %v12671_v44 }
0x5139   :  { %12674 = vmatpush3.bf16.msra.mxu0 %v12671_v44 }
0x513a   :  { %12676 = vmatprep.subr.bf16.mxu0 %v12675_v51 }
0x513d   :  { %12678 = vmatpush3.bf16.msra.mxu0 %v12675_v51 }
0x5203   :  { %v12429_v60 = vpop.f32.mrb[104].mxu0 }
0x5204   :  { %v10613_v3 = vadd.f32 %v12429_v60, %v11326_v37  ;;  %v10607_v57 = vpop.f32.mrb[105].mxu0 }
0x5205   :  { %v10608_v27 = vadd.f32 %v11326_v37, %v10607_v57 }
0x5206   :  { %v10617_v43 = vadd.f32 %v10613_v3, %v14362_v10 }
0x5207   :  { %v10616_v4 = vadd.f32 %v10608_v27, %v14358_v54 }
0x5208   :  { %v10625_v6 = vsel %vm180_vm0, %v10617_v43, 0.0 }
0x5209   :  { %10626 = vadd.xlane.f32.xlu1 %v10625_v6  ;;  %v10622_v41 = vsel %vm180_vm0, %v10616_v4, 0.0 }
0x520a   :  { %10623 = vadd.xlane.f32.xlu0 %v10622_v41 }
0x5296   :  { %v10627_v56 = vpop.xlane.xlu1 %10626 }
0x5297   :  { %v10629_v55 = vmul.f32 0.03125, %v10627_v56  ;;  %v10624_v2 = vpop.xlane.xlu0 %10623 }
0x5298   :  { %v10628_v19 = vmul.f32 0.03125, %v10624_v2 }
0x5299   :  { %v10631_v23 = vsub.f32 %v10617_v43, %v10629_v55 }
0x529a   :  { %v10630_v15 = vsub.f32 %v10616_v4, %v10628_v19 }
0x529b   :  { %v10633_v10 = vmul.f32 %v10631_v23, %v10631_v23 }
0x529c   :  { %v10632_v28 = vmul.f32 %v10630_v15, %v10630_v15 }
0x529d   :  { %v10637_v21 = vsel %vm180_vm0, %v10633_v10, 0.0 }
0x529e   :  { %v10634_v54 = vsel %vm180_vm0, %v10632_v28, 0.0  ;;  %v10906_v28 = vld [vmem:[%s11044_s13] sm:$0xff] }
0x529f   :  { %10635 = vadd.xlane.f32.xlu0 %v10634_v54  ;;  %v10907_v54 = vld [vmem:[%s11044_s13 + $0x8] sm:$0xff] }
0x52a0   :  { %v12679_v10 = vpack.c.bf16 %v10907_v54, %v10906_v28 }
0x52a2   :  { %12680 = vmatprep.subr.bf16.mxu1 %v12679_v10 }
0x52a3   :  { %10638 = vadd.xlane.f32.xlu0 %v10637_v21  ;;  %v10908_v21 = vld [vmem:[%s11044_s13 + $0x10] sm:$0xff] }
0x52a4   :  { %v12683_v12 = vpack.c.bf16 %v10909_v31, %v10908_v21 }
0x532c   :  { %v10636_v48 = vpop.xlane.xlu0 %10635 }
0x532d   :  { %v10640_v13 = vmul.f32 0.03125, %v10636_v48 }
0x532f   :  { %v10642_v14 = vadd.f32 1e-05, %v10640_v13 }
0x5330   :  { %v10639_v22 = vpop.xlane.xlu0 %10638 }
0x5331   :  { %12963 = vrsqrt.f32 %v10642_v14  ;;  %v10641_v63 = vmul.f32 0.03125, %v10639_v22  ;;  %v11357_v22 = vld [vmem:[%s11045_s15] ss:$0 sm:$0xff] }
0x5333   :  { %v10643_v49 = vadd.f32 1e-05, %v10641_v63 }
0x5335   :  { %12965 = vrsqrt.f32 %v10643_v49 }
0x533b   :  { %v12964_v34 = vpop.eup %12963 }
0x533c   :  { %v10646_v52 = vmul.f32 %v12964_v34, %v10630_v15 }
0x533e   :  { %v10654_v18 = vmul.f32 %v11331_v50, %v10646_v52 }
0x533f   :  { %v12966_v40 = vpop.eup %12965 }
0x5340   :  { %v10647_v59 = vmul.f32 %v12966_v40, %v10631_v23  ;;  %v10662_v33 = vadd.f32 %v11332_v26, %v10654_v18 }
0x5342   :  { %v10655_v58 = vmul.f32 %v11331_v50, %v10647_v59  ;;  %12438 = vmatprep.mubr.msk.f32.mxu1 %vm180_vm0, %v10662_v33 }
0x5344   :  { %v10663_v32 = vadd.f32 %v11332_v26, %v10655_v58 }
0x5346   :  { %12439 = vmatmul.mubr.msk.f32.vlgmr.msra.gmra.mrb[126].mxu1 %vm180_vm0, %v10663_v32 }
0x5347   :  { %12682 = vmatpush3.bf16.msra.mxu1 %v12679_v10 }
0x5348   :  { %12684 = vmatprep.subr.bf16.mxu1 %v12683_v12 }
0x534b   :  { %12686 = vmatpush3.bf16.msra.mxu1 %v12683_v12 }
0x5419   :  { %v12440_v17 = vpop.f32.mrb[126].mxu1 }
0x541a   :  { %v10755_v62 = vadd.f32 %v12440_v17, %v11338_v42  ;;  %v10749_v61 = vpop.f32.mrb[127].mxu1 }
0x541b   :  { %v10750_v47 = vadd.f32 %v11338_v42, %v10749_v61 }
0x541c   :  { %v10759_v39 = vmax.f32 %v10755_v62, 0.0 }
0x541d   :  { %v10758_v0 = vmax.f32 %v10750_v47, 0.0 }
0x541f   :  { %12457 = vmatprep.mubr.msk.f32.mxu0 %vm1877_vm5, %v10758_v0 }
0x5420   :  { %12458 = vmatmul.mubr.msk.f32.vlgmr.msra.gmra.mrb[106].mxu0 %vm1877_vm5, %v10759_v39 }
0x54f3   :  { %v12459_v1 = vpop.f32.mrb[106].mxu0 }
0x54f4   :  { %v10855_v24 = vadd.f32 %v12459_v1, %v11350_v45  ;;  %v10849_v25 = vpop.f32.mrb[107].mxu0 }
0x54f5   :  { %v10850_v37 = vadd.f32 %v11350_v45, %v10849_v25 }
0x54f6   :  { %v10859_v60 = vadd.f32 %v10855_v24, %v10663_v32 }
0x54f7   :  { %v10858_v3 = vadd.f32 %v10850_v37, %v10662_v33 }
0x54f8   :  { %v10867_v57 = vsel %vm180_vm0, %v10859_v60, 0.0 }
0x54f9   :  { %10868 = vadd.xlane.f32.xlu0 %v10867_v57  ;;  %v10864_v27 = vsel %vm180_vm0, %v10858_v3, 0.0 }
0x54fa   :  { %10865 = vadd.xlane.f32.xlu1 %v10864_v27 }
0x5586   :  { %v10869_v43 = vpop.xlane.xlu0 %10868 }
0x5587   :  { %v10871_v4 = vmul.f32 0.03125, %v10869_v43  ;;  %v10866_v6 = vpop.xlane.xlu1 %10865 }
0x5588   :  { %v10870_v41 = vmul.f32 0.03125, %v10866_v6 }
0x5589   :  { %v10873_v56 = vsub.f32 %v10859_v60, %v10871_v4 }
0x558a   :  { %v10872_v55 = vsub.f32 %v10858_v3, %v10870_v41 }
0x558b   :  { %v10875_v2 = vmul.f32 %v10873_v56, %v10873_v56 }
0x558c   :  { %v10874_v19 = vmul.f32 %v10872_v55, %v10872_v55 }
0x558d   :  { %v10879_v23 = vsel %vm180_vm0, %v10875_v2, 0.0 }
0x558e   :  { %10880 = vadd.xlane.f32.xlu0 %v10879_v23  ;;  %v10876_v15 = vsel %vm180_vm0, %v10874_v19, 0.0 }
0x558f   :  { %10877 = vadd.xlane.f32.xlu1 %v10876_v15 }
0x561b   :  { %v10881_v29 = vpop.xlane.xlu0 %10880 }
0x561c   :  { %v10883_v20 = vmul.f32 0.03125, %v10881_v29  ;;  %v10878_v35 = vpop.xlane.xlu1 %10877 }
0x561d   :  { %v10882_v8 = vmul.f32 0.03125, %v10878_v35 }
0x561e   :  { %v10885_v30 = vadd.f32 1e-05, %v10883_v20 }
0x561f   :  { %v10884_v7 = vadd.f32 1e-05, %v10882_v8 }
0x5620   :  { %12967 = vrsqrt.f32 %v10885_v30 }
0x5621   :  { %12969 = vrsqrt.f32 %v10884_v7 }
0x562a   :  { %v12968_v38 = vpop.eup %12967 }
0x562b   :  { %v12970_v9 = vpop.eup %12969  ;;  %v10889_v16 = vmul.f32 %v12968_v38, %v10873_v56 }
0x562c   :  { %v10888_v5 = vmul.f32 %v12970_v9, %v10872_v55 }
0x562d   :  { %v10897_v44 = vmul.f32 %v11355_v36, %v10889_v16 }
0x562e   :  { %v10896_v48 = vmul.f32 %v11355_v36, %v10888_v5 }
0x562f   :  { %v10905_v14 = vadd.f32 %v11356_v11, %v10897_v44 }
0x5630   :  { %v10904_v13 = vadd.f32 %v11356_v11, %v10896_v48 }
0x5632   :  { %12468 = vmatprep.mubr.msk.f32.mxu1 %vm180_vm0, %v10904_v13 }
0x5633   :  { %12469 = vmatmul.mubr.msk.f32.vlgmr.msra.gmra.mrb[128].mxu1 %vm180_vm0, %v10905_v14 }
0x5706   :  { %v12470_v63 = vpop.f32.mrb[128].mxu1 }
0x5707   :  { %v10995_v49 = vadd.f32 %v12470_v63, %v11357_v22  ;;  %v10989_v34 = vpop.f32.mrb[129].mxu1 }
0x5708   :  { %v10990_v50 = vadd.f32 %v11357_v22, %v10989_v34 }
0x5709   :  { %10999 = vst [vmem:[%s11046_s10 + $0x8] sm:$0xff] %v10995_v49 }
0x570a   :  { %10998 = vst [vmem:[%s11046_s10] sm:$0xff] %v10990_v50 }

</bundles_post_ra>
